<compile_context>
chip_gen: v7x
topology: tpu7x:2x2x1
jax: 0.10.0
libtpu: 0.0.40
codegen_flags: <defaults>
</compile_context>

<pallas_src>
import functools
import numpy as np
import jax
import jax.numpy as jnp
from jax.experimental import pallas as pl
from jax.experimental.pallas import tpu as pltpu

LRELU_SLOPE = 0.2                      # nn.LeakyReLU(0.2)


def _default_vmem_limit():
    """64 MiB on 128-MiB-VMEM chips (v5e/v6e), 32 MiB on v7x (64 MiB/TC)."""
    try:
        cap = int(pltpu.get_tpu_info().vmem_capacity_bytes)
    except Exception:
        cap = 128 * 1024 * 1024
    return max(32 * 1024 * 1024, min(64 * 1024 * 1024, cap // 2))


VMEM_LIMIT_BYTES = _default_vmem_limit()
_VMEM_BUDGET = (VMEM_LIMIT_BYTES * 3) // 5      # headroom below the hard cap


def _lrelu(x, slope=LRELU_SLOPE):
    return jnp.where(x >= 0, x, x * slope)


def _pick_tn(cout):
    """Output-channel tile: lane-dense (multiple of 128) when possible."""
    if cout >= 512 and cout % 256 == 0:
        return 256
    if cout % 128 == 0:
        return 128
    return cout                         # full dim (small test channels etc.)


def _cin_chunk(cin):
    """In-kernel reduction chunk over input channels (bounds dot operands)."""
    if cin > 512 and cin % 512 == 0:
        return 512
    if cin > 512 and cin % 256 == 0:
        return 256
    return cin


def _rows_per_step(k, ho, wo, wp, cin, cin_chunk, tn, has_residual, batched):
    """Output rows per grid step, chosen against a VMEM estimate so the bands
    can grow on the memory-bound early layers (amortizes per-step overhead and
    halo re-reads) while staying under the scoped-VMEM budget."""
    cap = 32 if batched else 8          # per-row fallback also unrolls over r

    def vmem_est(r):
        b_in = 2 * (r + k - 1) * wp * cin * 2            # bulk+halos, 2-buf bf16
        b_w = 2 * k * k * cin * tn * 2                   # weights, 2-buf bf16
        b_out = 2 * r * wo * tn * 2                      # output, 2-buf bf16
        b_res = 2 * r * wo * tn * 2 if has_residual else 0
        b_scr = (r + k - 1) * wp * cin_chunk * 2 + 2 * r * wo * tn * 4
        return b_in + b_w + b_out + b_res + b_scr

    r = min(cap, ho)
    while r > 1 and (ho % r or vmem_est(r) > _VMEM_BUDGET):
        r -= 1
    return r


# ----------------------------------------------------------------------------
# Conv2dBlock kernel: direct (no im2col) kxk conv on a row band, fused
# bias + optional act-first leaky-relu + optional residual add.
# ----------------------------------------------------------------------------
def _conv_kernel(*refs, k, r_rows, wo, cin, cin_chunk, act_first,
                 has_residual, batched):
    # refs: bulk rows (1,R,Wp,Cin), (k-1) halo rows (1,1,Wp,Cin),
    #       w (k*k,Cin,tn) bf16, b (1,tn) f32, [res (1,R,Wo,tn) bf16],
    #       out (1,R,Wo,tn) bf16
    bulk = refs[0]
    extras = refs[1:k]
    w_ref = refs[k]
    b_ref = refs[k + 1]
    res_ref = refs[k + 2] if has_residual else None
    o_ref = refs[-1]
    tn = o_ref.shape[-1]
    n_chunks = cin // cin_chunk
    bias = b_ref[...].astype(jnp.float32)                       # (1, tn)

    def staged_band(c):
        # Load + (optionally) activate every row of the band exactly ONCE per
        # cin-chunk, staying in bf16 (hoisted out of the tap loops).
        if n_chunks == 1:
            parts = [bulk[0]] + [e[0] for e in extras]
        else:
            sl = pl.ds(c * cin_chunk, cin_chunk)
            parts = [bulk[0, :, :, sl]] + [e[0, :, :, sl] for e in extras]
        band = parts[0] if len(parts) == 1 else jnp.concatenate(parts, axis=0)
        if act_first:                        # Conv2dBlock(activation_first)
            band = _lrelu(band)              # bf16 native leaky-relu
        return band                          # (r+k-1, Wp, chunk) bf16

    def w_tap(dh, dw, c):
        if n_chunks == 1:
            return w_ref[dh * k + dw]                            # (Cin, tn)
        return w_ref[dh * k + dw, pl.ds(c * cin_chunk, cin_chunk), :]

    if batched:
        # One tall dot per (c, dh, dw): M = r*Wo keeps the 256-wide MXU busy
        # on the deep layers with small spatial maps.
        acc = jnp.zeros((r_rows * wo, tn), jnp.float32)
        for c in range(n_chunks):
            band = staged_band(c)
            for dh in range(k):
                rows_dh = band[dh:dh + r_rows]                   # (r, Wp, ch)
                for dw in range(k):
                    win = rows_dh[:, dw:dw + wo, :].reshape(r_rows * wo,
                                                            cin_chunk)
                    acc = acc + jnp.dot(win, w_tap(dh, dw, c),
                                        preferred_element_type=jnp.float32)
        acc = acc + bias
        if has_residual:                     # ActFirstResBlock shortcut add
            acc = acc + res_ref[0].astype(jnp.float32).reshape(r_rows * wo, tn)
        o_ref[0] = acc.reshape(r_rows, wo, tn).astype(o_ref.dtype)
    else:
        # Per-row fallback (only when Wo is not a multiple of 8, i.e. the
        # smallest deep maps); still benefits from the staged band.
        accs = [jnp.zeros((wo, tn), jnp.float32) for _ in range(r_rows)]
        for c in range(n_chunks):
            band = staged_band(c)
            for dh in range(k):
                for dw in range(k):
                    w_t = w_tap(dh, dw, c)
                    for rr in range(r_rows):
                        win = band[rr + dh, dw:dw + wo, :]
                        accs[rr] = accs[rr] + jnp.dot(
                            win, w_t, preferred_element_type=jnp.float32)
        for rr in range(r_rows):
            a = accs[rr] + bias
            if has_residual:
                a = a + res_ref[0, rr].astype(jnp.float32)
            o_ref[0, rr] = a.astype(o_ref.dtype)


def conv_block_fwd(x, p, residual=None):
    """Conv2dBlock: (optional lrelu-first) -> reflect pad -> conv + bias
    [+ fused residual].  x: (N,H,W,Cin) bf16."""
    k, pad = p['k'], p['pad']
    if pad > 0:
        # TODO(synk): reflect pad could be folded into the kernel (shifted
        # border columns + reflected halo index maps) to save one HBM pass.
        xp = jnp.pad(x, ((0, 0), (pad, pad), (pad, pad), (0, 0)), mode='reflect')
    else:
        xp = x
    N, Hp, Wp, Cin = xp.shape
    Ho, Wo = Hp - k + 1, Wp - k + 1
    Cout = p['w'].shape[-1]
    tn = _pick_tn(Cout)
    jn = Cout // tn
    cin_chunk = _cin_chunk(Cin)
    batched = (Wo % 8 == 0)              # sublane-trivial row collapse
    has_res = residual is not None
    r = _rows_per_step(k, Ho, Wo, Wp, Cin, cin_chunk, tn, has_res, batched)
    hb = Ho // r

    in_specs = [pl.BlockSpec((1, r, Wp, Cin), lambda j, n, h: (n, h, 0, 0))]
    for dr in range(k - 1):     # halo rows below the bulk band
        in_specs.append(pl.BlockSpec(
            (1, 1, Wp, Cin),
            (lambda j, n, h, dr=dr: (n, h * r + r + dr, 0, 0))))
    in_specs += [
        pl.BlockSpec((k * k, Cin, tn), lambda j, n, h: (0, 0, j)),
        pl.BlockSpec((1, tn), lambda j, n, h: (0, j)),
    ]
    inputs = [xp] * k + [p['w'], p['b']]
    if has_res:
        in_specs.append(pl.BlockSpec((1, r, Wo, tn),
                                     lambda j, n, h: (n, h, 0, j)))
        inputs.append(residual)

    kernel = functools.partial(
        _conv_kernel, k=k, r_rows=r, wo=Wo, cin=Cin, cin_chunk=cin_chunk,
        act_first=p['act_first'], has_residual=has_res, batched=batched)

    out = pl.pallas_call(
        kernel,
        out_shape=jax.ShapeDtypeStruct((N, Ho, Wo, Cout), jnp.bfloat16),
        grid=(jn, N, hb),                       # Cout tiles outermost: weight
        in_specs=in_specs,                      # block stays VMEM-resident
        out_specs=pl.BlockSpec((1, r, Wo, tn), lambda j, n, h: (n, h, 0, j)),
        compiler_params=pltpu.CompilerParams(
            dimension_semantics=("parallel", "parallel", "parallel"),
            vmem_limit_bytes=VMEM_LIMIT_BYTES),
    )(*inputs)
    return out


def res_block_fwd(x, p):
    """ActFirstResBlock: out = shortcut(x) + conv_1(conv_0(x))."""
    if p['learned_shortcut']:
        x_s = conv_block_fwd(x, p['conv_s'])
    else:
        x_s = x
    dx = conv_block_fwd(x, p['conv_0'])
    return conv_block_fwd(dx, p['conv_1'], residual=x_s)   # residual fused


# ----------------------------------------------------------------------------
# Fused ReflectionPad2d(1) + AvgPool2d(3, stride=2)
# ----------------------------------------------------------------------------
def _pool_kernel(e_bulk, e_last, od_bulk, od_last, o_ref, *, r_rows, wo):
    inv9 = 1.0 / 9.0

    def row(bulk, last, idx):
        if idx < 2 * r_rows:
            return bulk[0, idx].astype(jnp.float32)
        return last[0, 0].astype(jnp.float32)

    for rr in range(r_rows):
        acc = jnp.zeros((wo, o_ref.shape[-1]), jnp.float32)
        for dr in range(3):
            e = row(e_bulk, e_last, 2 * rr + dr)      # even cols  (We, C)
            od = row(od_bulk, od_last, 2 * rr + dr)   # odd cols   (Wod, C)
            acc = acc + e[0:wo, :] + e[1:wo + 1, :] + od[0:wo, :]
        o_ref[0, rr] = (acc * inv9).astype(o_ref.dtype)


def reflectpad1_avgpool3s2(x):
    """nn.ReflectionPad2d(1) -> nn.AvgPool2d(kernel_size=3, stride=2)."""
    # TODO(synk): the even/odd host-side strided slices (and the pad copy)
    # could be replaced by stride-2 pl.ds loads inside the kernel to cut the
    # pool's HBM traffic further.
    N, H, W, C = x.shape
    xp = jnp.pad(x, ((0, 0), (1, 1), (1, 1), (0, 0)), mode='reflect')
    Hp, Wp = H + 2, W + 2
    Ho = (Hp - 3) // 2 + 1
    Wo = (Wp - 3) // 2 + 1
    xe = xp[:, :, 0::2, :]                 # even columns (N, Hp, We, C)
    xo = xp[:, :, 1::2, :]                 # odd  columns (N, Hp, Wod, C)
    We, Wod = xe.shape[2], xo.shape[2]
    r = min(8, Ho)
    while r > 1 and Ho % r:
        r -= 1
    hb = Ho // r

    in_specs = [
        pl.BlockSpec((1, 2 * r, We, C), lambda n, h: (n, h, 0, 0)),
        pl.BlockSpec((1, 1, We, C), lambda n, h: (n, 2 * r * (h + 1), 0, 0)),
        pl.BlockSpec((1, 2 * r, Wod, C), lambda n, h: (n, h, 0, 0)),
        pl.BlockSpec((1, 1, Wod, C), lambda n, h: (n, 2 * r * (h + 1), 0, 0)),
    ]
    out = pl.pallas_call(
        functools.partial(_pool_kernel, r_rows=r, wo=Wo),
        out_shape=jax.ShapeDtypeStruct((N, Ho, Wo, C), x.dtype),
        grid=(N, hb),
        in_specs=in_specs,
        out_specs=pl.BlockSpec((1, r, Wo, C), lambda n, h: (n, h, 0, 0)),
        compiler_params=pltpu.CompilerParams(
            dimension_semantics=("parallel", "parallel"),
            vmem_limit_bytes=VMEM_LIMIT_BYTES),
    )(xe, xe, xo, xo)
    return out


# ----------------------------------------------------------------------------
# cnn_c head fused with the per-sample class gather:
#   out[b,h,w] = lrelu(feat[b,h,w,:]) . W[:, y[b]] + b[y[b]]
# (lane-dense-ish (N,Hf,Wf) output; no trailing size-1 lane dim)
# ----------------------------------------------------------------------------
def _head_kernel(f_ref, w_ref, b_ref, o_ref):
    a = _lrelu(f_ref[...].astype(jnp.float32))          # (1, Hf, Wf, C)
    w = w_ref[...].astype(jnp.float32)                  # (1, 1, 1, C)
    s = jnp.sum(a * w, axis=-1)                         # (1, Hf, Wf)
    o_ref[...] = s + b_ref[...]                         # bias (1,1,1)


def class_head_fwd(feat, p, y):
    N, Hf, Wf, C = feat.shape
    w_sel = jnp.take(p['w'], y, axis=1)                 # (C, N) bf16
    w_sel = jnp.transpose(w_sel, (1, 0)).reshape(N, 1, 1, C)
    b_sel = jnp.take(p['b'], y, axis=0).reshape(N, 1, 1).astype(jnp.float32)
    out = pl.pallas_call(
        _head_kernel,
        out_shape=jax.ShapeDtypeStruct((N, Hf, Wf), jnp.float32),
        grid=(N,),
        in_specs=[pl.BlockSpec((1, Hf, Wf, C), lambda n: (n, 0, 0, 0)),
                  pl.BlockSpec((1, 1, 1, C), lambda n: (n, 0, 0, 0)),
                  pl.BlockSpec((1, 1, 1), lambda n: (n, 0, 0))],
        out_specs=pl.BlockSpec((1, Hf, Wf), lambda n: (n, 0, 0)),
        compiler_params=pltpu.CompilerParams(
            dimension_semantics=("parallel",),
            vmem_limit_bytes=VMEM_LIMIT_BYTES),
    )(feat, w_sel, b_sel)
    return out                                          # (N, Hf, Wf)


# ----------------------------------------------------------------------------
# Deterministic parameter construction (shapes follow Discriminator.__init__)
# ----------------------------------------------------------------------------
def init_conv_block(key, cin, cout, k, pad, act_first=False, use_bias=True):
    kw, kb = jax.random.split(key)
    fan_in = k * k * cin
    w = (jax.random.normal(kw, (k * k, cin, cout), jnp.float32)
         / np.sqrt(fan_in)).astype(jnp.bfloat16)
    if use_bias:
        b = jax.random.normal(kb, (cout,), jnp.float32) * 0.01
    else:
        b = jnp.zeros((cout,), jnp.float32)
    return dict(w=w, b=b.reshape(1, cout).astype(jnp.float32),
                k=k, pad=pad, act_first=act_first)


def init_res_block(key, fin, fout):
    fhid = max(fin, fout)                  # fhid=None in torch -> max(fin,fout)
    k0, k1, ks = jax.random.split(key, 3)
    p = dict(
        learned_shortcut=(fin != fout),
        conv_0=init_conv_block(k0, fin, fhid, 3, 1, act_first=True),
        conv_1=init_conv_block(k1, fhid, fout, 3, 1, act_first=True),
    )
    if p['learned_shortcut']:
        p['conv_s'] = init_conv_block(ks, fin, fout, 1, 0,
                                      act_first=False, use_bias=False)
    return p


def init_discriminator(key, n_layers=5, num_classes=150,
                       base_nf=64, max_nf=1024, in_ch=3):
    keys = jax.random.split(key, 2 * n_layers + 4)
    ki = iter(keys)
    layers = []
    nf = base_nf
    layers.append(('conv', init_conv_block(next(ki), in_ch, nf, 7, 3,
                                           act_first=False)))
    for _ in range(n_layers - 1):
        nf_out = int(min(nf * 2, max_nf))
        layers.append(('res', init_res_block(next(ki), nf, nf)))
        layers.append(('res', init_res_block(next(ki), nf, nf_out)))
        layers.append(('pool', None))
        nf = nf_out
    nf_out = int(min(nf * 2, max_nf))
    layers.append(('res', init_res_block(next(ki), nf, nf)))
    layers.append(('res', init_res_block(next(ki), nf, nf_out)))
    kcw, kcb = jax.random.split(next(ki))
    cnn_c = dict(
        w=(jax.random.normal(kcw, (nf_out, num_classes), jnp.float32)
           / np.sqrt(nf_out)).astype(jnp.bfloat16),
        b=jax.random.normal(kcb, (num_classes,), jnp.float32) * 0.01,
    )
    # TODO(synk): cnn_attr / fc heads are only used by get_attr(), not forward().
    return dict(cnn_f=layers, cnn_c=cnn_c, nf_out=nf_out)


# ----------------------------------------------------------------------------
# Discriminator.forward(x, y)
# ----------------------------------------------------------------------------
def discriminator_forward(params, x_nchw, y):
    x = jnp.transpose(x_nchw, (0, 2, 3, 1)).astype(jnp.bfloat16)   # NHWC bf16
    for kind, p in params['cnn_f']:
        if kind == 'conv':
            x = conv_block_fwd(x, p)
        elif kind == 'res':
            x = res_block_fwd(x, p)
        else:
            x = reflectpad1_avgpool3s2(x)
    feat = x                                                       # (N,Hf,Wf,C)
    out = class_head_fwd(feat, params['cnn_c'], y)                 # (N,Hf,Wf)
    feat_nchw = jnp.transpose(feat, (0, 3, 1, 2)).astype(jnp.float32)
    return out, feat_nchw


# ----------------------------------------------------------------------------
if __name__ == "__main__":
    key = jax.random.PRNGKey(0)
    kx, ky, kp = jax.random.split(key, 3)

    # Small config consistent with the module (structure identical, widths reduced)
    N, C, H, W = 2, 3, 16, 16
    n_layers, num_classes, base_nf, max_nf = 3, 16, 8, 64

    x = jax.random.normal(kx, (N, C, H, W), jnp.float32)
    y = jax.random.randint(ky, (N,), 0, num_classes)

    params = init_discriminator(kp, n_layers=n_layers, num_classes=num_classes,
                                base_nf=base_nf, max_nf=max_nf, in_ch=C)

    out, feat = discriminator_forward(params, x, y)
    jax.block_until_ready((out, feat))

    # Expected: 2 downsamples (16 -> 8 -> 4), final channels = min(2*32, 64) = 64
    assert out.shape == (N, 4, 4), out.shape
    assert feat.shape == (N, params['nf_out'], 4, 4), feat.shape
    assert jnp.all(jnp.isfinite(out)) and jnp.all(jnp.isfinite(feat))
    print("KERNEL_OK")
</pallas_src>

<mosaic_0001>
module attributes {stable_mosaic.version = 11 : i64} {
  func.func @_conv_kernel(%arg0: i32, %arg1: i32, %arg2: i32, %arg3: memref<1x16x22x3xbf16, #tpu.memory_space<vmem>>, %arg4: memref<1x1x22x3xbf16, #tpu.memory_space<vmem>>, %arg5: memref<1x1x22x3xbf16, #tpu.memory_space<vmem>>, %arg6: memref<1x1x22x3xbf16, #tpu.memory_space<vmem>>, %arg7: memref<1x1x22x3xbf16, #tpu.memory_space<vmem>>, %arg8: memref<1x1x22x3xbf16, #tpu.memory_space<vmem>>, %arg9: memref<1x1x22x3xbf16, #tpu.memory_space<vmem>>, %arg10: memref<49x3x8xbf16, #tpu.memory_space<vmem>>, %arg11: memref<1x8xf32, #tpu.memory_space<vmem>>, %arg12: memref<1x16x16x8xbf16, #tpu.memory_space<vmem>>) attributes {dimension_semantics = [#tpu.dimension_semantics<parallel>, #tpu.dimension_semantics<parallel>, #tpu.dimension_semantics<parallel>], iteration_bounds = array<i64: 1, 2, 1>, scalar_prefetch = 0 : i64, scratch_operands = 0 : i64, tpu.core_type = #tpu.core_type<tc>, window_params = [{transform_indices = @transform_0, window_bounds = array<i64: 1, 16, 22, 3>}, {transform_indices = @transform_1, window_bounds = array<i64: 1, 1, 22, 3>}, {transform_indices = @transform_2, window_bounds = array<i64: 1, 1, 22, 3>}, {transform_indices = @transform_3, window_bounds = array<i64: 1, 1, 22, 3>}, {transform_indices = @transform_4, window_bounds = array<i64: 1, 1, 22, 3>}, {transform_indices = @transform_5, window_bounds = array<i64: 1, 1, 22, 3>}, {transform_indices = @transform_6, window_bounds = array<i64: 1, 1, 22, 3>}, {transform_indices = @transform_7, window_bounds = array<i64: 49, 3, 8>}, {transform_indices = @transform_8, window_bounds = array<i64: 1, 8>}, {transform_indices = @transform_9, window_bounds = array<i64: 1, 16, 16, 8>}]} {
    %c0 = arith.constant 0 : index
    %c0_0 = arith.constant 0 : index
    %0 = vector.load %arg11[%c0, %c0_0] : memref<1x8xf32, #tpu.memory_space<vmem>>, vector<1x8xf32>
    %cst = arith.constant 0.000000e+00 : f32
    %1 = vector.broadcast %cst : f32 to vector<256x8xf32>
    %c0_1 = arith.constant 0 : index
    %c0_2 = arith.constant 0 : index
    %c0_3 = arith.constant 0 : index
    %c0_4 = arith.constant 0 : index
    %2 = vector.load %arg3[%c0_1, %c0_2, %c0_3, %c0_4] : memref<1x16x22x3xbf16, #tpu.memory_space<vmem>>, vector<1x16x22x3xbf16>
    %3 = vector.shape_cast %2 : vector<1x16x22x3xbf16> to vector<16x22x3xbf16>
    %c0_5 = arith.constant 0 : index
    %c0_6 = arith.constant 0 : index
    %c0_7 = arith.constant 0 : index
    %c0_8 = arith.constant 0 : index
    %4 = vector.load %arg4[%c0_5, %c0_6, %c0_7, %c0_8] : memref<1x1x22x3xbf16, #tpu.memory_space<vmem>>, vector<1x1x22x3xbf16>
    %5 = vector.shape_cast %4 : vector<1x1x22x3xbf16> to vector<1x22x3xbf16>
    %c0_9 = arith.constant 0 : index
    %c0_10 = arith.constant 0 : index
    %c0_11 = arith.constant 0 : index
    %c0_12 = arith.constant 0 : index
    %6 = vector.load %arg5[%c0_9, %c0_10, %c0_11, %c0_12] : memref<1x1x22x3xbf16, #tpu.memory_space<vmem>>, vector<1x1x22x3xbf16>
    %7 = vector.shape_cast %6 : vector<1x1x22x3xbf16> to vector<1x22x3xbf16>
    %c0_13 = arith.constant 0 : index
    %c0_14 = arith.constant 0 : index
    %c0_15 = arith.constant 0 : index
    %c0_16 = arith.constant 0 : index
    %8 = vector.load %arg6[%c0_13, %c0_14, %c0_15, %c0_16] : memref<1x1x22x3xbf16, #tpu.memory_space<vmem>>, vector<1x1x22x3xbf16>
    %9 = vector.shape_cast %8 : vector<1x1x22x3xbf16> to vector<1x22x3xbf16>
    %c0_17 = arith.constant 0 : index
    %c0_18 = arith.constant 0 : index
    %c0_19 = arith.constant 0 : index
    %c0_20 = arith.constant 0 : index
    %10 = vector.load %arg7[%c0_17, %c0_18, %c0_19, %c0_20] : memref<1x1x22x3xbf16, #tpu.memory_space<vmem>>, vector<1x1x22x3xbf16>
    %11 = vector.shape_cast %10 : vector<1x1x22x3xbf16> to vector<1x22x3xbf16>
    %c0_21 = arith.constant 0 : index
    %c0_22 = arith.constant 0 : index
    %c0_23 = arith.constant 0 : index
    %c0_24 = arith.constant 0 : index
    %12 = vector.load %arg8[%c0_21, %c0_22, %c0_23, %c0_24] : memref<1x1x22x3xbf16, #tpu.memory_space<vmem>>, vector<1x1x22x3xbf16>
    %13 = vector.shape_cast %12 : vector<1x1x22x3xbf16> to vector<1x22x3xbf16>
    %c0_25 = arith.constant 0 : index
    %c0_26 = arith.constant 0 : index
    %c0_27 = arith.constant 0 : index
    %c0_28 = arith.constant 0 : index
    %14 = vector.load %arg9[%c0_25, %c0_26, %c0_27, %c0_28] : memref<1x1x22x3xbf16, #tpu.memory_space<vmem>>, vector<1x1x22x3xbf16>
    %15 = vector.shape_cast %14 : vector<1x1x22x3xbf16> to vector<1x22x3xbf16>
    %16 = tpu.concatenate %3, %5, %7, %9, %11, %13, %15 in 0 : vector<16x22x3xbf16>, vector<1x22x3xbf16>, vector<1x22x3xbf16>, vector<1x22x3xbf16>, vector<1x22x3xbf16>, vector<1x22x3xbf16>, vector<1x22x3xbf16> -> vector<22x22x3xbf16>
    %17 = vector.extract_strided_slice %16 {offsets = [0, 0, 0], sizes = [16, 22, 3], strides = [1, 1, 1]} : vector<22x22x3xbf16> to vector<16x22x3xbf16>
    %18 = vector.extract_strided_slice %17 {offsets = [0, 0, 0], sizes = [16, 16, 3], strides = [1, 1, 1]} : vector<16x22x3xbf16> to vector<16x16x3xbf16>
    %19 = vector.shape_cast %18 : vector<16x16x3xbf16> to vector<256x3xbf16>
    %c0_29 = arith.constant 0 : index
    %c0_30 = arith.constant 0 : index
    %c0_31 = arith.constant 0 : index
    %20 = vector.load %arg10[%c0_29, %c0_30, %c0_31] : memref<49x3x8xbf16, #tpu.memory_space<vmem>>, vector<1x3x8xbf16>
    %21 = vector.shape_cast %20 : vector<1x3x8xbf16> to vector<3x8xbf16>
    %cst_32 = arith.constant dense<0.000000e+00> : vector<256x8xf32>
    %22 = tpu.matmul %19, %21, %cst_32 {dimension_numbers = #tpu.dot_dimension_numbers<[1], [0], [0], [1], [0, 0, 1, 1], [], []>} : vector<256x3xbf16>, vector<3x8xbf16>, vector<256x8xf32> -> vector<256x8xf32>
    %23 = arith.addf %1, %22 : vector<256x8xf32>
    %24 = vector.extract_strided_slice %17 {offsets = [0, 1, 0], sizes = [16, 16, 3], strides = [1, 1, 1]} : vector<16x22x3xbf16> to vector<16x16x3xbf16>
    %25 = vector.shape_cast %24 : vector<16x16x3xbf16> to vector<256x3xbf16>
    %c1 = arith.constant 1 : index
    %c0_33 = arith.constant 0 : index
    %c0_34 = arith.constant 0 : index
    %26 = vector.load %arg10[%c1, %c0_33, %c0_34] : memref<49x3x8xbf16, #tpu.memory_space<vmem>>, vector<1x3x8xbf16>
    %27 = vector.shape_cast %26 : vector<1x3x8xbf16> to vector<3x8xbf16>
    %cst_35 = arith.constant dense<0.000000e+00> : vector<256x8xf32>
    %28 = tpu.matmul %25, %27, %cst_35 {dimension_numbers = #tpu.dot_dimension_numbers<[1], [0], [0], [1], [0, 0, 1, 1], [], []>} : vector<256x3xbf16>, vector<3x8xbf16>, vector<256x8xf32> -> vector<256x8xf32>
    %29 = arith.addf %23, %28 : vector<256x8xf32>
    %30 = vector.extract_strided_slice %17 {offsets = [0, 2, 0], sizes = [16, 16, 3], strides = [1, 1, 1]} : vector<16x22x3xbf16> to vector<16x16x3xbf16>
    %31 = vector.shape_cast %30 : vector<16x16x3xbf16> to vector<256x3xbf16>
    %c2 = arith.constant 2 : index
    %c0_36 = arith.constant 0 : index
    %c0_37 = arith.constant 0 : index
    %32 = vector.load %arg10[%c2, %c0_36, %c0_37] : memref<49x3x8xbf16, #tpu.memory_space<vmem>>, vector<1x3x8xbf16>
    %33 = vector.shape_cast %32 : vector<1x3x8xbf16> to vector<3x8xbf16>
    %cst_38 = arith.constant dense<0.000000e+00> : vector<256x8xf32>
    %34 = tpu.matmul %31, %33, %cst_38 {dimension_numbers = #tpu.dot_dimension_numbers<[1], [0], [0], [1], [0, 0, 1, 1], [], []>} : vector<256x3xbf16>, vector<3x8xbf16>, vector<256x8xf32> -> vector<256x8xf32>
    %35 = arith.addf %29, %34 : vector<256x8xf32>
    %36 = vector.extract_strided_slice %17 {offsets = [0, 3, 0], sizes = [16, 16, 3], strides = [1, 1, 1]} : vector<16x22x3xbf16> to vector<16x16x3xbf16>
    %37 = vector.shape_cast %36 : vector<16x16x3xbf16> to vector<256x3xbf16>
    %c3 = arith.constant 3 : index
    %c0_39 = arith.constant 0 : index
    %c0_40 = arith.constant 0 : index
    %38 = vector.load %arg10[%c3, %c0_39, %c0_40] : memref<49x3x8xbf16, #tpu.memory_space<vmem>>, vector<1x3x8xbf16>
    %39 = vector.shape_cast %38 : vector<1x3x8xbf16> to vector<3x8xbf16>
    %cst_41 = arith.constant dense<0.000000e+00> : vector<256x8xf32>
    %40 = tpu.matmul %37, %39, %cst_41 {dimension_numbers = #tpu.dot_dimension_numbers<[1], [0], [0], [1], [0, 0, 1, 1], [], []>} : vector<256x3xbf16>, vector<3x8xbf16>, vector<256x8xf32> -> vector<256x8xf32>
    %41 = arith.addf %35, %40 : vector<256x8xf32>
    %42 = vector.extract_strided_slice %17 {offsets = [0, 4, 0], sizes = [16, 16, 3], strides = [1, 1, 1]} : vector<16x22x3xbf16> to vector<16x16x3xbf16>
    %43 = vector.shape_cast %42 : vector<16x16x3xbf16> to vector<256x3xbf16>
    %c4 = arith.constant 4 : index
    %c0_42 = arith.constant 0 : index
    %c0_43 = arith.constant 0 : index
    %44 = vector.load %arg10[%c4, %c0_42, %c0_43] : memref<49x3x8xbf16, #tpu.memory_space<vmem>>, vector<1x3x8xbf16>
    %45 = vector.shape_cast %44 : vector<1x3x8xbf16> to vector<3x8xbf16>
    %cst_44 = arith.constant dense<0.000000e+00> : vector<256x8xf32>
    %46 = tpu.matmul %43, %45, %cst_44 {dimension_numbers = #tpu.dot_dimension_numbers<[1], [0], [0], [1], [0, 0, 1, 1], [], []>} : vector<256x3xbf16>, vector<3x8xbf16>, vector<256x8xf32> -> vector<256x8xf32>
    %47 = arith.addf %41, %46 : vector<256x8xf32>
    %48 = vector.extract_strided_slice %17 {offsets = [0, 5, 0], sizes = [16, 16, 3], strides = [1, 1, 1]} : vector<16x22x3xbf16> to vector<16x16x3xbf16>
    %49 = vector.shape_cast %48 : vector<16x16x3xbf16> to vector<256x3xbf16>
    %c5 = arith.constant 5 : index
    %c0_45 = arith.constant 0 : index
    %c0_46 = arith.constant 0 : index
    %50 = vector.load %arg10[%c5, %c0_45, %c0_46] : memref<49x3x8xbf16, #tpu.memory_space<vmem>>, vector<1x3x8xbf16>
    %51 = vector.shape_cast %50 : vector<1x3x8xbf16> to vector<3x8xbf16>
    %cst_47 = arith.constant dense<0.000000e+00> : vector<256x8xf32>
    %52 = tpu.matmul %49, %51, %cst_47 {dimension_numbers = #tpu.dot_dimension_numbers<[1], [0], [0], [1], [0, 0, 1, 1], [], []>} : vector<256x3xbf16>, vector<3x8xbf16>, vector<256x8xf32> -> vector<256x8xf32>
    %53 = arith.addf %47, %52 : vector<256x8xf32>
    %54 = vector.extract_strided_slice %17 {offsets = [0, 6, 0], sizes = [16, 16, 3], strides = [1, 1, 1]} : vector<16x22x3xbf16> to vector<16x16x3xbf16>
    %55 = vector.shape_cast %54 : vector<16x16x3xbf16> to vector<256x3xbf16>
    %c6 = arith.constant 6 : index
    %c0_48 = arith.constant 0 : index
    %c0_49 = arith.constant 0 : index
    %56 = vector.load %arg10[%c6, %c0_48, %c0_49] : memref<49x3x8xbf16, #tpu.memory_space<vmem>>, vector<1x3x8xbf16>
    %57 = vector.shape_cast %56 : vector<1x3x8xbf16> to vector<3x8xbf16>
    %cst_50 = arith.constant dense<0.000000e+00> : vector<256x8xf32>
    %58 = tpu.matmul %55, %57, %cst_50 {dimension_numbers = #tpu.dot_dimension_numbers<[1], [0], [0], [1], [0, 0, 1, 1], [], []>} : vector<256x3xbf16>, vector<3x8xbf16>, vector<256x8xf32> -> vector<256x8xf32>
    %59 = arith.addf %53, %58 : vector<256x8xf32>
    %60 = vector.extract_strided_slice %16 {offsets = [1, 0, 0], sizes = [16, 22, 3], strides = [1, 1, 1]} : vector<22x22x3xbf16> to vector<16x22x3xbf16>
    %61 = vector.extract_strided_slice %60 {offsets = [0, 0, 0], sizes = [16, 16, 3], strides = [1, 1, 1]} : vector<16x22x3xbf16> to vector<16x16x3xbf16>
    %62 = vector.shape_cast %61 : vector<16x16x3xbf16> to vector<256x3xbf16>
    %c7 = arith.constant 7 : index
    %c0_51 = arith.constant 0 : index
    %c0_52 = arith.constant 0 : index
    %63 = vector.load %arg10[%c7, %c0_51, %c0_52] : memref<49x3x8xbf16, #tpu.memory_space<vmem>>, vector<1x3x8xbf16>
    %64 = vector.shape_cast %63 : vector<1x3x8xbf16> to vector<3x8xbf16>
    %cst_53 = arith.constant dense<0.000000e+00> : vector<256x8xf32>
    %65 = tpu.matmul %62, %64, %cst_53 {dimension_numbers = #tpu.dot_dimension_numbers<[1], [0], [0], [1], [0, 0, 1, 1], [], []>} : vector<256x3xbf16>, vector<3x8xbf16>, vector<256x8xf32> -> vector<256x8xf32>
    %66 = arith.addf %59, %65 : vector<256x8xf32>
    %67 = vector.extract_strided_slice %60 {offsets = [0, 1, 0], sizes = [16, 16, 3], strides = [1, 1, 1]} : vector<16x22x3xbf16> to vector<16x16x3xbf16>
    %68 = vector.shape_cast %67 : vector<16x16x3xbf16> to vector<256x3xbf16>
    %c8 = arith.constant 8 : index
    %c0_54 = arith.constant 0 : index
    %c0_55 = arith.constant 0 : index
    %69 = vector.load %arg10[%c8, %c0_54, %c0_55] : memref<49x3x8xbf16, #tpu.memory_space<vmem>>, vector<1x3x8xbf16>
    %70 = vector.shape_cast %69 : vector<1x3x8xbf16> to vector<3x8xbf16>
    %cst_56 = arith.constant dense<0.000000e+00> : vector<256x8xf32>
    %71 = tpu.matmul %68, %70, %cst_56 {dimension_numbers = #tpu.dot_dimension_numbers<[1], [0], [0], [1], [0, 0, 1, 1], [], []>} : vector<256x3xbf16>, vector<3x8xbf16>, vector<256x8xf32> -> vector<256x8xf32>
    %72 = arith.addf %66, %71 : vector<256x8xf32>
    %73 = vector.extract_strided_slice %60 {offsets = [0, 2, 0], sizes = [16, 16, 3], strides = [1, 1, 1]} : vector<16x22x3xbf16> to vector<16x16x3xbf16>
    %74 = vector.shape_cast %73 : vector<16x16x3xbf16> to vector<256x3xbf16>
    %c9 = arith.constant 9 : index
    %c0_57 = arith.constant 0 : index
    %c0_58 = arith.constant 0 : index
    %75 = vector.load %arg10[%c9, %c0_57, %c0_58] : memref<49x3x8xbf16, #tpu.memory_space<vmem>>, vector<1x3x8xbf16>
    %76 = vector.shape_cast %75 : vector<1x3x8xbf16> to vector<3x8xbf16>
    %cst_59 = arith.constant dense<0.000000e+00> : vector<256x8xf32>
    %77 = tpu.matmul %74, %76, %cst_59 {dimension_numbers = #tpu.dot_dimension_numbers<[1], [0], [0], [1], [0, 0, 1, 1], [], []>} : vector<256x3xbf16>, vector<3x8xbf16>, vector<256x8xf32> -> vector<256x8xf32>
    %78 = arith.addf %72, %77 : vector<256x8xf32>
    %79 = vector.extract_strided_slice %60 {offsets = [0, 3, 0], sizes = [16, 16, 3], strides = [1, 1, 1]} : vector<16x22x3xbf16> to vector<16x16x3xbf16>
    %80 = vector.shape_cast %79 : vector<16x16x3xbf16> to vector<256x3xbf16>
    %c10 = arith.constant 10 : index
    %c0_60 = arith.constant 0 : index
    %c0_61 = arith.constant 0 : index
    %81 = vector.load %arg10[%c10, %c0_60, %c0_61] : memref<49x3x8xbf16, #tpu.memory_space<vmem>>, vector<1x3x8xbf16>
    %82 = vector.shape_cast %81 : vector<1x3x8xbf16> to vector<3x8xbf16>
    %cst_62 = arith.constant dense<0.000000e+00> : vector<256x8xf32>
    %83 = tpu.matmul %80, %82, %cst_62 {dimension_numbers = #tpu.dot_dimension_numbers<[1], [0], [0], [1], [0, 0, 1, 1], [], []>} : vector<256x3xbf16>, vector<3x8xbf16>, vector<256x8xf32> -> vector<256x8xf32>
    %84 = arith.addf %78, %83 : vector<256x8xf32>
    %85 = vector.extract_strided_slice %60 {offsets = [0, 4, 0], sizes = [16, 16, 3], strides = [1, 1, 1]} : vector<16x22x3xbf16> to vector<16x16x3xbf16>
    %86 = vector.shape_cast %85 : vector<16x16x3xbf16> to vector<256x3xbf16>
    %c11 = arith.constant 11 : index
    %c0_63 = arith.constant 0 : index
    %c0_64 = arith.constant 0 : index
    %87 = vector.load %arg10[%c11, %c0_63, %c0_64] : memref<49x3x8xbf16, #tpu.memory_space<vmem>>, vector<1x3x8xbf16>
    %88 = vector.shape_cast %87 : vector<1x3x8xbf16> to vector<3x8xbf16>
    %cst_65 = arith.constant dense<0.000000e+00> : vector<256x8xf32>
    %89 = tpu.matmul %86, %88, %cst_65 {dimension_numbers = #tpu.dot_dimension_numbers<[1], [0], [0], [1], [0, 0, 1, 1], [], []>} : vector<256x3xbf16>, vector<3x8xbf16>, vector<256x8xf32> -> vector<256x8xf32>
    %90 = arith.addf %84, %89 : vector<256x8xf32>
    %91 = vector.extract_strided_slice %60 {offsets = [0, 5, 0], sizes = [16, 16, 3], strides = [1, 1, 1]} : vector<16x22x3xbf16> to vector<16x16x3xbf16>
    %92 = vector.shape_cast %91 : vector<16x16x3xbf16> to vector<256x3xbf16>
    %c12 = arith.constant 12 : index
    %c0_66 = arith.constant 0 : index
    %c0_67 = arith.constant 0 : index
    %93 = vector.load %arg10[%c12, %c0_66, %c0_67] : memref<49x3x8xbf16, #tpu.memory_space<vmem>>, vector<1x3x8xbf16>
    %94 = vector.shape_cast %93 : vector<1x3x8xbf16> to vector<3x8xbf16>
    %cst_68 = arith.constant dense<0.000000e+00> : vector<256x8xf32>
    %95 = tpu.matmul %92, %94, %cst_68 {dimension_numbers = #tpu.dot_dimension_numbers<[1], [0], [0], [1], [0, 0, 1, 1], [], []>} : vector<256x3xbf16>, vector<3x8xbf16>, vector<256x8xf32> -> vector<256x8xf32>
    %96 = arith.addf %90, %95 : vector<256x8xf32>
    %97 = vector.extract_strided_slice %60 {offsets = [0, 6, 0], sizes = [16, 16, 3], strides = [1, 1, 1]} : vector<16x22x3xbf16> to vector<16x16x3xbf16>
    %98 = vector.shape_cast %97 : vector<16x16x3xbf16> to vector<256x3xbf16>
    %c13 = arith.constant 13 : index
    %c0_69 = arith.constant 0 : index
    %c0_70 = arith.constant 0 : index
    %99 = vector.load %arg10[%c13, %c0_69, %c0_70] : memref<49x3x8xbf16, #tpu.memory_space<vmem>>, vector<1x3x8xbf16>
    %100 = vector.shape_cast %99 : vector<1x3x8xbf16> to vector<3x8xbf16>
    %cst_71 = arith.constant dense<0.000000e+00> : vector<256x8xf32>
    %101 = tpu.matmul %98, %100, %cst_71 {dimension_numbers = #tpu.dot_dimension_numbers<[1], [0], [0], [1], [0, 0, 1, 1], [], []>} : vector<256x3xbf16>, vector<3x8xbf16>, vector<256x8xf32> -> vector<256x8xf32>
    %102 = arith.addf %96, %101 : vector<256x8xf32>
    %103 = vector.extract_strided_slice %16 {offsets = [2, 0, 0], sizes = [16, 22, 3], strides = [1, 1, 1]} : vector<22x22x3xbf16> to vector<16x22x3xbf16>
    %104 = vector.extract_strided_slice %103 {offsets = [0, 0, 0], sizes = [16, 16, 3], strides = [1, 1, 1]} : vector<16x22x3xbf16> to vector<16x16x3xbf16>
    %105 = vector.shape_cast %104 : vector<16x16x3xbf16> to vector<256x3xbf16>
    %c14 = arith.constant 14 : index
    %c0_72 = arith.constant 0 : index
    %c0_73 = arith.constant 0 : index
    %106 = vector.load %arg10[%c14, %c0_72, %c0_73] : memref<49x3x8xbf16, #tpu.memory_space<vmem>>, vector<1x3x8xbf16>
    %107 = vector.shape_cast %106 : vector<1x3x8xbf16> to vector<3x8xbf16>
    %cst_74 = arith.constant dense<0.000000e+00> : vector<256x8xf32>
    %108 = tpu.matmul %105, %107, %cst_74 {dimension_numbers = #tpu.dot_dimension_numbers<[1], [0], [0], [1], [0, 0, 1, 1], [], []>} : vector<256x3xbf16>, vector<3x8xbf16>, vector<256x8xf32> -> vector<256x8xf32>
    %109 = arith.addf %102, %108 : vector<256x8xf32>
    %110 = vector.extract_strided_slice %103 {offsets = [0, 1, 0], sizes = [16, 16, 3], strides = [1, 1, 1]} : vector<16x22x3xbf16> to vector<16x16x3xbf16>
    %111 = vector.shape_cast %110 : vector<16x16x3xbf16> to vector<256x3xbf16>
    %c15 = arith.constant 15 : index
    %c0_75 = arith.constant 0 : index
    %c0_76 = arith.constant 0 : index
    %112 = vector.load %arg10[%c15, %c0_75, %c0_76] : memref<49x3x8xbf16, #tpu.memory_space<vmem>>, vector<1x3x8xbf16>
    %113 = vector.shape_cast %112 : vector<1x3x8xbf16> to vector<3x8xbf16>
    %cst_77 = arith.constant dense<0.000000e+00> : vector<256x8xf32>
    %114 = tpu.matmul %111, %113, %cst_77 {dimension_numbers = #tpu.dot_dimension_numbers<[1], [0], [0], [1], [0, 0, 1, 1], [], []>} : vector<256x3xbf16>, vector<3x8xbf16>, vector<256x8xf32> -> vector<256x8xf32>
    %115 = arith.addf %109, %114 : vector<256x8xf32>
    %116 = vector.extract_strided_slice %103 {offsets = [0, 2, 0], sizes = [16, 16, 3], strides = [1, 1, 1]} : vector<16x22x3xbf16> to vector<16x16x3xbf16>
    %117 = vector.shape_cast %116 : vector<16x16x3xbf16> to vector<256x3xbf16>
    %c16 = arith.constant 16 : index
    %c0_78 = arith.constant 0 : index
    %c0_79 = arith.constant 0 : index
    %118 = vector.load %arg10[%c16, %c0_78, %c0_79] : memref<49x3x8xbf16, #tpu.memory_space<vmem>>, vector<1x3x8xbf16>
    %119 = vector.shape_cast %118 : vector<1x3x8xbf16> to vector<3x8xbf16>
    %cst_80 = arith.constant dense<0.000000e+00> : vector<256x8xf32>
    %120 = tpu.matmul %117, %119, %cst_80 {dimension_numbers = #tpu.dot_dimension_numbers<[1], [0], [0], [1], [0, 0, 1, 1], [], []>} : vector<256x3xbf16>, vector<3x8xbf16>, vector<256x8xf32> -> vector<256x8xf32>
    %121 = arith.addf %115, %120 : vector<256x8xf32>
    %122 = vector.extract_strided_slice %103 {offsets = [0, 3, 0], sizes = [16, 16, 3], strides = [1, 1, 1]} : vector<16x22x3xbf16> to vector<16x16x3xbf16>
    %123 = vector.shape_cast %122 : vector<16x16x3xbf16> to vector<256x3xbf16>
    %c17 = arith.constant 17 : index
    %c0_81 = arith.constant 0 : index
    %c0_82 = arith.constant 0 : index
    %124 = vector.load %arg10[%c17, %c0_81, %c0_82] : memref<49x3x8xbf16, #tpu.memory_space<vmem>>, vector<1x3x8xbf16>
    %125 = vector.shape_cast %124 : vector<1x3x8xbf16> to vector<3x8xbf16>
    %cst_83 = arith.constant dense<0.000000e+00> : vector<256x8xf32>
    %126 = tpu.matmul %123, %125, %cst_83 {dimension_numbers = #tpu.dot_dimension_numbers<[1], [0], [0], [1], [0, 0, 1, 1], [], []>} : vector<256x3xbf16>, vector<3x8xbf16>, vector<256x8xf32> -> vector<256x8xf32>
    %127 = arith.addf %121, %126 : vector<256x8xf32>
    %128 = vector.extract_strided_slice %103 {offsets = [0, 4, 0], sizes = [16, 16, 3], strides = [1, 1, 1]} : vector<16x22x3xbf16> to vector<16x16x3xbf16>
    %129 = vector.shape_cast %128 : vector<16x16x3xbf16> to vector<256x3xbf16>
    %c18 = arith.constant 18 : index
    %c0_84 = arith.constant 0 : index
    %c0_85 = arith.constant 0 : index
    %130 = vector.load %arg10[%c18, %c0_84, %c0_85] : memref<49x3x8xbf16, #tpu.memory_space<vmem>>, vector<1x3x8xbf16>
    %131 = vector.shape_cast %130 : vector<1x3x8xbf16> to vector<3x8xbf16>
    %cst_86 = arith.constant dense<0.000000e+00> : vector<256x8xf32>
    %132 = tpu.matmul %129, %131, %cst_86 {dimension_numbers = #tpu.dot_dimension_numbers<[1], [0], [0], [1], [0, 0, 1, 1], [], []>} : vector<256x3xbf16>, vector<3x8xbf16>, vector<256x8xf32> -> vector<256x8xf32>
    %133 = arith.addf %127, %132 : vector<256x8xf32>
    %134 = vector.extract_strided_slice %103 {offsets = [0, 5, 0], sizes = [16, 16, 3], strides = [1, 1, 1]} : vector<16x22x3xbf16> to vector<16x16x3xbf16>
    %135 = vector.shape_cast %134 : vector<16x16x3xbf16> to vector<256x3xbf16>
    %c19 = arith.constant 19 : index
    %c0_87 = arith.constant 0 : index
    %c0_88 = arith.constant 0 : index
    %136 = vector.load %arg10[%c19, %c0_87, %c0_88] : memref<49x3x8xbf16, #tpu.memory_space<vmem>>, vector<1x3x8xbf16>
    %137 = vector.shape_cast %136 : vector<1x3x8xbf16> to vector<3x8xbf16>
    %cst_89 = arith.constant dense<0.000000e+00> : vector<256x8xf32>
    %138 = tpu.matmul %135, %137, %cst_89 {dimension_numbers = #tpu.dot_dimension_numbers<[1], [0], [0], [1], [0, 0, 1, 1], [], []>} : vector<256x3xbf16>, vector<3x8xbf16>, vector<256x8xf32> -> vector<256x8xf32>
    %139 = arith.addf %133, %138 : vector<256x8xf32>
    %140 = vector.extract_strided_slice %103 {offsets = [0, 6, 0], sizes = [16, 16, 3], strides = [1, 1, 1]} : vector<16x22x3xbf16> to vector<16x16x3xbf16>
    %141 = vector.shape_cast %140 : vector<16x16x3xbf16> to vector<256x3xbf16>
    %c20 = arith.constant 20 : index
    %c0_90 = arith.constant 0 : index
    %c0_91 = arith.constant 0 : index
    %142 = vector.load %arg10[%c20, %c0_90, %c0_91] : memref<49x3x8xbf16, #tpu.memory_space<vmem>>, vector<1x3x8xbf16>
    %143 = vector.shape_cast %142 : vector<1x3x8xbf16> to vector<3x8xbf16>
    %cst_92 = arith.constant dense<0.000000e+00> : vector<256x8xf32>
    %144 = tpu.matmul %141, %143, %cst_92 {dimension_numbers = #tpu.dot_dimension_numbers<[1], [0], [0], [1], [0, 0, 1, 1], [], []>} : vector<256x3xbf16>, vector<3x8xbf16>, vector<256x8xf32> -> vector<256x8xf32>
    %145 = arith.addf %139, %144 : vector<256x8xf32>
    %146 = vector.extract_strided_slice %16 {offsets = [3, 0, 0], sizes = [16, 22, 3], strides = [1, 1, 1]} : vector<22x22x3xbf16> to vector<16x22x3xbf16>
    %147 = vector.extract_strided_slice %146 {offsets = [0, 0, 0], sizes = [16, 16, 3], strides = [1, 1, 1]} : vector<16x22x3xbf16> to vector<16x16x3xbf16>
    %148 = vector.shape_cast %147 : vector<16x16x3xbf16> to vector<256x3xbf16>
    %c21 = arith.constant 21 : index
    %c0_93 = arith.constant 0 : index
    %c0_94 = arith.constant 0 : index
    %149 = vector.load %arg10[%c21, %c0_93, %c0_94] : memref<49x3x8xbf16, #tpu.memory_space<vmem>>, vector<1x3x8xbf16>
    %150 = vector.shape_cast %149 : vector<1x3x8xbf16> to vector<3x8xbf16>
    %cst_95 = arith.constant dense<0.000000e+00> : vector<256x8xf32>
    %151 = tpu.matmul %148, %150, %cst_95 {dimension_numbers = #tpu.dot_dimension_numbers<[1], [0], [0], [1], [0, 0, 1, 1], [], []>} : vector<256x3xbf16>, vector<3x8xbf16>, vector<256x8xf32> -> vector<256x8xf32>
    %152 = arith.addf %145, %151 : vector<256x8xf32>
    %153 = vector.extract_strided_slice %146 {offsets = [0, 1, 0], sizes = [16, 16, 3], strides = [1, 1, 1]} : vector<16x22x3xbf16> to vector<16x16x3xbf16>
    %154 = vector.shape_cast %153 : vector<16x16x3xbf16> to vector<256x3xbf16>
    %c22 = arith.constant 22 : index
    %c0_96 = arith.constant 0 : index
    %c0_97 = arith.constant 0 : index
    %155 = vector.load %arg10[%c22, %c0_96, %c0_97] : memref<49x3x8xbf16, #tpu.memory_space<vmem>>, vector<1x3x8xbf16>
    %156 = vector.shape_cast %155 : vector<1x3x8xbf16> to vector<3x8xbf16>
    %cst_98 = arith.constant dense<0.000000e+00> : vector<256x8xf32>
    %157 = tpu.matmul %154, %156, %cst_98 {dimension_numbers = #tpu.dot_dimension_numbers<[1], [0], [0], [1], [0, 0, 1, 1], [], []>} : vector<256x3xbf16>, vector<3x8xbf16>, vector<256x8xf32> -> vector<256x8xf32>
    %158 = arith.addf %152, %157 : vector<256x8xf32>
    %159 = vector.extract_strided_slice %146 {offsets = [0, 2, 0], sizes = [16, 16, 3], strides = [1, 1, 1]} : vector<16x22x3xbf16> to vector<16x16x3xbf16>
    %160 = vector.shape_cast %159 : vector<16x16x3xbf16> to vector<256x3xbf16>
    %c23 = arith.constant 23 : index
    %c0_99 = arith.constant 0 : index
    %c0_100 = arith.constant 0 : index
    %161 = vector.load %arg10[%c23, %c0_99, %c0_100] : memref<49x3x8xbf16, #tpu.memory_space<vmem>>, vector<1x3x8xbf16>
    %162 = vector.shape_cast %161 : vector<1x3x8xbf16> to vector<3x8xbf16>
    %cst_101 = arith.constant dense<0.000000e+00> : vector<256x8xf32>
    %163 = tpu.matmul %160, %162, %cst_101 {dimension_numbers = #tpu.dot_dimension_numbers<[1], [0], [0], [1], [0, 0, 1, 1], [], []>} : vector<256x3xbf16>, vector<3x8xbf16>, vector<256x8xf32> -> vector<256x8xf32>
    %164 = arith.addf %158, %163 : vector<256x8xf32>
    %165 = vector.extract_strided_slice %146 {offsets = [0, 3, 0], sizes = [16, 16, 3], strides = [1, 1, 1]} : vector<16x22x3xbf16> to vector<16x16x3xbf16>
    %166 = vector.shape_cast %165 : vector<16x16x3xbf16> to vector<256x3xbf16>
    %c24 = arith.constant 24 : index
    %c0_102 = arith.constant 0 : index
    %c0_103 = arith.constant 0 : index
    %167 = vector.load %arg10[%c24, %c0_102, %c0_103] : memref<49x3x8xbf16, #tpu.memory_space<vmem>>, vector<1x3x8xbf16>
    %168 = vector.shape_cast %167 : vector<1x3x8xbf16> to vector<3x8xbf16>
    %cst_104 = arith.constant dense<0.000000e+00> : vector<256x8xf32>
    %169 = tpu.matmul %166, %168, %cst_104 {dimension_numbers = #tpu.dot_dimension_numbers<[1], [0], [0], [1], [0, 0, 1, 1], [], []>} : vector<256x3xbf16>, vector<3x8xbf16>, vector<256x8xf32> -> vector<256x8xf32>
    %170 = arith.addf %164, %169 : vector<256x8xf32>
    %171 = vector.extract_strided_slice %146 {offsets = [0, 4, 0], sizes = [16, 16, 3], strides = [1, 1, 1]} : vector<16x22x3xbf16> to vector<16x16x3xbf16>
    %172 = vector.shape_cast %171 : vector<16x16x3xbf16> to vector<256x3xbf16>
    %c25 = arith.constant 25 : index
    %c0_105 = arith.constant 0 : index
    %c0_106 = arith.constant 0 : index
    %173 = vector.load %arg10[%c25, %c0_105, %c0_106] : memref<49x3x8xbf16, #tpu.memory_space<vmem>>, vector<1x3x8xbf16>
    %174 = vector.shape_cast %173 : vector<1x3x8xbf16> to vector<3x8xbf16>
    %cst_107 = arith.constant dense<0.000000e+00> : vector<256x8xf32>
    %175 = tpu.matmul %172, %174, %cst_107 {dimension_numbers = #tpu.dot_dimension_numbers<[1], [0], [0], [1], [0, 0, 1, 1], [], []>} : vector<256x3xbf16>, vector<3x8xbf16>, vector<256x8xf32> -> vector<256x8xf32>
    %176 = arith.addf %170, %175 : vector<256x8xf32>
    %177 = vector.extract_strided_slice %146 {offsets = [0, 5, 0], sizes = [16, 16, 3], strides = [1, 1, 1]} : vector<16x22x3xbf16> to vector<16x16x3xbf16>
    %178 = vector.shape_cast %177 : vector<16x16x3xbf16> to vector<256x3xbf16>
    %c26 = arith.constant 26 : index
    %c0_108 = arith.constant 0 : index
    %c0_109 = arith.constant 0 : index
    %179 = vector.load %arg10[%c26, %c0_108, %c0_109] : memref<49x3x8xbf16, #tpu.memory_space<vmem>>, vector<1x3x8xbf16>
    %180 = vector.shape_cast %179 : vector<1x3x8xbf16> to vector<3x8xbf16>
    %cst_110 = arith.constant dense<0.000000e+00> : vector<256x8xf32>
    %181 = tpu.matmul %178, %180, %cst_110 {dimension_numbers = #tpu.dot_dimension_numbers<[1], [0], [0], [1], [0, 0, 1, 1], [], []>} : vector<256x3xbf16>, vector<3x8xbf16>, vector<256x8xf32> -> vector<256x8xf32>
    %182 = arith.addf %176, %181 : vector<256x8xf32>
    %183 = vector.extract_strided_slice %146 {offsets = [0, 6, 0], sizes = [16, 16, 3], strides = [1, 1, 1]} : vector<16x22x3xbf16> to vector<16x16x3xbf16>
    %184 = vector.shape_cast %183 : vector<16x16x3xbf16> to vector<256x3xbf16>
    %c27 = arith.constant 27 : index
    %c0_111 = arith.constant 0 : index
    %c0_112 = arith.constant 0 : index
    %185 = vector.load %arg10[%c27, %c0_111, %c0_112] : memref<49x3x8xbf16, #tpu.memory_space<vmem>>, vector<1x3x8xbf16>
    %186 = vector.shape_cast %185 : vector<1x3x8xbf16> to vector<3x8xbf16>
    %cst_113 = arith.constant dense<0.000000e+00> : vector<256x8xf32>
    %187 = tpu.matmul %184, %186, %cst_113 {dimension_numbers = #tpu.dot_dimension_numbers<[1], [0], [0], [1], [0, 0, 1, 1], [], []>} : vector<256x3xbf16>, vector<3x8xbf16>, vector<256x8xf32> -> vector<256x8xf32>
    %188 = arith.addf %182, %187 : vector<256x8xf32>
    %189 = vector.extract_strided_slice %16 {offsets = [4, 0, 0], sizes = [16, 22, 3], strides = [1, 1, 1]} : vector<22x22x3xbf16> to vector<16x22x3xbf16>
    %190 = vector.extract_strided_slice %189 {offsets = [0, 0, 0], sizes = [16, 16, 3], strides = [1, 1, 1]} : vector<16x22x3xbf16> to vector<16x16x3xbf16>
    %191 = vector.shape_cast %190 : vector<16x16x3xbf16> to vector<256x3xbf16>
    %c28 = arith.constant 28 : index
    %c0_114 = arith.constant 0 : index
    %c0_115 = arith.constant 0 : index
    %192 = vector.load %arg10[%c28, %c0_114, %c0_115] : memref<49x3x8xbf16, #tpu.memory_space<vmem>>, vector<1x3x8xbf16>
    %193 = vector.shape_cast %192 : vector<1x3x8xbf16> to vector<3x8xbf16>
    %cst_116 = arith.constant dense<0.000000e+00> : vector<256x8xf32>
    %194 = tpu.matmul %191, %193, %cst_116 {dimension_numbers = #tpu.dot_dimension_numbers<[1], [0], [0], [1], [0, 0, 1, 1], [], []>} : vector<256x3xbf16>, vector<3x8xbf16>, vector<256x8xf32> -> vector<256x8xf32>
    %195 = arith.addf %188, %194 : vector<256x8xf32>
    %196 = vector.extract_strided_slice %189 {offsets = [0, 1, 0], sizes = [16, 16, 3], strides = [1, 1, 1]} : vector<16x22x3xbf16> to vector<16x16x3xbf16>
    %197 = vector.shape_cast %196 : vector<16x16x3xbf16> to vector<256x3xbf16>
    %c29 = arith.constant 29 : index
    %c0_117 = arith.constant 0 : index
    %c0_118 = arith.constant 0 : index
    %198 = vector.load %arg10[%c29, %c0_117, %c0_118] : memref<49x3x8xbf16, #tpu.memory_space<vmem>>, vector<1x3x8xbf16>
    %199 = vector.shape_cast %198 : vector<1x3x8xbf16> to vector<3x8xbf16>
    %cst_119 = arith.constant dense<0.000000e+00> : vector<256x8xf32>
    %200 = tpu.matmul %197, %199, %cst_119 {dimension_numbers = #tpu.dot_dimension_numbers<[1], [0], [0], [1], [0, 0, 1, 1], [], []>} : vector<256x3xbf16>, vector<3x8xbf16>, vector<256x8xf32> -> vector<256x8xf32>
    %201 = arith.addf %195, %200 : vector<256x8xf32>
    %202 = vector.extract_strided_slice %189 {offsets = [0, 2, 0], sizes = [16, 16, 3], strides = [1, 1, 1]} : vector<16x22x3xbf16> to vector<16x16x3xbf16>
    %203 = vector.shape_cast %202 : vector<16x16x3xbf16> to vector<256x3xbf16>
    %c30 = arith.constant 30 : index
    %c0_120 = arith.constant 0 : index
    %c0_121 = arith.constant 0 : index
    %204 = vector.load %arg10[%c30, %c0_120, %c0_121] : memref<49x3x8xbf16, #tpu.memory_space<vmem>>, vector<1x3x8xbf16>
    %205 = vector.shape_cast %204 : vector<1x3x8xbf16> to vector<3x8xbf16>
    %cst_122 = arith.constant dense<0.000000e+00> : vector<256x8xf32>
    %206 = tpu.matmul %203, %205, %cst_122 {dimension_numbers = #tpu.dot_dimension_numbers<[1], [0], [0], [1], [0, 0, 1, 1], [], []>} : vector<256x3xbf16>, vector<3x8xbf16>, vector<256x8xf32> -> vector<256x8xf32>
    %207 = arith.addf %201, %206 : vector<256x8xf32>
    %208 = vector.extract_strided_slice %189 {offsets = [0, 3, 0], sizes = [16, 16, 3], strides = [1, 1, 1]} : vector<16x22x3xbf16> to vector<16x16x3xbf16>
    %209 = vector.shape_cast %208 : vector<16x16x3xbf16> to vector<256x3xbf16>
    %c31 = arith.constant 31 : index
    %c0_123 = arith.constant 0 : index
    %c0_124 = arith.constant 0 : index
    %210 = vector.load %arg10[%c31, %c0_123, %c0_124] : memref<49x3x8xbf16, #tpu.memory_space<vmem>>, vector<1x3x8xbf16>
    %211 = vector.shape_cast %210 : vector<1x3x8xbf16> to vector<3x8xbf16>
    %cst_125 = arith.constant dense<0.000000e+00> : vector<256x8xf32>
    %212 = tpu.matmul %209, %211, %cst_125 {dimension_numbers = #tpu.dot_dimension_numbers<[1], [0], [0], [1], [0, 0, 1, 1], [], []>} : vector<256x3xbf16>, vector<3x8xbf16>, vector<256x8xf32> -> vector<256x8xf32>
    %213 = arith.addf %207, %212 : vector<256x8xf32>
    %214 = vector.extract_strided_slice %189 {offsets = [0, 4, 0], sizes = [16, 16, 3], strides = [1, 1, 1]} : vector<16x22x3xbf16> to vector<16x16x3xbf16>
    %215 = vector.shape_cast %214 : vector<16x16x3xbf16> to vector<256x3xbf16>
    %c32 = arith.constant 32 : index
    %c0_126 = arith.constant 0 : index
    %c0_127 = arith.constant 0 : index
    %216 = vector.load %arg10[%c32, %c0_126, %c0_127] : memref<49x3x8xbf16, #tpu.memory_space<vmem>>, vector<1x3x8xbf16>
    %217 = vector.shape_cast %216 : vector<1x3x8xbf16> to vector<3x8xbf16>
    %cst_128 = arith.constant dense<0.000000e+00> : vector<256x8xf32>
    %218 = tpu.matmul %215, %217, %cst_128 {dimension_numbers = #tpu.dot_dimension_numbers<[1], [0], [0], [1], [0, 0, 1, 1], [], []>} : vector<256x3xbf16>, vector<3x8xbf16>, vector<256x8xf32> -> vector<256x8xf32>
    %219 = arith.addf %213, %218 : vector<256x8xf32>
    %220 = vector.extract_strided_slice %189 {offsets = [0, 5, 0], sizes = [16, 16, 3], strides = [1, 1, 1]} : vector<16x22x3xbf16> to vector<16x16x3xbf16>
    %221 = vector.shape_cast %220 : vector<16x16x3xbf16> to vector<256x3xbf16>
    %c33 = arith.constant 33 : index
    %c0_129 = arith.constant 0 : index
    %c0_130 = arith.constant 0 : index
    %222 = vector.load %arg10[%c33, %c0_129, %c0_130] : memref<49x3x8xbf16, #tpu.memory_space<vmem>>, vector<1x3x8xbf16>
    %223 = vector.shape_cast %222 : vector<1x3x8xbf16> to vector<3x8xbf16>
    %cst_131 = arith.constant dense<0.000000e+00> : vector<256x8xf32>
    %224 = tpu.matmul %221, %223, %cst_131 {dimension_numbers = #tpu.dot_dimension_numbers<[1], [0], [0], [1], [0, 0, 1, 1], [], []>} : vector<256x3xbf16>, vector<3x8xbf16>, vector<256x8xf32> -> vector<256x8xf32>
    %225 = arith.addf %219, %224 : vector<256x8xf32>
    %226 = vector.extract_strided_slice %189 {offsets = [0, 6, 0], sizes = [16, 16, 3], strides = [1, 1, 1]} : vector<16x22x3xbf16> to vector<16x16x3xbf16>
    %227 = vector.shape_cast %226 : vector<16x16x3xbf16> to vector<256x3xbf16>
    %c34 = arith.constant 34 : index
    %c0_132 = arith.constant 0 : index
    %c0_133 = arith.constant 0 : index
    %228 = vector.load %arg10[%c34, %c0_132, %c0_133] : memref<49x3x8xbf16, #tpu.memory_space<vmem>>, vector<1x3x8xbf16>
    %229 = vector.shape_cast %228 : vector<1x3x8xbf16> to vector<3x8xbf16>
    %cst_134 = arith.constant dense<0.000000e+00> : vector<256x8xf32>
    %230 = tpu.matmul %227, %229, %cst_134 {dimension_numbers = #tpu.dot_dimension_numbers<[1], [0], [0], [1], [0, 0, 1, 1], [], []>} : vector<256x3xbf16>, vector<3x8xbf16>, vector<256x8xf32> -> vector<256x8xf32>
    %231 = arith.addf %225, %230 : vector<256x8xf32>
    %232 = vector.extract_strided_slice %16 {offsets = [5, 0, 0], sizes = [16, 22, 3], strides = [1, 1, 1]} : vector<22x22x3xbf16> to vector<16x22x3xbf16>
    %233 = vector.extract_strided_slice %232 {offsets = [0, 0, 0], sizes = [16, 16, 3], strides = [1, 1, 1]} : vector<16x22x3xbf16> to vector<16x16x3xbf16>
    %234 = vector.shape_cast %233 : vector<16x16x3xbf16> to vector<256x3xbf16>
    %c35 = arith.constant 35 : index
    %c0_135 = arith.constant 0 : index
    %c0_136 = arith.constant 0 : index
    %235 = vector.load %arg10[%c35, %c0_135, %c0_136] : memref<49x3x8xbf16, #tpu.memory_space<vmem>>, vector<1x3x8xbf16>
    %236 = vector.shape_cast %235 : vector<1x3x8xbf16> to vector<3x8xbf16>
    %cst_137 = arith.constant dense<0.000000e+00> : vector<256x8xf32>
    %237 = tpu.matmul %234, %236, %cst_137 {dimension_numbers = #tpu.dot_dimension_numbers<[1], [0], [0], [1], [0, 0, 1, 1], [], []>} : vector<256x3xbf16>, vector<3x8xbf16>, vector<256x8xf32> -> vector<256x8xf32>
    %238 = arith.addf %231, %237 : vector<256x8xf32>
    %239 = vector.extract_strided_slice %232 {offsets = [0, 1, 0], sizes = [16, 16, 3], strides = [1, 1, 1]} : vector<16x22x3xbf16> to vector<16x16x3xbf16>
    %240 = vector.shape_cast %239 : vector<16x16x3xbf16> to vector<256x3xbf16>
    %c36 = arith.constant 36 : index
    %c0_138 = arith.constant 0 : index
    %c0_139 = arith.constant 0 : index
    %241 = vector.load %arg10[%c36, %c0_138, %c0_139] : memref<49x3x8xbf16, #tpu.memory_space<vmem>>, vector<1x3x8xbf16>
    %242 = vector.shape_cast %241 : vector<1x3x8xbf16> to vector<3x8xbf16>
    %cst_140 = arith.constant dense<0.000000e+00> : vector<256x8xf32>
    %243 = tpu.matmul %240, %242, %cst_140 {dimension_numbers = #tpu.dot_dimension_numbers<[1], [0], [0], [1], [0, 0, 1, 1], [], []>} : vector<256x3xbf16>, vector<3x8xbf16>, vector<256x8xf32> -> vector<256x8xf32>
    %244 = arith.addf %238, %243 : vector<256x8xf32>
    %245 = vector.extract_strided_slice %232 {offsets = [0, 2, 0], sizes = [16, 16, 3], strides = [1, 1, 1]} : vector<16x22x3xbf16> to vector<16x16x3xbf16>
    %246 = vector.shape_cast %245 : vector<16x16x3xbf16> to vector<256x3xbf16>
    %c37 = arith.constant 37 : index
    %c0_141 = arith.constant 0 : index
    %c0_142 = arith.constant 0 : index
    %247 = vector.load %arg10[%c37, %c0_141, %c0_142] : memref<49x3x8xbf16, #tpu.memory_space<vmem>>, vector<1x3x8xbf16>
    %248 = vector.shape_cast %247 : vector<1x3x8xbf16> to vector<3x8xbf16>
    %cst_143 = arith.constant dense<0.000000e+00> : vector<256x8xf32>
    %249 = tpu.matmul %246, %248, %cst_143 {dimension_numbers = #tpu.dot_dimension_numbers<[1], [0], [0], [1], [0, 0, 1, 1], [], []>} : vector<256x3xbf16>, vector<3x8xbf16>, vector<256x8xf32> -> vector<256x8xf32>
    %250 = arith.addf %244, %249 : vector<256x8xf32>
    %251 = vector.extract_strided_slice %232 {offsets = [0, 3, 0], sizes = [16, 16, 3], strides = [1, 1, 1]} : vector<16x22x3xbf16> to vector<16x16x3xbf16>
    %252 = vector.shape_cast %251 : vector<16x16x3xbf16> to vector<256x3xbf16>
    %c38 = arith.constant 38 : index
    %c0_144 = arith.constant 0 : index
    %c0_145 = arith.constant 0 : index
    %253 = vector.load %arg10[%c38, %c0_144, %c0_145] : memref<49x3x8xbf16, #tpu.memory_space<vmem>>, vector<1x3x8xbf16>
    %254 = vector.shape_cast %253 : vector<1x3x8xbf16> to vector<3x8xbf16>
    %cst_146 = arith.constant dense<0.000000e+00> : vector<256x8xf32>
    %255 = tpu.matmul %252, %254, %cst_146 {dimension_numbers = #tpu.dot_dimension_numbers<[1], [0], [0], [1], [0, 0, 1, 1], [], []>} : vector<256x3xbf16>, vector<3x8xbf16>, vector<256x8xf32> -> vector<256x8xf32>
    %256 = arith.addf %250, %255 : vector<256x8xf32>
    %257 = vector.extract_strided_slice %232 {offsets = [0, 4, 0], sizes = [16, 16, 3], strides = [1, 1, 1]} : vector<16x22x3xbf16> to vector<16x16x3xbf16>
    %258 = vector.shape_cast %257 : vector<16x16x3xbf16> to vector<256x3xbf16>
    %c39 = arith.constant 39 : index
    %c0_147 = arith.constant 0 : index
    %c0_148 = arith.constant 0 : index
    %259 = vector.load %arg10[%c39, %c0_147, %c0_148] : memref<49x3x8xbf16, #tpu.memory_space<vmem>>, vector<1x3x8xbf16>
    %260 = vector.shape_cast %259 : vector<1x3x8xbf16> to vector<3x8xbf16>
    %cst_149 = arith.constant dense<0.000000e+00> : vector<256x8xf32>
    %261 = tpu.matmul %258, %260, %cst_149 {dimension_numbers = #tpu.dot_dimension_numbers<[1], [0], [0], [1], [0, 0, 1, 1], [], []>} : vector<256x3xbf16>, vector<3x8xbf16>, vector<256x8xf32> -> vector<256x8xf32>
    %262 = arith.addf %256, %261 : vector<256x8xf32>
    %263 = vector.extract_strided_slice %232 {offsets = [0, 5, 0], sizes = [16, 16, 3], strides = [1, 1, 1]} : vector<16x22x3xbf16> to vector<16x16x3xbf16>
    %264 = vector.shape_cast %263 : vector<16x16x3xbf16> to vector<256x3xbf16>
    %c40 = arith.constant 40 : index
    %c0_150 = arith.constant 0 : index
    %c0_151 = arith.constant 0 : index
    %265 = vector.load %arg10[%c40, %c0_150, %c0_151] : memref<49x3x8xbf16, #tpu.memory_space<vmem>>, vector<1x3x8xbf16>
    %266 = vector.shape_cast %265 : vector<1x3x8xbf16> to vector<3x8xbf16>
    %cst_152 = arith.constant dense<0.000000e+00> : vector<256x8xf32>
    %267 = tpu.matmul %264, %266, %cst_152 {dimension_numbers = #tpu.dot_dimension_numbers<[1], [0], [0], [1], [0, 0, 1, 1], [], []>} : vector<256x3xbf16>, vector<3x8xbf16>, vector<256x8xf32> -> vector<256x8xf32>
    %268 = arith.addf %262, %267 : vector<256x8xf32>
    %269 = vector.extract_strided_slice %232 {offsets = [0, 6, 0], sizes = [16, 16, 3], strides = [1, 1, 1]} : vector<16x22x3xbf16> to vector<16x16x3xbf16>
    %270 = vector.shape_cast %269 : vector<16x16x3xbf16> to vector<256x3xbf16>
    %c41 = arith.constant 41 : index
    %c0_153 = arith.constant 0 : index
    %c0_154 = arith.constant 0 : index
    %271 = vector.load %arg10[%c41, %c0_153, %c0_154] : memref<49x3x8xbf16, #tpu.memory_space<vmem>>, vector<1x3x8xbf16>
    %272 = vector.shape_cast %271 : vector<1x3x8xbf16> to vector<3x8xbf16>
    %cst_155 = arith.constant dense<0.000000e+00> : vector<256x8xf32>
    %273 = tpu.matmul %270, %272, %cst_155 {dimension_numbers = #tpu.dot_dimension_numbers<[1], [0], [0], [1], [0, 0, 1, 1], [], []>} : vector<256x3xbf16>, vector<3x8xbf16>, vector<256x8xf32> -> vector<256x8xf32>
    %274 = arith.addf %268, %273 : vector<256x8xf32>
    %275 = vector.extract_strided_slice %16 {offsets = [6, 0, 0], sizes = [16, 22, 3], strides = [1, 1, 1]} : vector<22x22x3xbf16> to vector<16x22x3xbf16>
    %276 = vector.extract_strided_slice %275 {offsets = [0, 0, 0], sizes = [16, 16, 3], strides = [1, 1, 1]} : vector<16x22x3xbf16> to vector<16x16x3xbf16>
    %277 = vector.shape_cast %276 : vector<16x16x3xbf16> to vector<256x3xbf16>
    %c42 = arith.constant 42 : index
    %c0_156 = arith.constant 0 : index
    %c0_157 = arith.constant 0 : index
    %278 = vector.load %arg10[%c42, %c0_156, %c0_157] : memref<49x3x8xbf16, #tpu.memory_space<vmem>>, vector<1x3x8xbf16>
    %279 = vector.shape_cast %278 : vector<1x3x8xbf16> to vector<3x8xbf16>
    %cst_158 = arith.constant dense<0.000000e+00> : vector<256x8xf32>
    %280 = tpu.matmul %277, %279, %cst_158 {dimension_numbers = #tpu.dot_dimension_numbers<[1], [0], [0], [1], [0, 0, 1, 1], [], []>} : vector<256x3xbf16>, vector<3x8xbf16>, vector<256x8xf32> -> vector<256x8xf32>
    %281 = arith.addf %274, %280 : vector<256x8xf32>
    %282 = vector.extract_strided_slice %275 {offsets = [0, 1, 0], sizes = [16, 16, 3], strides = [1, 1, 1]} : vector<16x22x3xbf16> to vector<16x16x3xbf16>
    %283 = vector.shape_cast %282 : vector<16x16x3xbf16> to vector<256x3xbf16>
    %c43 = arith.constant 43 : index
    %c0_159 = arith.constant 0 : index
    %c0_160 = arith.constant 0 : index
    %284 = vector.load %arg10[%c43, %c0_159, %c0_160] : memref<49x3x8xbf16, #tpu.memory_space<vmem>>, vector<1x3x8xbf16>
    %285 = vector.shape_cast %284 : vector<1x3x8xbf16> to vector<3x8xbf16>
    %cst_161 = arith.constant dense<0.000000e+00> : vector<256x8xf32>
    %286 = tpu.matmul %283, %285, %cst_161 {dimension_numbers = #tpu.dot_dimension_numbers<[1], [0], [0], [1], [0, 0, 1, 1], [], []>} : vector<256x3xbf16>, vector<3x8xbf16>, vector<256x8xf32> -> vector<256x8xf32>
    %287 = arith.addf %281, %286 : vector<256x8xf32>
    %288 = vector.extract_strided_slice %275 {offsets = [0, 2, 0], sizes = [16, 16, 3], strides = [1, 1, 1]} : vector<16x22x3xbf16> to vector<16x16x3xbf16>
    %289 = vector.shape_cast %288 : vector<16x16x3xbf16> to vector<256x3xbf16>
    %c44 = arith.constant 44 : index
    %c0_162 = arith.constant 0 : index
    %c0_163 = arith.constant 0 : index
    %290 = vector.load %arg10[%c44, %c0_162, %c0_163] : memref<49x3x8xbf16, #tpu.memory_space<vmem>>, vector<1x3x8xbf16>
    %291 = vector.shape_cast %290 : vector<1x3x8xbf16> to vector<3x8xbf16>
    %cst_164 = arith.constant dense<0.000000e+00> : vector<256x8xf32>
    %292 = tpu.matmul %289, %291, %cst_164 {dimension_numbers = #tpu.dot_dimension_numbers<[1], [0], [0], [1], [0, 0, 1, 1], [], []>} : vector<256x3xbf16>, vector<3x8xbf16>, vector<256x8xf32> -> vector<256x8xf32>
    %293 = arith.addf %287, %292 : vector<256x8xf32>
    %294 = vector.extract_strided_slice %275 {offsets = [0, 3, 0], sizes = [16, 16, 3], strides = [1, 1, 1]} : vector<16x22x3xbf16> to vector<16x16x3xbf16>
    %295 = vector.shape_cast %294 : vector<16x16x3xbf16> to vector<256x3xbf16>
    %c45 = arith.constant 45 : index
    %c0_165 = arith.constant 0 : index
    %c0_166 = arith.constant 0 : index
    %296 = vector.load %arg10[%c45, %c0_165, %c0_166] : memref<49x3x8xbf16, #tpu.memory_space<vmem>>, vector<1x3x8xbf16>
    %297 = vector.shape_cast %296 : vector<1x3x8xbf16> to vector<3x8xbf16>
    %cst_167 = arith.constant dense<0.000000e+00> : vector<256x8xf32>
    %298 = tpu.matmul %295, %297, %cst_167 {dimension_numbers = #tpu.dot_dimension_numbers<[1], [0], [0], [1], [0, 0, 1, 1], [], []>} : vector<256x3xbf16>, vector<3x8xbf16>, vector<256x8xf32> -> vector<256x8xf32>
    %299 = arith.addf %293, %298 : vector<256x8xf32>
    %300 = vector.extract_strided_slice %275 {offsets = [0, 4, 0], sizes = [16, 16, 3], strides = [1, 1, 1]} : vector<16x22x3xbf16> to vector<16x16x3xbf16>
    %301 = vector.shape_cast %300 : vector<16x16x3xbf16> to vector<256x3xbf16>
    %c46 = arith.constant 46 : index
    %c0_168 = arith.constant 0 : index
    %c0_169 = arith.constant 0 : index
    %302 = vector.load %arg10[%c46, %c0_168, %c0_169] : memref<49x3x8xbf16, #tpu.memory_space<vmem>>, vector<1x3x8xbf16>
    %303 = vector.shape_cast %302 : vector<1x3x8xbf16> to vector<3x8xbf16>
    %cst_170 = arith.constant dense<0.000000e+00> : vector<256x8xf32>
    %304 = tpu.matmul %301, %303, %cst_170 {dimension_numbers = #tpu.dot_dimension_numbers<[1], [0], [0], [1], [0, 0, 1, 1], [], []>} : vector<256x3xbf16>, vector<3x8xbf16>, vector<256x8xf32> -> vector<256x8xf32>
    %305 = arith.addf %299, %304 : vector<256x8xf32>
    %306 = vector.extract_strided_slice %275 {offsets = [0, 5, 0], sizes = [16, 16, 3], strides = [1, 1, 1]} : vector<16x22x3xbf16> to vector<16x16x3xbf16>
    %307 = vector.shape_cast %306 : vector<16x16x3xbf16> to vector<256x3xbf16>
    %c47 = arith.constant 47 : index
    %c0_171 = arith.constant 0 : index
    %c0_172 = arith.constant 0 : index
    %308 = vector.load %arg10[%c47, %c0_171, %c0_172] : memref<49x3x8xbf16, #tpu.memory_space<vmem>>, vector<1x3x8xbf16>
    %309 = vector.shape_cast %308 : vector<1x3x8xbf16> to vector<3x8xbf16>
    %cst_173 = arith.constant dense<0.000000e+00> : vector<256x8xf32>
    %310 = tpu.matmul %307, %309, %cst_173 {dimension_numbers = #tpu.dot_dimension_numbers<[1], [0], [0], [1], [0, 0, 1, 1], [], []>} : vector<256x3xbf16>, vector<3x8xbf16>, vector<256x8xf32> -> vector<256x8xf32>
    %311 = arith.addf %305, %310 : vector<256x8xf32>
    %312 = vector.extract_strided_slice %275 {offsets = [0, 6, 0], sizes = [16, 16, 3], strides = [1, 1, 1]} : vector<16x22x3xbf16> to vector<16x16x3xbf16>
    %313 = vector.shape_cast %312 : vector<16x16x3xbf16> to vector<256x3xbf16>
    %c48 = arith.constant 48 : index
    %c0_174 = arith.constant 0 : index
    %c0_175 = arith.constant 0 : index
    %314 = vector.load %arg10[%c48, %c0_174, %c0_175] : memref<49x3x8xbf16, #tpu.memory_space<vmem>>, vector<1x3x8xbf16>
    %315 = vector.shape_cast %314 : vector<1x3x8xbf16> to vector<3x8xbf16>
    %cst_176 = arith.constant dense<0.000000e+00> : vector<256x8xf32>
    %316 = tpu.matmul %313, %315, %cst_176 {dimension_numbers = #tpu.dot_dimension_numbers<[1], [0], [0], [1], [0, 0, 1, 1], [], []>} : vector<256x3xbf16>, vector<3x8xbf16>, vector<256x8xf32> -> vector<256x8xf32>
    %317 = arith.addf %311, %316 : vector<256x8xf32>
    %318 = vector.broadcast %0 : vector<1x8xf32> to vector<256x8xf32>
    %319 = arith.addf %317, %318 : vector<256x8xf32>
    %320 = vector.shape_cast %319 : vector<256x8xf32> to vector<16x16x8xf32>
    %321 = arith.truncf %320 : vector<16x16x8xf32> to vector<16x16x8xbf16>
    %c0_177 = arith.constant 0 : index
    %c0_178 = arith.constant 0 : index
    %c0_179 = arith.constant 0 : index
    %c0_180 = arith.constant 0 : index
    %322 = vector.load %arg12[%c0_177, %c0_178, %c0_179, %c0_180] : memref<1x16x16x8xbf16, #tpu.memory_space<vmem>>, vector<1x16x16x8xbf16>
    %323 = vector.shape_cast %322 : vector<1x16x16x8xbf16> to vector<16x16x8xbf16>
    %324 = vector.shape_cast %321 : vector<16x16x8xbf16> to vector<1x16x16x8xbf16>
    tpu.vector_store %arg12[%c0_177, %c0_178, %c0_179, %c0_180], %324 {strides = array<i32>} : memref<1x16x16x8xbf16, #tpu.memory_space<vmem>>, vector<1x16x16x8xbf16>,
    return
  }
  func.func @transform_0(%arg0: i32, %arg1: i32, %arg2: i32) -> (i32, i32, i32, i32) {
    %c0_i32 = arith.constant 0 : i32
    %c0_i32_0 = arith.constant 0 : i32
    %c0_i32_1 = arith.constant 0 : i32
    return %arg1, %arg2, %c0_i32, %c0_i32_0 : i32, i32, i32, i32
  }
  func.func @transform_1(%arg0: i32, %arg1: i32, %arg2: i32) -> (i32, i32, i32, i32) {
    %c16_i32 = arith.constant 16 : i32
    %0 = arith.muli %arg2, %c16_i32 : i32
    %c16_i32_0 = arith.constant 16 : i32
    %1 = arith.addi %0, %c16_i32_0 : i32
    %c0_i32 = arith.constant 0 : i32
    %2 = arith.addi %1, %c0_i32 : i32
    %c0_i32_1 = arith.constant 0 : i32
    %c0_i32_2 = arith.constant 0 : i32
    %c0_i32_3 = arith.constant 0 : i32
    return %arg1, %2, %c0_i32_1, %c0_i32_2 : i32, i32, i32, i32
  }
  func.func @transform_2(%arg0: i32, %arg1: i32, %arg2: i32) -> (i32, i32, i32, i32) {
    %c16_i32 = arith.constant 16 : i32
    %0 = arith.muli %arg2, %c16_i32 : i32
    %c16_i32_0 = arith.constant 16 : i32
    %1 = arith.addi %0, %c16_i32_0 : i32
    %c1_i32 = arith.constant 1 : i32
    %2 = arith.addi %1, %c1_i32 : i32
    %c0_i32 = arith.constant 0 : i32
    %c0_i32_1 = arith.constant 0 : i32
    %c0_i32_2 = arith.constant 0 : i32
    return %arg1, %2, %c0_i32, %c0_i32_1 : i32, i32, i32, i32
  }
  func.func @transform_3(%arg0: i32, %arg1: i32, %arg2: i32) -> (i32, i32, i32, i32) {
    %c16_i32 = arith.constant 16 : i32
    %0 = arith.muli %arg2, %c16_i32 : i32
    %c16_i32_0 = arith.constant 16 : i32
    %1 = arith.addi %0, %c16_i32_0 : i32
    %c2_i32 = arith.constant 2 : i32
    %2 = arith.addi %1, %c2_i32 : i32
    %c0_i32 = arith.constant 0 : i32
    %c0_i32_1 = arith.constant 0 : i32
    %c0_i32_2 = arith.constant 0 : i32
    return %arg1, %2, %c0_i32, %c0_i32_1 : i32, i32, i32, i32
  }
  func.func @transform_4(%arg0: i32, %arg1: i32, %arg2: i32) -> (i32, i32, i32, i32) {
    %c16_i32 = arith.constant 16 : i32
    %0 = arith.muli %arg2, %c16_i32 : i32
    %c16_i32_0 = arith.constant 16 : i32
    %1 = arith.addi %0, %c16_i32_0 : i32
    %c3_i32 = arith.constant 3 : i32
    %2 = arith.addi %1, %c3_i32 : i32
    %c0_i32 = arith.constant 0 : i32
    %c0_i32_1 = arith.constant 0 : i32
    %c0_i32_2 = arith.constant 0 : i32
    return %arg1, %2, %c0_i32, %c0_i32_1 : i32, i32, i32, i32
  }
  func.func @transform_5(%arg0: i32, %arg1: i32, %arg2: i32) -> (i32, i32, i32, i32) {
    %c16_i32 = arith.constant 16 : i32
    %0 = arith.muli %arg2, %c16_i32 : i32
    %c16_i32_0 = arith.constant 16 : i32
    %1 = arith.addi %0, %c16_i32_0 : i32
    %c4_i32 = arith.constant 4 : i32
    %2 = arith.addi %1, %c4_i32 : i32
    %c0_i32 = arith.constant 0 : i32
    %c0_i32_1 = arith.constant 0 : i32
    %c0_i32_2 = arith.constant 0 : i32
    return %arg1, %2, %c0_i32, %c0_i32_1 : i32, i32, i32, i32
  }
  func.func @transform_6(%arg0: i32, %arg1: i32, %arg2: i32) -> (i32, i32, i32, i32) {
    %c16_i32 = arith.constant 16 : i32
    %0 = arith.muli %arg2, %c16_i32 : i32
    %c16_i32_0 = arith.constant 16 : i32
    %1 = arith.addi %0, %c16_i32_0 : i32
    %c5_i32 = arith.constant 5 : i32
    %2 = arith.addi %1, %c5_i32 : i32
    %c0_i32 = arith.constant 0 : i32
    %c0_i32_1 = arith.constant 0 : i32
    %c0_i32_2 = arith.constant 0 : i32
    return %arg1, %2, %c0_i32, %c0_i32_1 : i32, i32, i32, i32
  }
  func.func @transform_7(%arg0: i32, %arg1: i32, %arg2: i32) -> (i32, i32, i32) {
    %c0_i32 = arith.constant 0 : i32
    %c0_i32_0 = arith.constant 0 : i32
    %c0_i32_1 = arith.constant 0 : i32
    return %c0_i32, %c0_i32_0, %arg0 : i32, i32, i32
  }
  func.func @transform_8(%arg0: i32, %arg1: i32, %arg2: i32) -> (i32, i32) {
    %c0_i32 = arith.constant 0 : i32
    %c0_i32_0 = arith.constant 0 : i32
    return %c0_i32, %arg0 : i32, i32
  }
  func.func @transform_9(%arg0: i32, %arg1: i32, %arg2: i32) -> (i32, i32, i32, i32) {
    %c0_i32 = arith.constant 0 : i32
    %c0_i32_0 = arith.constant 0 : i32
    return %arg1, %arg2, %c0_i32, %arg0 : i32, i32, i32, i32
  }
}

</mosaic_0001>

<bundles_post_ra>
// kernel: tpu_custom_call.1
= control target key start
LH: loop header
LB: loop body
LE: loop exit
PB: predicated region body
PF: predicated region fallthrough
CT: control target
= control target key end

     0   :  { %s23874_s0 = inlined_call_operand.hbm [shape: bf16[2,22,22,3], index: 0, kind: input, shape index: {}]   ;;  %s23875_s1 = inlined_call_operand.hbm [shape: bf16[2,22,22,3], index: 1, kind: input, shape index: {}]   ;;  %s23876_s2 = inlined_call_operand.hbm [shape: bf16[2,22,22,3], index: 2, kind: input, shape index: {}]   ;;  %s23877_s3 = inlined_call_operand.hbm [shape: bf16[2,22,22,3], index: 3, kind: input, shape index: {}]   ;;  %s23878_s4 = inlined_call_operand.hbm [shape: bf16[2,22,22,3], index: 4, kind: input, shape index: {}]   ;;  %s23879_s5 = inlined_call_operand.hbm [shape: bf16[2,22,22,3], index: 5, kind: input, shape index: {}]   ;;  %s23880_s6 = inlined_call_operand.hbm [shape: bf16[2,22,22,3], index: 6, kind: input, shape index: {}]   ;;  %s23881_s7 = inlined_call_operand.hbm [shape: bf16[49,3,8], index: 7, kind: input, shape index: {}]   ;;  %s23882_s8 = inlined_call_operand.hbm [shape: f32[1,8], index: 8, kind: input, shape index: {}]   ;;  %s23883_s9 = inlined_call_operand.hbm [shape: bf16[2,16,16,8], index: 9, kind: output, shape index: {}]  }
   0x1   :  { %24473 = sst [smem:[#allocation179_spill]] %s23875_s1 }
   0x2   :  { %24474 = sst [smem:[#allocation180_spill]] %s23877_s3 }
   0x3   :  { %24475 = sst [smem:[#allocation181_spill]] %s23879_s5 }
   0x4   :  { %24476 = sst [smem:[#allocation182_spill]] %s23883_s9 }
   0x5   :  { %14 = vsyncpa [#allocation3], 0 }
   0x6   :  { %16 = vsyncpa [#allocation3 + $0x1], 0 }
   0x7   :  { %17 = vsyncpa [#allocation6], 0 }
   0x8   :  { %19 = vsyncpa [#allocation6 + $0x1], 0 }
   0x9   :  { %20 = vsyncpa [#allocation9], 0 }
   0xa   :  { %22 = vsyncpa [#allocation9 + $0x1], 0 }
   0xb   :  { %23 = vsyncpa [#allocation12], 0 }
   0xc   :  { %25 = vsyncpa [#allocation12 + $0x1], 0 }
   0xd   :  { %26 = vsyncpa [#allocation15], 0 }
   0xe   :  { %27 = vsyncpa [#allocation4], 0 }
   0xf   :  { %29 = vsyncpa [#allocation4 + $0x1], 0  ;;  %s19338_s30 = smov 0   ;;  %s19340_s10 = smov 0  }
  0x10   :  { %s19342_s11 = smov 0   ;;  %s19344_s12 = smov 0  }
  0x11   :  { %s19346_s13 = smov 0   ;;  %s19348_s14 = smov 0  }
  0x12 LB: > { %24477 = sst [smem:[#allocation24_spill]] %s19249_s30  ;;  %s19369_s15 = sadd.s32 4294967295, %s19269_s14   ;;  %s19269_s14 = sphi %s19348_s14, %s35_s14   ;;  %s19265_s13 = sphi %s19346_s13, %s25387_s13   ;;  %s19261_s12 = sphi %s19344_s12, %s25386_s12   ;;  %s19257_s11 = sphi %s19342_s11, %s25385_s11   ;;  %s19253_s10 = sphi %s19340_s10, %s25389_s10   ;;  %s19249_s30 = sphi %s19338_s30, %s25388_s30  }
  0x13   : > { %24478 = sst [smem:[#allocation25_spill]] %s19257_s11  ;;  %s13553_s16 = sadd.s32 4294967294, %s19269_s14  }
  0x14   : > { %24479 = sst [smem:[#allocation26_spill]] %s19261_s12  ;;  %s50_s17 = sadd.s32 1, %s19265_s13 }
  0x15   : > { %24480 = sst [smem:[#allocation27_spill]] %s19265_s13  ;;  %s63_s18 = sadd.s32 1, %s19257_s11 }
  0x16   : > { %24481 = sst [smem:[#allocation28_spill]] %s19369_s15  ;;  %p52_p0 = scmp.ge.s32.totalorder %s50_s17, 2 }
  0x17   : > { %p70_p1 = scmp.ne.s32.totalorder %s19257_s11, %s19253_s10  ;;  %p71_p2 = scmp.eq.s32.totalorder %s19269_s14, 0 }
  0x18   : > { %p76_p3 = scmp.ne.s32.totalorder %s19253_s10, %s19249_s30  ;;  %s25391_s17 = smov (%p52_p0, %s50_s17), 0 }
  0x19   : > { %24482 = sst [smem:[#allocation29_spill]] %s25391_s17  ;;  %p19381_p4 = por %p71_p2, %p70_p1 }
  0x1a   : > { %p23888_p5 = scmp.eq.s32.totalorder %s19369_s15, 0  ;;  %s58_s20 = ssub.s32 %s19265_s13, %s25391_s17 }
  0x1b   : > { %p348_p6 = scmp.eq.s32.totalorder %s19369_s15, 1  ;;  %p61_p7 = scmp.eq.s32.totalorder %s58_s20, 0 }
  0x1c   : > { %p19391_p8 = por %p23888_p5, %p76_p3  ;;  %p354_p10 = scmp.eq.s32.totalorder %s13553_s16, 1 }
  0x1d   : > { %p19395_p9 = por %p348_p6, %p70_p1  ;;  %p13554_p12 = scmp.ge.s32.totalorder %s19269_s14, 1 }
  0x1e   : > { %s24484_s21 = scalar_select %p19391_p8, 1, 0 }
  0x1f   : > { %s24486_s22 = scalar_select %p19395_p9, 1, 0 }
  0x20   : > { %24485 = sst [smem:[#allocation30_spill]] %s24484_s21  ;;  %p19402_p11 = por %p354_p10, %p76_p3 }
  0x21   : > { %24487 = sst [smem:[#allocation31_spill]] %s24486_s22  ;;  %p361_p13 = scmp.lt.s32.totalorder %s19269_s14, 3 }
  0x22   : > { %s19400_s23 = scalar_select %p61_p7, %s19257_s11, %s63_s18  }
  0x23   : > { %s24489_s24 = scalar_select %p19402_p11, 1, 0 }
  0x24   : > { %24488 = sst [smem:[#allocation32_spill]] %s19400_s23  ;;  %p19408_p0 = pnand %p13554_p12, %p361_p13 }
  0x25   : > { %24490 = sst [smem:[#allocation33_spill]] %s24489_s24  ;;  %s19271_s26 = smov [#allocation14]  }
  0x26   : > { %s24491_s25 = scalar_select %p19408_p0, 1, 0 }
  0x27   : > { %s375_s27 = sshll.u32 %s19271_s26, 4  ;;  %p18715_p1 = pneg %p19408_p0  ;;  %s19412_s27 = int_to_ptr.vmem [resolvable:$true] %s375_s27 }
  0x28   : > { %p18750_p6 = scmp.lt.s32.totalorder %s19269_s14, 2  ;;  %s19419_s28 = sand.u32 1, %s19257_s11  }
  0x29   : > { %p19423_p3 = pnand %p18715_p1, %p23888_p5  ;;  %s19428_s16 = smul.u32 4224, %s19265_s13 }
  0x2a   : > { %p19432_p7 = pnand %p18750_p6, %p19381_p4  ;;  %s19437_s20 = smul.u32 12, %s19419_s28 }
  0x2b   : > { %s24492_s29 = scalar_select %p19423_p3, 1, 0 }
  0x2c   : > { %s24493_s18 = scalar_select %p19432_p7, 1, 0 }
  0x2d   : > { %s18899_s23 = scalar_lea.hbm %s23881_s7, 1568  ;;  %p23899_p12 = pneg %p19423_p3 }
  0x2e   : > { %p18900_p10 = scmp.ne.s32.totalorder %s23881_s7, %s18899_s23  ;;  %p18906_p4 = scmp.lt.u32.totalorder %s18899_s23, %s23881_s7 }
  0x30   : > { %p18902_p13 = pnand %p23899_p12, %p18900_p10 }
  0x32   : > { %p18903_p1 = pneg %p18902_p13 }
  0x34   : > { %p18908_p6 = pnand %p18906_p4, %p18903_p1 }
  0x36   : > { %18911 = shalt.err (!%p18908_p6)
}
  0x37   : > { %s18912_s17 = scalar_lea.vmem %s19412_s27, 1568  ;;  %p18920_p9 = scmp.lt.s32.totalorder %s19412_s27, %s19412_s27 }
  0x38   : > { %p18913_p2 = scmp.ne.s32.totalorder %s19412_s27, %s18912_s17  ;;  %p18921_p10 = scmp.lt.s32.totalorder %s18912_s17, %s18912_s17 }
  0x3a   : > { %p18915_p5 = pnand %p18913_p2, %p23899_p12  ;;  %p18922_p13 = por %p18921_p10, %p18920_p9 }
  0x3c   : > { %p18916_p11 = pneg %p18915_p5 }
  0x3e   : > { %p18923_p8 = pnand %p18922_p13, %p18916_p11 }
  0x40   : > { %18926 = shalt.err (!%p18923_p8)
}
  0x41   : > { %s19272_s11 = smov 32   ;;  %s19273_s13 = smov 2  }
  0x42   : > { %18718 = dma.hbm_to_vmem [thread:$0]  (!%p19423_p3), %s23881_s7, 1568, %s19412_s27, [#allocation15], %s19272_s11, %s19272_s11, %s19273_s13  }
  0x43   : > { %s19467_s26 = sand.u32 1, %s19269_s14   ;;  %s24494_s1 = sld [smem:[#allocation179_spill]] }
  0x44   : > { %s438_s22 = scalar_lea.vmem [#allocation5], %s19437_s20  ;;  %s23903_s15 = scalar_lea.sflag [#allocation6], %s19467_s26 }
  0x45   : > { %s449_s12 = sshll.u32 %s438_s22, 4  ;;  %p19482_p8 = pneg %p19432_p7  ;;  %s19476_s12 = int_to_ptr.vmem [resolvable:$true] %s449_s12 }
  0x47   : > { %s24495_s27 = scalar_select %p19482_p8, 1, 0 }
  0x49   : > { %s13336_s30 = scalar_lea.hbm %s24494_s1, %s19428_s16  ;;  %s18932_s23 = scalar_lea.hbm %s24494_s1, 8448 }
  0x4a   : > { %s19473_s9 = scalar_lea.hbm %s13336_s30, 3072  ;;  %s18957_s21 = scalar_lea.hbm %s13336_s30, 3264 }
  0x4b   : > { %p18928_p5 = scmp.ne.s32.totalorder %s19473_s9, %s18957_s21  ;;  %p18933_p2 = scmp.lt.u32.totalorder %s19473_s9, %s24494_s1 }
  0x4c   : > { %p18934_p1 = scmp.lt.u32.totalorder %s18932_s23, %s18957_s21  ;;  %p18936_p6 = scmp.lt.u32.totalorder %s18957_s21, %s19473_s9 }
  0x4d   : > { %p18930_p9 = pnand %p19482_p8, %p18928_p5 }
  0x4e   : > { %p18935_p4 = por %p18934_p1, %p18933_p2 }
  0x4f   : > { %p18931_p11 = pneg %p18930_p9 }
  0x50   : > { %p18937_p10 = por %p18936_p6, %p18935_p4 }
  0x52   : > { %p18938_p13 = pnand %p18937_p10, %p18931_p11 }
  0x54   : > { %18941 = shalt.err (!%p18938_p13)
}
  0x55   : > { %s18942_s30 = scalar_lea.vmem %s19476_s12, 192  ;;  %s19274_s19 = smov [#allocation5]  }
  0x56   : > { %p18943_p5 = scmp.ne.s32.totalorder %s19476_s12, %s18942_s30  ;;  %s18947_s17 = sshll.u32 %s19274_s19, 4  ;;  %s18948_s17 = int_to_ptr.vmem [resolvable:$false] %s18947_s17 }
  0x57   : > { %s18949_s11 = scalar_lea.vmem %s18948_s17, 384  ;;  %p18950_p0 = scmp.lt.s32.totalorder %s19476_s12, %s18948_s17 }
  0x58   : > { %p18945_p9 = pnand %p18943_p5, %p19482_p8  ;;  %p18951_p3 = scmp.lt.s32.totalorder %s18949_s11, %s18942_s30 }
  0x5a   : > { %p18946_p12 = pneg %p18945_p9  ;;  %p18952_p2 = por %p18951_p3, %p18950_p0 }
  0x5c   : > { %p18953_p1 = pnand %p18952_p2, %p18946_p12 }
  0x5e   : > { %18956 = shalt.err (!%p18953_p1)
}
  0x5f   : > { %s19275_s21 = smov 64   ;;  %s19276_s13 = smov 4  }
  0x60   : > { %18728 = dma.hbm_to_vmem [thread:$0]  (!%p19432_p7), %s19473_s9, 192, %s19476_s12, %s23903_s15, %s19275_s21, %s19275_s21, %s19276_s13  }
  0x61   : > { %s24496_s3 = sld [smem:[#allocation180_spill]]  ;;  %s488_s19 = scalar_lea.vmem [#allocation8], %s19437_s20 }
  0x62   : > { %s499_s17 = sshll.u32 %s488_s19, 4  ;;  %s23904_s11 = scalar_lea.sflag [#allocation9], %s19467_s26  ;;  %s19517_s17 = int_to_ptr.vmem [resolvable:$true] %s499_s17 }
  0x67   : > { %s13356_s22 = scalar_lea.hbm %s24496_s3, %s19428_s16  ;;  %s18963_s23 = scalar_lea.hbm %s24496_s3, 8448 }
  0x68   : > { %s19514_s30 = scalar_lea.hbm %s13356_s22, 3456  ;;  %s18988_s1 = scalar_lea.hbm %s13356_s22, 3648 }
  0x69   : > { %p18959_p0 = scmp.ne.s32.totalorder %s19514_s30, %s18988_s1  ;;  %p18964_p11 = scmp.lt.u32.totalorder %s19514_s30, %s24496_s3 }
  0x6a   : > { %p18965_p4 = scmp.lt.u32.totalorder %s18963_s23, %s18988_s1  ;;  %p18967_p10 = scmp.lt.u32.totalorder %s18988_s1, %s19514_s30 }
  0x6b   : > { %p18961_p3 = pnand %p18959_p0, %p19482_p8 }
  0x6c   : > { %p18966_p6 = por %p18965_p4, %p18964_p11 }
  0x6d   : > { %p18962_p12 = pneg %p18961_p3 }
  0x6e   : > { %p18968_p13 = por %p18967_p10, %p18966_p6 }
  0x70   : > { %p18969_p5 = pnand %p18968_p13, %p18962_p12 }
  0x72   : > { %18972 = shalt.err (!%p18969_p5)
}
  0x73   : > { %s18973_s22 = scalar_lea.vmem %s19517_s17, 192  ;;  %s19277_s19 = smov [#allocation8]  }
  0x74   : > { %p18974_p9 = scmp.ne.s32.totalorder %s19517_s17, %s18973_s22  ;;  %s18978_s9 = sshll.u32 %s19277_s19, 4  ;;  %s18979_s9 = int_to_ptr.vmem [resolvable:$false] %s18978_s9 }
  0x75   : > { %s18980_s15 = scalar_lea.vmem %s18979_s9, 384  ;;  %p18981_p0 = scmp.lt.s32.totalorder %s19517_s17, %s18979_s9 }
  0x76   : > { %p18976_p2 = pnand %p18974_p9, %p19482_p8  ;;  %p18982_p3 = scmp.lt.s32.totalorder %s18980_s15, %s18973_s22 }
  0x78   : > { %p18977_p1 = pneg %p18976_p2  ;;  %p18983_p11 = por %p18982_p3, %p18981_p0 }
  0x7a   : > { %p18984_p4 = pnand %p18983_p11, %p18977_p1 }
  0x7c   : > { %18987 = shalt.err (!%p18984_p4)
}
  0x7d   : > { %18734 = dma.hbm_to_vmem [thread:$0]  (!%p19432_p7), %s19514_s30, 192, %s19517_s17, %s23904_s11, %s19275_s21, %s19275_s21, %s19276_s13  }
  0x7e   : > { %s24497_s5 = sld [smem:[#allocation181_spill]]  ;;  %s538_s22 = scalar_lea.vmem [#allocation11], %s19437_s20 }
  0x7f   : > { %s549_s19 = sshll.u32 %s538_s22, 4  ;;  %s535_s9 = scalar_lea.sflag [#allocation12], %s19467_s26  ;;  %s19552_s19 = int_to_ptr.vmem [resolvable:$true] %s549_s19 }
  0x84   : > { %s13376_s23 = scalar_lea.hbm %s24497_s5, %s19428_s16  ;;  %s18994_s1 = scalar_lea.hbm %s24497_s5, 8448 }
  0x85   : > { %s19549_s24 = scalar_lea.hbm %s13376_s23, 3840  ;;  %s19019_s15 = scalar_lea.hbm %s13376_s23, 4032 }
  0x86   : > { %p18990_p12 = scmp.ne.s32.totalorder %s19549_s24, %s19019_s15  ;;  %p18995_p13 = scmp.lt.u32.totalorder %s19549_s24, %s24497_s5 }
  0x87   : > { %p18996_p5 = scmp.lt.u32.totalorder %s18994_s1, %s19019_s15  ;;  %p18998_p2 = scmp.lt.u32.totalorder %s19019_s15, %s19549_s24 }
  0x88   : > { %p18992_p6 = pnand %p18990_p12, %p19482_p8 }
  0x89   : > { %p18997_p9 = por %p18996_p5, %p18995_p13 }
  0x8a   : > { %p18993_p10 = pneg %p18992_p6 }
  0x8b   : > { %p18999_p1 = por %p18998_p2, %p18997_p9 }
  0x8d   : > { %p19000_p0 = pnand %p18999_p1, %p18993_p10 }
  0x8f   : > { %19003 = shalt.err (!%p19000_p0)
}
  0x90   : > { %s19004_s23 = scalar_lea.vmem %s19552_s19, 192  ;;  %s19278_s22 = smov [#allocation11]  }
  0x91   : > { %p19005_p3 = scmp.ne.s32.totalorder %s19552_s19, %s19004_s23  ;;  %s19009_s30 = sshll.u32 %s19278_s22, 4  ;;  %s19010_s30 = int_to_ptr.vmem [resolvable:$false] %s19009_s30 }
  0x92   : > { %s19011_s11 = scalar_lea.vmem %s19010_s30, 384  ;;  %p19012_p12 = scmp.lt.s32.totalorder %s19552_s19, %s19010_s30 }
  0x93   : > { %p19007_p11 = pnand %p19005_p3, %p19482_p8  ;;  %p19013_p6 = scmp.lt.s32.totalorder %s19011_s11, %s19004_s23 }
  0x95   : > { %p19008_p4 = pneg %p19007_p11  ;;  %p19014_p13 = por %p19013_p6, %p19012_p12 }
  0x97   : > { %p19015_p5 = pnand %p19014_p13, %p19008_p4 }
  0x99   : > { %19018 = shalt.err (!%p19015_p5)
}
  0x9a   : > { %18740 = dma.hbm_to_vmem [thread:$0]  (!%p19432_p7), %s19549_s24, 192, %s19552_s19, %s535_s9, %s19275_s21, %s19275_s21, %s19276_s13  }
  0x9b   : > { %s19279_s15 = smov [#allocation16]   ;;  %s18681_s1 = smul.u32 192, %s19419_s28 }
  0x9c   : > { %s391_s17 = sshll.u32 %s19279_s15, 4  ;;  %s19020_s22 = scalar_lea.hbm %s23882_s8, 16  ;;  %s392_s17 = int_to_ptr.vmem [resolvable:$true] %s391_s17 }
  0x9d   : > { %p19021_p10 = scmp.ne.s32.totalorder %s23882_s8, %s19020_s22  ;;  %p24498_p9 = scmp.ne.s32.totalorder %s24492_s29, 0 }
  0x9e   : > { %p19027_p3 = scmp.lt.u32.totalorder %s19020_s22, %s23882_s8 }
  0x9f   : > { %p24499_p2 = pneg %p24498_p9 }
  0xa1   : > { %p19023_p1 = pnand %p19021_p10, %p24499_p2 }
  0xa3   : > { %p19024_p0 = pneg %p19023_p1 }
  0xa5   : > { %p19029_p11 = pnand %p19027_p3, %p19024_p0 }
  0xa7   : > { %19032 = shalt.err (!%p19029_p11)
}
  0xa8   : > { %s19033_s24 = scalar_lea.vmem %s392_s17, 16  ;;  %p24500_p12 = pmov %p24499_p2 }
  0xa9   : > { %p19034_p4 = scmp.ne.s32.totalorder %s392_s17, %s19033_s24  ;;  %s19040_s19 = scalar_lea.vmem %s392_s17, 32 }
  0xaa   : > { %p19041_p5 = scmp.lt.s32.totalorder %s392_s17, %s392_s17  ;;  %p19042_p7 = scmp.lt.s32.totalorder %s19040_s19, %s19033_s24 }
  0xab   : > { %p19036_p6 = pnand %p19034_p4, %p24500_p12 }
  0xac   : > { %p19043_p8 = por %p19042_p7, %p19041_p5 }
  0xad   : > { %p19037_p13 = pneg %p19036_p6 }
  0xaf   : > { %p19044_p2 = pnand %p19043_p8, %p19037_p13 }
  0xb1   : > { %19047 = shalt.err (!%p19044_p2)
}
  0xb2   : > { %18721 = dma.hbm_to_vmem [thread:$0]  (!%p24498_p9), %s23882_s8, 16, %s392_s17, [#allocation15]  }
  0xb3   : > { %s19605_s23 = scalar_lea.hbm %s23874_s0, %s19428_s16  ;;  %s406_s22 = scalar_lea.vmem [#allocation2], %s18681_s1 }
  0xb4   : > { %s424_s30 = sshll.u32 %s406_s22, 4  ;;  %s19613_s24 = scalar_lea.hbm %s23876_s2, %s19428_s16  ;;  %s19607_s30 = int_to_ptr.vmem [resolvable:$true] %s424_s30 }
  0xb5   : > { %s403_s19 = scalar_lea.sflag [#allocation3], %s19419_s28  ;;  %s19048_s17 = scalar_lea.hbm %s19605_s23, 3072 }
  0xb6   : > { %p19049_p7 = scmp.ne.s32.totalorder %s19605_s23, %s19048_s17  ;;  %p24501_p8 = scmp.ne.s32.totalorder %s24495_s27, 0 }
  0xb7   : > { %s19053_s5 = scalar_lea.hbm %s23874_s0, 8448  ;;  %p19054_p1 = scmp.lt.u32.totalorder %s19605_s23, %s23874_s0 }
  0xb8   : > { %p19051_p10 = pnand %p19049_p7, %p24501_p8  ;;  %p19055_p0 = scmp.lt.u32.totalorder %s19053_s5, %s19048_s17 }
  0xb9   : > { %p19057_p11 = scmp.lt.u32.totalorder %s19048_s17, %s19605_s23 }
  0xba   : > { %p19052_p9 = pneg %p19051_p10  ;;  %p19056_p3 = por %p19055_p0, %p19054_p1 }
  0xbc   : > { %p19058_p4 = por %p19057_p11, %p19056_p3 }
  0xbe   : > { %p19059_p12 = pnand %p19058_p4, %p19052_p9 }
  0xc0   : > { %19062 = shalt.err (!%p19059_p12)
}
  0xc1   : > { %s19063_s22 = scalar_lea.vmem %s19607_s30, 3072  ;;  %s19280_s29 = smov [#allocation2]  }
  0xc2   : > { %p19064_p6 = scmp.ne.s32.totalorder %s19607_s30, %s19063_s22  ;;  %s19068_s11 = sshll.u32 %s19280_s29, 4  ;;  %s19069_s11 = int_to_ptr.vmem [resolvable:$false] %s19068_s11 }
  0xc3   : > { %s19070_s15 = scalar_lea.vmem %s19069_s11, 6144  ;;  %p19071_p2 = scmp.lt.s32.totalorder %s19607_s30, %s19069_s11 }
  0xc4   : > { %p19066_p13 = pnand %p19064_p6, %p24501_p8  ;;  %p19072_p7 = scmp.lt.s32.totalorder %s19070_s15, %s19063_s22 }
  0xc6   : > { %p19067_p5 = pneg %p19066_p13  ;;  %p19073_p10 = por %p19072_p7, %p19071_p2 }
  0xc8   : > { %p19074_p1 = pnand %p19073_p10, %p19067_p5 }
  0xca   : > { %19077 = shalt.err (!%p19074_p1)
}
  0xcb   : > { %p24502_p9 = scmp.ne.s32.totalorder %s24493_s18, 0  ;;  %s19643_s17 = scalar_lea.hbm %s19613_s24, 3264 }
  0xcc   : > { %s463_s3 = scalar_lea.vmem [#allocation7], %s19437_s20  ;;  %s19108_s12 = scalar_lea.hbm %s19613_s24, 3456 }
  0xcd   : > { %18725 = dma.hbm_to_vmem [thread:$0]  (!%p24502_p9), %s19605_s23, 3072, %s19607_s30, %s403_s19, %s19275_s21, %s19275_s21, %s19276_s13  }
  0xce   : > { %s474_s5 = sshll.u32 %s463_s3, 4  ;;  %p19079_p0 = scmp.ne.s32.totalorder %s19643_s17, %s19108_s12  ;;  %s19646_s5 = int_to_ptr.vmem [resolvable:$true] %s474_s5 }
  0xcf   : > { %s19083_s22 = scalar_lea.hbm %s23876_s2, 8448  ;;  %p19084_p4 = scmp.lt.u32.totalorder %s19643_s17, %s23876_s2 }
  0xd0   : > { %p19081_p3 = pnand %p19079_p0, %p24501_p8  ;;  %p19085_p12 = scmp.lt.u32.totalorder %s19083_s22, %s19108_s12 }
  0xd1   : > { %p19087_p13 = scmp.lt.u32.totalorder %s19108_s12, %s19643_s17 }
  0xd2   : > { %p19082_p11 = pneg %p19081_p3  ;;  %p19086_p6 = por %p19085_p12, %p19084_p4 }
  0xd4   : > { %p19088_p5 = por %p19087_p13, %p19086_p6 }
  0xd6   : > { %p19089_p2 = pnand %p19088_p5, %p19082_p11 }
  0xd8   : > { %19092 = shalt.err (!%p19089_p2)
}
  0xd9   : > { %s19093_s30 = scalar_lea.vmem %s19646_s5, 192  ;;  %s19281_s24 = smov [#allocation7]  }
  0xda   : > { %p19094_p7 = scmp.ne.s32.totalorder %s19646_s5, %s19093_s30  ;;  %s19098_s19 = sshll.u32 %s19281_s24, 4  ;;  %s19099_s19 = int_to_ptr.vmem [resolvable:$false] %s19098_s19 }
  0xdb   : > { %s19100_s11 = scalar_lea.vmem %s19099_s19, 384  ;;  %p19101_p0 = scmp.lt.s32.totalorder %s19646_s5, %s19099_s19 }
  0xdc   : > { %p19096_p10 = pnand %p19094_p7, %p24501_p8  ;;  %p19102_p3 = scmp.lt.s32.totalorder %s19100_s11, %s19093_s30 }
  0xde   : > { %p19097_p1 = pneg %p19096_p10  ;;  %p19103_p4 = por %p19102_p3, %p19101_p0 }
  0xe0   : > { %p19104_p12 = pnand %p19103_p4, %p19097_p1 }
  0xe2   : > { %19107 = shalt.err (!%p19104_p12)
}
  0xe3   : > { %s24503_s15 = scalar_lea.sflag [#allocation6], %s19467_s26  ;;  %s13366_s28 = scalar_lea.hbm %s23878_s4, %s19428_s16 }
  0xe4   : > { %18731 = dma.hbm_to_vmem [thread:$0]  (!%p24502_p9), %s19643_s17, 192, %s19646_s5, %s24503_s15, %s19275_s21, %s19275_s21, %s19276_s13  }
  0xe5   : > { %s513_s1 = scalar_lea.vmem [#allocation10], %s19437_s20  ;;  %s19679_s29 = scalar_lea.hbm %s13366_s28, 3648 }
  0xe6   : > { %s524_s22 = sshll.u32 %s513_s1, 4  ;;  %s19139_s23 = scalar_lea.hbm %s13366_s28, 3840  ;;  %s19681_s22 = int_to_ptr.vmem [resolvable:$true] %s524_s22 }
  0xe7   : > { %p19110_p11 = scmp.ne.s32.totalorder %s19679_s29, %s19139_s23  ;;  %s19114_s5 = scalar_lea.hbm %s23878_s4, 8448 }
  0xe8   : > { %p19115_p5 = scmp.lt.u32.totalorder %s19679_s29, %s23878_s4  ;;  %p19116_p2 = scmp.lt.u32.totalorder %s19114_s5, %s19139_s23 }
  0xe9   : > { %p19112_p6 = pnand %p19110_p11, %p24501_p8  ;;  %p19118_p10 = scmp.lt.u32.totalorder %s19139_s23, %s19679_s29 }
  0xea   : > { %p19117_p7 = por %p19116_p2, %p19115_p5 }
  0xeb   : > { %p19113_p13 = pneg %p19112_p6 }
  0xec   : > { %p19119_p1 = por %p19118_p10, %p19117_p7 }
  0xee   : > { %p19120_p0 = pnand %p19119_p1, %p19113_p13 }
  0xf0   : > { %19123 = shalt.err (!%p19120_p0)
}
  0xf1   : > { %s19124_s11 = scalar_lea.vmem %s19681_s22, 192  ;;  %s19282_s15 = smov [#allocation10]  }
  0xf2   : > { %p19125_p3 = scmp.ne.s32.totalorder %s19681_s22, %s19124_s11  ;;  %s19129_s3 = sshll.u32 %s19282_s15, 4  ;;  %s19130_s3 = int_to_ptr.vmem [resolvable:$false] %s19129_s3 }
  0xf3   : > { %s19131_s12 = scalar_lea.vmem %s19130_s3, 384  ;;  %p19132_p11 = scmp.lt.s32.totalorder %s19681_s22, %s19130_s3 }
  0xf4   : > { %p19127_p4 = pnand %p19125_p3, %p24501_p8  ;;  %p19133_p6 = scmp.lt.s32.totalorder %s19131_s12, %s19124_s11 }
  0xf6   : > { %p19128_p12 = pneg %p19127_p4  ;;  %p19134_p5 = por %p19133_p6, %p19132_p11 }
  0xf8   : > { %p19135_p2 = pnand %p19134_p5, %p19128_p12 }
  0xfa   : > { %19138 = shalt.err (!%p19135_p2)
}
  0xfb   : > { %s24504_s28 = scalar_lea.sflag [#allocation9], %s19467_s26  ;;  %s13386_s30 = scalar_lea.hbm %s23880_s6, %s19428_s16 }
  0xfc   : > { %18737 = dma.hbm_to_vmem [thread:$0]  (!%p24502_p9), %s19679_s29, 192, %s19681_s22, %s24504_s28, %s19275_s21, %s19275_s21, %s19276_s13  }
  0xfd   : > { %s19712_s17 = scalar_lea.hbm %s13386_s30, 4032  ;;  %s563_s5 = scalar_lea.vmem [#allocation13], %s19437_s20 }
  0xfe   : > { %s574_s24 = sshll.u32 %s563_s5, 4  ;;  %s19170_s19 = scalar_lea.hbm %s13386_s30, 4224  ;;  %s19715_s24 = int_to_ptr.vmem [resolvable:$true] %s574_s24 }
  0xff   : > { %p19141_p13 = scmp.ne.s32.totalorder %s19712_s17, %s19170_s19  ;;  %s19145_s29 = scalar_lea.hbm %s23880_s6, 8448 }
 0x100   : > { %p19146_p1 = scmp.lt.u32.totalorder %s19712_s17, %s23880_s6  ;;  %p19147_p0 = scmp.lt.u32.totalorder %s19145_s29, %s19170_s19 }
 0x101   : > { %p19143_p7 = pnand %p19141_p13, %p24501_p8  ;;  %p19149_p4 = scmp.lt.u32.totalorder %s19170_s19, %s19712_s17 }
 0x102   : > { %p19148_p3 = por %p19147_p0, %p19146_p1 }
 0x103   : > { %p19144_p10 = pneg %p19143_p7 }
 0x104   : > { %p19150_p12 = por %p19149_p4, %p19148_p3 }
 0x106   : > { %p19151_p11 = pnand %p19150_p12, %p19144_p10 }
 0x108   : > { %19154 = shalt.err (!%p19151_p11)
}
 0x109   : > { %s19155_s20 = scalar_lea.vmem %s19715_s24, 192  ;;  %s19283_s3 = smov [#allocation13]  }
 0x10a   : > { %p19156_p6 = scmp.ne.s32.totalorder %s19715_s24, %s19155_s20  ;;  %s19160_s12 = sshll.u32 %s19283_s3, 4  ;;  %s19161_s12 = int_to_ptr.vmem [resolvable:$false] %s19160_s12 }
 0x10b   : > { %s19162_s28 = scalar_lea.vmem %s19161_s12, 384  ;;  %p19163_p13 = scmp.lt.s32.totalorder %s19715_s24, %s19161_s12 }
 0x10c   : > { %p19158_p5 = pnand %p19156_p6, %p24501_p8  ;;  %p19164_p7 = scmp.lt.s32.totalorder %s19162_s28, %s19155_s20 }
 0x10e   : > { %p19159_p2 = pneg %p19158_p5  ;;  %p19165_p1 = por %p19164_p7, %p19163_p13 }
 0x110   : > { %p19166_p0 = pnand %p19165_p1, %p19159_p2 }
 0x112   : > { %19169 = shalt.err (!%p19166_p0)
}
 0x113   : > { %18743 = dma.hbm_to_vmem [thread:$0]  (!%p24502_p9), %s19712_s17, 192, %s19715_s24, %s535_s9, %s19275_s21, %s19275_s21, %s19276_s13  }
 0x114   : > { %p24505_p8 = scmp.ne.s32.totalorder %s24491_s25, 0 }
 0x116   : > { %586 = sbr.rel (%p24505_p8) target bundleno = 2181 (0x885), region = 56 }
 0x11d   : > { %s24506_s27 = sld [smem:[#allocation30_spill]]  ;;  %s19745_s1 = sand.u32 1, %s19253_s10  }
 0x11e   : > { %s18689_s23 = smul.u32 192, %s19745_s1  ;;  %s589_s30 = scalar_lea.sflag [#allocation3], %s19745_s1 }
 0x120   : > { %s19749_s18 = scalar_lea.vmem [#allocation2], %s18689_s23 }
 0x123   : > { %p24507_p10 = scmp.ne.s32.totalorder %s24506_s27, 0 }
 0x125   : > { %19224 = dma.done.wait (%p24507_p10), %s589_s30, 3072  }
 0x126   : > { %19226 = vsyncadd (%p24507_p10), %s589_s30, 4294964224  ;;  %s24508_s26 = sld [smem:[#allocation28_spill]]  ;;  %s18690_s21 = smul.u32 12, %s19745_s1 }
 0x128   : > { %s19757_s9 = scalar_lea.vmem [#allocation5], %s18690_s21 }
 0x12c   : > { %s597_s25 = sand.u32 1, %s24508_s26  }
 0x12d   : > { %s598_s13 = scalar_lea.sflag [#allocation6], %s597_s25 }
 0x12e   : > { %19228 = dma.done.wait (%p24507_p10), %s598_s13, 384  }
 0x12f   : > { %19230 = vsyncadd (%p24507_p10), %s598_s13, 4294966912  ;;  %s19763_s17 = scalar_lea.vmem [#allocation7], %s18690_s21  ;;  %s616_s5 = scalar_lea.sflag [#allocation9], %s597_s25 }
 0x130   : > { %s19765_s24 = scalar_lea.vmem [#allocation8], %s18690_s21 }
 0x131   : > { %19232 = dma.done.wait (%p24507_p10), %s616_s5, 384  }
 0x132   : > { %19234 = vsyncadd (%p24507_p10), %s616_s5, 4294966912  ;;  %s19771_s19 = scalar_lea.vmem [#allocation10], %s18690_s21  ;;  %s634_s11 = scalar_lea.sflag [#allocation12], %s597_s25 }
 0x133   : > { %s19773_s22 = scalar_lea.vmem [#allocation11], %s18690_s21 }
 0x134   : > { %19236 = dma.done.wait (%p24507_p10), %s634_s11, 384  }
 0x135   : > { %19238 = vsyncadd (%p24507_p10), %s634_s11, 4294966912  ;;  %s19779_s29 = scalar_lea.vmem [#allocation13], %s18690_s21  ;;  %p24509_p9 = scmp.eq.s32.totalorder %s24508_s26, 0 }
 0x137   : > { %19240 = dma.done.wait (%p24509_p9), [#allocation15], 1584   ;;  %p24510_p3 = pmov %p24509_p9 }
 0x138   : > { %vm1293_vm0 = vcmask 1040384   ;;  %vm1294_vm1 = vcmask 1041408   ;;  %v19284_v0 = vmov 65535   ;;  %vm807_vm2 = vsmask.f32 3328  ;;  %s13568_s15 = sshll.u32 %s19745_s1, 7 }
 0x139   : > { %19242 = vsyncadd (%p24510_p3), [#allocation15], 4294965712  ;;  %v1295_v1 = vsel %vm1293_vm0, 4294967295, %v19284_v0  ;;  %vm808_vm3 = vsmask.f32 7440  ;;  %vm1244_vm6 = vcmask 23552  }
 0x13a   : > { %v19787_v2 = vsel %vm1294_vm1, %v1295_v1, 0  ;;  %vm2178_vm4 = vsmask.f32 2304  ;;  %vm2179_vm5 = vsmask.f32 6416  ;;  %vm19848_vm7 = vmor %vm807_vm2, %vm808_vm3  ;;  %v24522_v31 = vmov 0 }
 0x13b   : > { %v1195_v3 = vld [vmem:[#allocation14 + $0x2] sm:$0x3]  ;;  %v7708_v4 = vld [vmem:[#allocation14 + $0x30] sm:$0x3]  ;;  %v19797_v8 = vld [vmem:[%s19749_s18 + $0x4] sm:$0xf] }
 0x13c   : > { %v19790_v5 = vld [vmem:[%s19749_s18] sm:$0xf]  ;;  %v1298_v6 = vand.u32 %v19787_v2, %v1195_v3  ;;  %v19794_v7 = vand.u32 %v7708_v4, %v19787_v2  ;;  %24512 = vst [vmem:[#allocation35_spill] sm:$0xff] %v19797_v8  ;;  %v742_v9 = vld [vmem:[%s19749_s18 + $0x8] sm:$0x7]  ;;  %v19807_v12 = vshll.u32 %v19797_v8, 16  ;;  %vm19877_vm8 = vmor %vm2178_vm4, %vm2179_vm5 }
 0x13d   : > { %v19801_v10 = vshrl.u32 %v19790_v5, 16  ;;  %v19804_v11 = vshll.u32 %v19790_v5, 16  ;;  %v19810_v13 = vshrl.u32 %v19797_v8, 16  ;;  %v19812_v14 = vshll.u32 %v742_v9, 16  ;;  %v806_v15 = vld [vmem:[#allocation14] sm:$0x3] }
 0x13e   : > { %24511 = vst [vmem:[#allocation34_spill] sm:$0xff] %v19794_v7  ;;  %24515 = vst [vmem:[#allocation38_spill] sm:$0xff] %v19807_v12  ;;  %15477 = vmatprep.subr.bf16.mxu1 %v1298_v6  ;;  %16293 = vmatprep.subr.bf16.mxu0 %v19794_v7  ;;  %v19818_v18 = vand.u32 %v19787_v2, %v806_v15  ;;  %v19821_v19 = vld [vmem:[%s19749_s18 + $0x24] sm:$0xf]  ;;  %v19824_v20 = vld [vmem:[%s19749_s18 + $0x28] sm:$0xf] }
 0x13f   : > { %24513 = vst [vmem:[#allocation36_spill] sm:$0xff] %v19801_v10  ;;  %24514 = vst [vmem:[#allocation37_spill] sm:$0xff] %v19804_v11  ;;  %v813_v16 = vrot.slane %v19801_v10, 4  ;;  %v816_v17 = vrot.slane %v19804_v11, 5  ;;  %15478 = vmatpush3.bf16.msra.mxu1 %v1298_v6  ;;  %16294 = vmatpush3.bf16.msra.mxu0 %v19794_v7  ;;  %v822_v21 = vrot.slane %v19807_v12, 5  ;;  %v826_v22 = vrot.slane %v19810_v13, 4 }
 0x140   : > { %24516 = vst [vmem:[#allocation39_spill] sm:$0xff] %v19810_v13  ;;  %24517 = vst [vmem:[#allocation40_spill] sm:$0xff] %v19812_v14  ;;  %v832_v23 = vrot.slane %v19812_v14, 5  ;;  %v19831_v24 = vld [vmem:[%s19749_s18 + $0x2c] sm:$0x7]  ;;  %v19834_v25 = vshrl.u32 %v19821_v19, 16  ;;  %15511 = vmatprep.subr.bf16.mxu1 %v19818_v18 }
 0x141   : > { %v817_v26 = vor.u32 %v816_v17, %v813_v16  ;;  %v19838_v27 = vshll.u32 %v19821_v19, 16  ;;  %v19841_v28 = vshll.u32 %v19824_v20, 16  ;;  %v19844_v29 = vshrl.u32 %v19824_v20, 16  ;;  %v7919_v30 = vld [vmem:[#allocation14 + $0x32] sm:$0x3]  ;;  %s23720_s16 = scalar_lea.vmem [#allocation17], %s13568_s15 }
 0x142   : > { %24518 = vst [vmem:[#allocation41_spill] sm:$0xff] %v19834_v25  ;;  %v24523_v31 = vsel %vm19848_vm7, 4294967295, %v24522_v31  ;;  %v827_v32 = vor.u32 %v826_v22, %v822_v21  ;;  %v19853_v33 = vshll.u32 %v19831_v24, 16  ;;  %v2226_v34 = vrot.slane %v19834_v25, 5  ;;  %v743_v36 = vld [vmem:[%s19749_s18 + $0xc] sm:$0xf] }
 0x143   : > { %24519 = vst [vmem:[#allocation42_spill] sm:$0xff] %v19838_v27  ;;  %24520 = vst [vmem:[#allocation43_spill] sm:$0xff] %v19841_v28  ;;  %v23909_v35 = vshrl.u32 %v19831_v24, 16  ;;  %v818_v37 = vrot.slane %v817_v26, 4  ;;  %v2227_v38 = vrot.slane %v19838_v27, 6  ;;  %v2230_v39 = vrot.slane %v19844_v29, 5 }
 0x144   : > { %24521 = vst [vmem:[#allocation44_spill] sm:$0xff] %v19844_v29  ;;  %24524 = vst [vmem:[#allocation45_spill] sm:$0xff] %v24523_v31  ;;  %v2231_v40 = vrot.slane %v19841_v28, 6  ;;  %v744_v41 = vld [vmem:[%s19749_s18 + $0x10] sm:$0xf]  ;;  %v828_v42 = vrot.slane %v827_v32, 4  ;;  %v19866_v45 = vand.u32 %v7919_v30, %v19787_v2 }
 0x145   : > { %24525 = vst [vmem:[#allocation46_spill] sm:$0xff] %v19853_v33  ;;  %v2237_v43 = vrot.slane %v23909_v35, 5  ;;  %v2238_v44 = vrot.slane %v19853_v33, 6  ;;  %v823_v46 = vsel %vm19848_vm7, %v818_v37, %v822_v21  ;;  %v2228_v47 = vor.u32 %v2227_v38, %v2226_v34  ;;  %v745_v49 = vld [vmem:[%s19749_s18 + $0x14] sm:$0x7]  ;;  %s25375_s20 = sld [smem:[#allocation26_spill]] }
 0x146   : > { %v2232_v48 = vor.u32 %v2231_v40, %v2230_v39  ;;  %v19871_v50 = vshrl.u32 %v743_v36, 16  ;;  %v833_v51 = vsel %vm19848_vm7, %v828_v42, %v832_v23  ;;  %v24527_v52 = vmov 0  ;;  %16327 = vmatprep.subr.bf16.mxu0 %v19866_v45  ;;  %v19902_v9 = vld [vmem:[%s19749_s18 + $0x30] sm:$0xf]  ;;  %v19907_v17 = vld [vmem:[%s19749_s18 + $0x34] sm:$0xf] }
 0x147   : > { %v24528_v52 = vsel %vm19877_vm8, 4294967295, %v24527_v52  ;;  %v2239_v53 = vor.u32 %v2238_v44, %v2237_v43  ;;  %v19882_v54 = vshll.u32 %v743_v36, 16  ;;  %v19884_v55 = vshll.u32 %v744_v41, 16  ;;  %v19916_v32 = vld [vmem:[%s19749_s18 + $0x38] sm:$0x7]  ;;  %s13279_s12 = sshll.u32 %s23720_s16, 4  ;;  %s23819_s12 = int_to_ptr.vmem [resolvable:$true] %s13279_s12 }
 0x148   : > { %24526 = vst [vmem:[#allocation47_spill] sm:$0xff] %v19871_v50  ;;  %24529 = vst [vmem:[#allocation48_spill] sm:$0xff] %v24528_v52  ;;  %v13569_v56 = vcombine.low %v823_v46, %v833_v51  ;;  %v2229_v57 = vrot.slane %v2228_v47, 4  ;;  %v2234_v58 = vrot.slane %v2232_v48, 4  ;;  %v837_v59 = vrot.slane %v19871_v50, 4  ;;  %s25376_s28 = sld [smem:[#allocation31_spill]] }
 0x149   : > { %24530 = vst [vmem:[#allocation49_spill] sm:$0xff] %v19882_v54  ;;  %24531 = vst [vmem:[#allocation50_spill] sm:$0xff] %v19884_v55  ;;  %v840_v60 = vrot.slane %v19882_v54, 5  ;;  %v846_v61 = vrot.slane %v19884_v55, 5  ;;  %v19889_v62 = vshrl.u32 %v744_v41, 16  ;;  %v19891_v63 = vshll.u32 %v745_v49, 16 }
 0x14a   : > { %15479 = vmatprep.mubr.msk.bf16.mxu1 %vm1244_vm6, %v13569_v56  ;;  %v2233_v0 = vsel %vm19877_vm8, %v2229_v57, %v2232_v48  ;;  %v2240_v1 = vsel %vm19877_vm8, %v2234_v58, %v2239_v53  ;;  %v19921_v37 = vshrl.u32 %v19902_v9, 16  ;;  %v19924_v38 = vshll.u32 %v19902_v9, 16  ;;  %v19927_v39 = vld [vmem:[%s19749_s18 + $0x18] sm:$0xf]  ;;  %v19948_v56 = vld [vmem:[%s19749_s18 + $0x1c] sm:$0xf] }
 0x14b   : > { %24532 = vst [vmem:[#allocation51_spill] sm:$0xff] %v19889_v62  ;;  %24533 = vst [vmem:[#allocation52_spill] sm:$0xff] %v19891_v63  ;;  %v19898_v3 = vcombine.low %v2233_v0, %v2240_v1  ;;  %v841_v4 = vor.u32 %v840_v60, %v837_v59  ;;  %v850_v6 = vrot.slane %v19889_v62, 4  ;;  %v856_v26 = vrot.slane %v19891_v63, 5  ;;  %v748_v0 = vld [vmem:[%s19749_s18 + $0x20] sm:$0x7] }
 0x14c   : > { %24535 = vst [vmem:[#allocation54_spill] sm:$0xff] %v19921_v37  ;;  %24536 = vst [vmem:[#allocation55_spill] sm:$0xff] %v19924_v38  ;;  %v19932_v42 = vshll.u32 %v19907_v17, 16  ;;  %v19935_v43 = vshrl.u32 %v19907_v17, 16  ;;  %v19938_v44 = vshll.u32 %v19916_v32, 16  ;;  %v2241_v46 = vrot.slane %v19921_v37, 5 }
 0x14d   : > { %24534 = vst [vmem:[#allocation53_spill] sm:$0xff] %v19898_v3  ;;  %16295 = vmatprep.mubr.msk.bf16.mxu0 %vm1244_vm6, %v19898_v3  ;;  %v842_v22 = vrot.slane %v841_v4, 4  ;;  %v851_v23 = vor.u32 %v850_v6, %v846_v61  ;;  %v2242_v47 = vrot.slane %v19924_v38, 6  ;;  %v2250_v48 = vshrl.u32 %v19916_v32, 16  ;;  %v19958_v1 = vld [vmem:[%s19749_s18 + $0x3c] sm:$0xf] }
 0x14e   : > { %24537 = vst [vmem:[#allocation56_spill] sm:$0xff] %v19932_v42  ;;  %24538 = vst [vmem:[#allocation57_spill] sm:$0xff] %v19935_v43  ;;  %v2245_v51 = vrot.slane %v19935_v43, 5  ;;  %v2246_v53 = vrot.slane %v19932_v42, 6  ;;  %v19951_v57 = vshrl.u32 %v19927_v39, 16  ;;  %v19992_v34 = vshll.u32 %v19958_v1, 16 }
 0x14f   : > { %v847_v40 = vsel %vm19848_vm7, %v842_v22, %v846_v61  ;;  %v852_v41 = vrot.slane %v851_v23, 4  ;;  %24539 = vst [vmem:[#allocation58_spill] sm:$0xff] %v19938_v44  ;;  %v2243_v59 = vor.u32 %v2242_v47, %v2241_v46  ;;  %v2252_v60 = vrot.slane %v2250_v48, 5  ;;  %v19975_v47 = vld [vmem:[%s19749_s18 + $0x40] sm:$0xf]  ;;  %s14643_s3 = sshll.u32 %s25375_s20, 11 }
 0x150   : > { %24540 = vst [vmem:[#allocation59_spill] sm:$0xff] %v19951_v57  ;;  %v2253_v61 = vrot.slane %v19938_v44, 6  ;;  %v2247_v4 = vor.u32 %v2246_v53, %v2245_v51  ;;  %v19960_v6 = vrot.slane %v2250_v48, 6  ;;  %v861_v22 = vrot.slane %v19951_v57, 4  ;;  %v19982_v53 = vld [vmem:[%s19749_s18 + $0x44] sm:$0x7] }
 0x151   : > { %v857_v49 = vsel %vm19848_vm7, %v852_v41, %v856_v26  ;;  %v19964_v23 = vshll.u32 %v19927_v39, 16  ;;  %v2244_v26 = vrot.slane %v2243_v59, 4  ;;  %v19969_v41 = vshll.u32 %v19948_v56, 16  ;;  %24548 = vst [vmem:[#allocation67_spill] sm:$0xff] %v19992_v34  ;;  %v20084_v50 = vld [vmem:[%s19749_s18 + $0x58] sm:$0xf] }
 0x152   : > { %v19953_v58 = vcombine.low %v847_v40, %v857_v49  ;;  %24542 = vst [vmem:[#allocation61_spill] sm:$0xff] %v19960_v6  ;;  %v2254_v40 = vor.u32 %v2253_v61, %v2252_v60  ;;  %v19972_v46 = vshrl.u32 %v19948_v56, 16  ;;  %v2249_v48 = vrot.slane %v2247_v4, 4  ;;  %v20090_v12 = vld [vmem:[%s19749_s18 + $0x5c] sm:$0x7]  ;;  %s25377_s30 = sld [smem:[#allocation182_spill]] }
 0x153   : > { %24543 = vst [vmem:[#allocation62_spill] sm:$0xff] %v19964_v23  ;;  %24544 = vst [vmem:[#allocation63_spill] sm:$0xff] %v19969_v41  ;;  %v864_v49 = vrot.slane %v19964_v23, 5  ;;  %v19979_v51 = vshll.u32 %v748_v0, 16  ;;  %v19985_v59 = vshrl.u32 %v19958_v1, 16  ;;  %v2248_v60 = vsel %vm19877_vm8, %v2244_v26, %v2247_v4  ;;  %s13262_s25 = scalar_lea.sflag [#allocation4], %s19745_s1 }
 0x154   : > { %24541 = vst [vmem:[#allocation60_spill] sm:$0xff] %v19953_v58  ;;  %15480 = vmatmul.mubr.msk.bf16.vlgmr.msra.gmra.mrb[0].mxu1 %vm1244_vm6, %v19953_v58  ;;  %24545 = vst [vmem:[#allocation64_spill] sm:$0xff] %v19972_v46  ;;  %v870_v61 = vrot.slane %v19969_v41, 5  ;;  %v874_v36 = vrot.slane %v19972_v46, 4  ;;  %v19998_v16 = vshll.u32 %v19975_v47, 16  ;;  %v20003_v4 = vshrl.u32 %v19975_v47, 16 }
 0x155   : > { %15512 = vmatpush3.bf16.msra.mxu1 %v19818_v18  ;;  %24546 = vst [vmem:[#allocation65_spill] sm:$0xff] %v19979_v51  ;;  %24547 = vst [vmem:[#allocation66_spill] sm:$0xff] %v19985_v59  ;;  %v2255_v18 = vsel %vm19877_vm8, %v2249_v48, %v2254_v40  ;;  %v865_v0 = vor.u32 %v864_v49, %v861_v22  ;;  %v880_v30 = vrot.slane %v19979_v51, 5  ;;  %v20006_v26 = vshll.u32 %v19982_v53, 16  ;;  %v20683_v31 = vld [vmem:[%s19757_s9 + $0x4] sm:$0xf] }
 0x156   : > { %24549 = vst [vmem:[#allocation68_spill] sm:$0xff] %v19998_v16  ;;  %v20000_v15 = vcombine.low %v2248_v60, %v2255_v18  ;;  %v875_v35 = vor.u32 %v874_v36, %v870_v61  ;;  %24551 = vst [vmem:[#allocation70_spill] sm:$0xff] %v20003_v4  ;;  %v2256_v7 = vrot.slane %v19985_v59, 5  ;;  %v2257_v22 = vrot.slane %v19992_v34, 6  ;;  %s19171_s21 = scalar_lea.vmem %s23819_s12, 2048  ;;  %p25379_p12 = scmp.ne.s32.totalorder %s25376_s28, 0 }
 0x157   : > { %24552 = vst [vmem:[#allocation71_spill] sm:$0xff] %v20006_v26  ;;  %v866_v21 = vrot.slane %v865_v0, 4  ;;  %v2261_v40 = vrot.slane %v19998_v16, 6  ;;  %v2260_v36 = vrot.slane %v20003_v4, 5  ;;  %v2268_v60 = vrot.slane %v20006_v26, 6  ;;  %24646 = vst [vmem:[#allocation158_spill] sm:$0xff] %v20683_v31  ;;  %p19172_p4 = scmp.ne.s32.totalorder %s23819_s12, %s19171_s21 }
 0x158   : > { %24550 = vst [vmem:[#allocation69_spill] sm:$0xff] %v20000_v15  ;;  %16296 = vmatmul.mubr.msk.bf16.vlgmr.msra.gmra.mrb[0].mxu0 %vm1244_vm6, %v20000_v15  ;;  %v876_v48 = vrot.slane %v875_v35, 4  ;;  %v2258_v0 = vor.u32 %v2257_v22, %v2256_v7  ;;  %v885_v58 = vrot.slane %v19834_v25, 4  ;;  %v888_v3 = vrot.slane %v19838_v27, 5  ;;  %v20022_v15 = vld [vmem:[%s19749_s18 + $0x48] sm:$0xf]  ;;  %s23817_s26 = scalar_lea.hbm %s25377_s30, %s14643_s3 }
 0x159   : > { %16328 = vmatpush3.bf16.msra.mxu0 %v19866_v45  ;;  %v871_v18 = vsel %vm19848_vm7, %v866_v21, %v870_v61  ;;  %v2262_v49 = vor.u32 %v2261_v40, %v2260_v36  ;;  %v24553_v51 = vshrl.u32 %v19982_v53, 16  ;;  %v894_v46 = vrot.slane %v19841_v28, 5  ;;  %v20033_v61 = vld [vmem:[%s19749_s18 + $0x4c] sm:$0xf]  ;;  %v20036_v22 = vld [vmem:[%s19749_s18 + $0x50] sm:$0x7]  ;;  %p19173_p11 = pnand %p19172_p4, %p25379_p12 }
 0x15a   : > { %v881_v35 = vsel %vm19848_vm7, %v876_v48, %v880_v30  ;;  %v2259_v23 = vrot.slane %v2258_v0, 4  ;;  %v889_v21 = vor.u32 %v888_v3, %v885_v58  ;;  %v898_v7 = vrot.slane %v19844_v29, 4  ;;  %v20243_v28 = vld [vmem:[%s19749_s18 + $0x7c] sm:$0xf]  ;;  %s19285_s13 = smov [#allocation17]  }
 0x15b   : > { %v2267_v41 = vrot.slane %v24553_v51, 5  ;;  %v20029_v45 = vcombine.low %v871_v18, %v881_v35  ;;  %v2264_v63 = vrot.slane %v2262_v49, 4  ;;  %v904_v30 = vrot.slane %v19853_v33, 5  ;;  %v20196_v33 = vld [vmem:[%s19749_s18 + $0x74] sm:$0x7]  ;;  %p19174_p6 = pneg %p19173_p11 }
 0x15c   : > { %v20040_v40 = vshrl.u32 %v20022_v15, 16  ;;  %v2263_v51 = vsel %vm19877_vm8, %v2259_v23, %v2262_v49  ;;  %v890_v3 = vrot.slane %v889_v21, 4  ;;  %v899_v58 = vor.u32 %v898_v7, %v894_v46  ;;  %24573 = vst [vmem:[#allocation91_spill] sm:$0xff] %v20196_v33 }
 0x15d   : > { %24554 = vst [vmem:[#allocation72_spill] sm:$0xff] %v20029_v45  ;;  %v2269_v57 = vor.u32 %v2268_v60, %v2267_v41  ;;  %15483 = vmatprep.mubr.msk.bf16.mxu1 %vm1244_vm6, %v20029_v45  ;;  %v20047_v48 = vshll.u32 %v20022_v15, 16  ;;  %v20052_v41 = vshll.u32 %v20033_v61, 16  ;;  %v20055_v60 = vshrl.u32 %v20033_v61, 16 }
 0x15e   : > { %24555 = vst [vmem:[#allocation73_spill] sm:$0xff] %v20040_v40  ;;  %v20058_v18 = vshll.u32 %v20036_v22, 16  ;;  %v895_v23 = vsel %vm19848_vm7, %v890_v3, %v894_v46  ;;  %v900_v49 = vrot.slane %v899_v58, 4  ;;  %v2271_v35 = vrot.slane %v20040_v40, 5 }
 0x15f   : > { %24556 = vst [vmem:[#allocation74_spill] sm:$0xff] %v20047_v48  ;;  %v2270_v36 = vsel %vm19877_vm8, %v2264_v63, %v2269_v57  ;;  %24557 = vst [vmem:[#allocation75_spill] sm:$0xff] %v20052_v41  ;;  %v2272_v63 = vrot.slane %v20047_v48, 6  ;;  %v2275_v57 = vrot.slane %v20055_v60, 5  ;;  %v2276_v21 = vrot.slane %v20052_v41, 6 }
 0x160   : > { %24558 = vst [vmem:[#allocation76_spill] sm:$0xff] %v20055_v60  ;;  %24559 = vst [vmem:[#allocation77_spill] sm:$0xff] %v20058_v18  ;;  %v20060_v0 = vcombine.low %v2263_v51, %v2270_v36  ;;  %v23945_v7 = vshrl.u32 %v20036_v22, 16  ;;  %v905_v51 = vsel %vm19848_vm7, %v900_v49, %v904_v30  ;;  %v2283_v46 = vrot.slane %v20058_v18, 6  ;;  %v20077_v36 = vld [vmem:[%s19749_s18 + $0x54] sm:$0xf] }
 0x161   : > { %v909_v3 = vrot.slane %v19921_v37, 4  ;;  %v912_v58 = vrot.slane %v19924_v38, 5  ;;  %v20079_v45 = vcombine.low %v895_v23, %v905_v51  ;;  %v2273_v55 = vor.u32 %v2272_v63, %v2271_v35  ;;  %v20190_v37 = vld [vmem:[%s19749_s18 + $0x70] sm:$0xf] }
 0x162   : > { %24560 = vst [vmem:[#allocation78_spill] sm:$0xff] %v20060_v0  ;;  %16299 = vmatprep.mubr.msk.bf16.mxu0 %vm1244_vm6, %v20060_v0  ;;  %v2277_v62 = vor.u32 %v2276_v21, %v2275_v57  ;;  %v2282_v54 = vrot.slane %v23945_v7, 5  ;;  %v918_v30 = vrot.slane %v19932_v42, 5  ;;  %v922_v49 = vrot.slane %v19935_v43, 4  ;;  %v20137_v42 = vld [vmem:[%s19749_s18 + $0x64] sm:$0xf] }
 0x163   : > { %24561 = vst [vmem:[#allocation79_spill] sm:$0xff] %v20079_v45  ;;  %v913_v0 = vor.u32 %v912_v58, %v909_v3  ;;  %v928_v14 = vrot.slane %v19938_v44, 5  ;;  %15484 = vmatmul.mubr.msk.bf16.gmra.mrb[4].mxu1 %vm1244_vm6, %v20079_v45  ;;  %v2274_v23 = vrot.slane %v2273_v55, 4  ;;  %v20095_v57 = vshrl.u32 %v20077_v36, 16  ;;  %v20143_v43 = vld [vmem:[%s19749_s18 + $0x68] sm:$0x7] }
 0x164   : > { %v2279_v35 = vrot.slane %v2277_v62, 4  ;;  %v2284_v63 = vor.u32 %v2283_v46, %v2282_v54  ;;  %v923_v51 = vor.u32 %v922_v49, %v918_v30  ;;  %v20098_v3 = vshll.u32 %v20077_v36, 16 }
 0x165   : > { %24562 = vst [vmem:[#allocation80_spill] sm:$0xff] %v20095_v57  ;;  %v914_v21 = vrot.slane %v913_v0, 4  ;;  %v20101_v58 = vshll.u32 %v20084_v50, 16  ;;  %v2278_v7 = vsel %vm19877_vm8, %v2274_v23, %v2277_v62  ;;  %v20108_v54 = vshrl.u32 %v20084_v50, 16 }
 0x166   : > { %24563 = vst [vmem:[#allocation81_spill] sm:$0xff] %v20098_v3  ;;  %v2285_v45 = vsel %vm19877_vm8, %v2279_v35, %v2284_v63  ;;  %v20111_v55 = vshll.u32 %v20090_v12, 16  ;;  %v924_v49 = vrot.slane %v923_v51, 4  ;;  %v2286_v13 = vrot.slane %v20095_v57, 5  ;;  %v20130_v51 = vld [vmem:[%s19749_s18 + $0x60] sm:$0xf] }
 0x167   : > { %24564 = vst [vmem:[#allocation82_spill] sm:$0xff] %v20101_v58  ;;  %24565 = vst [vmem:[#allocation83_spill] sm:$0xff] %v20108_v54  ;;  %v20113_v0 = vcombine.low %v2278_v7, %v2285_v45  ;;  %v919_v46 = vsel %vm19848_vm7, %v914_v21, %v918_v30  ;;  %v2287_v62 = vrot.slane %v20098_v3, 6  ;;  %v2290_v23 = vrot.slane %v20108_v54, 5 }
 0x168   : > { %24566 = vst [vmem:[#allocation84_spill] sm:$0xff] %v20111_v55  ;;  %v2291_v35 = vrot.slane %v20101_v58, 6  ;;  %v23960_v63 = vshrl.u32 %v20090_v12, 16  ;;  %v929_v45 = vsel %vm19848_vm7, %v924_v49, %v928_v14  ;;  %v2298_v7 = vrot.slane %v20111_v55, 6 }
 0x169   : > { %24567 = vst [vmem:[#allocation85_spill] sm:$0xff] %v20113_v0  ;;  %16300 = vmatmul.mubr.msk.bf16.gmra.mrb[4].mxu0 %vm1244_vm6, %v20113_v0  ;;  %v933_v30 = vrot.slane %v19985_v59, 4  ;;  %v936_v21 = vrot.slane %v19992_v34, 5  ;;  %v20132_v11 = vcombine.low %v919_v46, %v929_v45  ;;  %v2288_v10 = vor.u32 %v2287_v62, %v2286_v13 }
 0x16a   : > { %v2292_v6 = vor.u32 %v2291_v35, %v2290_v23  ;;  %v2297_v44 = vrot.slane %v23960_v63, 5  ;;  %v942_v14 = vrot.slane %v19998_v16, 5  ;;  %v946_v49 = vrot.slane %v20003_v4, 4 }
 0x16b   : > { %24568 = vst [vmem:[#allocation86_spill] sm:$0xff] %v20132_v11  ;;  %v937_v0 = vor.u32 %v936_v21, %v933_v30  ;;  %v952_v59 = vrot.slane %v20006_v26, 5  ;;  %15487 = vmatprep.mubr.msk.bf16.mxu1 %vm1244_vm6, %v20132_v11  ;;  %v2289_v46 = vrot.slane %v2288_v10, 4  ;;  %v20148_v23 = vshrl.u32 %v20130_v51, 16 }
 0x16c   : > { %v2294_v13 = vrot.slane %v2292_v6, 4  ;;  %v2299_v62 = vor.u32 %v2298_v7, %v2297_v44  ;;  %v947_v45 = vor.u32 %v946_v49, %v942_v14  ;;  %v20151_v30 = vshll.u32 %v20130_v51, 16 }
 0x16d   : > { %24569 = vst [vmem:[#allocation87_spill] sm:$0xff] %v20148_v23  ;;  %v938_v35 = vrot.slane %v937_v0, 4  ;;  %v20154_v21 = vshll.u32 %v20137_v42, 16  ;;  %v2293_v63 = vsel %vm19877_vm8, %v2289_v46, %v2292_v6  ;;  %v20161_v10 = vshrl.u32 %v20137_v42, 16 }
 0x16e   : > { %24570 = vst [vmem:[#allocation88_spill] sm:$0xff] %v20151_v30  ;;  %v2300_v11 = vsel %vm19877_vm8, %v2294_v13, %v2299_v62  ;;  %v20164_v44 = vshll.u32 %v20143_v43, 16  ;;  %v948_v49 = vrot.slane %v947_v45, 4  ;;  %v2301_v26 = vrot.slane %v20148_v23, 5  ;;  %v20183_v45 = vld [vmem:[%s19749_s18 + $0x6c] sm:$0xf] }
 0x16f   : > { %v20166_v0 = vcombine.low %v2293_v63, %v2300_v11  ;;  %v943_v7 = vsel %vm19848_vm7, %v938_v35, %v942_v14  ;;  %v2302_v6 = vrot.slane %v20151_v30, 6  ;;  %v2305_v46 = vrot.slane %v20161_v10, 5 }
 0x170   : > { %v2306_v13 = vrot.slane %v20154_v21, 6  ;;  %v23973_v62 = vshrl.u32 %v20143_v43, 16  ;;  %v953_v11 = vsel %vm19848_vm7, %v948_v49, %v952_v59  ;;  %v2313_v63 = vrot.slane %v20164_v44, 6 }
 0x171   : > { %24571 = vst [vmem:[#allocation89_spill] sm:$0xff] %v20166_v0  ;;  %16303 = vmatprep.mubr.msk.bf16.mxu0 %vm1244_vm6, %v20166_v0  ;;  %v957_v14 = vrot.slane %v20040_v40, 4  ;;  %v960_v35 = vrot.slane %v20047_v48, 5  ;;  %v20185_v16 = vcombine.low %v943_v7, %v953_v11  ;;  %v2303_v4 = vor.u32 %v2302_v6, %v2301_v26 }
 0x172   : > { %v2307_v34 = vor.u32 %v2306_v13, %v2305_v46  ;;  %v2312_v38 = vrot.slane %v23973_v62, 5  ;;  %v966_v59 = vrot.slane %v20052_v41, 5  ;;  %v970_v49 = vrot.slane %v20055_v60, 4 }
 0x173   : > { %24572 = vst [vmem:[#allocation90_spill] sm:$0xff] %v20185_v16  ;;  %v961_v0 = vor.u32 %v960_v35, %v957_v14  ;;  %v976_v40 = vrot.slane %v20058_v18, 5  ;;  %15488 = vmatmul.mubr.msk.bf16.gmra.mrb[8].mxu1 %vm1244_vm6, %v20185_v16  ;;  %v2304_v7 = vrot.slane %v2303_v4, 4  ;;  %v20201_v46 = vshrl.u32 %v20183_v45, 16 }
 0x174   : > { %v2309_v26 = vrot.slane %v2307_v34, 4  ;;  %v2314_v6 = vor.u32 %v2313_v63, %v2312_v38  ;;  %v971_v11 = vor.u32 %v970_v49, %v966_v59  ;;  %v20204_v14 = vshll.u32 %v20183_v45, 16 }
 0x175   : > { %v962_v13 = vrot.slane %v961_v0, 4  ;;  %v20207_v35 = vshll.u32 %v20190_v37, 16  ;;  %v2308_v62 = vsel %vm19877_vm8, %v2304_v7, %v2307_v34  ;;  %v20214_v38 = vshrl.u32 %v20190_v37, 16 }
 0x176   : > { %v2315_v16 = vsel %vm19877_vm8, %v2309_v26, %v2314_v6  ;;  %v20217_v4 = vshll.u32 %v20196_v33, 16  ;;  %v972_v49 = vrot.slane %v971_v11, 4  ;;  %v2316_v18 = vrot.slane %v20201_v46, 5  ;;  %v20236_v11 = vld [vmem:[%s19749_s18 + $0x78] sm:$0xf] }
 0x177   : > { %24574 = vst [vmem:[#allocation92_spill] sm:$0xff] %v20207_v35  ;;  %24575 = vst [vmem:[#allocation93_spill] sm:$0xff] %v20214_v38  ;;  %v20219_v0 = vcombine.low %v2308_v62, %v2315_v16  ;;  %v967_v63 = vsel %vm19848_vm7, %v962_v13, %v966_v59  ;;  %v2317_v34 = vrot.slane %v20204_v14, 6  ;;  %v2320_v7 = vrot.slane %v20214_v38, 5 }
 0x178   : > { %24576 = vst [vmem:[#allocation94_spill] sm:$0xff] %v20217_v4  ;;  %v2321_v26 = vrot.slane %v20207_v35, 6  ;;  %v977_v16 = vsel %vm19848_vm7, %v972_v49, %v976_v40  ;;  %v2328_v62 = vrot.slane %v20217_v4, 6  ;;  %v981_v59 = vrot.slane %v20095_v57, 4 }
 0x179   : > { %24577 = vst [vmem:[#allocation95_spill] sm:$0xff] %v20219_v0  ;;  %16304 = vmatmul.mubr.msk.bf16.gmra.mrb[8].mxu0 %vm1244_vm6, %v20219_v0  ;;  %v984_v13 = vrot.slane %v20098_v3, 5  ;;  %vm2716_vm9 = vcmask 1045508   ;;  %v20238_v41 = vcombine.low %v967_v63, %v977_v16  ;;  %v2318_v60 = vor.u32 %v2317_v34, %v2316_v18  ;;  %v20249_v3 = vld [vmem:[%s19749_s18 + $0x80] sm:$0x7] }
 0x17a   : > { %v2322_v6 = vor.u32 %v2321_v26, %v2320_v7  ;;  %v24579_v48 = vshrl.u32 %v20196_v33, 16  ;;  %v990_v40 = vrot.slane %v20101_v58, 5  ;;  %v994_v49 = vrot.slane %v20108_v54, 4  ;;  %vm20299_vm10 = vmor %vm1294_vm1, %vm2716_vm9 }
 0x17b   : > { %24578 = vst [vmem:[#allocation96_spill] sm:$0xff] %v20238_v41  ;;  %v985_v29 = vor.u32 %v984_v13, %v981_v59  ;;  %v1000_v57 = vrot.slane %v20111_v55, 5  ;;  %15491 = vmatprep.mubr.msk.bf16.mxu1 %vm1244_vm6, %v20238_v41  ;;  %v2319_v63 = vrot.slane %v2318_v60, 4  ;;  %v20254_v7 = vshrl.u32 %v20236_v11, 16 }
 0x17c   : > { %v2327_v0 = vrot.slane %v24579_v48, 5  ;;  %v2324_v18 = vrot.slane %v2322_v6, 4  ;;  %v995_v26 = vor.u32 %v994_v49, %v990_v40  ;;  %v20257_v16 = vshll.u32 %v20236_v11, 16 }
 0x17d   : > { %24580 = vst [vmem:[#allocation97_spill] sm:$0xff] %v20254_v7  ;;  %v986_v48 = vrot.slane %v985_v29, 4  ;;  %v20260_v59 = vshll.u32 %v20243_v28, 16  ;;  %v2323_v13 = vsel %vm19877_vm8, %v2319_v63, %v2322_v6  ;;  %v20267_v60 = vshrl.u32 %v20243_v28, 16 }
 0x17e   : > { %v2329_v34 = vor.u32 %v2328_v62, %v2327_v0  ;;  %24581 = vst [vmem:[#allocation98_spill] sm:$0xff] %v20257_v16  ;;  %v20270_v0 = vshll.u32 %v20249_v3, 16  ;;  %v996_v49 = vrot.slane %v995_v26, 4  ;;  %v2331_v55 = vrot.slane %v20254_v7, 5 }
 0x17f   : > { %24582 = vst [vmem:[#allocation99_spill] sm:$0xff] %v20260_v59  ;;  %24583 = vst [vmem:[#allocation100_spill] sm:$0xff] %v20267_v60  ;;  %v991_v62 = vsel %vm19848_vm7, %v986_v48, %v990_v40  ;;  %v2332_v58 = vrot.slane %v20257_v16, 6  ;;  %v2335_v6 = vrot.slane %v20267_v60, 5  ;;  %v2336_v63 = vrot.slane %v20260_v59, 6 }
 0x180   : > { %v2330_v41 = vsel %vm19877_vm8, %v2324_v18, %v2329_v34  ;;  %24584 = vst [vmem:[#allocation101_spill] sm:$0xff] %v20270_v0  ;;  %v23998_v18 = vshrl.u32 %v20249_v3, 16  ;;  %v2343_v34 = vrot.slane %v20270_v0, 6  ;;  %v1005_v40 = vrot.slane %v20148_v23, 4 }
 0x181   : > { %v20272_v29 = vcombine.low %v2323_v13, %v2330_v41  ;;  %v1001_v41 = vsel %vm19848_vm7, %v996_v49, %v1000_v57  ;;  %v1008_v48 = vrot.slane %v20151_v30, 5  ;;  %v2333_v13 = vor.u32 %v2332_v58, %v2331_v55  ;;  %v8136_v49 = vld [vmem:[#allocation14 + $0x34] sm:$0x3] }
 0x182   : > { %v20288_v26 = vcombine.low %v991_v62, %v1001_v41  ;;  %v2337_v54 = vor.u32 %v2336_v63, %v2335_v6  ;;  %v2342_v27 = vrot.slane %v23998_v18, 5  ;;  %v1014_v8 = vrot.slane %v20154_v21, 5 }
 0x183   : > { %24585 = vst [vmem:[#allocation102_spill] sm:$0xff] %v20272_v29  ;;  %16307 = vmatprep.mubr.msk.bf16.mxu0 %vm1244_vm6, %v20272_v29  ;;  %v1009_v25 = vor.u32 %v1008_v48, %v1005_v40  ;;  %v1018_v29 = vrot.slane %v20161_v10, 4  ;;  %v1024_v57 = vrot.slane %v20164_v44, 5  ;;  %v2334_v23 = vrot.slane %v2333_v13, 4 }
 0x184   : > { %24586 = vst [vmem:[#allocation103_spill] sm:$0xff] %v20288_v26  ;;  %15492 = vmatmul.mubr.msk.bf16.gmra.mrb[12].mxu1 %vm1244_vm6, %v20288_v26  ;;  %v2339_v30 = vrot.slane %v2337_v54, 4  ;;  %v2344_v62 = vor.u32 %v2343_v34, %v2342_v27  ;;  %v24587_v58 = vmov 0  ;;  %v13716_v55 = vrot.slane %v19821_v19, 10 }
 0x185   : > { %v24588_v58 = vsel %vm20299_vm10, 4294967295, %v24587_v58  ;;  %v1010_v6 = vrot.slane %v1009_v25, 4  ;;  %v1019_v63 = vor.u32 %v1018_v29, %v1014_v8  ;;  %v2741_v41 = vrot.slane %v19824_v20, 6 }
 0x186   : > { %24589 = vst [vmem:[#allocation104_spill] sm:$0xff] %v24588_v58  ;;  %v2744_v40 = vrot.slane %v19831_v24, 6  ;;  %v2338_v48 = vsel %vm19877_vm8, %v2334_v23, %v2337_v54  ;;  %v2345_v27 = vsel %vm19877_vm8, %v2339_v30, %v2344_v62  ;;  %v8144_v34 = vand.u32 %v8136_v49, %v19787_v2 }
 0x187   : > { %v1029_v13 = vrot.slane %v20201_v46, 4  ;;  %v20312_v18 = vcombine.low %v2338_v48, %v2345_v27  ;;  %v1015_v19 = vsel %vm19848_vm7, %v1010_v6, %v1014_v8  ;;  %v1020_v25 = vrot.slane %v1019_v63, 4 }
 0x188   : > { %v2742_v20 = vsel %vm20299_vm10, %v13716_v55, %v2741_v41  ;;  %v2743_v29 = vrot.slane %v2741_v41, 4  ;;  %16361 = vmatprep.subr.bf16.mxu0 %v8144_v34  ;;  %v1032_v54 = vrot.slane %v20204_v14, 5  ;;  %v1038_v23 = vrot.slane %v20207_v35, 5 }
 0x189   : > { %24590 = vst [vmem:[#allocation105_spill] sm:$0xff] %v20312_v18  ;;  %v1042_v30 = vrot.slane %v20214_v38, 4  ;;  %16308 = vmatmul.mubr.msk.bf16.gmra.mrb[12].mxu0 %vm1244_vm6, %v20312_v18  ;;  %v1025_v49 = vsel %vm19848_vm7, %v1020_v25, %v1024_v57  ;;  %v1048_v8 = vrot.slane %v20217_v4, 5  ;;  %v13717_v62 = vrot.slane %v19902_v9, 10  ;;  %v20366_v18 = vld [vmem:[%s19749_s18 + $0x8c] sm:$0x7] }
 0x18a   : > { %v2748_v55 = vrot.slane %v19907_v17, 6  ;;  %v20328_v6 = vcombine.low %v1015_v19, %v1025_v49  ;;  %v2745_v63 = vsel %vm20299_vm10, %v2743_v29, %v2744_v40  ;;  %v1033_v41 = vor.u32 %v1032_v54, %v1029_v13  ;;  %v20349_v54 = vld [vmem:[%s19749_s18 + $0x84] sm:$0xf]  ;;  %v20542_v4 = vld [vmem:[%s19749_s18 + $0xb4] sm:$0xf] }
 0x18b   : > { %v1043_v48 = vor.u32 %v1042_v30, %v1038_v23  ;;  %v20332_v27 = vcombine.low %v2742_v20, %v2745_v63  ;;  %v2751_v25 = vrot.slane %v19916_v32, 6  ;;  %v1053_v19 = vrot.slane %v20254_v7, 4  ;;  %v20358_v63 = vld [vmem:[%s19749_s18 + $0x88] sm:$0xf] }
 0x18c   : > { %24591 = vst [vmem:[#allocation106_spill] sm:$0xff] %v20328_v6  ;;  %v2749_v26 = vsel %vm20299_vm10, %v13717_v62, %v2748_v55  ;;  %v2750_v57 = vrot.slane %v2748_v55, 4  ;;  %15495 = vmatprep.mubr.msk.bf16.mxu1 %vm1244_vm6, %v20328_v6  ;;  %v1034_v9 = vrot.slane %v1033_v41, 4  ;;  %v1056_v40 = vrot.slane %v20257_v16, 5 }
 0x18d   : > { %24592 = vst [vmem:[#allocation107_spill] sm:$0xff] %v20332_v27  ;;  %v1044_v17 = vrot.slane %v1043_v48, 4  ;;  %16329 = vmatprep.mubr.msk.bf16.mxu0 %vm1244_vm6, %v20332_v27  ;;  %v1062_v20 = vrot.slane %v20260_v59, 5  ;;  %v1066_v32 = vrot.slane %v20267_v60, 4  ;;  %v1072_v29 = vrot.slane %v20270_v0, 5 }
 0x18e   : > { %v2752_v13 = vsel %vm20299_vm10, %v2750_v57, %v2751_v25  ;;  %v1039_v30 = vsel %vm19848_vm7, %v1034_v9, %v1038_v23  ;;  %v1057_v55 = vor.u32 %v1056_v40, %v1053_v19  ;;  %v13718_v57 = vrot.slane %v19958_v1, 10  ;;  %v20503_v60 = vld [vmem:[%s19749_s18 + $0xac] sm:$0xf] }
 0x18f   : > { %v1049_v49 = vsel %vm19848_vm7, %v1044_v17, %v1048_v8  ;;  %v20355_v62 = vcombine.low %v2749_v26, %v2752_v13  ;;  %v1067_v48 = vor.u32 %v1066_v32, %v1062_v20  ;;  %v2755_v25 = vrot.slane %v19975_v47, 6 }
 0x190   : > { %v20360_v41 = vcombine.low %v1039_v30, %v1049_v49  ;;  %v1058_v6 = vrot.slane %v1057_v55, 4  ;;  %v2758_v27 = vrot.slane %v19982_v53, 6  ;;  %v20369_v23 = vshrl.u32 %v20349_v54, 16 }
 0x191   : > { %24593 = vst [vmem:[#allocation108_spill] sm:$0xff] %v20355_v62  ;;  %v20372_v26 = vshll.u32 %v20349_v54, 16  ;;  %16330 = vmatmul.mubr.msk.bf16.vlgmr.msra.gmra.mrb[0].mxu0 %vm1244_vm6, %v20355_v62  ;;  %v1068_v8 = vrot.slane %v1067_v48, 4  ;;  %v2756_v9 = vsel %vm20299_vm10, %v13718_v57, %v2755_v25  ;;  %v2757_v17 = vrot.slane %v2755_v25, 4  ;;  %v20407_v62 = vld [vmem:[%s19749_s18 + $0x94] sm:$0xf] }
 0x192   : > { %24594 = vst [vmem:[#allocation109_spill] sm:$0xff] %v20360_v41  ;;  %24595 = vst [vmem:[#allocation110_spill] sm:$0xff] %v20369_v23  ;;  %15496 = vmatmul.mubr.msk.bf16.gmra.mrb[16].mxu1 %vm1244_vm6, %v20360_v41  ;;  %v20381_v19 = vshll.u32 %v20358_v63, 16  ;;  %16362 = vmatpush3.bf16.msra.mxu0 %v8144_v34  ;;  %v1063_v40 = vsel %vm19848_vm7, %v1058_v6, %v1062_v20  ;;  %v1077_v13 = vrot.slane %v20369_v23, 4  ;;  %v20388_v30 = vshrl.u32 %v20358_v63, 16 }
 0x193   : > { %24596 = vst [vmem:[#allocation111_spill] sm:$0xff] %v20372_v26  ;;  %v1080_v32 = vrot.slane %v20372_v26, 5  ;;  %v1073_v49 = vsel %vm19848_vm7, %v1068_v8, %v1072_v29  ;;  %v2759_v55 = vsel %vm20299_vm10, %v2757_v17, %v2758_v27  ;;  %v20396_v34 = vshll.u32 %v20366_v18, 16  ;;  %v20399_v6 = vld [vmem:[%s19749_s18 + $0x90] sm:$0xf] }
 0x194   : > { %24597 = vst [vmem:[#allocation112_spill] sm:$0xff] %v20381_v19  ;;  %24598 = vst [vmem:[#allocation113_spill] sm:$0xff] %v20388_v30  ;;  %v1086_v48 = vrot.slane %v20381_v19, 5  ;;  %v20401_v20 = vcombine.low %v1063_v40, %v1073_v49  ;;  %v20403_v57 = vcombine.low %v2756_v9, %v2759_v55  ;;  %v1090_v41 = vrot.slane %v20388_v30, 4  ;;  %v20446_v23 = vld [vmem:[%s19749_s18 + $0x9c] sm:$0xf] }
 0x195   : > { %24599 = vst [vmem:[#allocation114_spill] sm:$0xff] %v20396_v34  ;;  %v1081_v25 = vor.u32 %v1080_v32, %v1077_v13  ;;  %v1096_v29 = vrot.slane %v20396_v34, 5  ;;  %v13719_v27 = vrot.slane %v20022_v15, 10  ;;  %v2762_v8 = vrot.slane %v20033_v61, 6  ;;  %v20418_v13 = vld [vmem:[%s19749_s18 + $0x98] sm:$0x7] }
 0x196   : > { %24600 = vst [vmem:[#allocation115_spill] sm:$0xff] %v20401_v20  ;;  %24601 = vst [vmem:[#allocation116_spill] sm:$0xff] %v20403_v57  ;;  %v2765_v17 = vrot.slane %v20036_v22, 6  ;;  %15499 = vmatprep.mubr.msk.bf16.mxu1 %vm1244_vm6, %v20401_v20  ;;  %16333 = vmatprep.mubr.msk.bf16.mxu0 %vm1244_vm6, %v20403_v57  ;;  %v1091_v40 = vor.u32 %v1090_v41, %v1086_v48  ;;  %v20421_v32 = vshrl.u32 %v20399_v6, 16  ;;  %v20424_v49 = vshll.u32 %v20399_v6, 16 }
 0x197   : > { %v1082_v9 = vrot.slane %v1081_v25, 4  ;;  %v2763_v55 = vsel %vm20299_vm10, %v13719_v27, %v2762_v8  ;;  %v2764_v52 = vrot.slane %v2762_v8, 4  ;;  %v20429_v20 = vshll.u32 %v20407_v62, 16 }
 0x198   : > { %24602 = vst [vmem:[#allocation117_spill] sm:$0xff] %v20421_v32  ;;  %24603 = vst [vmem:[#allocation118_spill] sm:$0xff] %v20424_v49  ;;  %v20432_v25 = vshrl.u32 %v20407_v62, 16  ;;  %v1092_v57 = vrot.slane %v1091_v40, 4  ;;  %v1101_v34 = vrot.slane %v20421_v32, 4  ;;  %v1104_v19 = vrot.slane %v20424_v49, 5 }
 0x199   : > { %24604 = vst [vmem:[#allocation119_spill] sm:$0xff] %v20429_v20  ;;  %v1087_v41 = vsel %vm19848_vm7, %v1082_v9, %v1086_v48  ;;  %v2766_v30 = vsel %vm20299_vm10, %v2764_v52, %v2765_v17  ;;  %v1110_v27 = vrot.slane %v20429_v20, 5  ;;  %v20443_v26 = vshll.u32 %v20418_v13, 16  ;;  %v20454_v32 = vld [vmem:[%s19749_s18 + $0xa0] sm:$0xf] }
 0x19a   : > { %24605 = vst [vmem:[#allocation120_spill] sm:$0xff] %v20432_v25  ;;  %v1114_v8 = vrot.slane %v20432_v25, 4  ;;  %v1097_v48 = vsel %vm19848_vm7, %v1092_v57, %v1096_v29  ;;  %v20450_v9 = vcombine.low %v2763_v55, %v2766_v30  ;;  %v1105_v40 = vor.u32 %v1104_v19, %v1101_v34  ;;  %v20464_v30 = vld [vmem:[%s19749_s18 + $0xa4] sm:$0x7] }
 0x19b   : > { %24606 = vst [vmem:[#allocation121_spill] sm:$0xff] %v20443_v26  ;;  %v13720_v49 = vrot.slane %v20077_v36, 10  ;;  %v20456_v52 = vcombine.low %v1087_v41, %v1097_v48  ;;  %v1120_v20 = vrot.slane %v20443_v26, 5  ;;  %v2769_v25 = vrot.slane %v20084_v50, 6  ;;  %24609 = vst [vmem:[#allocation124_spill] sm:$0xff] %v20464_v30 }
 0x19c   : > { %24607 = vst [vmem:[#allocation122_spill] sm:$0xff] %v20450_v9  ;;  %v1115_v17 = vor.u32 %v1114_v8, %v1110_v27  ;;  %16334 = vmatmul.mubr.msk.bf16.gmra.mrb[4].mxu0 %vm1244_vm6, %v20450_v9  ;;  %v1106_v0 = vrot.slane %v1105_v40, 4  ;;  %v2772_v57 = vrot.slane %v20090_v12, 6  ;;  %v20467_v19 = vshrl.u32 %v20446_v23, 16 }
 0x19d   : > { %24608 = vst [vmem:[#allocation123_spill] sm:$0xff] %v20456_v52  ;;  %v20470_v34 = vshll.u32 %v20446_v23, 16  ;;  %15500 = vmatmul.mubr.msk.bf16.gmra.mrb[20].mxu1 %vm1244_vm6, %v20456_v52  ;;  %v2770_v55 = vsel %vm20299_vm10, %v13720_v49, %v2769_v25  ;;  %v2771_v41 = vrot.slane %v2769_v25, 4  ;;  %v20477_v8 = vshll.u32 %v20454_v32, 16 }
 0x19e   : > { %24610 = vst [vmem:[#allocation125_spill] sm:$0xff] %v20467_v19  ;;  %v1116_v29 = vrot.slane %v1115_v17, 4  ;;  %v1111_v48 = vsel %vm19848_vm7, %v1106_v0, %v1110_v27  ;;  %v1125_v40 = vrot.slane %v20467_v19, 4  ;;  %v20484_v26 = vshrl.u32 %v20454_v32, 16  ;;  %v20495_v0 = vld [vmem:[%s19749_s18 + $0xa8] sm:$0xf] }
 0x19f   : > { %24611 = vst [vmem:[#allocation126_spill] sm:$0xff] %v20470_v34  ;;  %24612 = vst [vmem:[#allocation127_spill] sm:$0xff] %v20477_v8  ;;  %v1128_v9 = vrot.slane %v20470_v34, 5  ;;  %v2773_v49 = vsel %vm20299_vm10, %v2771_v41, %v2772_v57  ;;  %v1134_v25 = vrot.slane %v20477_v8, 5  ;;  %v20492_v52 = vshll.u32 %v20464_v30, 16 }
 0x1a0   : > { %24613 = vst [vmem:[#allocation128_spill] sm:$0xff] %v20484_v26  ;;  %v1121_v17 = vsel %vm19848_vm7, %v1116_v29, %v1120_v20  ;;  %v20499_v34 = vcombine.low %v2770_v55, %v2773_v49  ;;  %v1138_v59 = vrot.slane %v20484_v26, 4  ;;  %v13721_v57 = vrot.slane %v20130_v51, 10 }
 0x1a1   : > { %24614 = vst [vmem:[#allocation129_spill] sm:$0xff] %v20492_v52  ;;  %v20497_v27 = vcombine.low %v1111_v48, %v1121_v17  ;;  %v1129_v19 = vor.u32 %v1128_v9, %v1125_v40  ;;  %v1144_v20 = vrot.slane %v20492_v52, 5  ;;  %v2776_v29 = vrot.slane %v20137_v42, 6  ;;  %v20514_v48 = vld [vmem:[%s19749_s18 + $0xb0] sm:$0x7] }
 0x1a2   : > { %24616 = vst [vmem:[#allocation131_spill] sm:$0xff] %v20499_v34  ;;  %v2779_v41 = vrot.slane %v20143_v43, 6  ;;  %16337 = vmatprep.mubr.msk.bf16.mxu0 %vm1244_vm6, %v20499_v34  ;;  %v1139_v9 = vor.u32 %v1138_v59, %v1134_v25  ;;  %24617 = vst [vmem:[#allocation132_spill] sm:$0xff] %v20514_v48  ;;  %v20517_v40 = vshrl.u32 %v20495_v0, 16  ;;  %v20520_v17 = vshll.u32 %v20495_v0, 16 }
 0x1a3   : > { %24615 = vst [vmem:[#allocation130_spill] sm:$0xff] %v20497_v27  ;;  %15503 = vmatprep.mubr.msk.bf16.mxu1 %vm1244_vm6, %v20497_v27  ;;  %v1130_v55 = vrot.slane %v1129_v19, 4  ;;  %v2777_v49 = vsel %vm20299_vm10, %v13721_v57, %v2776_v29  ;;  %v2778_v52 = vrot.slane %v2776_v29, 4  ;;  %v20525_v27 = vshll.u32 %v20503_v60, 16 }
 0x1a4   : > { %24618 = vst [vmem:[#allocation133_spill] sm:$0xff] %v20517_v40  ;;  %24619 = vst [vmem:[#allocation134_spill] sm:$0xff] %v20520_v17  ;;  %v20528_v19 = vshrl.u32 %v20503_v60, 16  ;;  %v1140_v34 = vrot.slane %v1139_v9, 4  ;;  %v1149_v8 = vrot.slane %v20517_v40, 4  ;;  %v1152_v26 = vrot.slane %v20520_v17, 5 }
 0x1a5   : > { %24620 = vst [vmem:[#allocation135_spill] sm:$0xff] %v20525_v27  ;;  %v1135_v59 = vsel %vm19848_vm7, %v1130_v55, %v1134_v25  ;;  %v2780_v16 = vsel %vm20299_vm10, %v2778_v52, %v2779_v41  ;;  %v1158_v57 = vrot.slane %v20525_v27, 5  ;;  %v20539_v7 = vshll.u32 %v20514_v48, 16  ;;  %v20550_v40 = vld [vmem:[%s19749_s18 + $0xb8] sm:$0xf] }
 0x1a6   : > { %24621 = vst [vmem:[#allocation136_spill] sm:$0xff] %v20528_v19  ;;  %v1162_v29 = vrot.slane %v20528_v19, 4  ;;  %v1145_v25 = vsel %vm19848_vm7, %v1140_v34, %v1144_v20  ;;  %v20546_v55 = vcombine.low %v2777_v49, %v2780_v16  ;;  %v1153_v9 = vor.u32 %v1152_v26, %v1149_v8  ;;  %v20560_v16 = vld [vmem:[%s19749_s18 + $0xbc] sm:$0x7] }
 0x1a7   : > { %24622 = vst [vmem:[#allocation137_spill] sm:$0xff] %v20539_v7  ;;  %v13722_v17 = vrot.slane %v20183_v45, 10  ;;  %v20552_v52 = vcombine.low %v1135_v59, %v1145_v25  ;;  %v1168_v27 = vrot.slane %v20539_v7, 5  ;;  %v2783_v19 = vrot.slane %v20190_v37, 6  ;;  %24625 = vst [vmem:[#allocation140_spill] sm:$0xff] %v20560_v16 }
 0x1a8   : > { %24623 = vst [vmem:[#allocation138_spill] sm:$0xff] %v20546_v55  ;;  %v1163_v41 = vor.u32 %v1162_v29, %v1158_v57  ;;  %16338 = vmatmul.mubr.msk.bf16.gmra.mrb[8].mxu0 %vm1244_vm6, %v20546_v55  ;;  %v1154_v35 = vrot.slane %v1153_v9, 4  ;;  %v2786_v34 = vrot.slane %v20196_v33, 6  ;;  %v20563_v26 = vshrl.u32 %v20542_v4, 16  ;;  %v1885_v33 = vld [vmem:[#allocation14 + $0x4] sm:$0x3] }
 0x1a9   : > { %24624 = vst [vmem:[#allocation139_spill] sm:$0xff] %v20552_v52  ;;  %v20566_v8 = vshll.u32 %v20542_v4, 16  ;;  %15504 = vmatmul.mubr.msk.bf16.gmra.mrb[24].mxu1 %vm1244_vm6, %v20552_v52  ;;  %v2784_v49 = vsel %vm20299_vm10, %v13722_v17, %v2783_v19  ;;  %v2785_v59 = vrot.slane %v2783_v19, 4  ;;  %v20573_v29 = vshll.u32 %v20550_v40, 16 }
 0x1aa   : > { %24626 = vst [vmem:[#allocation141_spill] sm:$0xff] %v20563_v26  ;;  %v1164_v20 = vrot.slane %v1163_v41, 4  ;;  %v1159_v25 = vsel %vm19848_vm7, %v1154_v35, %v1158_v57  ;;  %v1173_v9 = vrot.slane %v20563_v26, 4  ;;  %v20580_v7 = vshrl.u32 %v20550_v40, 16 }
 0x1ab   : > { %24627 = vst [vmem:[#allocation142_spill] sm:$0xff] %v20566_v8  ;;  %24628 = vst [vmem:[#allocation143_spill] sm:$0xff] %v20573_v29  ;;  %v1176_v55 = vrot.slane %v20566_v8, 5  ;;  %v2787_v17 = vsel %vm20299_vm10, %v2785_v59, %v2786_v34  ;;  %v1182_v19 = vrot.slane %v20573_v29, 5  ;;  %v20588_v52 = vshll.u32 %v20560_v16, 16 }
 0x1ac   : > { %24629 = vst [vmem:[#allocation144_spill] sm:$0xff] %v20580_v7  ;;  %v1169_v41 = vsel %vm19848_vm7, %v1164_v20, %v1168_v27  ;;  %v20592_v57 = vcombine.low %v2784_v49, %v2787_v17  ;;  %v1186_v26 = vrot.slane %v20580_v7, 4  ;;  %v13723_v27 = vrot.slane %v20236_v11, 10 }
 0x1ad   : > { %24630 = vst [vmem:[#allocation145_spill] sm:$0xff] %v20588_v52  ;;  %v20590_v35 = vcombine.low %v1159_v25, %v1169_v41  ;;  %v1177_v8 = vor.u32 %v1176_v55, %v1173_v9  ;;  %v1192_v38 = vrot.slane %v20588_v52, 5  ;;  %v2790_v34 = vrot.slane %v20243_v28, 6 }
 0x1ae   : > { %24632 = vst [vmem:[#allocation147_spill] sm:$0xff] %v20592_v57  ;;  %v2793_v20 = vrot.slane %v20249_v3, 6  ;;  %16341 = vmatprep.mubr.msk.bf16.mxu0 %vm1244_vm6, %v20592_v57  ;;  %v1187_v55 = vor.u32 %v1186_v26, %v1182_v19  ;;  %v20604_v59 = vand.u32 %v1885_v33, %v19787_v2  ;;  %v13724_v25 = vrot.slane %v20349_v54, 10  ;;  %v20615_v26 = vld [vmem:[%s19749_s18 + $0xc] sm:$0xf] }
 0x1af   : > { %24631 = vst [vmem:[#allocation146_spill] sm:$0xff] %v20590_v35  ;;  %15507 = vmatprep.mubr.msk.bf16.mxu1 %vm1244_vm6, %v20590_v35  ;;  %v1178_v49 = vrot.slane %v1177_v8, 4  ;;  %v2791_v9 = vsel %vm20299_vm10, %v13723_v27, %v2790_v34  ;;  %v2792_v41 = vrot.slane %v2790_v34, 4  ;;  %v2797_v17 = vrot.slane %v20358_v63, 6  ;;  %24633 = vst [vmem:[#allocation148_spill] sm:$0xff] %v20615_v26 }
 0x1b0   : > { %v2800_v52 = vrot.slane %v20366_v18, 6  ;;  %v1188_v29 = vrot.slane %v1187_v55, 4  ;;  %15545 = vmatprep.subr.bf16.mxu1 %v20604_v59  ;;  %v20618_v33 = vld [vmem:[%s19749_s18 + $0x10] sm:$0xf]  ;;  %v13725_v27 = vrot.slane %v20399_v6, 10  ;;  %vm1769_vm14 = vcmask 1042432  }
 0x1b1   : > { %v1183_v35 = vsel %vm19848_vm7, %v1178_v49, %v1182_v19  ;;  %24634 = vst [vmem:[#allocation149_spill] sm:$0xff] %v20618_v33  ;;  %v20622_v8 = vcombine.low %v20615_v26, %v20618_v33  ;;  %v2794_v34 = vsel %vm20299_vm10, %v2792_v41, %v2793_v20  ;;  %v2798_v57 = vsel %vm20299_vm10, %v13724_v25, %v2797_v17 }
 0x1b2   : > { %v2799_v19 = vrot.slane %v2797_v17, 4  ;;  %v2804_v49 = vrot.slane %v20407_v62, 6  ;;  %v1193_v55 = vsel %vm19848_vm7, %v1188_v29, %v1192_v38  ;;  %v20632_v7 = vcombine.low %v2791_v9, %v2794_v34 }
 0x1b3   : > { %24635 = vst [vmem:[#allocation150_spill] sm:$0xff] %v20622_v8  ;;  %v2807_v33 = vrot.slane %v20418_v13, 6  ;;  %v20637_v26 = vcombine.low %v19927_v39, %v19948_v56  ;;  %v20639_v20 = vcombine.low %v1183_v35, %v1193_v55  ;;  %v13726_v29 = vrot.slane %v20446_v23, 10  ;;  %v20657_v35 = vld [vmem:[%s19749_s18 + $0x24] sm:$0xf] }
 0x1b4   : > { %24636 = vst [vmem:[#allocation151_spill] sm:$0xff] %v20632_v7  ;;  %v2801_v25 = vsel %vm20299_vm10, %v2799_v19, %v2800_v52  ;;  %v2805_v41 = vsel %vm20299_vm10, %v13725_v27, %v2804_v49  ;;  %v2806_v17 = vrot.slane %v2804_v49, 4  ;;  %16342 = vmatmul.mubr.msk.bf16.gmra.mrb[12].mxu0 %vm1244_vm6, %v20632_v7  ;;  %v2811_v39 = vrot.slane %v20454_v32, 6  ;;  %24640 = vst [vmem:[#allocation155_spill] sm:$0xff] %v20657_v35  ;;  %v24643_v19 = vld [vmem:[#allocation35_spill] sm:$0xff] }
 0x1b5   : > { %24637 = vst [vmem:[#allocation152_spill] sm:$0xff] %v20637_v26  ;;  %24638 = vst [vmem:[#allocation153_spill] sm:$0xff] %v20639_v20  ;;  %v20647_v38 = vcombine.low %v2798_v57, %v2801_v25  ;;  %v2814_v56 = vrot.slane %v20464_v30, 6  ;;  %15508 = vmatmul.mubr.msk.bf16.gmra.mrb[28].mxu1 %vm1244_vm6, %v20639_v20  ;;  %v20660_v57 = vld [vmem:[%s19749_s18 + $0x28] sm:$0xf]  ;;  %v13727_v27 = vrot.slane %v20495_v0, 10  ;;  %v24644_v49 = vcombine.low %v19790_v5, %v24643_v19 }
 0x1b6   : > { %v2808_v52 = vsel %vm20299_vm10, %v2806_v17, %v2807_v33  ;;  %24641 = vst [vmem:[#allocation156_spill] sm:$0xff] %v20660_v57  ;;  %v20664_v9 = vcombine.low %v20657_v35, %v20660_v57  ;;  %v2818_v34 = vrot.slane %v20503_v60, 6  ;;  %v2812_v55 = vsel %vm20299_vm10, %v13726_v29, %v2811_v39  ;;  %v20680_v20 = vld [vmem:[%s19757_s9] sm:$0xf]  ;;  %v20733_v30 = vld [vmem:[%s19765_s24 + $0x4] sm:$0xf] }
 0x1b7   : > { %24639 = vst [vmem:[#allocation154_spill] sm:$0xff] %v20647_v38  ;;  %15513 = vmatprep.mubr.msk.bf16.mxu1 %vm1244_vm6, %v24644_v49  ;;  %16345 = vmatprep.mubr.msk.bf16.mxu0 %vm1244_vm6, %v20647_v38  ;;  %v20674_v33 = vcombine.low %v2805_v41, %v2808_v52  ;;  %v2813_v25 = vrot.slane %v2811_v39, 4  ;;  %v2821_v17 = vrot.slane %v20514_v48, 6  ;;  %v20688_v49 = vld [vmem:[%s19749_s18 + $0x30] sm:$0xf]  ;;  %v13728_v39 = vrot.slane %v20542_v4, 10 }
 0x1b8   : > { %24642 = vst [vmem:[#allocation157_spill] sm:$0xff] %v20664_v9  ;;  %v2819_v5 = vsel %vm20299_vm10, %v13727_v27, %v2818_v34  ;;  %v2820_v19 = vrot.slane %v2818_v34, 4  ;;  %24647 = vst [vmem:[#allocation159_spill] sm:$0xff] %v20688_v49  ;;  %v20691_v41 = vld [vmem:[%s19749_s18 + $0x34] sm:$0xf]  ;;  %v2825_v27 = vrot.slane %v20550_v40, 6  ;;  %v20707_v7 = vcombine.low %v19958_v1, %v19975_v47 }
 0x1b9   : > { %24645 = vst [vmem:[#allocation35_spill] sm:$0xff] %v20674_v33  ;;  %24648 = vst [vmem:[#allocation160_spill] sm:$0xff] %v20691_v41  ;;  %v20695_v29 = vcombine.low %v20688_v49, %v20691_v41  ;;  %v20699_v52 = vld [vmem:[%s19757_s9 + $0x8] sm:$0x7]  ;;  %v2815_v38 = vsel %vm20299_vm10, %v2813_v25, %v2814_v56  ;;  %v2828_v34 = vrot.slane %v20560_v16, 6  ;;  %v13910_v57 = vrot.slane %v20680_v20, 10 }
 0x1ba   : > { %24650 = vst [vmem:[#allocation162_spill] sm:$0xff] %v20699_v52  ;;  %24651 = vst [vmem:[#allocation163_spill] sm:$0xff] %v20707_v7  ;;  %v20710_v48 = vld [vmem:[%s19763_s17] sm:$0xf]  ;;  %v20712_v41 = vcombine.low %v2812_v55, %v2815_v38  ;;  %v2822_v49 = vsel %vm20299_vm10, %v2820_v19, %v2821_v17  ;;  %v4905_v56 = vrot.slane %v20683_v31, 6  ;;  %v2826_v1 = vsel %vm20299_vm10, %v13728_v39, %v2825_v27 }
 0x1bb   : > { %24649 = vst [vmem:[#allocation161_spill] sm:$0xff] %v20695_v29  ;;  %v20719_v25 = vld [vmem:[%s19763_s17 + $0x4] sm:$0xf]  ;;  %v20722_v35 = vld [vmem:[%s19763_s17 + $0x8] sm:$0x7]  ;;  %v20724_v16 = vcombine.low %v2819_v5, %v2822_v49  ;;  %v2827_v47 = vrot.slane %v2825_v27, 4  ;;  %v20739_v31 = vcombine.low %v20022_v15, %v20033_v61 }
 0x1bc   : > { %24652 = vst [vmem:[#allocation164_spill] sm:$0xff] %v20712_v41  ;;  %24653 = vst [vmem:[#allocation165_spill] sm:$0xff] %v20722_v35  ;;  %v4908_v38 = vrot.slane %v20699_v52, 6  ;;  %v20730_v55 = vld [vmem:[%s19765_s24] sm:$0xf]  ;;  %v4906_v17 = vsel %vm20299_vm10, %v13910_v57, %v4905_v56  ;;  %v4907_v19 = vrot.slane %v4905_v56, 4  ;;  %16346 = vmatmul.mubr.msk.bf16.gmra.mrb[16].mxu0 %vm1244_vm6, %v20674_v33  ;;  %v20753_v57 = vcombine.low %v20077_v36, %v20084_v50 }
 0x1bd   : > { %24654 = vst [vmem:[#allocation166_spill] sm:$0xff] %v20724_v16  ;;  %24655 = vst [vmem:[#allocation167_spill] sm:$0xff] %v20733_v30  ;;  %v14032_v5 = vrot.slane %v20710_v48, 10  ;;  %v20743_v49 = vld [vmem:[%s19765_s24 + $0x8] sm:$0x7]  ;;  %v2829_v39 = vsel %vm20299_vm10, %v2827_v47, %v2828_v34  ;;  %v6409_v27 = vrot.slane %v20719_v25, 6  ;;  %15514 = vmatmul.mubr.msk.bf16.vlgmr.msra.gmra.mrb[0].mxu1 %vm1244_vm6, %v20622_v8  ;;  %16349 = vmatprep.mubr.msk.bf16.mxu0 %vm1244_vm6, %v20712_v41 }
 0x1be   : > { %24656 = vst [vmem:[#allocation168_spill] sm:$0xff] %v20739_v31  ;;  %24657 = vst [vmem:[#allocation169_spill] sm:$0xff] %v20743_v49  ;;  %v6412_v52 = vrot.slane %v20722_v35, 6  ;;  %v20759_v15 = vcombine.low %v2826_v1, %v2829_v39  ;;  %v4909_v61 = vsel %vm20299_vm10, %v4907_v19, %v4908_v38  ;;  %v14154_v34 = vrot.slane %v20730_v55, 10  ;;  %15546 = vmatpush3.bf16.msra.mxu1 %v20604_v59  ;;  %v24666_v33 = vld [vmem:[#allocation43_spill] sm:$0xff] }
 0x1bf   : > { %24658 = vst [vmem:[#allocation170_spill] sm:$0xff] %v20753_v57  ;;  %v7913_v56 = vrot.slane %v20733_v30, 6  ;;  %15517 = vmatprep.mubr.msk.bf16.mxu1 %vm1244_vm6, %v20637_v26  ;;  %v20768_v50 = vcombine.low %v4906_v17, %v4909_v61  ;;  %v6410_v36 = vsel %vm20299_vm10, %v14032_v5, %v6409_v27  ;;  %v6411_v47 = vrot.slane %v6409_v27, 4  ;;  %v24662_v17 = vld [vmem:[#allocation41_spill] sm:$0xff]  ;;  %v24663_v26 = vld [vmem:[#allocation42_spill] sm:$0xff] }
 0x1c0   : > { %24659 = vst [vmem:[#allocation171_spill] sm:$0xff] %v20759_v15  ;;  %v7916_v1 = vrot.slane %v20743_v49, 6  ;;  %v20777_v39 = vcombine.low %v20130_v51, %v20137_v42  ;;  %vm3124_vm11 = vsmask.f32 1280  ;;  %vm3125_vm12 = vsmask.f32 5392 }
 0x1c1   : > { %24660 = vst [vmem:[#allocation172_spill] sm:$0xff] %v20768_v50  ;;  %v7914_v38 = vsel %vm20299_vm10, %v14154_v34, %v7913_v56  ;;  %v7915_v19 = vrot.slane %v7913_v56, 4  ;;  %v6413_v59 = vsel %vm20299_vm10, %v6411_v47, %v6412_v52  ;;  %v3166_v61 = vrot.slane %v24662_v17, 6  ;;  %v8347_v27 = vld [vmem:[#allocation14 + $0x36] sm:$0x3]  ;;  %v24669_v30 = vld [vmem:[#allocation46_spill] sm:$0xff]  ;;  %vm20794_vm13 = vmor %vm3124_vm11, %vm3125_vm12 }
 0x1c2   : > { %24661 = vst [vmem:[#allocation173_spill] sm:$0xff] %v20777_v39  ;;  %v3167_v5 = vrot.slane %v24663_v26, 7  ;;  %v20783_v8 = vcombine.low %v6410_v36, %v6413_v59  ;;  %v24665_v56 = vld [vmem:[#allocation44_spill] sm:$0xff]  ;;  %v3171_v42 = vrot.slane %v24666_v33, 7  ;;  %v24668_v52 = vshrl.u32 %v19831_v24, 16  ;;  %v24674_v33 = vld [vmem:[#allocation54_spill] sm:$0xff] }
 0x1c3   : > { %v7917_v34 = vsel %vm20299_vm10, %v7915_v19, %v7916_v1  ;;  %v3170_v41 = vrot.slane %v24665_v56, 6  ;;  %v3176_v17 = vrot.slane %v24669_v30, 7  ;;  %v24670_v26 = vmov 0  ;;  %v24675_v30 = vld [vmem:[#allocation55_spill] sm:$0xff] }
 0x1c4   : > { %24664 = vst [vmem:[#allocation41_spill] sm:$0xff] %v20783_v8  ;;  %v20789_v51 = vcombine.low %v7914_v38, %v7917_v34  ;;  %v3168_v49 = vor.u32 %v3167_v5, %v3166_v61  ;;  %v3175_v47 = vrot.slane %v24668_v52, 6  ;;  %v24671_v26 = vsel %vm20794_vm13, 4294967295, %v24670_v26  ;;  %16350 = vmatmul.mubr.msk.bf16.gmra.mrb[20].mxu0 %vm1244_vm6, %v20724_v16  ;;  %v24676_v5 = vld [vmem:[#allocation57_spill] sm:$0xff] }
 0x1c5   : > { %24672 = vst [vmem:[#allocation44_spill] sm:$0xff] %v24671_v26  ;;  %v3172_v36 = vor.u32 %v3171_v42, %v3170_v41  ;;  %v20799_v59 = vand.u32 %v8347_v27, %v19787_v2  ;;  %v20803_v1 = vcombine.low %v20183_v45, %v20190_v37  ;;  %v3179_v38 = vrot.slane %v24674_v33, 6  ;;  %15518 = vmatmul.mubr.msk.bf16.gmra.mrb[4].mxu1 %vm1244_vm6, %v20664_v9  ;;  %v24677_v37 = vld [vmem:[#allocation56_spill] sm:$0xff]  ;;  %v24678_v27 = vld [vmem:[#allocation58_spill] sm:$0xff]  ;;  %v24681_v33 = vld [vmem:[#allocation67_spill] sm:$0xff] }
 0x1c6   : > { %24667 = vst [vmem:[#allocation42_spill] sm:$0xff] %v20789_v51  ;;  %v3169_v24 = vrot.slane %v3168_v49, 4  ;;  %v3177_v19 = vor.u32 %v3176_v17, %v3175_v47  ;;  %v3180_v61 = vrot.slane %v24675_v30, 7  ;;  %v3183_v34 = vrot.slane %v24676_v5, 6  ;;  %16353 = vmatprep.mubr.msk.bf16.mxu0 %vm1244_vm6, %v20759_v15  ;;  %15521 = vmatprep.mubr.msk.bf16.mxu1 %vm1244_vm6, %v20695_v29  ;;  %v24680_v47 = vld [vmem:[#allocation66_spill] sm:$0xff] }
 0x1c7   : > { %24673 = vst [vmem:[#allocation43_spill] sm:$0xff] %v20803_v1  ;;  %v3174_v41 = vrot.slane %v3172_v36, 4  ;;  %v3184_v45 = vrot.slane %v24677_v37, 7  ;;  %v3189_v56 = vrot.slane %v24678_v27, 7  ;;  %v20818_v42 = vcombine.low %v20236_v11, %v20243_v28  ;;  %16395 = vmatprep.subr.bf16.mxu0 %v20799_v59  ;;  %v24682_v27 = vld [vmem:[#allocation61_spill] sm:$0xff]  ;;  %v24683_v11 = vld [vmem:[#allocation70_spill] sm:$0xff] }
 0x1c8   : > { %v3173_v49 = vsel %vm20794_vm13, %v3169_v24, %v3172_v36  ;;  %v3181_v52 = vor.u32 %v3180_v61, %v3179_v38  ;;  %v3192_v17 = vrot.slane %v24680_v47, 6  ;;  %v3193_v30 = vrot.slane %v24681_v33, 7  ;;  %v24685_v36 = vld [vmem:[#allocation68_spill] sm:$0xff]  ;;  %v24687_v47 = vld [vmem:[#allocation71_spill] sm:$0xff]  ;;  %v21409_v26 = vld [vmem:[%s19749_s18 + $0x90] sm:$0xf] }
 0x1c9   : > { %24679 = vst [vmem:[#allocation46_spill] sm:$0xff] %v20818_v42  ;;  %v3178_v5 = vsel %vm20794_vm13, %v3174_v41, %v3177_v19  ;;  %v3185_v37 = vor.u32 %v3184_v45, %v3183_v34  ;;  %v3190_v28 = vor.u32 %v3189_v56, %v24682_v27  ;;  %v3196_v9 = vrot.slane %v24683_v11, 6  ;;  %v24689_v56 = vld [vmem:[#allocation73_spill] sm:$0xff] }
 0x1ca   : > { %v20831_v15 = vcombine.low %v3173_v49, %v3178_v5  ;;  %v3182_v16 = vrot.slane %v3181_v52, 4  ;;  %v3194_v58 = vor.u32 %v3193_v30, %v3192_v17  ;;  %v3197_v24 = vrot.slane %v24685_v36, 7  ;;  %v24690_v30 = vld [vmem:[#allocation74_spill] sm:$0xff]  ;;  %v24691_v5 = vld [vmem:[#allocation76_spill] sm:$0xff]  ;;  %v24695_v11 = vld [vmem:[#allocation77_spill] sm:$0xff] }
 0x1cb   : > { %v3187_v29 = vrot.slane %v3185_v37, 4  ;;  %v24686_v38 = vshrl.u32 %v19982_v53, 16  ;;  %v3202_v33 = vrot.slane %v24687_v47, 7  ;;  %v20839_v19 = vcombine.low %v20349_v54, %v20358_v63  ;;  %v24697_v47 = vld [vmem:[#allocation80_spill] sm:$0xff] }
 0x1cc   : > { %24684 = vst [vmem:[#allocation54_spill] sm:$0xff] %v20831_v15  ;;  %v3186_v34 = vsel %vm20794_vm13, %v3182_v16, %v3185_v37  ;;  %v3195_v41 = vrot.slane %v3194_v58, 4  ;;  %v3198_v45 = vor.u32 %v3197_v24, %v3196_v9  ;;  %v3205_v49 = vrot.slane %v24689_v56, 6  ;;  %16354 = vmatmul.mubr.msk.bf16.gmra.mrb[24].mxu0 %vm1244_vm6, %v20768_v50  ;;  %v24693_v16 = vld [vmem:[#allocation75_spill] sm:$0xff] }
 0x1cd   : > { %v3201_v61 = vrot.slane %v24686_v38, 6  ;;  %24688 = vst [vmem:[#allocation55_spill] sm:$0xff] %v20839_v19  ;;  %v3191_v52 = vsel %vm20794_vm13, %v3187_v29, %v3190_v28  ;;  %v3206_v53 = vrot.slane %v24690_v30, 7  ;;  %v3209_v27 = vrot.slane %v24691_v5, 6  ;;  %15522 = vmatmul.mubr.msk.bf16.gmra.mrb[8].mxu1 %vm1244_vm6, %v20707_v7  ;;  %16357 = vmatprep.mubr.msk.bf16.mxu0 %vm1244_vm6, %v20783_v8  ;;  %v24742_v8 = vld [vmem:[#allocation121_spill] sm:$0xff] }
 0x1ce   : > { %v20850_v54 = vcombine.low %v3186_v34, %v3191_v52  ;;  %v3199_v63 = vsel %vm20794_vm13, %v3195_v41, %v3198_v45  ;;  %v3200_v58 = vrot.slane %v3198_v45, 4  ;;  %v3210_v9 = vrot.slane %v24693_v16, 7  ;;  %15525 = vmatprep.mubr.msk.bf16.mxu1 %vm1244_vm6, %v20739_v31  ;;  %v24698_v34 = vld [vmem:[#allocation81_spill] sm:$0xff] }
 0x1cf   : > { %v3203_v17 = vor.u32 %v3202_v33, %v3201_v61  ;;  %v3207_v29 = vor.u32 %v3206_v53, %v3205_v49  ;;  %v24694_v37 = vshrl.u32 %v20036_v22, 16  ;;  %v3215_v36 = vrot.slane %v24695_v11, 7  ;;  %v24700_v49 = vld [vmem:[#allocation83_spill] sm:$0xff] }
 0x1d0   : > { %24692 = vst [vmem:[#allocation57_spill] sm:$0xff] %v20850_v54  ;;  %v20864_v24 = vcombine.low %v20399_v6, %v20407_v62  ;;  %v3211_v61 = vor.u32 %v3210_v9, %v3209_v27  ;;  %v3218_v33 = vrot.slane %v24697_v47, 6  ;;  %v3219_v41 = vrot.slane %v24698_v34, 7  ;;  %v24701_v6 = vld [vmem:[#allocation82_spill] sm:$0xff]  ;;  %v24703_v27 = vld [vmem:[#allocation84_spill] sm:$0xff]  ;;  %v24705_v9 = vld [vmem:[#allocation87_spill] sm:$0xff] }
 0x1d1   : > { %v3214_v28 = vrot.slane %v24694_v37, 6  ;;  %v3204_v38 = vsel %vm20794_vm13, %v3200_v58, %v3203_v17  ;;  %v3208_v22 = vrot.slane %v3207_v29, 4  ;;  %v3222_v52 = vrot.slane %v24700_v49, 6 }
 0x1d2   : > { %24696 = vst [vmem:[#allocation56_spill] sm:$0xff] %v20864_v24  ;;  %v20872_v45 = vcombine.low %v3199_v63, %v3204_v38  ;;  %v3213_v30 = vrot.slane %v3211_v61, 4  ;;  %v3220_v62 = vor.u32 %v3219_v41, %v3218_v33  ;;  %v3223_v53 = vrot.slane %v24701_v6, 7 }
 0x1d3   : > { %v3216_v56 = vor.u32 %v3215_v36, %v3214_v28  ;;  %v24702_v5 = vshrl.u32 %v20090_v12, 16  ;;  %v3212_v17 = vsel %vm20794_vm13, %v3208_v22, %v3211_v61  ;;  %v3228_v58 = vrot.slane %v24703_v27, 7  ;;  %v24706_v36 = vld [vmem:[#allocation88_spill] sm:$0xff] }
 0x1d4   : > { %24699 = vst [vmem:[#allocation58_spill] sm:$0xff] %v20872_v45  ;;  %v20883_v63 = vcombine.low %v20446_v23, %v20454_v32  ;;  %v3231_v29 = vrot.slane %v24705_v9, 6  ;;  %v3221_v28 = vrot.slane %v3220_v62, 4  ;;  %v3224_v11 = vor.u32 %v3223_v53, %v3222_v52  ;;  %16358 = vmatmul.mubr.msk.bf16.gmra.mrb[28].mxu0 %vm1244_vm6, %v20789_v51  ;;  %v24710_v62 = vld [vmem:[#allocation93_spill] sm:$0xff]  ;;  %v24715_v9 = vld [vmem:[#allocation94_spill] sm:$0xff] }
 0x1d5   : > { %v3227_v16 = vrot.slane %v24702_v5, 6  ;;  %v3217_v37 = vsel %vm20794_vm13, %v3213_v30, %v3216_v56  ;;  %v3232_v38 = vrot.slane %v24706_v36, 7  ;;  %v3235_v61 = vrot.slane %v20161_v10, 6  ;;  %15526 = vmatmul.mubr.msk.bf16.gmra.mrb[12].mxu1 %vm1244_vm6, %v20753_v57  ;;  %16363 = vmatprep.mubr.msk.bf16.mxu0 %vm1244_vm6, %v20831_v15 }
 0x1d6   : > { %24704 = vst [vmem:[#allocation66_spill] sm:$0xff] %v20883_v63  ;;  %v20889_v12 = vcombine.low %v3212_v17, %v3217_v37  ;;  %v3236_v33 = vrot.slane %v20154_v21, 7  ;;  %v3225_v23 = vsel %vm20794_vm13, %v3221_v28, %v3224_v11  ;;  %v3226_v32 = vrot.slane %v3224_v11, 4  ;;  %15529 = vmatprep.mubr.msk.bf16.mxu1 %vm1244_vm6, %v20777_v39  ;;  %v24713_v17 = vld [vmem:[#allocation91_spill] sm:$0xff]  ;;  %v24717_v11 = vld [vmem:[#allocation97_spill] sm:$0xff] }
 0x1d7   : > { %v3229_v47 = vor.u32 %v3228_v58, %v3227_v16  ;;  %v3233_v34 = vor.u32 %v3232_v38, %v3231_v29  ;;  %v24708_v41 = vshrl.u32 %v20143_v43, 16  ;;  %v3241_v21 = vrot.slane %v20164_v44, 7  ;;  %v24712_v16 = vld [vmem:[#allocation92_spill] sm:$0xff]  ;;  %v24755_v39 = vld [vmem:[#allocation133_spill] sm:$0xff] }
 0x1d8   : > { %24707 = vst [vmem:[#allocation67_spill] sm:$0xff] %v20889_v12  ;;  %v3237_v10 = vor.u32 %v3236_v33, %v3235_v61  ;;  %v20906_v56 = vcombine.low %v20495_v0, %v20503_v60  ;;  %v3244_v49 = vrot.slane %v20201_v46, 6  ;;  %v3245_v30 = vrot.slane %v20204_v14, 7  ;;  %v24719_v33 = vld [vmem:[#allocation98_spill] sm:$0xff] }
 0x1d9   : > { %v3240_v22 = vrot.slane %v24708_v41, 6  ;;  %v3230_v43 = vsel %vm20794_vm13, %v3226_v32, %v3229_v47  ;;  %v3234_v52 = vrot.slane %v3233_v34, 4  ;;  %v3248_v6 = vrot.slane %v24710_v62, 6  ;;  %v24720_v34 = vld [vmem:[#allocation100_spill] sm:$0xff] }
 0x1da   : > { %24709 = vst [vmem:[#allocation61_spill] sm:$0xff] %v20906_v56  ;;  %v20915_v53 = vcombine.low %v3225_v23, %v3230_v43  ;;  %v3239_v44 = vrot.slane %v3237_v10, 4  ;;  %v3249_v60 = vrot.slane %v24712_v16, 7  ;;  %v3246_v0 = vor.u32 %v3245_v30, %v3244_v49  ;;  %v24723_v43 = vld [vmem:[#allocation101_spill] sm:$0xff]  ;;  %v2422_v30 = vld [vmem:[#allocation14 + $0x6] sm:$0x3] }
 0x1db   : > { %v3242_v5 = vor.u32 %v3241_v21, %v3240_v22  ;;  %v3238_v46 = vsel %vm20794_vm13, %v3234_v52, %v3237_v10  ;;  %v24714_v27 = vshrl.u32 %v24713_v17, 16  ;;  %v3254_v29 = vrot.slane %v24715_v9, 7  ;;  %v24721_v22 = vld [vmem:[#allocation99_spill] sm:$0xff] }
 0x1dc   : > { %24711 = vst [vmem:[#allocation70_spill] sm:$0xff] %v20915_v53  ;;  %v3250_v37 = vor.u32 %v3249_v60, %v3248_v6  ;;  %v20927_v28 = vcombine.low %v20542_v4, %v20550_v40  ;;  %v3257_v36 = vrot.slane %v24717_v11, 6  ;;  %v3247_v47 = vrot.slane %v3246_v0, 4  ;;  %16364 = vmatmul.mubr.msk.bf16.vlgmr.msra.gmra.mrb[0].mxu0 %vm1244_vm6, %v20850_v54  ;;  %v18839_v6 = vld [vmem:[%s19749_s18] sm:$0xf] }
 0x1dd   : > { %v3253_v58 = vrot.slane %v24714_v27, 6  ;;  %v3243_v14 = vsel %vm20794_vm13, %v3239_v44, %v3242_v5  ;;  %v3258_v23 = vrot.slane %v24719_v33, 7  ;;  %v3261_v41 = vrot.slane %v24720_v34, 6  ;;  %15530 = vmatmul.mubr.msk.bf16.gmra.mrb[16].mxu1 %vm1244_vm6, %v20803_v1  ;;  %16396 = vmatpush3.bf16.msra.mxu0 %v20799_v59  ;;  %v18840_v59 = vld [vmem:[%s19749_s18 + $0x4] sm:$0xf]  ;;  %v24730_v33 = vld [vmem:[#allocation111_spill] sm:$0xff] }
 0x1de   : > { %24716 = vst [vmem:[#allocation68_spill] sm:$0xff] %v20927_v28  ;;  %v20930_v38 = vcombine.low %v3238_v46, %v3243_v14  ;;  %v3252_v32 = vrot.slane %v3250_v37, 4  ;;  %v3262_v10 = vrot.slane %v24721_v22, 7  ;;  %v24722_v21 = vshrl.u32 %v20249_v3, 16  ;;  %15533 = vmatprep.mubr.msk.bf16.mxu1 %vm1244_vm6, %v20818_v42  ;;  %16367 = vmatprep.mubr.msk.bf16.mxu0 %vm1244_vm6, %v20872_v45  ;;  %v20960_v27 = vld [vmem:[%s19749_s18 + $0x8] sm:$0x7] }
 0x1df   : > { %v3255_v61 = vor.u32 %v3254_v29, %v3253_v58  ;;  %v3251_v4 = vsel %vm20794_vm13, %v3247_v47, %v3250_v37  ;;  %v3259_v40 = vor.u32 %v3258_v23, %v3257_v36  ;;  %v3267_v52 = vrot.slane %v24723_v43, 7  ;;  %24728 = vst [vmem:[#allocation76_spill] sm:$0xff] %v20960_v27  ;;  %v24729_v36 = vld [vmem:[#allocation110_spill] sm:$0xff]  ;;  %v18844_v45 = vld [vmem:[%s19749_s18 + $0x1c] sm:$0xf] }
 0x1e0   : > { %24718 = vst [vmem:[#allocation71_spill] sm:$0xff] %v20930_v38  ;;  %v3266_v49 = vrot.slane %v24722_v21, 6  ;;  %v3263_v62 = vor.u32 %v3262_v10, %v3261_v41  ;;  %vm1770_vm15 = vcmask 1046532   ;;  %v13633_v44 = vrot.slane %v18839_v6, 9  ;;  %v24732_v41 = vld [vmem:[#allocation112_spill] sm:$0xff] }
 0x1e1   : > { %v3256_v3 = vsel %vm20794_vm13, %v3252_v32, %v3255_v61  ;;  %v3260_v16 = vrot.slane %v3259_v40, 4  ;;  %vm20954_vm1 = vmor %vm1769_vm14, %vm1770_vm15  ;;  %v24725_v46 = vmov 0  ;;  %v1774_v0 = vrot.slane %v18840_v59, 5  ;;  %v24731_v32 = vld [vmem:[#allocation113_spill] sm:$0xff] }
 0x1e2   : > { %v20952_v5 = vcombine.low %v3251_v4, %v3256_v3  ;;  %v3268_v60 = vor.u32 %v3267_v52, %v3266_v49  ;;  %v24726_v46 = vsel %vm20954_vm1, 4294967295, %v24725_v46  ;;  %v3265_v17 = vrot.slane %v3263_v62, 4  ;;  %v24734_v4 = vld [vmem:[#allocation114_spill] sm:$0xff]  ;;  %v24735_v3 = vld [vmem:[#allocation148_spill] sm:$0xff] }
 0x1e3   : > { %24727 = vst [vmem:[#allocation74_spill] sm:$0xff] %v24726_v46  ;;  %v1777_v58 = vrot.slane %v20960_v27, 5  ;;  %v20964_v9 = vand.u32 %v2422_v30, %v19787_v2  ;;  %v24141_v29 = vshrl.u32 %v20366_v18, 16  ;;  %v3264_v14 = vsel %vm20794_vm13, %v3260_v16, %v3263_v62 }
 0x1e4   : > { %24724 = vst [vmem:[#allocation73_spill] sm:$0xff] %v20952_v5  ;;  %v20971_v37 = vsel %vm20954_vm1, %v13633_v44, %v1774_v0  ;;  %v1776_v11 = vrot.slane %v1774_v0, 4  ;;  %v3270_v47 = vrot.slane %v24729_v36, 6  ;;  %v3269_v61 = vsel %vm20794_vm13, %v3265_v17, %v3268_v60  ;;  %16368 = vmatmul.mubr.msk.bf16.gmra.mrb[4].mxu0 %vm1244_vm6, %v20889_v12  ;;  %v24736_v44 = vld [vmem:[#allocation149_spill] sm:$0xff]  ;;  %v20996_v60 = vld [vmem:[%s19749_s18 + $0x14] sm:$0x7] }
 0x1e5   : > { %15579 = vmatprep.subr.bf16.mxu1 %v20964_v9  ;;  %v3271_v23 = vrot.slane %v24730_v33, 7  ;;  %v3274_v34 = vrot.slane %v24731_v32, 6  ;;  %v3275_v22 = vrot.slane %v24732_v41, 7  ;;  %v20980_v10 = vcombine.low %v3264_v14, %v3269_v61  ;;  %15534 = vmatmul.mubr.msk.bf16.gmra.mrb[20].mxu1 %vm1244_vm6, %v20839_v19  ;;  %v24737_v14 = vld [vmem:[#allocation117_spill] sm:$0xff] }
 0x1e6   : > { %v20984_v21 = vsel %vm20954_vm1, %v1776_v11, %v1777_v58  ;;  %v3279_v49 = vrot.slane %v24141_v29, 6  ;;  %v3280_v40 = vrot.slane %v24734_v4, 7  ;;  %v13634_v62 = vrot.slane %v24735_v3, 9  ;;  %16371 = vmatprep.mubr.msk.bf16.mxu0 %vm1244_vm6, %v20915_v53  ;;  %15537 = vmatprep.mubr.msk.bf16.mxu1 %vm1244_vm6, %v20864_v24  ;;  %v21062_v19 = vld [vmem:[%s19749_s18 + $0x2c] sm:$0x7] }
 0x1e7   : > { %24733 = vst [vmem:[#allocation75_spill] sm:$0xff] %v20980_v10  ;;  %v3272_v52 = vor.u32 %v3271_v23, %v3270_v47  ;;  %v3276_v30 = vor.u32 %v3275_v22, %v3274_v34  ;;  %v1781_v16 = vrot.slane %v24736_v44, 5  ;;  %v1784_v59 = vrot.slane %v20996_v60, 5  ;;  %v24738_v47 = vld [vmem:[#allocation118_spill] sm:$0xff]  ;;  %v24739_v22 = vld [vmem:[#allocation120_spill] sm:$0xff] }
 0x1e8   : > { %v3281_v6 = vor.u32 %v3280_v40, %v3279_v49  ;;  %v24156_v0 = vshrl.u32 %v20418_v13, 16  ;;  %v3283_v11 = vrot.slane %v24737_v14, 6  ;;  %v3284_v61 = vrot.slane %v24738_v47, 7  ;;  %v24740_v40 = vld [vmem:[#allocation119_spill] sm:$0xff] }
 0x1e9   : > { %v3273_v17 = vrot.slane %v3272_v52, 4  ;;  %v3278_v58 = vrot.slane %v3276_v30, 4  ;;  %v1782_v23 = vsel %vm20954_vm1, %v13634_v62, %v1781_v16  ;;  %v1783_v34 = vrot.slane %v1781_v16, 4 }
 0x1ea   : > { %v3287_v49 = vrot.slane %v24739_v22, 6  ;;  %v3288_v3 = vrot.slane %v24740_v40, 7  ;;  %v3285_v29 = vor.u32 %v3284_v61, %v3283_v11  ;;  %v3292_v43 = vrot.slane %v24156_v0, 6  ;;  %v21028_v11 = vld [vmem:[%s19749_s18 + $0x20] sm:$0x7] }
 0x1eb   : > { %v3277_v52 = vsel %vm20794_vm13, %v3273_v17, %v3276_v30  ;;  %v3282_v44 = vsel %vm20794_vm13, %v3278_v58, %v3281_v6  ;;  %v1785_v62 = vsel %vm20954_vm1, %v1783_v34, %v1784_v59  ;;  %v3293_v50 = vrot.slane %v24742_v8, 7  ;;  %v18843_v30 = vld [vmem:[%s19749_s18 + $0x18] sm:$0xf] }
 0x1ec   : > { %v21018_v51 = vcombine.low %v3277_v52, %v3282_v44  ;;  %v3289_v16 = vor.u32 %v3288_v3, %v3287_v49  ;;  %v21023_v53 = vcombine.low %v1782_v23, %v1785_v62  ;;  %v3286_v12 = vrot.slane %v3285_v29, 4  ;;  %v24744_v52 = vld [vmem:[#allocation124_spill] sm:$0xff]  ;;  %v24745_v29 = vld [vmem:[#allocation125_spill] sm:$0xff]  ;;  %16372 = vmatmul.mubr.msk.bf16.gmra.mrb[8].mxu0 %vm1244_vm6, %v20930_v38 }
 0x1ed   : > { %v13635_v17 = vrot.slane %v18843_v30, 9  ;;  %v1788_v54 = vrot.slane %v18844_v45, 5  ;;  %v3294_v58 = vor.u32 %v3293_v50, %v3292_v43  ;;  %v1791_v61 = vrot.slane %v21028_v11, 5  ;;  %v24746_v45 = vld [vmem:[#allocation126_spill] sm:$0xff]  ;;  %v24747_v3 = vld [vmem:[#allocation128_spill] sm:$0xff]  ;;  %v24748_v30 = vld [vmem:[#allocation127_spill] sm:$0xff]  ;;  %15538 = vmatmul.mubr.msk.bf16.gmra.mrb[24].mxu1 %vm1244_vm6, %v20883_v63  ;;  %16375 = vmatprep.mubr.msk.bf16.mxu0 %vm1244_vm6, %v20952_v5 }
 0x1ee   : > { %24741 = vst [vmem:[#allocation77_spill] sm:$0xff] %v21018_v51  ;;  %24743 = vst [vmem:[#allocation80_spill] sm:$0xff] %v21023_v53  ;;  %v3291_v6 = vrot.slane %v3289_v16, 4  ;;  %v24169_v44 = vshrl.u32 %v24744_v52, 16  ;;  %v3290_v59 = vsel %vm20794_vm13, %v3286_v12, %v3289_v16  ;;  %v3296_v49 = vrot.slane %v24745_v29, 6  ;;  %15541 = vmatprep.mubr.msk.bf16.mxu1 %vm1244_vm6, %v20906_v56  ;;  %v24752_v63 = vld [vmem:[#allocation155_spill] sm:$0xff] }
 0x1ef   : > { %v1789_v23 = vsel %vm20954_vm1, %v13635_v17, %v1788_v54  ;;  %v1790_v34 = vrot.slane %v1788_v54, 4  ;;  %v3297_v43 = vrot.slane %v24746_v45, 7  ;;  %v3300_v62 = vrot.slane %v24747_v3, 6  ;;  %v24750_v17 = vld [vmem:[#allocation129_spill] sm:$0xff]  ;;  %v24756_v56 = vld [vmem:[#allocation134_spill] sm:$0xff] }
 0x1f0   : > { %v3295_v50 = vsel %vm20794_vm13, %v3291_v6, %v3294_v58  ;;  %v3301_v0 = vrot.slane %v24748_v30, 7  ;;  %v3305_v16 = vrot.slane %v24169_v44, 6  ;;  %v3306_v6 = vrot.slane %v24750_v17, 7  ;;  %v24761_v52 = vld [vmem:[#allocation137_spill] sm:$0xff] }
 0x1f1   : > { %v21048_v54 = vcombine.low %v3290_v59, %v3295_v50  ;;  %v1792_v12 = vsel %vm20954_vm1, %v1790_v34, %v1791_v61  ;;  %v3298_v38 = vor.u32 %v3297_v43, %v3296_v49  ;;  %v13636_v24 = vrot.slane %v24752_v63, 9  ;;  %v24753_v59 = vld [vmem:[#allocation156_spill] sm:$0xff] }
 0x1f2   : > { %v21057_v58 = vcombine.low %v1789_v23, %v1792_v12  ;;  %v3302_v15 = vor.u32 %v3301_v0, %v3300_v62  ;;  %v3307_v5 = vor.u32 %v3306_v6, %v3305_v16  ;;  %v1795_v50 = vrot.slane %v24753_v59, 5  ;;  %v24754_v34 = vld [vmem:[#allocation132_spill] sm:$0xff]  ;;  %v24758_v12 = vld [vmem:[#allocation135_spill] sm:$0xff] }
 0x1f3   : > { %24749 = vst [vmem:[#allocation81_spill] sm:$0xff] %v21048_v54  ;;  %v1798_v61 = vrot.slane %v21062_v19, 5  ;;  %v3299_v42 = vrot.slane %v3298_v38, 4  ;;  %v3309_v57 = vrot.slane %v24755_v39, 6  ;;  %v3310_v23 = vrot.slane %v24756_v56, 7  ;;  %v24757_v43 = vld [vmem:[#allocation136_spill] sm:$0xff] }
 0x1f4   : > { %24751 = vst [vmem:[#allocation83_spill] sm:$0xff] %v21057_v58  ;;  %v3304_v1 = vrot.slane %v3302_v15, 4  ;;  %v1796_v0 = vsel %vm20954_vm1, %v13636_v24, %v1795_v50  ;;  %v1797_v49 = vrot.slane %v1795_v50, 4  ;;  %v3313_v62 = vrot.slane %v24757_v43, 6  ;;  %16376 = vmatmul.mubr.msk.bf16.gmra.mrb[12].mxu0 %vm1244_vm6, %v20980_v10  ;;  %v2831_v56 = vld [vmem:[#allocation14 + $0x8] sm:$0x3] }
 0x1f5   : > { %v3314_v16 = vrot.slane %v24758_v12, 7  ;;  %v3303_v6 = vsel %vm20794_vm13, %v3299_v42, %v3302_v15  ;;  %v3311_v38 = vor.u32 %v3310_v23, %v3309_v57  ;;  %v24759_v31 = vshrl.u32 %v24754_v34, 16  ;;  %v24764_v57 = vld [vmem:[#allocation160_spill] sm:$0xff]  ;;  %15542 = vmatmul.mubr.msk.bf16.gmra.mrb[28].mxu1 %vm1244_vm6, %v20927_v28  ;;  %16379 = vmatprep.mubr.msk.bf16.mxu0 %vm1244_vm6, %v21018_v51  ;;  %v21122_v12 = vld [vmem:[%s19749_s18 + $0x3c] sm:$0xf] }
 0x1f6   : > { %v3308_v44 = vsel %vm20794_vm13, %v3304_v1, %v3307_v5  ;;  %v1799_v24 = vsel %vm20954_vm1, %v1797_v49, %v1798_v61  ;;  %v3319_v43 = vrot.slane %v24761_v52, 7  ;;  %v24763_v1 = vld [vmem:[#allocation159_spill] sm:$0xff]  ;;  %v1802_v23 = vrot.slane %v24764_v57, 5  ;;  %v21094_v61 = vld [vmem:[%s19749_s18 + $0x38] sm:$0x7] }
 0x1f7   : > { %v3318_v7 = vrot.slane %v24759_v31, 6  ;;  %v21078_v17 = vcombine.low %v3303_v6, %v3308_v44  ;;  %v3315_v50 = vor.u32 %v3314_v16, %v3313_v62  ;;  %v21085_v15 = vcombine.low %v1796_v0, %v1799_v24  ;;  %v24765_v62 = vld [vmem:[#allocation140_spill] sm:$0xff]  ;;  %v24768_v0 = vld [vmem:[#allocation142_spill] sm:$0xff] }
 0x1f8   : > { %v3312_v42 = vrot.slane %v3311_v38, 4  ;;  %v13637_v5 = vrot.slane %v24763_v1, 9  ;;  %v1805_v49 = vrot.slane %v21094_v61, 5  ;;  %v24766_v16 = vcombine.low %v20971_v37, %v20984_v21  ;;  %v24769_v37 = vld [vmem:[#allocation144_spill] sm:$0xff] }
 0x1f9   : > { %24760 = vst [vmem:[#allocation82_spill] sm:$0xff] %v21078_v17  ;;  %24762 = vst [vmem:[#allocation84_spill] sm:$0xff] %v21085_v15  ;;  %v3317_v31 = vrot.slane %v3315_v50, 4  ;;  %v3320_v44 = vor.u32 %v3319_v43, %v3318_v7  ;;  %v1804_v24 = vrot.slane %v1802_v23, 4  ;;  %v24767_v7 = vld [vmem:[#allocation141_spill] sm:$0xff]  ;;  %v3323_v10 = vrot.slane %v24768_v0, 7 }
 0x1fa   : > { %15547 = vmatprep.mubr.msk.bf16.mxu1 %vm1244_vm6, %v24766_v16  ;;  %v3316_v6 = vsel %vm20794_vm13, %v3312_v42, %v3315_v50  ;;  %v1803_v38 = vsel %vm20954_vm1, %v13637_v5, %v1802_v23  ;;  %v3322_v43 = vrot.slane %v24767_v7, 6  ;;  %v3326_v21 = vrot.slane %v24769_v37, 6  ;;  %v24770_v16 = vld [vmem:[#allocation143_spill] sm:$0xff]  ;;  %v24773_v23 = vld [vmem:[#allocation145_spill] sm:$0xff] }
 0x1fb   : > { %v3321_v51 = vsel %vm20794_vm13, %v3317_v31, %v3320_v44  ;;  %v3327_v28 = vrot.slane %v24770_v16, 7  ;;  %v1806_v50 = vsel %vm20954_vm1, %v1804_v24, %v1805_v49  ;;  %v24772_v42 = vshrl.u32 %v24765_v62, 16  ;;  %v21126_v16 = vld [vmem:[%s19749_s18 + $0x40] sm:$0xf] }
 0x1fc   : > { %v21112_v52 = vcombine.low %v3316_v6, %v3321_v51  ;;  %v3332_v7 = vrot.slane %v24773_v23, 7  ;;  %v21119_v34 = vcombine.low %v1803_v38, %v1806_v50  ;;  %v3324_v31 = vor.u32 %v3323_v10, %v3322_v43  ;;  %v21130_v6 = vld [vmem:[%s19749_s18 + $0x44] sm:$0x7]  ;;  %v24777_v10 = vld [vmem:[#allocation158_spill] sm:$0xff]  ;;  %16380 = vmatmul.mubr.msk.bf16.gmra.mrb[16].mxu0 %vm1244_vm6, %v21048_v54 }
 0x1fd   : > { %v3331_v5 = vrot.slane %v24772_v42, 6  ;;  %v3328_v44 = vor.u32 %v3327_v28, %v3326_v21  ;;  %v13638_v37 = vrot.slane %v21122_v12, 9  ;;  %v1809_v51 = vrot.slane %v21126_v16, 5  ;;  %15548 = vmatmul.mubr.msk.bf16.vlgmr.msra.gmra.mrb[0].mxu1 %vm1244_vm6, %v21023_v53  ;;  %16383 = vmatprep.mubr.msk.bf16.mxu0 %vm1244_vm6, %v21078_v17 }
 0x1fe   : > { %24771 = vst [vmem:[#allocation87_spill] sm:$0xff] %v21112_v52  ;;  %24774 = vst [vmem:[#allocation88_spill] sm:$0xff] %v21119_v34  ;;  %v1812_v49 = vrot.slane %v21130_v6, 5  ;;  %v21134_v24 = vshrl.u32 %v20680_v20, 16  ;;  %v3325_v38 = vrot.slane %v3324_v31, 4  ;;  %v21137_v28 = vshll.u32 %v20680_v20, 16  ;;  %15580 = vmatpush3.bf16.msra.mxu1 %v20964_v9  ;;  %15551 = vmatprep.mubr.msk.bf16.mxu1 %vm1244_vm6, %v21057_v58 }
 0x1ff   : > { %v3333_v0 = vor.u32 %v3332_v7, %v3331_v5  ;;  %v3330_v50 = vrot.slane %v3328_v44, 4  ;;  %v21140_v43 = vshll.u32 %v24777_v10, 16  ;;  %v1810_v7 = vsel %vm20954_vm1, %v13638_v37, %v1809_v51  ;;  %v24780_v5 = vld [vmem:[#allocation162_spill] sm:$0xff]  ;;  %v21178_v58 = vld [vmem:[%s19749_s18 + $0x48] sm:$0xf] }
 0x200   : > { %24775 = vst [vmem:[#allocation93_spill] sm:$0xff] %v21134_v24  ;;  %24776 = vst [vmem:[#allocation92_spill] sm:$0xff] %v21137_v28  ;;  %v1811_v21 = vrot.slane %v1809_v51, 4  ;;  %v21147_v42 = vshrl.u32 %v24777_v10, 16  ;;  %v21150_v23 = vshll.u32 %v24780_v5, 16  ;;  %v3329_v20 = vsel %vm20794_vm13, %v3325_v38, %v3328_v44 }
 0x201   : > { %24778 = vst [vmem:[#allocation91_spill] sm:$0xff] %v21140_v43  ;;  %v3334_v37 = vsel %vm20794_vm13, %v3330_v50, %v3333_v0  ;;  %v24202_v31 = vshrl.u32 %v24780_v5, 16  ;;  %v5114_v51 = vrot.slane %v21134_v24, 6  ;;  %v5115_v44 = vrot.slane %v21137_v28, 7 }
 0x202   : > { %24779 = vst [vmem:[#allocation94_spill] sm:$0xff] %v21147_v42  ;;  %24781 = vst [vmem:[#allocation97_spill] sm:$0xff] %v21150_v23  ;;  %v21165_v10 = vcombine.low %v3329_v20, %v3334_v37  ;;  %v1813_v53 = vsel %vm20954_vm1, %v1811_v21, %v1812_v49  ;;  %v5118_v0 = vrot.slane %v21147_v42, 6  ;;  %v5119_v50 = vrot.slane %v21140_v43, 7  ;;  %v21182_v37 = vld [vmem:[%s19749_s18 + $0x4c] sm:$0xf] }
 0x203   : > { %v21171_v38 = vcombine.low %v1810_v7, %v1813_v53  ;;  %v5123_v17 = vrot.slane %v24202_v31, 6  ;;  %v5124_v9 = vrot.slane %v21150_v23, 7  ;;  %v5116_v54 = vor.u32 %v5115_v44, %v5114_v51  ;;  %v21186_v21 = vld [vmem:[%s19749_s18 + $0x50] sm:$0x7] }
 0x204   : > { %24782 = vst [vmem:[#allocation98_spill] sm:$0xff] %v21165_v10  ;;  %v13639_v20 = vrot.slane %v21178_v58, 9  ;;  %v1816_v49 = vrot.slane %v21182_v37, 5  ;;  %v1819_v53 = vrot.slane %v21186_v21, 5  ;;  %v5120_v7 = vor.u32 %v5119_v50, %v5118_v0  ;;  %16384 = vmatmul.mubr.msk.bf16.gmra.mrb[20].mxu0 %vm1244_vm6, %v21112_v52  ;;  %v21233_v52 = vld [vmem:[%s19749_s18 + $0x54] sm:$0xf] }
 0x205   : > { %24783 = vst [vmem:[#allocation100_spill] sm:$0xff] %v21171_v38  ;;  %v5125_v42 = vor.u32 %v5124_v9, %v5123_v17  ;;  %v21190_v5 = vshrl.u32 %v20710_v48, 16  ;;  %v21193_v31 = vshll.u32 %v20710_v48, 16  ;;  %v5117_v51 = vrot.slane %v5116_v54, 4  ;;  %15552 = vmatmul.mubr.msk.bf16.gmra.mrb[4].mxu1 %vm1244_vm6, %v21085_v15  ;;  %16387 = vmatprep.mubr.msk.bf16.mxu0 %vm1244_vm6, %v21165_v10 }
 0x206   : > { %v1817_v44 = vsel %vm20954_vm1, %v13639_v20, %v1816_v49  ;;  %v1818_v23 = vrot.slane %v1816_v49, 4  ;;  %v21198_v43 = vshll.u32 %v20719_v25, 16  ;;  %v5122_v28 = vrot.slane %v5120_v7, 4  ;;  %15555 = vmatprep.mubr.msk.bf16.mxu1 %vm1244_vm6, %v21119_v34  ;;  %v24793_v34 = vld [vmem:[#allocation167_spill] sm:$0xff] }
 0x207   : > { %24784 = vst [vmem:[#allocation99_spill] sm:$0xff] %v21190_v5  ;;  %24785 = vst [vmem:[#allocation101_spill] sm:$0xff] %v21193_v31  ;;  %v21201_v24 = vshrl.u32 %v20719_v25, 16  ;;  %v21204_v17 = vshll.u32 %v20722_v35, 16  ;;  %v24217_v0 = vshrl.u32 %v20722_v35, 16  ;;  %v5121_v48 = vsel %vm20794_vm13, %v5117_v51, %v5120_v7 }
 0x208   : > { %24786 = vst [vmem:[#allocation110_spill] sm:$0xff] %v21198_v43  ;;  %v1820_v54 = vsel %vm20954_vm1, %v1818_v23, %v1819_v53  ;;  %v6618_v50 = vrot.slane %v21190_v5, 6  ;;  %v6619_v25 = vrot.slane %v21193_v31, 7  ;;  %v5126_v9 = vsel %vm20794_vm13, %v5122_v28, %v5125_v42  ;;  %v21237_v42 = vld [vmem:[%s19749_s18 + $0x58] sm:$0xf] }
 0x209   : > { %24787 = vst [vmem:[#allocation111_spill] sm:$0xff] %v21201_v24  ;;  %24788 = vst [vmem:[#allocation113_spill] sm:$0xff] %v21204_v17  ;;  %v21221_v20 = vcombine.low %v1817_v44, %v1820_v54  ;;  %v6622_v49 = vrot.slane %v21201_v24, 6  ;;  %v6623_v23 = vrot.slane %v21198_v43, 7  ;;  %v21227_v53 = vcombine.low %v5121_v48, %v5126_v9  ;;  %v21241_v54 = vld [vmem:[%s19749_s18 + $0x5c] sm:$0x7] }
 0x20a   : > { %v6620_v7 = vor.u32 %v6619_v25, %v6618_v50  ;;  %v6627_v51 = vrot.slane %v24217_v0, 6  ;;  %v6628_v15 = vrot.slane %v21204_v17, 7  ;;  %v13640_v28 = vrot.slane %v21233_v52, 9 }
 0x20b   : > { %24789 = vst [vmem:[#allocation112_spill] sm:$0xff] %v21221_v20  ;;  %24790 = vst [vmem:[#allocation114_spill] sm:$0xff] %v21227_v53  ;;  %v6624_v10 = vor.u32 %v6623_v23, %v6622_v49  ;;  %v1823_v44 = vrot.slane %v21237_v42, 5  ;;  %v1826_v48 = vrot.slane %v21241_v54, 5  ;;  %v21245_v25 = vshrl.u32 %v20730_v55, 16 }
 0x20c   : > { %v6621_v9 = vrot.slane %v6620_v7, 4  ;;  %v6629_v50 = vor.u32 %v6628_v15, %v6627_v51  ;;  %v21248_v0 = vshll.u32 %v20730_v55, 16  ;;  %v21253_v17 = vshll.u32 %v24793_v34, 16  ;;  %v24796_v15 = vld [vmem:[#allocation169_spill] sm:$0xff]  ;;  %16388 = vmatmul.mubr.msk.bf16.gmra.mrb[24].mxu0 %vm1244_vm6, %v21227_v53 }
 0x20d   : > { %24791 = vst [vmem:[#allocation148_spill] sm:$0xff] %v21245_v25  ;;  %v6626_v49 = vrot.slane %v6624_v10, 4  ;;  %v1824_v23 = vsel %vm20954_vm1, %v13640_v28, %v1823_v44  ;;  %v1825_v35 = vrot.slane %v1823_v44, 4  ;;  %v21258_v7 = vshrl.u32 %v24793_v34, 16  ;;  %15556 = vmatmul.mubr.msk.bf16.gmra.mrb[8].mxu1 %vm1244_vm6, %v21171_v38 }
 0x20e   : > { %24792 = vst [vmem:[#allocation149_spill] sm:$0xff] %v21248_v0  ;;  %24794 = vst [vmem:[#allocation117_spill] sm:$0xff] %v21253_v17  ;;  %v6625_v24 = vsel %vm20794_vm13, %v6621_v9, %v6624_v10  ;;  %v21261_v51 = vshll.u32 %v24796_v15, 16  ;;  %v8122_v44 = vrot.slane %v21245_v25, 6  ;;  %v8123_v10 = vrot.slane %v21248_v0, 7  ;;  %15559 = vmatprep.mubr.msk.bf16.mxu1 %vm1244_vm6, %v21221_v20 }
 0x20f   : > { %24795 = vst [vmem:[#allocation118_spill] sm:$0xff] %v21258_v7  ;;  %v6630_v43 = vsel %vm20794_vm13, %v6626_v49, %v6629_v50  ;;  %v1827_v28 = vsel %vm20954_vm1, %v1825_v35, %v1826_v48  ;;  %v8126_v55 = vrot.slane %v21258_v7, 6  ;;  %v8127_v50 = vrot.slane %v21253_v17, 7  ;;  %v21284_v25 = vld [vmem:[%s19749_s18 + $0x60] sm:$0xf] }
 0x210   : > { %24797 = vst [vmem:[#allocation120_spill] sm:$0xff] %v21261_v51  ;;  %v21272_v34 = vcombine.low %v6625_v24, %v6630_v43  ;;  %v21274_v9 = vcombine.low %v1824_v23, %v1827_v28  ;;  %v8124_v35 = vor.u32 %v8123_v10, %v8122_v44  ;;  %v24800_v48 = vshrl.u32 %v24796_v15, 16  ;;  %v21292_v23 = vld [vmem:[%s19749_s18 + $0x64] sm:$0xf]  ;;  %v21296_v44 = vld [vmem:[%s19749_s18 + $0x68] sm:$0x7] }
 0x211   : > { %v8132_v0 = vrot.slane %v21261_v51, 7  ;;  %v13641_v24 = vrot.slane %v21284_v25, 9  ;;  %v8128_v43 = vor.u32 %v8127_v50, %v8126_v55  ;;  %v1830_v28 = vrot.slane %v21292_v23, 5 }
 0x212   : > { %24798 = vst [vmem:[#allocation119_spill] sm:$0xff] %v21272_v34  ;;  %24799 = vst [vmem:[#allocation121_spill] sm:$0xff] %v21274_v9  ;;  %v8131_v49 = vrot.slane %v24800_v48, 6  ;;  %16391 = vmatprep.mubr.msk.bf16.mxu0 %vm1244_vm6, %v21272_v34  ;;  %v1833_v10 = vrot.slane %v21296_v44, 5  ;;  %vm3630_vm2 = vcmask 1044484   ;;  %v8125_v53 = vrot.slane %v8124_v35, 4 }
 0x213   : > { %v8551_v48 = vld [vmem:[#allocation14 + $0x38] sm:$0x3]  ;;  %vm21300_vm3 = vmor %vm1293_vm0, %vm3630_vm2  ;;  %v24801_v20 = vmov 0  ;;  %v13796_v55 = vrot.slane %v24752_v63, 11  ;;  %v3655_v50 = vrot.slane %v24753_v59, 7  ;;  %v8130_v34 = vrot.slane %v8128_v43, 4 }
 0x214   : > { %v8133_v15 = vor.u32 %v8132_v0, %v8131_v49  ;;  %v24802_v20 = vsel %vm21300_vm3, 4294967295, %v24801_v20  ;;  %v1831_v38 = vsel %vm20954_vm1, %v13641_v24, %v1830_v28  ;;  %v1832_v51 = vrot.slane %v1830_v28, 4  ;;  %v21321_v24 = vld [vmem:[%s19749_s18 + $0x6c] sm:$0xf]  ;;  %v21325_v28 = vld [vmem:[%s19749_s18 + $0x70] sm:$0xf] }
 0x215   : > { %24803 = vst [vmem:[#allocation125_spill] sm:$0xff] %v24802_v20  ;;  %v3658_v7 = vrot.slane %v21062_v19, 7  ;;  %v8129_v0 = vsel %vm20794_vm13, %v8125_v53, %v8128_v43  ;;  %v3656_v35 = vsel %vm21300_vm3, %v13796_v55, %v3655_v50  ;;  %v3657_v49 = vrot.slane %v3655_v50, 4  ;;  %15560 = vmatmul.mubr.msk.bf16.gmra.mrb[12].mxu1 %vm1244_vm6, %v21274_v9  ;;  %v25012_v20 = vld [vmem:[#allocation110_spill] sm:$0xff] }
 0x216   : > { %v21314_v17 = vand.u32 %v8551_v48, %v19787_v2  ;;  %v8134_v63 = vsel %vm20794_vm13, %v8130_v34, %v8133_v15  ;;  %v1834_v59 = vsel %vm20954_vm1, %v1832_v51, %v1833_v10  ;;  %v13642_v19 = vrot.slane %v21321_v24, 9  ;;  %v21336_v51 = vld [vmem:[%s19749_s18 + $0x74] sm:$0x7] }
 0x217   : > { %v1837_v53 = vrot.slane %v21325_v28, 5  ;;  %v21328_v43 = vcombine.low %v8129_v0, %v8134_v63  ;;  %v21330_v48 = vcombine.low %v1831_v38, %v1834_v59  ;;  %v3659_v15 = vsel %vm21300_vm3, %v3657_v49, %v3658_v7  ;;  %v21351_v49 = vld [vmem:[%s19749_s18 + $0x78] sm:$0xf]  ;;  %v21355_v63 = vld [vmem:[%s19749_s18 + $0x7c] sm:$0xf] }
 0x218   : > { %16429 = vmatprep.subr.bf16.mxu0 %v21314_v17  ;;  %v1840_v34 = vrot.slane %v21336_v51, 5  ;;  %v21339_v10 = vcombine.low %v3656_v35, %v3659_v15  ;;  %v13797_v0 = vrot.slane %v24763_v1, 11  ;;  %v3662_v38 = vrot.slane %v24764_v57, 7  ;;  %v21365_v57 = vld [vmem:[%s19749_s18 + $0x80] sm:$0x7] }
 0x219   : > { %24804 = vst [vmem:[#allocation126_spill] sm:$0xff] %v21328_v43  ;;  %24805 = vst [vmem:[#allocation128_spill] sm:$0xff] %v21330_v48  ;;  %v1838_v55 = vsel %vm20954_vm1, %v13642_v19, %v1837_v53  ;;  %v1839_v50 = vrot.slane %v1837_v53, 4  ;;  %16392 = vmatmul.mubr.msk.bf16.gmra.mrb[28].mxu0 %vm1244_vm6, %v21328_v43  ;;  %v3665_v7 = vrot.slane %v21094_v61, 7  ;;  %v13643_v35 = vrot.slane %v21351_v49, 9  ;;  %15563 = vmatprep.mubr.msk.bf16.mxu1 %vm1244_vm6, %v21330_v48 }
 0x21a   : > { %24806 = vst [vmem:[#allocation127_spill] sm:$0xff] %v21339_v10  ;;  %v1844_v59 = vrot.slane %v21355_v63, 5  ;;  %16397 = vmatprep.mubr.msk.bf16.mxu0 %vm1244_vm6, %v21339_v10  ;;  %v1847_v61 = vrot.slane %v21365_v57, 5  ;;  %v13798_v19 = vrot.slane %v21122_v12, 11  ;;  %v3669_v53 = vrot.slane %v21126_v16, 7 }
 0x21b   : > { %v1841_v1 = vsel %vm20954_vm1, %v1839_v50, %v1840_v34  ;;  %v3663_v43 = vsel %vm21300_vm3, %v13797_v0, %v3662_v38  ;;  %v3664_v48 = vrot.slane %v3662_v38, 4  ;;  %v3672_v31 = vrot.slane %v21130_v6, 7  ;;  %v21382_v16 = vld [vmem:[%s19749_s18 + $0x84] sm:$0xf]  ;;  %v21386_v0 = vld [vmem:[%s19749_s18 + $0x88] sm:$0xf] }
 0x21c   : > { %v21370_v15 = vcombine.low %v1838_v55, %v1841_v1  ;;  %v1845_v10 = vsel %vm20954_vm1, %v13643_v35, %v1844_v59  ;;  %v1846_v34 = vrot.slane %v1844_v59, 4  ;;  %v3670_v50 = vsel %vm21300_vm3, %v13798_v19, %v3669_v53  ;;  %v21390_v35 = vld [vmem:[%s19749_s18 + $0x8c] sm:$0x7] }
 0x21d   : > { %v3671_v9 = vrot.slane %v3669_v53, 4  ;;  %v3666_v12 = vsel %vm21300_vm3, %v3664_v48, %v3665_v7  ;;  %v13644_v55 = vrot.slane %v21382_v16, 9  ;;  %v1851_v38 = vrot.slane %v21386_v0, 5 }
 0x21e   : > { %24807 = vst [vmem:[#allocation155_spill] sm:$0xff] %v21370_v15  ;;  %v1854_v59 = vrot.slane %v21390_v35, 5  ;;  %v21393_v1 = vcombine.low %v3663_v43, %v3666_v12  ;;  %v1848_v6 = vsel %vm20954_vm1, %v1846_v34, %v1847_v61  ;;  %v13799_v7 = vrot.slane %v21178_v58, 11  ;;  %v21413_v34 = vld [vmem:[%s19749_s18 + $0x94] sm:$0xf]  ;;  %15564 = vmatmul.mubr.msk.bf16.gmra.mrb[16].mxu1 %vm1244_vm6, %v21370_v15 }
 0x21f   : > { %v3673_v48 = vsel %vm21300_vm3, %v3671_v9, %v3672_v31  ;;  %v21400_v19 = vcombine.low %v1845_v10, %v1848_v6  ;;  %v1852_v5 = vsel %vm20954_vm1, %v13644_v55, %v1851_v38  ;;  %v1853_v62 = vrot.slane %v1851_v38, 4  ;;  %v21445_v6 = vld [vmem:[%s19749_s18 + $0x9c] sm:$0xf] }
 0x220   : > { %24808 = vst [vmem:[#allocation156_spill] sm:$0xff] %v21393_v1  ;;  %v21402_v53 = vcombine.low %v3670_v50, %v3673_v48  ;;  %v3676_v43 = vrot.slane %v21182_v37, 7  ;;  %v3679_v12 = vrot.slane %v21186_v21, 7  ;;  %v13645_v61 = vrot.slane %v21409_v26, 9  ;;  %v21423_v37 = vld [vmem:[%s19749_s18 + $0x98] sm:$0x7] }
 0x221   : > { %24809 = vst [vmem:[#allocation133_spill] sm:$0xff] %v21400_v19  ;;  %v1858_v58 = vrot.slane %v21413_v34, 5  ;;  %16398 = vmatmul.mubr.msk.bf16.vlgmr.msra.gmra.mrb[0].mxu0 %vm1244_vm6, %v21393_v1  ;;  %v1855_v31 = vsel %vm20954_vm1, %v1853_v62, %v1854_v59  ;;  %v1861_v21 = vrot.slane %v21423_v37, 5  ;;  %v13800_v9 = vrot.slane %v21233_v52, 11  ;;  %15567 = vmatprep.mubr.msk.bf16.mxu1 %vm1244_vm6, %v21400_v19 }
 0x222   : > { %24810 = vst [vmem:[#allocation159_spill] sm:$0xff] %v21402_v53  ;;  %v3683_v10 = vrot.slane %v21237_v42, 7  ;;  %16430 = vmatpush3.bf16.msra.mxu0 %v21314_v17  ;;  %v21431_v50 = vcombine.low %v1852_v5, %v1855_v31  ;;  %v3677_v62 = vsel %vm21300_vm3, %v13799_v7, %v3676_v43  ;;  %v3678_v55 = vrot.slane %v3676_v43, 4  ;;  %16401 = vmatprep.mubr.msk.bf16.mxu0 %vm1244_vm6, %v21402_v53  ;;  %v21449_v7 = vld [vmem:[%s19749_s18 + $0xa0] sm:$0xf] }
 0x223   : > { %v1859_v38 = vsel %vm20954_vm1, %v13645_v61, %v1858_v58  ;;  %v1860_v52 = vrot.slane %v1858_v58, 4  ;;  %v3686_v59 = vrot.slane %v21241_v54, 7  ;;  %v13646_v48 = vrot.slane %v21445_v6, 9  ;;  %v21453_v61 = vld [vmem:[%s19749_s18 + $0xa4] sm:$0x7] }
 0x224   : > { %24811 = vst [vmem:[#allocation160_spill] sm:$0xff] %v21431_v50  ;;  %v3684_v17 = vsel %vm21300_vm3, %v13800_v9, %v3683_v10  ;;  %v3685_v42 = vrot.slane %v3683_v10, 4  ;;  %v3680_v5 = vsel %vm21300_vm3, %v3678_v55, %v3679_v12  ;;  %v1865_v43 = vrot.slane %v21449_v7, 5 }
 0x225   : > { %v1868_v58 = vrot.slane %v21453_v61, 5  ;;  %v21456_v31 = vcombine.low %v3677_v62, %v3680_v5  ;;  %v1862_v54 = vsel %vm20954_vm1, %v1860_v52, %v1861_v21  ;;  %v13801_v9 = vrot.slane %v21284_v25, 11  ;;  %v21472_v5 = vld [vmem:[%s19749_s18 + $0xa8] sm:$0xf]  ;;  %v21476_v52 = vld [vmem:[%s19749_s18 + $0xac] sm:$0xf] }
 0x226   : > { %v3687_v12 = vsel %vm21300_vm3, %v3685_v42, %v3686_v59  ;;  %v21463_v10 = vcombine.low %v1859_v38, %v1862_v54  ;;  %v1866_v53 = vsel %vm20954_vm1, %v13646_v48, %v1865_v43  ;;  %v1867_v1 = vrot.slane %v1865_v43, 4  ;;  %15568 = vmatmul.mubr.msk.bf16.gmra.mrb[20].mxu1 %vm1244_vm6, %v21431_v50 }
 0x227   : > { %24812 = vst [vmem:[#allocation158_spill] sm:$0xff] %v21456_v31  ;;  %v21465_v55 = vcombine.low %v3684_v17, %v3687_v12  ;;  %v3690_v19 = vrot.slane %v21292_v23, 7  ;;  %v3693_v62 = vrot.slane %v21296_v44, 7  ;;  %v13647_v21 = vrot.slane %v21472_v5, 9  ;;  %v21482_v17 = vld [vmem:[%s19749_s18 + $0xb0] sm:$0x7] }
 0x228   : > { %24813 = vst [vmem:[#allocation167_spill] sm:$0xff] %v21463_v10  ;;  %v1872_v25 = vrot.slane %v21476_v52, 5  ;;  %v1869_v38 = vsel %vm20954_vm1, %v1867_v1, %v1868_v58  ;;  %v1875_v42 = vrot.slane %v21482_v17, 5  ;;  %v13802_v23 = vrot.slane %v21321_v24, 11  ;;  %15571 = vmatprep.mubr.msk.bf16.mxu1 %vm1244_vm6, %v21463_v10 }
 0x229   : > { %24814 = vst [vmem:[#allocation174_spill] sm:$0xff] %v21465_v55  ;;  %v3697_v44 = vrot.slane %v21325_v28, 7  ;;  %16402 = vmatmul.mubr.msk.bf16.gmra.mrb[4].mxu0 %vm1244_vm6, %v21456_v31  ;;  %v21491_v59 = vcombine.low %v1866_v53, %v1869_v38  ;;  %v3691_v1 = vsel %vm21300_vm3, %v13801_v9, %v3690_v19  ;;  %v3692_v48 = vrot.slane %v3690_v19, 4  ;;  %v21507_v19 = vld [vmem:[%s19749_s18 + $0xb4] sm:$0xf] }
 0x22a   : > { %v1873_v43 = vsel %vm20954_vm1, %v13647_v21, %v1872_v25  ;;  %16405 = vmatprep.mubr.msk.bf16.mxu0 %vm1244_vm6, %v21465_v55  ;;  %v1874_v24 = vrot.slane %v1872_v25, 4  ;;  %v3700_v53 = vrot.slane %v21336_v51, 7  ;;  %v13648_v12 = vrot.slane %v21507_v19, 9  ;;  %v21511_v9 = vld [vmem:[%s19749_s18 + $0xb8] sm:$0xf] }
 0x22b   : > { %24815 = vst [vmem:[#allocation175_spill] sm:$0xff] %v21491_v59  ;;  %v3698_v28 = vsel %vm21300_vm3, %v13802_v23, %v3697_v44  ;;  %v3699_v58 = vrot.slane %v3697_v44, 4  ;;  %v3694_v54 = vsel %vm21300_vm3, %v3692_v48, %v3693_v62  ;;  %v1879_v21 = vrot.slane %v21511_v9, 5  ;;  %v21515_v38 = vld [vmem:[%s19749_s18 + $0xbc] sm:$0x7] }
 0x22c   : > { %v1882_v25 = vrot.slane %v21515_v38, 5  ;;  %v21518_v55 = vcombine.low %v3691_v1, %v3694_v54  ;;  %v1876_v51 = vsel %vm20954_vm1, %v1874_v24, %v1875_v42  ;;  %v13803_v23 = vrot.slane %v21351_v49, 11  ;;  %v24819_v54 = vld [vmem:[#allocation36_spill] sm:$0xff]  ;;  %v24820_v42 = vld [vmem:[#allocation37_spill] sm:$0xff] }
 0x22d   : > { %v3701_v62 = vsel %vm21300_vm3, %v3699_v58, %v3700_v53  ;;  %v21525_v44 = vcombine.low %v1873_v43, %v1876_v51  ;;  %v1880_v31 = vsel %vm20954_vm1, %v13648_v12, %v1879_v21  ;;  %v1881_v10 = vrot.slane %v1879_v21, 4  ;;  %v24821_v43 = vld [vmem:[#allocation39_spill] sm:$0xff] }
 0x22e   : > { %24816 = vst [vmem:[#allocation176_spill] sm:$0xff] %v21518_v55  ;;  %v21527_v48 = vcombine.low %v3698_v28, %v3701_v62  ;;  %v3704_v50 = vrot.slane %v21355_v63, 7  ;;  %v3707_v1 = vrot.slane %v21365_v57, 7  ;;  %v2181_v15 = vrot.slane %v24819_v54, 5  ;;  %v24822_v28 = vld [vmem:[#allocation38_spill] sm:$0xff]  ;;  %15572 = vmatmul.mubr.msk.bf16.gmra.mrb[24].mxu1 %vm1244_vm6, %v21491_v59  ;;  %v24824_v62 = vld [vmem:[#allocation40_spill] sm:$0xff] }
 0x22f   : > { %24817 = vst [vmem:[#allocation177_spill] sm:$0xff] %v21525_v44  ;;  %v2182_v24 = vrot.slane %v24820_v42, 6  ;;  %v1883_v49 = vsel %vm20954_vm1, %v1881_v10, %v1882_v25  ;;  %v2185_v58 = vrot.slane %v24821_v43, 5  ;;  %v2186_v53 = vrot.slane %v24822_v28, 6  ;;  %15575 = vmatprep.mubr.msk.bf16.mxu1 %vm1244_vm6, %v21525_v44 }
 0x230   : > { %24818 = vst [vmem:[#allocation178_spill] sm:$0xff] %v21527_v48  ;;  %v24279_v51 = vshrl.u32 %v20960_v27, 16  ;;  %v21540_v12 = vcombine.low %v1880_v31, %v1883_v49  ;;  %v3705_v63 = vsel %vm21300_vm3, %v13803_v23, %v3704_v50  ;;  %v3706_v57 = vrot.slane %v3704_v50, 4 }
 0x231   : > { %v2183_v21 = vor.u32 %v2182_v24, %v2181_v15  ;;  %16406 = vmatmul.mubr.msk.bf16.gmra.mrb[8].mxu0 %vm1244_vm6, %v21518_v55  ;;  %v2187_v10 = vor.u32 %v2186_v53, %v2185_v58  ;;  %v2193_v46 = vrot.slane %v24824_v62, 6  ;;  %v21552_v31 = vand.u32 %v2831_v56, %v19787_v2 }
 0x232   : > { %24823 = vst [vmem:[#allocation36_spill] sm:$0xff] %v21540_v12  ;;  %v2192_v25 = vrot.slane %v24279_v51, 5  ;;  %16409 = vmatprep.mubr.msk.bf16.mxu0 %vm1244_vm6, %v21527_v48  ;;  %v3708_v15 = vsel %vm21300_vm3, %v3706_v57, %v3707_v1  ;;  %v13804_v23 = vrot.slane %v21382_v16, 11  ;;  %v3711_v24 = vrot.slane %v21386_v0, 7  ;;  %v24827_v57 = vld [vmem:[#allocation47_spill] sm:$0xff]  ;;  %v24829_v16 = vld [vmem:[#allocation49_spill] sm:$0xff] }
 0x233   : > { %v2184_v50 = vrot.slane %v2183_v21, 4  ;;  %v21562_v49 = vcombine.low %v3705_v63, %v3708_v15  ;;  %v2189_v58 = vrot.slane %v2187_v10, 4  ;;  %15613 = vmatprep.subr.bf16.mxu1 %v21552_v31  ;;  %v3714_v56 = vrot.slane %v21390_v35, 7  ;;  %v24833_v15 = vld [vmem:[#allocation50_spill] sm:$0xff] }
 0x234   : > { %v2194_v53 = vor.u32 %v2193_v46, %v2192_v25  ;;  %v3712_v48 = vsel %vm21300_vm3, %v13804_v23, %v3711_v24  ;;  %v3713_v1 = vrot.slane %v3711_v24, 4  ;;  %v24828_v21 = vrot.slane %v24827_v57, 5  ;;  %v24831_v46 = vld [vmem:[#allocation51_spill] sm:$0xff] }
 0x235   : > { %24825 = vst [vmem:[#allocation37_spill] sm:$0xff] %v21562_v49  ;;  %v2188_v55 = vsel %vm19877_vm8, %v2184_v50, %v2187_v10  ;;  %v24830_v44 = vrot.slane %v24829_v16, 6  ;;  %v24832_v25 = vrot.slane %v24831_v46, 5  ;;  %v24834_v59 = vrot.slane %v24833_v15, 6 }
 0x236   : > { %v2195_v63 = vsel %vm19877_vm8, %v2189_v58, %v2194_v53  ;;  %v24289_v62 = vshrl.u32 %v20996_v60, 16  ;;  %v13805_v10 = vrot.slane %v21409_v26, 11  ;;  %v3715_v23 = vsel %vm21300_vm3, %v3713_v1, %v3714_v56  ;;  %15576 = vmatmul.mubr.msk.bf16.gmra.mrb[28].mxu1 %vm1244_vm6, %v21540_v12 }
 0x237   : > { %v2198_v0 = vor.u32 %v24830_v44, %v24828_v21  ;;  %v2202_v35 = vor.u32 %v24834_v59, %v24832_v25  ;;  %v13681_v50 = vcombine.low %v2188_v55, %v2195_v63  ;;  %v3718_v27 = vrot.slane %v21413_v34, 7  ;;  %v24836_v63 = vld [vmem:[#allocation59_spill] sm:$0xff]  ;;  %v24837_v34 = vld [vmem:[#allocation52_spill] sm:$0xff] }
 0x238   : > { %v21585_v44 = vcombine.low %v3712_v48, %v3715_v23  ;;  %v2207_v58 = vrot.slane %v24289_v62, 5  ;;  %v3721_v53 = vrot.slane %v21423_v37, 7  ;;  %v2211_v56 = vrot.slane %v24836_v63, 5  ;;  %v24840_v25 = vld [vmem:[#allocation64_spill] sm:$0xff]  ;;  %v24842_v62 = vld [vmem:[#allocation65_spill] sm:$0xff] }
 0x239   : > { %v2199_v24 = vrot.slane %v2198_v0, 4  ;;  %v2204_v21 = vrot.slane %v2202_v35, 4  ;;  %v3719_v26 = vsel %vm21300_vm3, %v13805_v10, %v3718_v27  ;;  %v3720_v55 = vrot.slane %v3718_v27, 4  ;;  %16410 = vmatmul.mubr.msk.bf16.gmra.mrb[12].mxu0 %vm1244_vm6, %v21562_v49  ;;  %v24839_v0 = vld [vmem:[#allocation62_spill] sm:$0xff]  ;;  %15581 = vmatprep.mubr.msk.bf16.mxu1 %vm1244_vm6, %v13681_v50 }
 0x23a   : > { %24835 = vst [vmem:[#allocation39_spill] sm:$0xff] %v21585_v44  ;;  %v24838_v48 = vrot.slane %v24837_v34, 6  ;;  %v2212_v37 = vrot.slane %v24839_v0, 6  ;;  %v2215_v23 = vrot.slane %v24840_v25, 5  ;;  %16413 = vmatprep.mubr.msk.bf16.mxu0 %vm1244_vm6, %v21585_v44  ;;  %v24296_v10 = vshrl.u32 %v21028_v11, 16 }
 0x23b   : > { %v2203_v59 = vsel %vm19877_vm8, %v2199_v24, %v2202_v35  ;;  %v24841_v35 = vld [vmem:[#allocation63_spill] sm:$0xff]  ;;  %v3722_v27 = vsel %vm21300_vm3, %v3720_v55, %v3721_v53  ;;  %v2223_v49 = vrot.slane %v24842_v62, 6  ;;  %v3725_v53 = vrot.slane %v21449_v7, 7 }
 0x23c   : > { %v2209_v1 = vor.u32 %v24838_v48, %v2207_v58  ;;  %v2216_v24 = vrot.slane %v24841_v35, 6  ;;  %v13806_v58 = vrot.slane %v21445_v6, 11  ;;  %v21614_v12 = vcombine.low %v3719_v26, %v3722_v27  ;;  %v21668_v27 = vld [vmem:[%s19757_s9] sm:$0xf] }
 0x23d   : > { %v2213_v35 = vor.u32 %v2212_v37, %v2211_v56  ;;  %v2222_v44 = vrot.slane %v24296_v10, 5  ;;  %v3728_v55 = vrot.slane %v21453_v61, 7  ;;  %v13807_v6 = vrot.slane %v21472_v5, 11  ;;  %v24850_v10 = vld [vmem:[#allocation78_spill] sm:$0xff] }
 0x23e   : > { %v2210_v48 = vsel %vm19877_vm8, %v2204_v21, %v2209_v1  ;;  %v2217_v25 = vor.u32 %v2216_v24, %v2215_v23  ;;  %v3732_v63 = vrot.slane %v21476_v52, 7  ;;  %v3726_v26 = vsel %vm21300_vm3, %v13806_v58, %v3725_v53  ;;  %v8781_v23 = vld [vmem:[#allocation14 + $0x3a] sm:$0x3] }
 0x23f   : > { %v21616_v50 = vcombine.low %v2203_v59, %v2210_v48  ;;  %v2214_v0 = vrot.slane %v2213_v35, 4  ;;  %v2224_v21 = vor.u32 %v2223_v49, %v2222_v44  ;;  %v3727_v56 = vrot.slane %v3725_v53, 4  ;;  %v21650_v44 = vld [vmem:[%s19757_s9 + $0x4] sm:$0xf] }
 0x240   : > { %v2219_v62 = vrot.slane %v2217_v25, 4  ;;  %v3735_v59 = vrot.slane %v21482_v17, 7  ;;  %v3734_v7 = vrot.slane %v3732_v63, 4  ;;  %v13808_v61 = vrot.slane %v21507_v19, 11 }
 0x241   : > { %24843 = vst [vmem:[#allocation38_spill] sm:$0xff] %v21616_v50  ;;  %v2218_v1 = vsel %vm19877_vm8, %v2214_v0, %v2217_v25  ;;  %v3729_v5 = vsel %vm21300_vm3, %v3727_v56, %v3728_v55  ;;  %v3739_v52 = vrot.slane %v21511_v9, 7  ;;  %v3742_v49 = vrot.slane %v21515_v38, 7  ;;  %15582 = vmatmul.mubr.msk.bf16.vlgmr.msra.gmra.mrb[0].mxu1 %vm1244_vm6, %v21616_v50  ;;  %16414 = vmatmul.mubr.msk.bf16.gmra.mrb[16].mxu0 %vm1244_vm6, %v21614_v12  ;;  %v21674_v55 = vld [vmem:[%s19757_s9 + $0x8] sm:$0x7]  ;;  %v24863_v50 = vld [vmem:[#allocation129_spill] sm:$0xff] }
 0x242   : > { %v2225_v37 = vsel %vm19877_vm8, %v2219_v62, %v2224_v21  ;;  %v21642_v19 = vcombine.low %v3726_v26, %v3729_v5  ;;  %15614 = vmatpush3.bf16.msra.mxu1 %v21552_v31  ;;  %v3733_v62 = vsel %vm21300_vm3, %v13807_v6, %v3732_v63  ;;  %v3736_v9 = vsel %vm21300_vm3, %v3734_v7, %v3735_v59  ;;  %v21660_v63 = vld [vmem:[%s19763_s17 + $0x4] sm:$0xf]  ;;  %v21681_v26 = vld [vmem:[%s19763_s17] sm:$0xf]  ;;  %s19175_s9 = sshll.u32 %s19285_s13, 4  ;;  %s19176_s9 = int_to_ptr.vmem [resolvable:$false] %s19175_s9 }
 0x243   : > { %v21640_v17 = vcombine.low %v2218_v1, %v2225_v37  ;;  %v3741_v38 = vrot.slane %v3739_v52, 4  ;;  %v5333_v0 = vrot.slane %v21650_v44, 7  ;;  %v3740_v31 = vsel %vm21300_vm3, %v13808_v61, %v3739_v52  ;;  %v21685_v1 = vld [vmem:[%s19763_s17 + $0x8] sm:$0x7]  ;;  %s19177_s17 = scalar_lea.vmem %s19176_s9, 4096  ;;  %p19178_p5 = scmp.lt.s32.totalorder %s23819_s12, %s19176_s9 }
 0x244   : > { %16417 = vmatprep.mubr.msk.bf16.mxu0 %vm1244_vm6, %v21642_v19  ;;  %v6837_v25 = vrot.slane %v21660_v63, 7  ;;  %v21665_v24 = vcombine.low %v3733_v62, %v3736_v9  ;;  %v13945_v58 = vrot.slane %v21668_v27, 11  ;;  %v5336_v6 = vrot.slane %v21674_v55, 7  ;;  %v24846_v61 = vld [vmem:[#allocation53_spill] sm:$0xff]  ;;  %p19179_p2 = scmp.lt.s32.totalorder %s19177_s17, %s19171_s21 }
 0x245   : > { %24844 = vst [vmem:[#allocation47_spill] sm:$0xff] %v21640_v17  ;;  %15585 = vmatprep.mubr.msk.bf16.mxu1 %vm1244_vm6, %v21640_v17  ;;  %v3743_v35 = vsel %vm21300_vm3, %v3741_v38, %v3742_v49  ;;  %v5335_v53 = vrot.slane %v5333_v0, 4  ;;  %v21678_v21 = vand.u32 %v8781_v23, %v19787_v2  ;;  %v14067_v56 = vrot.slane %v21681_v26, 11  ;;  %v24847_v37 = vld [vmem:[#allocation69_spill] sm:$0xff]  ;;  %v21702_v49 = vld [vmem:[%s19765_s24 + $0x4] sm:$0xf] }
 0x246   : > { %v21671_v48 = vcombine.low %v3740_v31, %v3743_v35  ;;  %v6839_v59 = vrot.slane %v6837_v25, 4  ;;  %v6840_v7 = vrot.slane %v21685_v1, 7  ;;  %v5334_v5 = vsel %vm21300_vm3, %v13945_v58, %v5333_v0  ;;  %v21714_v35 = vld [vmem:[%s19765_s24] sm:$0xf]  ;;  %p19180_p13 = por %p19179_p2, %p19178_p5 }
 0x247   : > { %16463 = vmatprep.subr.bf16.mxu0 %v21678_v21  ;;  %v5337_v52 = vsel %vm21300_vm3, %v5335_v53, %v5336_v6  ;;  %v8341_v62 = vrot.slane %v21702_v49, 7  ;;  %v6838_v9 = vsel %vm21300_vm3, %v14067_v56, %v6837_v25  ;;  %v14189_v0 = vrot.slane %v21714_v35, 11  ;;  %v21718_v53 = vld [vmem:[%s19765_s24 + $0x8] sm:$0x7]  ;;  %v24851_v25 = vld [vmem:[#allocation85_spill] sm:$0xff] }
 0x248   : > { %24845 = vst [vmem:[#allocation49_spill] sm:$0xff] %v21671_v48  ;;  %v6841_v38 = vsel %vm21300_vm3, %v6839_v59, %v6840_v7  ;;  %v21709_v31 = vcombine.low %v5334_v5, %v5337_v52  ;;  %v8344_v6 = vrot.slane %v21718_v53, 7  ;;  %v2346_v7 = vrot.slane %v24729_v36, 5  ;;  %v24854_v17 = vld [vmem:[#allocation89_spill] sm:$0xff]  ;;  %p19181_p7 = pnand %p19180_p13, %p19174_p6 }
 0x249   : > { %15586 = vmatmul.mubr.msk.bf16.gmra.mrb[4].mxu1 %vm1244_vm6, %v24846_v61  ;;  %16418 = vmatmul.mubr.msk.bf16.gmra.mrb[20].mxu0 %vm1244_vm6, %v21665_v24  ;;  %v21711_v23 = vcombine.low %v6838_v9, %v6841_v38  ;;  %v8343_v58 = vrot.slane %v8341_v62, 4  ;;  %v8342_v56 = vsel %vm21300_vm3, %v14189_v0, %v8341_v62  ;;  %v2347_v5 = vrot.slane %v24730_v33, 6 }
 0x24a   : > { %15589 = vmatprep.mubr.msk.bf16.mxu1 %vm1244_vm6, %v24847_v37  ;;  %16421 = vmatprep.mubr.msk.bf16.mxu0 %vm1244_vm6, %v21671_v48  ;;  %24848 = vst [vmem:[#allocation51_spill] sm:$0xff] %v21709_v31  ;;  %v2350_v52 = vrot.slane %v24731_v32, 5  ;;  %v2351_v9 = vrot.slane %v24732_v41, 6  ;;  %v2361_v38 = vrot.slane %v24737_v14, 5  ;;  %v2365_v61 = vrot.slane %v24739_v22, 5  ;;  %v24943_v48 = vld [vmem:[#allocation148_spill] sm:$0xff] }
 0x24b   : > { %24849 = vst [vmem:[#allocation50_spill] sm:$0xff] %v21711_v23  ;;  %v8345_v59 = vsel %vm21300_vm3, %v8343_v58, %v8344_v6  ;;  %v2366_v62 = vrot.slane %v24740_v40, 6  ;;  %v2348_v0 = vor.u32 %v2347_v5, %v2346_v7  ;;  %v24853_v36 = vshrl.u32 %v20366_v18, 16  ;;  %v3336_v32 = vld [vmem:[#allocation14 + $0xa] sm:$0x3]  ;;  %v24857_v18 = vld [vmem:[#allocation161_spill] sm:$0xff] }
 0x24c   : > { %v2352_v58 = vor.u32 %v2351_v9, %v2350_v52  ;;  %v2358_v33 = vrot.slane %v24734_v4, 6  ;;  %v2373_v40 = vrot.slane %v24742_v8, 6  ;;  %v3140_v7 = vrot.slane %v24827_v57, 6 }
 0x24d   : > { %v2357_v6 = vrot.slane %v24853_v36, 5  ;;  %v2367_v14 = vor.u32 %v2366_v62, %v2365_v61  ;;  %v2349_v4 = vrot.slane %v2348_v0, 4  ;;  %v2376_v8 = vrot.slane %v24745_v29, 5  ;;  %v24858_v29 = vld [vmem:[#allocation134_spill] sm:$0xff] }
 0x24e   : > { %v2354_v61 = vrot.slane %v2352_v58, 4  ;;  %v2377_v52 = vrot.slane %v24746_v45, 6  ;;  %v2380_v9 = vrot.slane %v24747_v3, 5  ;;  %v2381_v57 = vrot.slane %v24748_v30, 6  ;;  %v24859_v3 = vld [vmem:[#allocation136_spill] sm:$0xff] }
 0x24f   : > { %v2359_v5 = vor.u32 %v2358_v33, %v2357_v6  ;;  %v2369_v0 = vrot.slane %v2367_v14, 4  ;;  %v2353_v6 = vsel %vm19877_vm8, %v2349_v4, %v2352_v58  ;;  %v2392_v33 = vrot.slane %v24858_v29, 6  ;;  %v24864_v4 = vld [vmem:[#allocation102_spill] sm:$0xff]  ;;  %v24865_v29 = vld [vmem:[#allocation163_spill] sm:$0xff] }
 0x250   : > { %v2378_v30 = vor.u32 %v2377_v52, %v2376_v8  ;;  %v2388_v58 = vrot.slane %v24863_v50, 6  ;;  %v2382_v8 = vor.u32 %v2381_v57, %v2380_v9  ;;  %v24866_v52 = vld [vmem:[#allocation105_spill] sm:$0xff]  ;;  %vm13228_vm0 = vcmask 60416  }
 0x251   : > { %15590 = vmatmul.mubr.msk.bf16.gmra.mrb[8].mxu1 %vm1244_vm6, %v24850_v10  ;;  %16422 = vmatmul.mubr.msk.bf16.gmra.mrb[24].mxu0 %vm1244_vm6, %v21709_v31  ;;  %v21738_v31 = vcombine.low %v8342_v56, %v8345_v59  ;;  %v24856_v56 = vld [vmem:[#allocation95_spill] sm:$0xff]  ;;  %v21758_v59 = vand.u32 %v3336_v32, %v19787_v2  ;;  %v2360_v45 = vsel %vm19877_vm8, %v2354_v61, %v2359_v5  ;;  %v2395_v32 = vrot.slane %v24859_v3, 5 }
 0x252   : > { %15593 = vmatprep.mubr.msk.bf16.mxu1 %vm1244_vm6, %v24851_v25  ;;  %16425 = vmatprep.mubr.msk.bf16.mxu0 %vm1244_vm6, %v21711_v23  ;;  %v2362_v23 = vrot.slane %v24738_v47, 6  ;;  %v24855_v47 = vshrl.u32 %v20418_v13, 16  ;;  %v3144_v13 = vrot.slane %v24831_v46, 6  ;;  %v2391_v46 = vrot.slane %v24755_v39, 5 }
 0x253   : > { %24852 = vst [vmem:[#allocation52_spill] sm:$0xff] %v21738_v31  ;;  %15647 = vmatprep.subr.bf16.mxu1 %v21758_v59  ;;  %v3150_v39 = vrot.slane %v24837_v34, 7  ;;  %v21795_v50 = vcombine.low %v2353_v6, %v2360_v45  ;;  %v2379_v57 = vrot.slane %v2378_v30, 4  ;;  %v24874_v45 = vld [vmem:[#allocation141_spill] sm:$0xff] }
 0x254   : > { %v2363_v41 = vor.u32 %v2362_v23, %v2361_v38  ;;  %v2372_v22 = vrot.slane %v24855_v47, 5  ;;  %v3141_v23 = vrot.slane %v24829_v16, 7  ;;  %v8993_v38 = vld [vmem:[#allocation14 + $0x3c] sm:$0x3]  ;;  %v3145_v16 = vrot.slane %v24833_v15, 7  ;;  %v24860_v47 = vld [vmem:[#allocation135_spill] sm:$0xff] }
 0x255   : > { %24867 = vst [vmem:[#allocation134_spill] sm:$0xff] %v21795_v50  ;;  %v2393_v34 = vor.u32 %v2392_v33, %v2391_v46  ;;  %v2384_v33 = vrot.slane %v2382_v8, 4 }
 0x256   : > { %v2364_v62 = vrot.slane %v2363_v41, 4  ;;  %v2374_v36 = vor.u32 %v2373_v40, %v2372_v22  ;;  %v2396_v41 = vrot.slane %v24860_v47, 6  ;;  %v21778_v22 = vand.u32 %v8993_v38, %v19787_v2  ;;  %v24861_v40 = vld [vmem:[#allocation124_spill] sm:$0xff] }
 0x257   : > { %v24862_v15 = vshrl.u32 %v24861_v40, 16  ;;  %v24868_v38 = vld [vmem:[#allocation132_spill] sm:$0xff]  ;;  %v3142_v40 = vor.u32 %v3141_v23, %v3140_v7  ;;  %v3146_v9 = vor.u32 %v3145_v16, %v3144_v13  ;;  %v2406_v7 = vrot.slane %v24874_v45, 5 }
 0x258   : > { %v2368_v61 = vsel %vm19877_vm8, %v2364_v62, %v2367_v14  ;;  %v2375_v5 = vsel %vm19877_vm8, %v2369_v0, %v2374_v36  ;;  %v24869_v3 = vshrl.u32 %v24868_v38, 16  ;;  %v2397_v14 = vor.u32 %v2396_v41, %v2395_v32  ;;  %v24871_v62 = vld [vmem:[#allocation137_spill] sm:$0xff]  ;;  %v24876_v41 = vld [vmem:[#allocation144_spill] sm:$0xff] }
 0x259   : > { %15594 = vmatmul.mubr.msk.bf16.gmra.mrb[12].mxu1 %vm1244_vm6, %v24854_v17  ;;  %16426 = vmatmul.mubr.msk.bf16.gmra.mrb[28].mxu0 %vm1244_vm6, %v21738_v31  ;;  %v2387_v31 = vrot.slane %v24862_v15, 5  ;;  %v24870_v15 = vld [vmem:[#allocation168_spill] sm:$0xff]  ;;  %v21805_v36 = vcombine.low %v2368_v61, %v2375_v5  ;;  %v3143_v46 = vrot.slane %v3142_v40, 4  ;;  %v3148_v23 = vrot.slane %v3146_v9, 4 }
 0x25a   : > { %15597 = vmatprep.mubr.msk.bf16.mxu1 %vm1244_vm6, %v24856_v56  ;;  %16431 = vmatprep.mubr.msk.bf16.mxu0 %vm1244_vm6, %v24857_v18  ;;  %v2402_v47 = vrot.slane %v24869_v3, 5  ;;  %v24875_v3 = vld [vmem:[#allocation142_spill] sm:$0xff]  ;;  %v2394_v16 = vrot.slane %v2393_v34, 4  ;;  %v2399_v61 = vrot.slane %v2397_v14, 4  ;;  %v2383_v5 = vsel %vm19877_vm8, %v2379_v57, %v2382_v8 }
 0x25b   : > { %24873 = vst [vmem:[#allocation136_spill] sm:$0xff] %v21805_v36  ;;  %v2389_v6 = vor.u32 %v2388_v58, %v2387_v31  ;;  %v2407_v32 = vrot.slane %v24875_v3, 6  ;;  %v21845_v3 = vld [vmem:[%s19749_s18] sm:$0xf] }
 0x25c   : > { %v2398_v8 = vsel %vm19877_vm8, %v2394_v16, %v2397_v14  ;;  %v13713_v14 = vrot.slane %v21845_v3, 10  ;;  %v24888_v16 = vld [vmem:[#allocation46_spill] sm:$0xff] }
 0x25d   : > { %v2390_v34 = vsel %vm19877_vm8, %v2384_v33, %v2389_v6  ;;  %v21837_v6 = vld [vmem:[%s19749_s18 + $0x4] sm:$0xf] }
 0x25e   : > { %v2720_v33 = vrot.slane %v21837_v6, 6  ;;  %v21840_v45 = vcombine.low %v2383_v5, %v2390_v34  ;;  %v24910_v34 = vld [vmem:[#allocation90_spill] sm:$0xff] }
 0x260   : > { %24885 = vst [vmem:[#allocation124_spill] sm:$0xff] %v21840_v45 }
 0x261   : > { %15598 = vmatmul.mubr.msk.bf16.gmra.mrb[16].mxu1 %vm1244_vm6, %v24864_v4  ;;  %16432 = vmatmul.mubr.msk.bf16.vlgmr.msra.gmra.mrb[0].mxu0 %vm1244_vm6, %v24865_v29  ;;  %v2403_v29 = vrot.slane %v24871_v62, 6  ;;  %v2410_v62 = vrot.slane %v24876_v41, 5  ;;  %v21849_v41 = vld [vmem:[%s19749_s18 + $0x8] sm:$0x7] }
 0x262   : > { %16464 = vmatpush3.bf16.msra.mxu0 %v21678_v21  ;;  %15601 = vmatprep.mubr.msk.bf16.mxu1 %vm1244_vm6, %v24866_v52  ;;  %v24872_v21 = vshrl.u32 %v20996_v60, 16  ;;  %v3147_v60 = vsel %vm20794_vm13, %v3143_v46, %v3146_v9 }
 0x263   : > { %16435 = vmatprep.mubr.msk.bf16.mxu0 %vm1244_vm6, %v24870_v15  ;;  %16497 = vmatprep.subr.bf16.mxu0 %v21778_v22  ;;  %v24877_v15 = vld [vmem:[#allocation143_spill] sm:$0xff]  ;;  %v2404_v30 = vor.u32 %v2403_v29, %v2402_v47  ;;  %v24881_v29 = vld [vmem:[#allocation173_spill] sm:$0xff]  ;;  %v2408_v47 = vor.u32 %v2407_v32, %v2406_v7  ;;  %v2722_v32 = vrot.slane %v2720_v33, 4 }
 0x264   : > { %v3149_v0 = vrot.slane %v24872_v21, 6  ;;  %v2411_v18 = vrot.slane %v24877_v15, 6  ;;  %v24882_v15 = vld [vmem:[#allocation140_spill] sm:$0xff] }
 0x265   : > { %v24883_v9 = vshrl.u32 %v24882_v15, 16  ;;  %v2405_v57 = vsel %vm19877_vm8, %v2399_v61, %v2404_v30 }
 0x266   : > { %v3151_v38 = vor.u32 %v3150_v39, %v3149_v0  ;;  %v24880_v39 = vld [vmem:[#allocation170_spill] sm:$0xff]  ;;  %v2412_v40 = vor.u32 %v2411_v18, %v2410_v62  ;;  %v24884_v0 = vld [vmem:[#allocation145_spill] sm:$0xff]  ;;  %v21842_v7 = vcombine.low %v2398_v8, %v2405_v57  ;;  %v2409_v18 = vrot.slane %v2408_v47, 4 }
 0x267   : > { %v2417_v21 = vrot.slane %v24883_v9, 5  ;;  %v2418_v46 = vrot.slane %v24884_v0, 6  ;;  %v2723_v62 = vrot.slane %v21849_v41, 6  ;;  %v2721_v47 = vsel %vm20299_vm10, %v13713_v14, %v2720_v33  ;;  %v21873_v9 = vld [vmem:[%s19749_s18 + $0x1c] sm:$0xf] }
 0x268   : > { %v3152_v31 = vsel %vm20794_vm13, %v3148_v23, %v3151_v38  ;;  %24886 = vst [vmem:[#allocation129_spill] sm:$0xff] %v21842_v7  ;;  %v2414_v23 = vrot.slane %v2412_v40, 4  ;;  %v2413_v61 = vsel %vm19877_vm8, %v2409_v18, %v2412_v40  ;;  %v21883_v18 = vld [vmem:[%s19749_s18 + $0x14] sm:$0x7]  ;;  %v21887_v33 = vld [vmem:[%s19749_s18 + $0x18] sm:$0xf] }
 0x269   : > { %v21815_v58 = vcombine.low %v3147_v60, %v3152_v31  ;;  %15602 = vmatmul.mubr.msk.bf16.gmra.mrb[20].mxu1 %vm1244_vm6, %v21795_v50  ;;  %16436 = vmatmul.mubr.msk.bf16.gmra.mrb[4].mxu0 %vm1244_vm6, %v24880_v39  ;;  %v2419_v38 = vor.u32 %v2418_v46, %v2417_v21  ;;  %v24887_v60 = vld [vmem:[#allocation43_spill] sm:$0xff]  ;;  %v21865_v31 = vld [vmem:[%s19749_s18 + $0x10] sm:$0xf]  ;;  %v2724_v15 = vsel %vm20299_vm10, %v2722_v32, %v2723_v62  ;;  %v2734_v21 = vrot.slane %v21873_v9, 6  ;;  %v21879_v46 = vld [vmem:[%s19749_s18 + $0xc] sm:$0xf] }
 0x26a   : > { %15605 = vmatprep.mubr.msk.bf16.mxu1 %vm1244_vm6, %v21805_v36  ;;  %16439 = vmatprep.mubr.msk.bf16.mxu0 %vm1244_vm6, %v24881_v29  ;;  %v2727_v5 = vrot.slane %v21865_v31, 6  ;;  %v13729_v40 = vcombine.low %v2721_v47, %v2724_v15  ;;  %v13714_v8 = vrot.slane %v21879_v46, 10  ;;  %v21891_v32 = vld [vmem:[%s19749_s18 + $0x20] sm:$0x7]  ;;  %v3745_v29 = vld [vmem:[#allocation14 + $0xc] sm:$0x3]  ;;  %s25378_s18 = smov %s25377_s30 }
 0x26b   : > { %24879 = vst [vmem:[#allocation135_spill] sm:$0xff] %v21815_v58  ;;  %v2420_v30 = vsel %vm19877_vm8, %v2414_v23, %v2419_v38  ;;  %v2730_v23 = vrot.slane %v21883_v18, 6  ;;  %v13715_v38 = vrot.slane %v21887_v33, 10  ;;  %v2736_v14 = vrot.slane %v2734_v21, 4 }
 0x26c   : > { %v21876_v0 = vcombine.low %v2413_v61, %v2420_v30  ;;  %v2729_v57 = vrot.slane %v2727_v5, 4  ;;  %v2737_v62 = vrot.slane %v21891_v32, 6  ;;  %v24891_v61 = vld [vmem:[#allocation55_spill] sm:$0xff]  ;;  %v24892_v30 = vld [vmem:[#allocation56_spill] sm:$0xff]  ;;  %v2728_v47 = vsel %vm20299_vm10, %v13714_v8, %v2727_v5  ;;  %v24895_v5 = vld [vmem:[#allocation66_spill] sm:$0xff] }
 0x26d   : > { %v21940_v8 = vcombine.low %v21681_v26, %v21660_v63 }
 0x26e   : > { %24890 = vst [vmem:[#allocation132_spill] sm:$0xff] %v21876_v0  ;;  %v2731_v15 = vsel %vm20299_vm10, %v2729_v57, %v2730_v23  ;;  %v21944_v57 = vcombine.low %v21714_v35, %v21702_v49  ;;  %v24903_v23 = vld [vmem:[#allocation116_spill] sm:$0xff] }
 0x26f   : > { %v21909_v39 = vcombine.low %v2728_v47, %v2731_v15  ;;  %24901 = vst [vmem:[#allocation144_spill] sm:$0xff] %v21940_v8  ;;  %v24906_v15 = vld [vmem:[#allocation131_spill] sm:$0xff] }
 0x270   : > { %24902 = vst [vmem:[#allocation143_spill] sm:$0xff] %v21944_v57 }
 0x271   : > { %15606 = vmatmul.mubr.msk.bf16.gmra.mrb[24].mxu1 %vm1244_vm6, %v21840_v45  ;;  %16440 = vmatmul.mubr.msk.bf16.gmra.mrb[8].mxu0 %vm1244_vm6, %v24887_v60  ;;  %v2738_v60 = vsel %vm20299_vm10, %v2736_v14, %v2737_v62  ;;  %24893 = vst [vmem:[#allocation137_spill] sm:$0xff] %v21909_v39  ;;  %v21955_v14 = vld [vmem:[%s19771_s19] sm:$0xf]  ;;  %v21958_v62 = vld [vmem:[%s19771_s19 + $0x4] sm:$0xf] }
 0x272   : > { %15609 = vmatprep.mubr.msk.bf16.mxu1 %vm1244_vm6, %v21842_v7  ;;  %16443 = vmatprep.mubr.msk.bf16.mxu0 %vm1244_vm6, %v24888_v16  ;;  %v2735_v16 = vsel %vm20299_vm10, %v13715_v38, %v2734_v21  ;;  %v24896_v21 = vld [vmem:[#allocation61_spill] sm:$0xff]  ;;  %v24904_v38 = vld [vmem:[#allocation122_spill] sm:$0xff]  ;;  %v21962_v47 = vcombine.low %v21955_v14, %v21958_v62  ;;  %v24924_v45 = vld [vmem:[#allocation164_spill] sm:$0xff] }
 0x274   : > { %24905 = vst [vmem:[#allocation140_spill] sm:$0xff] %v21962_v47 }
 0x279   : > { %15610 = vmatmul.mubr.msk.bf16.gmra.mrb[28].mxu1 %vm1244_vm6, %v21876_v0  ;;  %16444 = vmatmul.mubr.msk.bf16.gmra.mrb[12].mxu0 %vm1244_vm6, %v24891_v61  ;;  %v21911_v61 = vcombine.low %v2735_v16, %v2738_v60  ;;  %v24898_v60 = vld [vmem:[#allocation107_spill] sm:$0xff]  ;;  %v24899_v16 = vld [vmem:[#allocation68_spill] sm:$0xff] }
 0x27a   : > { %15615 = vmatprep.mubr.msk.bf16.mxu1 %vm1244_vm6, %v13729_v40  ;;  %16447 = vmatprep.mubr.msk.bf16.mxu0 %vm1244_vm6, %v24892_v30  ;;  %v21914_v40 = vand.u32 %v3745_v29, %v19787_v2  ;;  %v21928_v29 = vcombine.low %v21668_v27, %v21650_v44  ;;  %v24920_v30 = vld [vmem:[#allocation59_spill] sm:$0xff]  ;;  %v24922_v0 = vld [vmem:[#allocation64_spill] sm:$0xff] }
 0x27b   : > { %24894 = vst [vmem:[#allocation141_spill] sm:$0xff] %v21911_v61  ;;  %v3157_v7 = vrot.slane %v24922_v0, 6 }
 0x27c   : > { %24897 = vst [vmem:[#allocation142_spill] sm:$0xff] %v21928_v29 }
 0x281   : > { %15616 = vmatmul.mubr.msk.bf16.vlgmr.msra.gmra.mrb[0].mxu1 %vm1244_vm6, %v21909_v39  ;;  %16448 = vmatmul.mubr.msk.bf16.gmra.mrb[16].mxu0 %vm1244_vm6, %v24895_v5  ;;  %v24909_v39 = vld [vmem:[#allocation147_spill] sm:$0xff] }
 0x282   : > { %15648 = vmatpush3.bf16.msra.mxu1 %v21758_v59  ;;  %15619 = vmatprep.mubr.msk.bf16.mxu1 %vm1244_vm6, %v21911_v61  ;;  %v24900_v59 = vld [vmem:[#allocation108_spill] sm:$0xff] }
 0x283   : > { %16451 = vmatprep.mubr.msk.bf16.mxu0 %vm1244_vm6, %v24896_v21  ;;  %15681 = vmatprep.subr.bf16.mxu1 %v21914_v40  ;;  %v24913_v21 = vld [vmem:[#allocation154_spill] sm:$0xff] }
 0x289   : > { %15620 = vmatmul.mubr.msk.bf16.gmra.mrb[4].mxu1 %vm1244_vm6, %v24898_v60  ;;  %16452 = vmatmul.mubr.msk.bf16.gmra.mrb[20].mxu0 %vm1244_vm6, %v24899_v16  ;;  %v24908_v60 = vld [vmem:[#allocation86_spill] sm:$0xff]  ;;  %v3131_v16 = vrot.slane %v24821_v43, 6  ;;  %v24919_v43 = vld [vmem:[#allocation40_spill] sm:$0xff] }
 0x28a   : > { %15623 = vmatprep.mubr.msk.bf16.mxu1 %vm1244_vm6, %v24900_v59  ;;  %16455 = vmatprep.mubr.msk.bf16.mxu0 %vm1244_vm6, %v21928_v29  ;;  %v24911_v29 = vld [vmem:[#allocation151_spill] sm:$0xff] }
 0x291   : > { %15624 = vmatmul.mubr.msk.bf16.gmra.mrb[8].mxu1 %vm1244_vm6, %v24903_v23  ;;  %16456 = vmatmul.mubr.msk.bf16.gmra.mrb[24].mxu0 %vm1244_vm6, %v21940_v8  ;;  %v24907_v8 = vld [vmem:[#allocation138_spill] sm:$0xff] }
 0x292   : > { %15627 = vmatprep.mubr.msk.bf16.mxu1 %vm1244_vm6, %v24904_v38  ;;  %16459 = vmatprep.mubr.msk.bf16.mxu0 %vm1244_vm6, %v21944_v57  ;;  %v9212_v57 = vld [vmem:[#allocation14 + $0x3e] sm:$0x3]  ;;  %v3153_v38 = vrot.slane %v24920_v30, 6 }
 0x293   : > { %v21973_v61 = vand.u32 %v9212_v57, %v19787_v2  ;;  %v3128_v57 = vrot.slane %v24820_v42, 7 }
 0x299   : > { %15628 = vmatmul.mubr.msk.bf16.gmra.mrb[12].mxu1 %vm1244_vm6, %v24906_v15  ;;  %16460 = vmatmul.mubr.msk.bf16.gmra.mrb[28].mxu0 %vm1244_vm6, %v21962_v47  ;;  %v24912_v47 = vld [vmem:[#allocation96_spill] sm:$0xff]  ;;  %v3137_v15 = vrot.slane %v24919_v43, 7 }
 0x29a   : > { %15631 = vmatprep.mubr.msk.bf16.mxu1 %vm1244_vm6, %v24907_v8  ;;  %16465 = vmatprep.mubr.msk.bf16.mxu0 %vm1244_vm6, %v24908_v60  ;;  %v3127_v60 = vrot.slane %v24819_v54, 6  ;;  %v24917_v8 = vld [vmem:[#allocation76_spill] sm:$0xff] }
 0x29b   : > { %v24918_v42 = vshrl.u32 %v24917_v8, 16  ;;  %v24929_v8 = vld [vmem:[#allocation65_spill] sm:$0xff]  ;;  %v24931_v43 = vld [vmem:[#allocation92_spill] sm:$0xff] }
 0x29d   : > { %v3136_v5 = vrot.slane %v24918_v42, 6 }
 0x2a1   : > { %15632 = vmatmul.mubr.msk.bf16.gmra.mrb[16].mxu1 %vm1244_vm6, %v24909_v39  ;;  %16466 = vmatmul.mubr.msk.bf16.vlgmr.msra.gmra.mrb[0].mxu0 %vm1244_vm6, %v24910_v34  ;;  %v3132_v39 = vrot.slane %v24822_v28, 7  ;;  %v24915_v34 = vld [vmem:[#allocation35_spill] sm:$0xff] }
 0x2a2   : > { %16498 = vmatpush3.bf16.msra.mxu0 %v21778_v22  ;;  %15635 = vmatprep.mubr.msk.bf16.mxu1 %vm1244_vm6, %v24911_v29  ;;  %v24914_v22 = vld [vmem:[#allocation103_spill] sm:$0xff]  ;;  %v3129_v29 = vor.u32 %v3128_v57, %v3127_v60  ;;  %v24926_v60 = vld [vmem:[#allocation166_spill] sm:$0xff]  ;;  %v24930_v57 = vld [vmem:[#allocation93_spill] sm:$0xff] }
 0x2a3   : > { %16469 = vmatprep.mubr.msk.bf16.mxu0 %vm1244_vm6, %v24912_v47  ;;  %16531 = vmatprep.subr.bf16.mxu0 %v21973_v61  ;;  %v24916_v47 = vld [vmem:[#allocation106_spill] sm:$0xff]  ;;  %v3133_v54 = vor.u32 %v3132_v39, %v3131_v16  ;;  %v24925_v39 = vld [vmem:[#allocation109_spill] sm:$0xff]  ;;  %v4247_v42 = vrot.slane %v24930_v57, 4 }
 0x2a4   : > { %v3130_v28 = vrot.slane %v3129_v29, 4  ;;  %v24927_v29 = vld [vmem:[#allocation115_spill] sm:$0xff] }
 0x2a5   : > { %v3135_v59 = vrot.slane %v3133_v54, 4 }
 0x2a6   : > { %v3134_v30 = vsel %vm20794_vm13, %v3130_v28, %v3133_v54  ;;  %v24934_v28 = vld [vmem:[#allocation171_spill] sm:$0xff] }
 0x2a9   : > { %15636 = vmatmul.mubr.msk.bf16.gmra.mrb[20].mxu1 %vm1244_vm6, %v24913_v21  ;;  %16470 = vmatmul.mubr.msk.bf16.gmra.mrb[4].mxu0 %vm1244_vm6, %v24914_v22  ;;  %v24921_v21 = vld [vmem:[#allocation62_spill] sm:$0xff]  ;;  %v3138_v22 = vor.u32 %v3137_v15, %v3136_v5  ;;  %v3163_v15 = vrot.slane %v24929_v8, 7  ;;  %v24939_v8 = vld [vmem:[#allocation101_spill] sm:$0xff] }
 0x2aa   : > { %15639 = vmatprep.mubr.msk.bf16.mxu1 %vm1244_vm6, %v24915_v34  ;;  %16473 = vmatprep.mubr.msk.bf16.mxu0 %vm1244_vm6, %v24916_v47  ;;  %v3154_v23 = vrot.slane %v24921_v21, 7  ;;  %v24923_v34 = vld [vmem:[#allocation63_spill] sm:$0xff]  ;;  %v24928_v21 = vshrl.u32 %v21028_v11, 16 }
 0x2ab   : > { %v3158_v51 = vrot.slane %v24923_v34, 7  ;;  %v3139_v0 = vsel %vm20794_vm13, %v3135_v59, %v3138_v22  ;;  %v24932_v47 = vld [vmem:[#allocation91_spill] sm:$0xff]  ;;  %v24936_v59 = vld [vmem:[#allocation130_spill] sm:$0xff] }
 0x2ac   : > { %v3155_v5 = vor.u32 %v3154_v23, %v3153_v38  ;;  %v3162_v16 = vrot.slane %v24928_v21, 6  ;;  %v13761_v36 = vcombine.low %v3134_v30, %v3139_v0  ;;  %v24938_v21 = vld [vmem:[#allocation99_spill] sm:$0xff] }
 0x2ad   : > { %v3159_v34 = vor.u32 %v3158_v51, %v3157_v7  ;;  %v24935_v51 = vld [vmem:[#allocation123_spill] sm:$0xff] }
 0x2ae   : > { %v3156_v54 = vrot.slane %v3155_v5, 4  ;;  %v3164_v38 = vor.u32 %v3163_v15, %v3162_v16  ;;  %v24937_v5 = vld [vmem:[#allocation97_spill] sm:$0xff]  ;;  %v5751_v16 = vrot.slane %v24938_v21, 4  ;;  %v5754_v15 = vrot.slane %v24939_v8, 5 }
 0x2af   : > { %v3161_v23 = vrot.slane %v3159_v34, 4  ;;  %v4266_v0 = vrot.slane %v24937_v5, 5  ;;  %v24946_v5 = vld [vmem:[#allocation118_spill] sm:$0xff] }
 0x2b0   : > { %v3160_v22 = vsel %vm20794_vm13, %v3156_v54, %v3159_v34  ;;  %v7255_v34 = vrot.slane %v24943_v48, 4  ;;  %v24944_v54 = vld [vmem:[#allocation149_spill] sm:$0xff]  ;;  %v5755_v8 = vor.u32 %v5754_v15, %v5751_v16  ;;  %v22063_v16 = vshll.u32 %v21955_v14, 16 }
 0x2b1   : > { %15640 = vmatmul.mubr.msk.bf16.gmra.mrb[24].mxu1 %vm1244_vm6, %v24924_v45  ;;  %16474 = vmatmul.mubr.msk.bf16.gmra.mrb[8].mxu0 %vm1244_vm6, %v24925_v39  ;;  %v4250_v39 = vrot.slane %v24931_v43, 5  ;;  %v3165_v30 = vsel %vm20794_vm13, %v3161_v23, %v3164_v38  ;;  %v7258_v13 = vrot.slane %v24944_v54, 5  ;;  %v24945_v23 = vld [vmem:[#allocation117_spill] sm:$0xff]  ;;  %v22066_v15 = vshll.u32 %v21958_v62, 16 }
 0x2b2   : > { %15643 = vmatprep.mubr.msk.bf16.mxu1 %vm1244_vm6, %v24926_v60  ;;  %16477 = vmatprep.mubr.msk.bf16.mxu0 %vm1244_vm6, %v24927_v29  ;;  %v4256_v60 = vrot.slane %v24932_v47, 5  ;;  %v24933_v29 = vld [vmem:[#allocation94_spill] sm:$0xff]  ;;  %v7264_v38 = vrot.slane %v24945_v23, 5  ;;  %v7268_v47 = vrot.slane %v24946_v5, 4  ;;  %24949 = vst [vmem:[#allocation76_spill] sm:$0xff] %v22063_v16  ;;  %v8762_v5 = vrot.slane %v22063_v16, 5 }
 0x2b3   : > { %v4260_v45 = vrot.slane %v24933_v29, 4  ;;  %v4251_v11 = vor.u32 %v4250_v39, %v4247_v42  ;;  %v24940_v42 = vld [vmem:[#allocation110_spill] sm:$0xff]  ;;  %24950 = vst [vmem:[#allocation40_spill] sm:$0xff] %v22066_v15  ;;  %v8768_v48 = vrot.slane %v22066_v15, 5 }
 0x2b5   : > { %v4261_v7 = vor.u32 %v4260_v45, %v4256_v60  ;;  %v4252_v39 = vrot.slane %v4251_v11, 4  ;;  %v24947_v11 = vld [vmem:[#allocation139_spill] sm:$0xff] }
 0x2b7   : > { %v4262_v45 = vrot.slane %v4261_v7, 4  ;;  %v24976_v7 = vld [vmem:[#allocation155_spill] sm:$0xff] }
 0x2b9   : > { %15644 = vmatmul.mubr.msk.bf16.gmra.mrb[28].mxu1 %vm1244_vm6, %v24934_v28  ;;  %16478 = vmatmul.mubr.msk.bf16.gmra.mrb[12].mxu0 %vm1244_vm6, %v24935_v51  ;;  %v4039_v51 = vld [vmem:[#allocation14 + $0xe] sm:$0x3] }
 0x2ba   : > { %15649 = vmatprep.mubr.msk.bf16.mxu1 %vm1244_vm6, %v13761_v36  ;;  %16481 = vmatprep.mubr.msk.bf16.mxu0 %vm1244_vm6, %v24936_v59  ;;  %v5760_v36 = vrot.slane %v24940_v42, 5  ;;  %v24941_v28 = vld [vmem:[#allocation111_spill] sm:$0xff]  ;;  %v22039_v59 = vcombine.low %v3160_v22, %v3165_v30  ;;  %v22046_v21 = vand.u32 %v4039_v51, %v19787_v2  ;;  %v4257_v22 = vsel %vm19848_vm7, %v4252_v39, %v4256_v60  ;;  %v24952_v39 = vld [vmem:[#allocation146_spill] sm:$0xff] }
 0x2bb   : > { %v5764_v50 = vrot.slane %v24941_v28, 4  ;;  %v4267_v30 = vsel %vm19848_vm7, %v4262_v45, %v4266_v0  ;;  %v22060_v51 = vshrl.u32 %v21955_v14, 16  ;;  %v22069_v60 = vshrl.u32 %v21958_v62, 16 }
 0x2bc   : > { %24942 = vst [vmem:[#allocation145_spill] sm:$0xff] %v22039_v59  ;;  %v22074_v0 = vcombine.low %v4257_v22, %v4267_v30  ;;  %v5756_v45 = vrot.slane %v5755_v8, 4  ;;  %v24956_v22 = vld [vmem:[#allocation54_spill] sm:$0xff]  ;;  %v24957_v8 = vld [vmem:[#allocation153_spill] sm:$0xff] }
 0x2bd   : > { %v5765_v54 = vor.u32 %v5764_v50, %v5760_v36  ;;  %24951 = vst [vmem:[#allocation59_spill] sm:$0xff] %v22069_v60  ;;  %v7259_v50 = vor.u32 %v7258_v13, %v7255_v34  ;;  %v8759_v23 = vrot.slane %v22060_v51, 4  ;;  %v8772_v42 = vrot.slane %v22069_v60, 4  ;;  %v24955_v13 = vld [vmem:[#allocation120_spill] sm:$0xff]  ;;  %v22083_v34 = vld [vmem:[%s19771_s19 + $0x8] sm:$0x7] }
 0x2be   : > { %24953 = vst [vmem:[#allocation62_spill] sm:$0xff] %v22074_v0  ;;  %v24958_v30 = vld [vmem:[#allocation57_spill] sm:$0xff]  ;;  %v22098_v60 = vshll.u32 %v22083_v34, 16 }
 0x2bf   : > { %v7260_v28 = vrot.slane %v7259_v50, 4  ;;  %v8773_v15 = vor.u32 %v8772_v42, %v8768_v48 }
 0x2c0   : > { %v8778_v16 = vrot.slane %v22098_v60, 5 }
 0x2c1   : > { %15650 = vmatmul.mubr.msk.bf16.vlgmr.msra.gmra.mrb[0].mxu1 %vm1244_vm6, %v21815_v58  ;;  %16482 = vmatmul.mubr.msk.bf16.gmra.mrb[16].mxu0 %vm1244_vm6, %v24947_v11  ;;  %v24954_v58 = vld [vmem:[#allocation113_spill] sm:$0xff] }
 0x2c2   : > { %15682 = vmatpush3.bf16.msra.mxu1 %v21914_v40  ;;  %15653 = vmatprep.mubr.msk.bf16.mxu1 %vm1244_vm6, %v22039_v59  ;;  %v7269_v40 = vor.u32 %v7268_v47, %v7264_v38  ;;  %v5766_v59 = vrot.slane %v5765_v54, 4  ;;  %v5770_v11 = vrot.slane %v24954_v58, 5  ;;  %v7274_v47 = vrot.slane %v24955_v13, 5 }
 0x2c3   : > { %16485 = vmatprep.mubr.msk.bf16.mxu0 %vm1244_vm6, %v24952_v39  ;;  %15715 = vmatprep.subr.bf16.mxu1 %v22046_v21  ;;  %v5761_v54 = vsel %vm19848_vm7, %v5756_v45, %v5760_v36 }
 0x2c4   : > { %v7270_v39 = vrot.slane %v7269_v40, 4  ;;  %v5771_v50 = vsel %vm19848_vm7, %v5766_v59, %v5770_v11  ;;  %v8763_v40 = vor.u32 %v8762_v5, %v8759_v23  ;;  %v24961_v59 = vld [vmem:[#allocation58_spill] sm:$0xff]  ;;  %v24962_v5 = vld [vmem:[#allocation67_spill] sm:$0xff] }
 0x2c5   : > { %v22104_v45 = vcombine.low %v5761_v54, %v5771_v50  ;;  %v24965_v11 = vld [vmem:[#allocation71_spill] sm:$0xff]  ;;  %v24971_v54 = vld [vmem:[#allocation77_spill] sm:$0xff] }
 0x2c6   : > { %v7275_v36 = vsel %vm19848_vm7, %v7270_v39, %v7274_v47  ;;  %v9423_v39 = vld [vmem:[#allocation14 + $0x40] sm:$0x3] }
 0x2c7   : > { %24959 = vst [vmem:[#allocation64_spill] sm:$0xff] %v22104_v45  ;;  %v24967_v47 = vld [vmem:[#allocation73_spill] sm:$0xff] }
 0x2c8   : > { %v24973_v50 = vld [vmem:[#allocation81_spill] sm:$0xff] }
 0x2c9   : > { %15654 = vmatmul.mubr.msk.bf16.gmra.mrb[4].mxu1 %vm1244_vm6, %v24956_v22  ;;  %16486 = vmatmul.mubr.msk.bf16.gmra.mrb[20].mxu0 %vm1244_vm6, %v24957_v8  ;;  %v7265_v22 = vsel %vm19848_vm7, %v7260_v28, %v7264_v38  ;;  %v24964_v38 = vld [vmem:[#allocation70_spill] sm:$0xff] }
 0x2ca   : > { %15657 = vmatprep.mubr.msk.bf16.mxu1 %vm1244_vm6, %v24958_v30  ;;  %16489 = vmatprep.mubr.msk.bf16.mxu0 %vm1244_vm6, %v22074_v0  ;;  %v22106_v8 = vcombine.low %v7265_v22, %v7275_v36  ;;  %v8764_v30 = vrot.slane %v8763_v40, 4  ;;  %v8774_v0 = vrot.slane %v8773_v15, 4  ;;  %v24966_v15 = vld [vmem:[#allocation88_spill] sm:$0xff]  ;;  %v13793_v36 = vrot.slane %v21845_v3, 11 }
 0x2cb   : > { %v24970_v22 = vld [vmem:[#allocation112_spill] sm:$0xff] }
 0x2cc   : > { %24960 = vst [vmem:[#allocation63_spill] sm:$0xff] %v22106_v8  ;;  %v8769_v28 = vsel %vm19848_vm7, %v8764_v30, %v8768_v48  ;;  %v8779_v42 = vsel %vm19848_vm7, %v8774_v0, %v8778_v16  ;;  %v22132_v48 = vand.u32 %v9423_v39, %v19787_v2  ;;  %v24968_v16 = vld [vmem:[#allocation100_spill] sm:$0xff]  ;;  %v24969_v0 = vld [vmem:[#allocation75_spill] sm:$0xff]  ;;  %v24972_v30 = vld [vmem:[#allocation121_spill] sm:$0xff] }
 0x2cd   : > { %v22121_v23 = vcombine.low %v8769_v28, %v8779_v42  ;;  %v24974_v40 = vld [vmem:[#allocation128_spill] sm:$0xff]  ;;  %v3637_v42 = vrot.slane %v21849_v41, 7  ;;  %v24975_v39 = vld [vmem:[#allocation82_spill] sm:$0xff]  ;;  %v3648_v41 = vrot.slane %v21873_v9, 7  ;;  %v24981_v9 = vld [vmem:[#allocation167_spill] sm:$0xff] }
 0x2cf   : > { %24963 = vst [vmem:[#allocation65_spill] sm:$0xff] %v22121_v23 }
 0x2d1   : > { %15658 = vmatmul.mubr.msk.bf16.gmra.mrb[8].mxu1 %vm1244_vm6, %v24961_v59  ;;  %16490 = vmatmul.mubr.msk.bf16.gmra.mrb[24].mxu0 %vm1244_vm6, %v22104_v45  ;;  %v3641_v45 = vrot.slane %v21865_v31, 7  ;;  %v24979_v31 = vld [vmem:[#allocation98_spill] sm:$0xff] }
 0x2d2   : > { %15661 = vmatprep.mubr.msk.bf16.mxu1 %vm1244_vm6, %v24962_v5  ;;  %16493 = vmatprep.mubr.msk.bf16.mxu0 %vm1244_vm6, %v22106_v8  ;;  %v24978_v8 = vld [vmem:[#allocation133_spill] sm:$0xff] }
 0x2d9   : > { %15662 = vmatmul.mubr.msk.bf16.gmra.mrb[12].mxu1 %vm1244_vm6, %v24964_v38  ;;  %16494 = vmatmul.mubr.msk.bf16.gmra.mrb[28].mxu0 %vm1244_vm6, %v22121_v23  ;;  %v24977_v23 = vld [vmem:[#allocation87_spill] sm:$0xff] }
 0x2da   : > { %15665 = vmatprep.mubr.msk.bf16.mxu1 %vm1244_vm6, %v24965_v11  ;;  %16499 = vmatprep.mubr.msk.bf16.mxu0 %vm1244_vm6, %v24966_v15  ;;  %v3650_v15 = vrot.slane %v3648_v41, 4 }
 0x2e1   : > { %15666 = vmatmul.mubr.msk.bf16.gmra.mrb[16].mxu1 %vm1244_vm6, %v24967_v47  ;;  %16500 = vmatmul.mubr.msk.bf16.vlgmr.msra.gmra.mrb[0].mxu0 %vm1244_vm6, %v24968_v16  ;;  %v13795_v16 = vrot.slane %v21887_v33, 11 }
 0x2e2   : > { %16532 = vmatpush3.bf16.msra.mxu0 %v21973_v61  ;;  %15669 = vmatprep.mubr.msk.bf16.mxu1 %vm1244_vm6, %v24969_v0  ;;  %v3634_v61 = vrot.slane %v21837_v6, 7 }
 0x2e3   : > { %16503 = vmatprep.mubr.msk.bf16.mxu0 %vm1244_vm6, %v24970_v22  ;;  %16565 = vmatprep.subr.bf16.mxu0 %v22132_v48  ;;  %v3644_v22 = vrot.slane %v21883_v18, 7  ;;  %v3649_v33 = vsel %vm21300_vm3, %v13795_v16, %v3648_v41  ;;  %v24984_v16 = vld [vmem:[#allocation175_spill] sm:$0xff] }
 0x2e4   : > { %v3636_v28 = vrot.slane %v3634_v61, 4  ;;  %v3635_v6 = vsel %vm21300_vm3, %v13793_v36, %v3634_v61  ;;  %v24980_v61 = vld [vmem:[#allocation160_spill] sm:$0xff]  ;;  %v4475_v36 = vrot.slane %v21650_v44, 5  ;;  %v5979_v44 = vrot.slane %v21660_v63, 5 }
 0x2e5   : > { %v5982_v63 = vrot.slane %v21685_v1, 5 }
 0x2e6   : > { %v3638_v3 = vsel %vm21300_vm3, %v3636_v28, %v3637_v42  ;;  %v4269_v28 = vld [vmem:[#allocation14 + $0x10] sm:$0x3]  ;;  %v5981_v41 = vrot.slane %v5979_v44, 4 }
 0x2e8   : > { %v5983_v1 = vsel %vm20954_vm1, %v5981_v41, %v5982_v63 }
 0x2e9   : > { %15670 = vmatmul.mubr.msk.bf16.gmra.mrb[20].mxu1 %vm1244_vm6, %v24971_v54  ;;  %16504 = vmatmul.mubr.msk.bf16.gmra.mrb[4].mxu0 %vm1244_vm6, %v24972_v30  ;;  %v13794_v30 = vrot.slane %v21879_v46, 11 }
 0x2ea   : > { %15673 = vmatprep.mubr.msk.bf16.mxu1 %vm1244_vm6, %v24973_v50  ;;  %16507 = vmatprep.mubr.msk.bf16.mxu0 %vm1244_vm6, %v24974_v40  ;;  %v13809_v40 = vcombine.low %v3635_v6, %v3638_v3  ;;  %v13875_v6 = vrot.slane %v21668_v27, 9  ;;  %v4477_v3 = vrot.slane %v4475_v36, 4  ;;  %v24985_v27 = vld [vmem:[#allocation177_spill] sm:$0xff] }
 0x2eb   : > { %v3642_v46 = vsel %vm21300_vm3, %v13794_v30, %v3641_v45 }
 0x2f1   : > { %15674 = vmatmul.mubr.msk.bf16.gmra.mrb[24].mxu1 %vm1244_vm6, %v24975_v39  ;;  %16508 = vmatmul.mubr.msk.bf16.gmra.mrb[8].mxu0 %vm1244_vm6, %v24976_v7  ;;  %v3643_v7 = vrot.slane %v3641_v45, 4  ;;  %v4478_v45 = vrot.slane %v21674_v55, 5  ;;  %v25005_v55 = vld [vmem:[#allocation136_spill] sm:$0xff] }
 0x2f2   : > { %15677 = vmatprep.mubr.msk.bf16.mxu1 %vm1244_vm6, %v24977_v23  ;;  %16511 = vmatprep.mubr.msk.bf16.mxu0 %vm1244_vm6, %v24978_v8  ;;  %v3651_v8 = vrot.slane %v21891_v32, 7 }
 0x2f3   : > { %v3645_v18 = vsel %vm21300_vm3, %v3643_v7, %v3644_v22  ;;  %v22196_v7 = vand.u32 %v4269_v28, %v19787_v2  ;;  %v7483_v22 = vrot.slane %v21702_v49, 5  ;;  %v24990_v49 = vld [vmem:[#allocation156_spill] sm:$0xff] }
 0x2f4   : > { %v3652_v32 = vsel %vm21300_vm3, %v3650_v15, %v3651_v8  ;;  %v22189_v42 = vcombine.low %v3642_v46, %v3645_v18  ;;  %v4476_v8 = vsel %vm20954_vm1, %v13875_v6, %v4475_v36  ;;  %v4479_v15 = vsel %vm20954_vm1, %v4477_v3, %v4478_v45  ;;  %v24989_v36 = vld [vmem:[#allocation36_spill] sm:$0xff] }
 0x2f5   : > { %v22214_v30 = vcombine.low %v4476_v8, %v4479_v15  ;;  %v14119_v46 = vrot.slane %v21714_v35, 9  ;;  %v7485_v18 = vrot.slane %v7483_v22, 4  ;;  %v8987_v35 = vrot.slane %v21958_v62, 5  ;;  %v24993_v15 = vld [vmem:[#allocation159_spill] sm:$0xff] }
 0x2f6   : > { %24982 = vst [vmem:[#allocation93_spill] sm:$0xff] %v22189_v42  ;;  %v14241_v45 = vrot.slane %v21955_v14, 9 }
 0x2f7   : > { %24987 = vst [vmem:[#allocation94_spill] sm:$0xff] %v22214_v30  ;;  %v8989_v8 = vrot.slane %v8987_v35, 4 }
 0x2f9   : > { %15678 = vmatmul.mubr.msk.bf16.gmra.mrb[28].mxu1 %vm1244_vm6, %v24979_v31  ;;  %16512 = vmatmul.mubr.msk.bf16.gmra.mrb[12].mxu0 %vm1244_vm6, %v24980_v61 }
 0x2fa   : > { %15683 = vmatprep.mubr.msk.bf16.mxu1 %vm1244_vm6, %v13809_v40  ;;  %16515 = vmatprep.mubr.msk.bf16.mxu0 %vm1244_vm6, %v24981_v9  ;;  %v22191_v40 = vcombine.low %v3649_v33, %v3652_v32  ;;  %v7486_v33 = vrot.slane %v21718_v53, 5  ;;  %v24988_v32 = vld [vmem:[#allocation127_spill] sm:$0xff]  ;;  %v7484_v53 = vsel %vm20954_vm1, %v14119_v46, %v7483_v22  ;;  %v8988_v22 = vsel %vm20954_vm1, %v14241_v45, %v8987_v35  ;;  %v24996_v46 = vld [vmem:[#allocation174_spill] sm:$0xff]  ;;  %v24999_v35 = vld [vmem:[#allocation37_spill] sm:$0xff] }
 0x2fb   : > { %v4688_v45 = vrot.slane %v24933_v29, 5  ;;  %v25008_v29 = vld [vmem:[#allocation97_spill] sm:$0xff] }
 0x2fc   : > { %24983 = vst [vmem:[#allocation92_spill] sm:$0xff] %v22191_v40  ;;  %v7487_v28 = vsel %vm20954_vm1, %v7485_v18, %v7486_v33  ;;  %v24997_v18 = vld [vmem:[#allocation176_spill] sm:$0xff]  ;;  %v9640_v33 = vld [vmem:[#allocation14 + $0x42] sm:$0x3] }
 0x2fd   : > { %v22239_v3 = vcombine.low %v7484_v53, %v7487_v28  ;;  %v25000_v53 = vld [vmem:[#allocation39_spill] sm:$0xff]  ;;  %v4685_v28 = vrot.slane %v24931_v43, 6 }
 0x2ff   : > { %24992 = vst [vmem:[#allocation120_spill] sm:$0xff] %v22239_v3 }
 0x301   : > { %15684 = vmatmul.mubr.msk.bf16.vlgmr.msra.gmra.mrb[0].mxu1 %vm1244_vm6, %v22189_v42  ;;  %16516 = vmatmul.mubr.msk.bf16.gmra.mrb[16].mxu0 %vm1244_vm6, %v24984_v16  ;;  %v25010_v42 = vld [vmem:[#allocation101_spill] sm:$0xff] }
 0x302   : > { %15716 = vmatpush3.bf16.msra.mxu1 %v22046_v21  ;;  %15687 = vmatprep.mubr.msk.bf16.mxu1 %vm1244_vm6, %v22191_v40  ;;  %v13997_v21 = vrot.slane %v21681_v26, 9 }
 0x303   : > { %16519 = vmatprep.mubr.msk.bf16.mxu0 %vm1244_vm6, %v24985_v27  ;;  %15749 = vmatprep.subr.bf16.mxu1 %v22196_v7 }
 0x304   : > { %v5980_v26 = vsel %vm20954_vm1, %v13997_v21, %v5979_v44  ;;  %v8990_v44 = vrot.slane %v22083_v34, 5  ;;  %v24994_v21 = vld [vmem:[#allocation158_spill] sm:$0xff] }
 0x305   : > { %v22237_v6 = vcombine.low %v5980_v26, %v5983_v1  ;;  %v22266_v26 = vand.u32 %v9640_v33, %v19787_v2  ;;  %v24998_v1 = vld [vmem:[#allocation178_spill] sm:$0xff] }
 0x306   : > { %v8991_v41 = vsel %vm20954_vm1, %v8989_v8, %v8990_v44  ;;  %v25001_v8 = vld [vmem:[#allocation91_spill] sm:$0xff]  ;;  %v25004_v33 = vld [vmem:[#allocation150_spill] sm:$0xff] }
 0x307   : > { %24991 = vst [vmem:[#allocation113_spill] sm:$0xff] %v22237_v6  ;;  %v22255_v63 = vcombine.low %v8988_v22, %v8991_v41  ;;  %v4689_v44 = vrot.slane %v25001_v8, 6  ;;  %v25002_v22 = vld [vmem:[#allocation49_spill] sm:$0xff]  ;;  %v25003_v41 = vld [vmem:[#allocation134_spill] sm:$0xff]  ;;  %v25009_v8 = vld [vmem:[#allocation99_spill] sm:$0xff] }
 0x308   : > { %v6188_v40 = vrot.slane %v25009_v8, 5 }
 0x309   : > { %15688 = vmatmul.mubr.msk.bf16.gmra.mrb[4].mxu1 %vm1244_vm6, %v24988_v32  ;;  %16520 = vmatmul.mubr.msk.bf16.gmra.mrb[20].mxu0 %vm1244_vm6, %v24989_v36  ;;  %24995 = vst [vmem:[#allocation167_spill] sm:$0xff] %v22255_v63  ;;  %v4696_v32 = vrot.slane %v25008_v29, 6 }
 0x30a   : > { %15691 = vmatprep.mubr.msk.bf16.mxu1 %vm1244_vm6, %v24990_v49  ;;  %16523 = vmatprep.mubr.msk.bf16.mxu0 %vm1244_vm6, %v22214_v30 }
 0x311   : > { %15692 = vmatmul.mubr.msk.bf16.gmra.mrb[8].mxu1 %vm1244_vm6, %v24993_v15  ;;  %16524 = vmatmul.mubr.msk.bf16.gmra.mrb[24].mxu0 %vm1244_vm6, %v22237_v6 }
 0x312   : > { %15695 = vmatprep.mubr.msk.bf16.mxu1 %vm1244_vm6, %v24994_v21  ;;  %16527 = vmatprep.mubr.msk.bf16.mxu0 %vm1244_vm6, %v22239_v3  ;;  %v25006_v3 = vld [vmem:[#allocation162_spill] sm:$0xff] }
 0x313   : > { %v25007_v43 = vshrl.u32 %v25006_v3, 16  ;;  %v25015_v3 = vld [vmem:[#allocation118_spill] sm:$0xff] }
 0x315   : > { %v4695_v6 = vrot.slane %v25007_v43, 5  ;;  %v25016_v43 = vld [vmem:[#allocation117_spill] sm:$0xff] }
 0x316   : > { %v7697_v29 = vrot.slane %v25016_v43, 6  ;;  %v25024_v43 = vld [vmem:[#allocation169_spill] sm:$0xff] }
 0x319   : > { %15696 = vmatmul.mubr.msk.bf16.gmra.mrb[12].mxu1 %vm1244_vm6, %v24996_v46  ;;  %16528 = vmatmul.mubr.msk.bf16.gmra.mrb[28].mxu0 %vm1244_vm6, %v22255_v63 }
 0x31a   : > { %15699 = vmatprep.mubr.msk.bf16.mxu1 %vm1244_vm6, %v24997_v18  ;;  %16533 = vmatprep.mubr.msk.bf16.mxu0 %vm1244_vm6, %v24847_v37 }
 0x321   : > { %15700 = vmatmul.mubr.msk.bf16.gmra.mrb[16].mxu1 %vm1244_vm6, %v24998_v1  ;;  %16534 = vmatmul.mubr.msk.bf16.vlgmr.msra.gmra.mrb[0].mxu0 %vm1244_vm6, %v24850_v10  ;;  %v4697_v10 = vor.u32 %v4696_v32, %v4695_v6  ;;  %v25019_v32 = vld [vmem:[#allocation165_spill] sm:$0xff] }
 0x322   : > { %16566 = vmatpush3.bf16.msra.mxu0 %v22132_v48  ;;  %15703 = vmatprep.mubr.msk.bf16.mxu1 %vm1244_vm6, %v24999_v35  ;;  %v4684_v48 = vrot.slane %v24930_v57, 5  ;;  %v4690_v57 = vor.u32 %v4689_v44, %v4688_v45  ;;  %v7696_v44 = vrot.slane %v25015_v3, 5  ;;  %v25020_v6 = vshrl.u32 %v25019_v32, 16  ;;  %v25023_v3 = vld [vmem:[#allocation129_spill] sm:$0xff] }
 0x323   : > { %16537 = vmatprep.mubr.msk.bf16.mxu0 %vm1244_vm6, %v24851_v25  ;;  %16599 = vmatprep.subr.bf16.mxu0 %v22266_v26  ;;  %v25025_v32 = vshrl.u32 %v25024_v43, 16 }
 0x324   : > { %v4686_v63 = vor.u32 %v4685_v28, %v4684_v48  ;;  %v4692_v25 = vrot.slane %v4690_v57, 4  ;;  %v25014_v28 = vld [vmem:[#allocation149_spill] sm:$0xff] }
 0x325   : > { %v7693_v45 = vrot.slane %v25014_v28, 6  ;;  %v25021_v28 = vld [vmem:[#allocation157_spill] sm:$0xff] }
 0x329   : > { %15704 = vmatmul.mubr.msk.bf16.gmra.mrb[20].mxu1 %vm1244_vm6, %v25000_v53  ;;  %16538 = vmatmul.mubr.msk.bf16.gmra.mrb[4].mxu0 %vm1244_vm6, %v24854_v17  ;;  %v6193_v17 = vrot.slane %v25012_v20, 6 }
 0x32a   : > { %15707 = vmatprep.mubr.msk.bf16.mxu1 %vm1244_vm6, %v21614_v12  ;;  %16541 = vmatprep.mubr.msk.bf16.mxu0 %vm1244_vm6, %v24856_v56  ;;  %v25011_v56 = vld [vmem:[#allocation111_spill] sm:$0xff] }
 0x331   : > { %15708 = vmatmul.mubr.msk.bf16.gmra.mrb[24].mxu1 %vm1244_vm6, %v21642_v19  ;;  %16542 = vmatmul.mubr.msk.bf16.gmra.mrb[8].mxu0 %vm1244_vm6, %v24864_v4  ;;  %v4481_v4 = vld [vmem:[#allocation14 + $0x12] sm:$0x3] }
 0x332   : > { %15711 = vmatprep.mubr.msk.bf16.mxu1 %vm1244_vm6, %v21665_v24  ;;  %16545 = vmatprep.mubr.msk.bf16.mxu0 %vm1244_vm6, %v24866_v52  ;;  %v6189_v52 = vrot.slane %v25010_v42, 6  ;;  %v22318_v8 = vand.u32 %v4481_v4, %v19787_v2  ;;  %v25055_v4 = vld [vmem:[#allocation60_spill] sm:$0xff] }
 0x334   : > { %v6190_v42 = vor.u32 %v6189_v52, %v6188_v40  ;;  %v4698_v40 = vsel %vm19877_vm8, %v4692_v25, %v4697_v10  ;;  %v25027_v10 = vld [vmem:[#allocation76_spill] sm:$0xff] }
 0x335   : > { %v9197_v25 = vrot.slane %v25027_v10, 6 }
 0x339   : > { %15712 = vmatmul.mubr.msk.bf16.gmra.mrb[28].mxu1 %vm1244_vm6, %v25002_v22  ;;  %16546 = vmatmul.mubr.msk.bf16.gmra.mrb[12].mxu0 %vm1244_vm6, %v25003_v41  ;;  %v6192_v41 = vrot.slane %v25011_v56, 5  ;;  %v25017_v22 = vld [vmem:[#allocation152_spill] sm:$0xff] }
 0x33a   : > { %15717 = vmatprep.mubr.msk.bf16.mxu1 %vm1244_vm6, %v25004_v33  ;;  %16549 = vmatprep.mubr.msk.bf16.mxu0 %vm1244_vm6, %v25005_v55  ;;  %v4687_v33 = vrot.slane %v4686_v63, 4  ;;  %v25013_v55 = vld [vmem:[#allocation148_spill] sm:$0xff]  ;;  %v6200_v63 = vrot.slane %v24954_v58, 6  ;;  %v7704_v58 = vrot.slane %v24955_v13, 6 }
 0x33b   : > { %v7692_v48 = vrot.slane %v25013_v55, 5  ;;  %v25018_v56 = vld [vmem:[#allocation124_spill] sm:$0xff]  ;;  %v6194_v20 = vor.u32 %v6193_v17, %v6192_v41  ;;  %v6199_v55 = vrot.slane %v25020_v6, 5  ;;  %v7698_v41 = vor.u32 %v7697_v29, %v7696_v44 }
 0x33c   : > { %v4691_v52 = vsel %vm19877_vm8, %v4687_v33, %v4690_v57  ;;  %v7703_v6 = vrot.slane %v25025_v32, 5  ;;  %v9196_v33 = vrot.slane %v22060_v51, 5  ;;  %v24370_v44 = vshrl.u32 %v22083_v34, 16  ;;  %v25030_v32 = vld [vmem:[#allocation161_spill] sm:$0xff] }
 0x33d   : > { %v7694_v17 = vor.u32 %v7693_v45, %v7692_v48  ;;  %v6201_v57 = vor.u32 %v6200_v63, %v6199_v55  ;;  %v25029_v48 = vld [vmem:[#allocation40_spill] sm:$0xff]  ;;  %v7700_v43 = vrot.slane %v7698_v41, 4 }
 0x33e   : > { %v9201_v45 = vrot.slane %v25029_v48, 6  ;;  %v7705_v13 = vor.u32 %v7704_v58, %v7703_v6  ;;  %v9207_v6 = vrot.slane %v24370_v44, 5  ;;  %v9208_v58 = vrot.slane %v22098_v60, 6  ;;  %v25054_v44 = vld [vmem:[#allocation154_spill] sm:$0xff] }
 0x33f   : > { %v7695_v29 = vrot.slane %v7694_v17, 4 }
 0x341   : > { %15718 = vmatmul.mubr.msk.bf16.vlgmr.msra.gmra.mrb[0].mxu1 %vm1244_vm6, %v25017_v22  ;;  %16550 = vmatmul.mubr.msk.bf16.gmra.mrb[16].mxu0 %vm1244_vm6, %v25018_v56  ;;  %v6196_v22 = vrot.slane %v6194_v20, 4  ;;  %v25028_v56 = vld [vmem:[#allocation59_spill] sm:$0xff] }
 0x342   : > { %15750 = vmatpush3.bf16.msra.mxu1 %v22196_v7  ;;  %15721 = vmatprep.mubr.msk.bf16.mxu1 %vm1244_vm6, %v25021_v28  ;;  %v6191_v7 = vrot.slane %v6190_v42, 4  ;;  %v22340_v28 = vcombine.low %v4691_v52, %v4698_v40  ;;  %v25031_v42 = vld [vmem:[#allocation132_spill] sm:$0xff]  ;;  %v25032_v52 = vld [vmem:[#allocation163_spill] sm:$0xff]  ;;  %v9198_v40 = vor.u32 %v9197_v25, %v9196_v33 }
 0x343   : > { %16553 = vmatprep.mubr.msk.bf16.mxu0 %vm1244_vm6, %v25023_v3  ;;  %15783 = vmatprep.subr.bf16.mxu1 %v22318_v8  ;;  %v9200_v3 = vrot.slane %v25028_v56, 5  ;;  %v6202_v63 = vsel %vm19877_vm8, %v6196_v22, %v6201_v57  ;;  %v25035_v33 = vld [vmem:[#allocation168_spill] sm:$0xff] }
 0x344   : > { %25026 = vst [vmem:[#allocation159_spill] sm:$0xff] %v22340_v28  ;;  %v6195_v55 = vsel %vm19877_vm8, %v6191_v7, %v6194_v20  ;;  %v7706_v20 = vsel %vm19877_vm8, %v7700_v43, %v7705_v13  ;;  %v9199_v57 = vrot.slane %v9198_v40, 4  ;;  %v25039_v43 = vld [vmem:[#allocation43_spill] sm:$0xff]  ;;  %v25040_v13 = vld [vmem:[#allocation108_spill] sm:$0xff]  ;;  %v25044_v40 = vld [vmem:[#allocation122_spill] sm:$0xff] }
 0x345   : > { %v9202_v17 = vor.u32 %v9201_v45, %v9200_v3  ;;  %v22366_v22 = vcombine.low %v6195_v55, %v6202_v63  ;;  %v25036_v3 = vld [vmem:[#allocation170_spill] sm:$0xff] }
 0x346   : > { %v25041_v63 = vld [vmem:[#allocation46_spill] sm:$0xff] }
 0x347   : > { %25033 = vst [vmem:[#allocation158_spill] sm:$0xff] %v22366_v22 }
 0x349   : > { %15722 = vmatmul.mubr.msk.bf16.gmra.mrb[4].mxu1 %vm1244_vm6, %v25030_v32  ;;  %16554 = vmatmul.mubr.msk.bf16.gmra.mrb[20].mxu0 %vm1244_vm6, %v25031_v42  ;;  %v7699_v32 = vsel %vm19877_vm8, %v7695_v29, %v7698_v41  ;;  %v9204_v42 = vrot.slane %v9202_v17, 4  ;;  %v9203_v41 = vsel %vm19877_vm8, %v9199_v57, %v9202_v17  ;;  %v25038_v29 = vld [vmem:[#allocation173_spill] sm:$0xff]  ;;  %v25045_v17 = vld [vmem:[#allocation56_spill] sm:$0xff]  ;;  %v25050_v57 = vld [vmem:[#allocation147_spill] sm:$0xff] }
 0x34a   : > { %15725 = vmatprep.mubr.msk.bf16.mxu1 %vm1244_vm6, %v25032_v52  ;;  %16557 = vmatprep.mubr.msk.bf16.mxu0 %vm1244_vm6, %v22340_v28  ;;  %v22368_v7 = vcombine.low %v7699_v32, %v7706_v20  ;;  %v9209_v28 = vor.u32 %v9208_v58, %v9207_v6  ;;  %v9851_v32 = vld [vmem:[#allocation14 + $0x44] sm:$0x3]  ;;  %v25046_v6 = vld [vmem:[#allocation131_spill] sm:$0xff] }
 0x34b   : > { %v9859_v55 = vand.u32 %v9851_v32, %v19787_v2  ;;  %v25047_v58 = vld [vmem:[#allocation66_spill] sm:$0xff] }
 0x34c   : > { %25034 = vst [vmem:[#allocation174_spill] sm:$0xff] %v22368_v7  ;;  %v9210_v25 = vsel %vm19877_vm8, %v9204_v42, %v9209_v28  ;;  %v25042_v28 = vld [vmem:[#allocation116_spill] sm:$0xff]  ;;  %v25043_v42 = vld [vmem:[#allocation55_spill] sm:$0xff]  ;;  %v25048_v20 = vld [vmem:[#allocation138_spill] sm:$0xff] }
 0x34d   : > { %v22382_v45 = vcombine.low %v9203_v41, %v9210_v25  ;;  %v25051_v41 = vld [vmem:[#allocation68_spill] sm:$0xff]  ;;  %v25052_v25 = vld [vmem:[#allocation151_spill] sm:$0xff]  ;;  %v25053_v32 = vld [vmem:[#allocation142_spill] sm:$0xff] }
 0x34f   : > { %25037 = vst [vmem:[#allocation176_spill] sm:$0xff] %v22382_v45 }
 0x351   : > { %15726 = vmatmul.mubr.msk.bf16.gmra.mrb[8].mxu1 %vm1244_vm6, %v25035_v33  ;;  %16558 = vmatmul.mubr.msk.bf16.gmra.mrb[24].mxu0 %vm1244_vm6, %v22366_v22 }
 0x352   : > { %15729 = vmatprep.mubr.msk.bf16.mxu1 %vm1244_vm6, %v25036_v3  ;;  %16561 = vmatprep.mubr.msk.bf16.mxu0 %vm1244_vm6, %v22368_v7  ;;  %v4700_v7 = vld [vmem:[#allocation14 + $0x14] sm:$0x3] }
 0x353   : > { %v4708_v22 = vand.u32 %v4700_v7, %v19787_v2  ;;  %v25063_v7 = vld [vmem:[#allocation90_spill] sm:$0xff] }
 0x359   : > { %15730 = vmatmul.mubr.msk.bf16.gmra.mrb[12].mxu1 %vm1244_vm6, %v25038_v29  ;;  %16562 = vmatmul.mubr.msk.bf16.gmra.mrb[28].mxu0 %vm1244_vm6, %v22382_v45  ;;  %v25056_v45 = vld [vmem:[#allocation35_spill] sm:$0xff] }
 0x35a   : > { %15733 = vmatprep.mubr.msk.bf16.mxu1 %vm1244_vm6, %v25039_v43  ;;  %16567 = vmatprep.mubr.msk.bf16.mxu0 %vm1244_vm6, %v25040_v13  ;;  %v25071_v13 = vld [vmem:[#allocation106_spill] sm:$0xff] }
 0x361   : > { %15734 = vmatmul.mubr.msk.bf16.gmra.mrb[16].mxu1 %vm1244_vm6, %v25041_v63  ;;  %16568 = vmatmul.mubr.msk.bf16.vlgmr.msra.gmra.mrb[0].mxu0 %vm1244_vm6, %v25042_v28 }
 0x362   : > { %16600 = vmatpush3.bf16.msra.mxu0 %v22266_v26  ;;  %15737 = vmatprep.mubr.msk.bf16.mxu1 %vm1244_vm6, %v25043_v42  ;;  %v25049_v26 = vld [vmem:[#allocation61_spill] sm:$0xff] }
 0x363   : > { %16571 = vmatprep.mubr.msk.bf16.mxu0 %vm1244_vm6, %v25044_v40  ;;  %16633 = vmatprep.subr.bf16.mxu0 %v9859_v55 }
 0x369   : > { %15738 = vmatmul.mubr.msk.bf16.gmra.mrb[20].mxu1 %vm1244_vm6, %v25045_v17  ;;  %16572 = vmatmul.mubr.msk.bf16.gmra.mrb[4].mxu0 %vm1244_vm6, %v25046_v6  ;;  %v25065_v6 = vld [vmem:[#allocation96_spill] sm:$0xff] }
 0x36a   : > { %15741 = vmatprep.mubr.msk.bf16.mxu1 %vm1244_vm6, %v25047_v58  ;;  %16575 = vmatprep.mubr.msk.bf16.mxu0 %vm1244_vm6, %v25048_v20  ;;  %v25058_v20 = vld [vmem:[#allocation164_spill] sm:$0xff] }
 0x371   : > { %15742 = vmatmul.mubr.msk.bf16.gmra.mrb[24].mxu1 %vm1244_vm6, %v25049_v26  ;;  %16576 = vmatmul.mubr.msk.bf16.gmra.mrb[8].mxu0 %vm1244_vm6, %v25050_v57  ;;  %v25057_v57 = vld [vmem:[#allocation72_spill] sm:$0xff] }
 0x372   : > { %15745 = vmatprep.mubr.msk.bf16.mxu1 %vm1244_vm6, %v25051_v41  ;;  %16579 = vmatprep.mubr.msk.bf16.mxu0 %vm1244_vm6, %v25052_v25  ;;  %v25059_v25 = vld [vmem:[#allocation79_spill] sm:$0xff] }
 0x379   : > { %15746 = vmatmul.mubr.msk.bf16.gmra.mrb[28].mxu1 %vm1244_vm6, %v25053_v32  ;;  %16580 = vmatmul.mubr.msk.bf16.gmra.mrb[12].mxu0 %vm1244_vm6, %v25054_v44  ;;  %v25060_v44 = vld [vmem:[#allocation166_spill] sm:$0xff] }
 0x37a   : > { %15751 = vmatprep.mubr.msk.bf16.mxu1 %vm1244_vm6, %v25055_v4  ;;  %16583 = vmatprep.mubr.msk.bf16.mxu0 %vm1244_vm6, %v25056_v45  ;;  %v25061_v4 = vld [vmem:[#allocation86_spill] sm:$0xff]  ;;  %v25062_v45 = vld [vmem:[#allocation171_spill] sm:$0xff] }
 0x381   : > { %15752 = vmatmul.mubr.msk.bf16.vlgmr.msra.gmra.mrb[0].mxu1 %vm1244_vm6, %v25057_v57  ;;  %16584 = vmatmul.mubr.msk.bf16.gmra.mrb[16].mxu0 %vm1244_vm6, %v25058_v20  ;;  %v25064_v57 = vld [vmem:[#allocation172_spill] sm:$0xff] }
 0x382   : > { %15784 = vmatpush3.bf16.msra.mxu1 %v22318_v8  ;;  %15755 = vmatprep.mubr.msk.bf16.mxu1 %vm1244_vm6, %v25059_v25  ;;  %v9417_v8 = vrot.slane %v21958_v62, 6  ;;  %v14276_v25 = vrot.slane %v21955_v14, 10 }
 0x383   : > { %16587 = vmatprep.mubr.msk.bf16.mxu0 %vm1244_vm6, %v25060_v44  ;;  %15817 = vmatprep.subr.bf16.mxu1 %v4708_v22  ;;  %v9420_v44 = vrot.slane %v22083_v34, 6 }
 0x384   : > { %v9419_v20 = vrot.slane %v9417_v8, 4  ;;  %v9418_v40 = vsel %vm20299_vm10, %v14276_v25, %v9417_v8  ;;  %v25074_v8 = vld [vmem:[#allocation115_spill] sm:$0xff] }
 0x386   : > { %v9421_v28 = vsel %vm20299_vm10, %v9419_v20, %v9420_v44  ;;  %v25075_v44 = vld [vmem:[#allocation123_spill] sm:$0xff]  ;;  %v25079_v20 = vld [vmem:[#allocation153_spill] sm:$0xff] }
 0x387   : > { %v22459_v32 = vcombine.low %v9418_v40, %v9421_v28  ;;  %v25076_v28 = vld [vmem:[#allocation130_spill] sm:$0xff]  ;;  %v25077_v40 = vld [vmem:[#allocation139_spill] sm:$0xff] }
 0x389   : > { %15756 = vmatmul.mubr.msk.bf16.gmra.mrb[4].mxu1 %vm1244_vm6, %v25061_v4  ;;  %16588 = vmatmul.mubr.msk.bf16.gmra.mrb[20].mxu0 %vm1244_vm6, %v25062_v45  ;;  %v25066_v4 = vld [vmem:[#allocation41_spill] sm:$0xff]  ;;  %v25067_v45 = vld [vmem:[#allocation103_spill] sm:$0xff]  ;;  %25070 = vst [vmem:[#allocation178_spill] sm:$0xff] %v22459_v32 }
 0x38a   : > { %15759 = vmatprep.mubr.msk.bf16.mxu1 %vm1244_vm6, %v25063_v7  ;;  %16591 = vmatprep.mubr.msk.bf16.mxu0 %vm1244_vm6, %v25064_v57  ;;  %v25068_v7 = vld [vmem:[#allocation42_spill] sm:$0xff]  ;;  %v25081_v57 = vld [vmem:[#allocation80_spill] sm:$0xff] }
 0x391   : > { %15760 = vmatmul.mubr.msk.bf16.gmra.mrb[8].mxu1 %vm1244_vm6, %v25065_v6  ;;  %16592 = vmatmul.mubr.msk.bf16.gmra.mrb[24].mxu0 %vm1244_vm6, %v25066_v4  ;;  %v25072_v4 = vld [vmem:[#allocation109_spill] sm:$0xff] }
 0x392   : > { %15763 = vmatprep.mubr.msk.bf16.mxu1 %vm1244_vm6, %v25067_v45  ;;  %16595 = vmatprep.mubr.msk.bf16.mxu0 %vm1244_vm6, %v25068_v7  ;;  %v25073_v45 = vld [vmem:[#allocation57_spill] sm:$0xff]  ;;  %v10055_v7 = vld [vmem:[#allocation14 + $0x46] sm:$0x3] }
 0x393   : > { %v10065_v25 = vand.u32 %v10055_v7, %v19787_v2  ;;  %v25080_v7 = vld [vmem:[#allocation62_spill] sm:$0xff] }
 0x399   : > { %15764 = vmatmul.mubr.msk.bf16.gmra.mrb[12].mxu1 %vm1244_vm6, %v25071_v13  ;;  %16596 = vmatmul.mubr.msk.bf16.gmra.mrb[28].mxu0 %vm1244_vm6, %v22459_v32  ;;  %v4911_v32 = vld [vmem:[#allocation14 + $0x16] sm:$0x3] }
 0x39a   : > { %15767 = vmatprep.mubr.msk.bf16.mxu1 %vm1244_vm6, %v25072_v4  ;;  %16601 = vmatprep.mubr.msk.bf16.mxu0 %vm1244_vm6, %v25073_v45 }
 0x3a1   : > { %15768 = vmatmul.mubr.msk.bf16.gmra.mrb[16].mxu1 %vm1244_vm6, %v25074_v8  ;;  %16602 = vmatmul.mubr.msk.bf16.vlgmr.msra.gmra.mrb[0].mxu0 %vm1244_vm6, %v24961_v59 }
 0x3a2   : > { %16634 = vmatpush3.bf16.msra.mxu0 %v9859_v55  ;;  %15771 = vmatprep.mubr.msk.bf16.mxu1 %vm1244_vm6, %v25075_v44  ;;  %v25078_v55 = vld [vmem:[#allocation146_spill] sm:$0xff] }
 0x3a3   : > { %16605 = vmatprep.mubr.msk.bf16.mxu0 %vm1244_vm6, %v24962_v5  ;;  %16667 = vmatprep.subr.bf16.mxu0 %v10065_v25 }
 0x3a9   : > { %15772 = vmatmul.mubr.msk.bf16.gmra.mrb[20].mxu1 %vm1244_vm6, %v25076_v28  ;;  %16606 = vmatmul.mubr.msk.bf16.gmra.mrb[4].mxu0 %vm1244_vm6, %v24964_v38 }
 0x3aa   : > { %15775 = vmatprep.mubr.msk.bf16.mxu1 %vm1244_vm6, %v25077_v40  ;;  %16609 = vmatprep.mubr.msk.bf16.mxu0 %vm1244_vm6, %v24965_v11  ;;  %v25082_v11 = vld [vmem:[#allocation83_spill] sm:$0xff] }
 0x3b1   : > { %15776 = vmatmul.mubr.msk.bf16.gmra.mrb[24].mxu1 %vm1244_vm6, %v25078_v55  ;;  %16610 = vmatmul.mubr.msk.bf16.gmra.mrb[8].mxu0 %vm1244_vm6, %v24967_v47  ;;  %v4919_v47 = vand.u32 %v4911_v32, %v19787_v2  ;;  %v9630_v32 = vrot.slane %v25028_v56, 6  ;;  %v9636_v56 = vrot.slane %v22098_v60, 7 }
 0x3b2   : > { %15779 = vmatprep.mubr.msk.bf16.mxu1 %vm1244_vm6, %v25079_v20  ;;  %16613 = vmatprep.mubr.msk.bf16.mxu0 %vm1244_vm6, %v24969_v0  ;;  %v25083_v0 = vld [vmem:[#allocation84_spill] sm:$0xff] }
 0x3b9   : > { %15780 = vmatmul.mubr.msk.bf16.gmra.mrb[28].mxu1 %vm1244_vm6, %v25080_v7  ;;  %16614 = vmatmul.mubr.msk.bf16.gmra.mrb[12].mxu0 %vm1244_vm6, %v24971_v54  ;;  %v9631_v54 = vrot.slane %v25029_v48, 7 }
 0x3ba   : > { %15785 = vmatprep.mubr.msk.bf16.mxu1 %vm1244_vm6, %v25081_v57  ;;  %16617 = vmatprep.mubr.msk.bf16.mxu0 %vm1244_vm6, %v24973_v50  ;;  %v9626_v57 = vrot.slane %v22060_v51, 6  ;;  %v9627_v50 = vrot.slane %v25027_v10, 7  ;;  %v25087_v10 = vshrl.u32 %v22083_v34, 16 }
 0x3bb   : > { %v9632_v51 = vor.u32 %v9631_v54, %v9630_v32  ;;  %v10285_v32 = vld [vmem:[#allocation14 + $0x48] sm:$0x3]  ;;  %v25105_v54 = vld [vmem:[#allocation89_spill] sm:$0xff] }
 0x3bd   : > { %v9634_v38 = vrot.slane %v9632_v51, 4 }
 0x3c1   : > { %15786 = vmatmul.mubr.msk.bf16.vlgmr.msra.gmra.mrb[0].mxu1 %vm1244_vm6, %v25082_v11  ;;  %16618 = vmatmul.mubr.msk.bf16.gmra.mrb[16].mxu0 %vm1244_vm6, %v24975_v39  ;;  %v25084_v11 = vld [vmem:[#allocation88_spill] sm:$0xff]  ;;  %v9635_v39 = vrot.slane %v25087_v10, 6  ;;  %v25096_v10 = vld [vmem:[#allocation133_spill] sm:$0xff] }
 0x3c2   : > { %15818 = vmatpush3.bf16.msra.mxu1 %v4708_v22  ;;  %15789 = vmatprep.mubr.msk.bf16.mxu1 %vm1244_vm6, %v25083_v0  ;;  %v25085_v22 = vld [vmem:[#allocation100_spill] sm:$0xff]  ;;  %v25086_v0 = vld [vmem:[#allocation114_spill] sm:$0xff] }
 0x3c3   : > { %16621 = vmatprep.mubr.msk.bf16.mxu0 %vm1244_vm6, %v24977_v23  ;;  %15851 = vmatprep.subr.bf16.mxu1 %v4919_v47  ;;  %v9628_v23 = vor.u32 %v9627_v50, %v9626_v57  ;;  %v9637_v5 = vor.u32 %v9636_v56, %v9635_v39  ;;  %v25094_v39 = vld [vmem:[#allocation128_spill] sm:$0xff]  ;;  %v25095_v57 = vld [vmem:[#allocation155_spill] sm:$0xff] }
 0x3c4   : > { %v25098_v56 = vld [vmem:[#allocation47_spill] sm:$0xff] }
 0x3c5   : > { %v9629_v48 = vrot.slane %v9628_v23, 4  ;;  %v9638_v60 = vsel %vm20794_vm13, %v9634_v38, %v9637_v5  ;;  %v25097_v5 = vld [vmem:[#allocation38_spill] sm:$0xff]  ;;  %v5128_v38 = vld [vmem:[#allocation14 + $0x18] sm:$0x3] }
 0x3c7   : > { %v9633_v50 = vsel %vm20794_vm13, %v9629_v48, %v9632_v51  ;;  %v10293_v51 = vand.u32 %v10285_v32, %v19787_v2  ;;  %v25099_v48 = vld [vmem:[#allocation53_spill] sm:$0xff]  ;;  %v25102_v32 = vld [vmem:[#allocation51_spill] sm:$0xff] }
 0x3c8   : > { %v22538_v23 = vcombine.low %v9633_v50, %v9638_v60  ;;  %v25100_v50 = vld [vmem:[#allocation49_spill] sm:$0xff]  ;;  %v25101_v60 = vld [vmem:[#allocation78_spill] sm:$0xff] }
 0x3c9   : > { %15790 = vmatmul.mubr.msk.bf16.gmra.mrb[4].mxu1 %vm1244_vm6, %v25084_v11  ;;  %16622 = vmatmul.mubr.msk.bf16.gmra.mrb[20].mxu0 %vm1244_vm6, %v24979_v31  ;;  %v25088_v11 = vld [vmem:[#allocation112_spill] sm:$0xff]  ;;  %v25089_v31 = vld [vmem:[#allocation119_spill] sm:$0xff] }
 0x3ca   : > { %15793 = vmatprep.mubr.msk.bf16.mxu1 %vm1244_vm6, %v25085_v22  ;;  %16625 = vmatprep.mubr.msk.bf16.mxu0 %vm1244_vm6, %v25086_v0  ;;  %v25090_v22 = vld [vmem:[#allocation121_spill] sm:$0xff]  ;;  %v25091_v0 = vld [vmem:[#allocation126_spill] sm:$0xff]  ;;  %25093 = vst [vmem:[#allocation37_spill] sm:$0xff] %v22538_v23 }
 0x3d1   : > { %15794 = vmatmul.mubr.msk.bf16.gmra.mrb[8].mxu1 %vm1244_vm6, %v25088_v11  ;;  %16626 = vmatmul.mubr.msk.bf16.gmra.mrb[24].mxu0 %vm1244_vm6, %v25089_v31 }
 0x3d2   : > { %15797 = vmatprep.mubr.msk.bf16.mxu1 %vm1244_vm6, %v25090_v22  ;;  %16629 = vmatprep.mubr.msk.bf16.mxu0 %vm1244_vm6, %v25091_v0  ;;  %v25118_v0 = vld [vmem:[#allocation137_spill] sm:$0xff] }
 0x3d9   : > { %15798 = vmatmul.mubr.msk.bf16.gmra.mrb[12].mxu1 %vm1244_vm6, %v25094_v39  ;;  %16630 = vmatmul.mubr.msk.bf16.gmra.mrb[28].mxu0 %vm1244_vm6, %v22538_v23  ;;  %v25106_v23 = vld [vmem:[#allocation52_spill] sm:$0xff] }
 0x3da   : > { %15801 = vmatprep.mubr.msk.bf16.mxu1 %vm1244_vm6, %v25095_v57  ;;  %16635 = vmatprep.mubr.msk.bf16.mxu0 %vm1244_vm6, %v24990_v49 }
 0x3e1   : > { %15802 = vmatmul.mubr.msk.bf16.gmra.mrb[16].mxu1 %vm1244_vm6, %v25096_v10  ;;  %16636 = vmatmul.mubr.msk.bf16.vlgmr.msra.gmra.mrb[0].mxu0 %vm1244_vm6, %v24993_v15 }
 0x3e2   : > { %16668 = vmatpush3.bf16.msra.mxu0 %v10065_v25  ;;  %15805 = vmatprep.mubr.msk.bf16.mxu1 %vm1244_vm6, %v24980_v61  ;;  %v5136_v25 = vand.u32 %v5128_v38, %v19787_v2 }
 0x3e3   : > { %16639 = vmatprep.mubr.msk.bf16.mxu0 %vm1244_vm6, %v24994_v21  ;;  %16701 = vmatprep.subr.bf16.mxu0 %v10293_v51 }
 0x3e9   : > { %15806 = vmatmul.mubr.msk.bf16.gmra.mrb[20].mxu1 %vm1244_vm6, %v24981_v9  ;;  %16640 = vmatmul.mubr.msk.bf16.gmra.mrb[4].mxu0 %vm1244_vm6, %v24996_v46 }
 0x3ea   : > { %15809 = vmatprep.mubr.msk.bf16.mxu1 %vm1244_vm6, %v24984_v16  ;;  %16643 = vmatprep.mubr.msk.bf16.mxu0 %vm1244_vm6, %v24997_v18 }
 0x3f1   : > { %15810 = vmatmul.mubr.msk.bf16.gmra.mrb[24].mxu1 %vm1244_vm6, %v24985_v27  ;;  %16644 = vmatmul.mubr.msk.bf16.gmra.mrb[8].mxu0 %vm1244_vm6, %v24998_v1 }
 0x3f2   : > { %15813 = vmatprep.mubr.msk.bf16.mxu1 %vm1244_vm6, %v24989_v36  ;;  %16647 = vmatprep.mubr.msk.bf16.mxu0 %vm1244_vm6, %v24999_v35 }
 0x3f9   : > { %15814 = vmatmul.mubr.msk.bf16.gmra.mrb[28].mxu1 %vm1244_vm6, %v22214_v30  ;;  %16648 = vmatmul.mubr.msk.bf16.gmra.mrb[12].mxu0 %vm1244_vm6, %v25000_v53 }
 0x3fa   : > { %15819 = vmatprep.mubr.msk.bf16.mxu1 %vm1244_vm6, %v25097_v5  ;;  %16651 = vmatprep.mubr.msk.bf16.mxu0 %vm1244_vm6, %v21614_v12  ;;  %v14311_v5 = vrot.slane %v21955_v14, 11 }
 0x401   : > { %15820 = vmatmul.mubr.msk.bf16.vlgmr.msra.gmra.mrb[0].mxu1 %vm1244_vm6, %v25098_v56  ;;  %16652 = vmatmul.mubr.msk.bf16.gmra.mrb[16].mxu0 %vm1244_vm6, %v21642_v19  ;;  %v25103_v56 = vld [vmem:[#allocation85_spill] sm:$0xff] }
 0x402   : > { %15852 = vmatpush3.bf16.msra.mxu1 %v4919_v47  ;;  %15823 = vmatprep.mubr.msk.bf16.mxu1 %vm1244_vm6, %v25099_v48  ;;  %v9845_v47 = vrot.slane %v21958_v62, 7  ;;  %v9848_v48 = vrot.slane %v22083_v34, 7  ;;  %v25109_v34 = vld [vmem:[#allocation95_spill] sm:$0xff] }
 0x403   : > { %16655 = vmatprep.mubr.msk.bf16.mxu0 %vm1244_vm6, %v21665_v24  ;;  %15885 = vmatprep.subr.bf16.mxu1 %v5136_v25 }
 0x404   : > { %v9847_v38 = vrot.slane %v9845_v47, 4  ;;  %v9846_v62 = vsel %vm21300_vm3, %v14311_v5, %v9845_v47  ;;  %v25111_v5 = vld [vmem:[#allocation105_spill] sm:$0xff] }
 0x406   : > { %v9849_v14 = vsel %vm21300_vm3, %v9847_v38, %v9848_v48  ;;  %v25112_v48 = vld [vmem:[#allocation134_spill] sm:$0xff]  ;;  %v25113_v38 = vld [vmem:[#allocation136_spill] sm:$0xff] }
 0x407   : > { %v22613_v31 = vcombine.low %v9846_v62, %v9849_v14  ;;  %v25116_v62 = vld [vmem:[#allocation132_spill] sm:$0xff]  ;;  %v25117_v14 = vld [vmem:[#allocation159_spill] sm:$0xff] }
 0x409   : > { %15824 = vmatmul.mubr.msk.bf16.gmra.mrb[4].mxu1 %vm1244_vm6, %v24847_v37  ;;  %16656 = vmatmul.mubr.msk.bf16.gmra.mrb[20].mxu0 %vm1244_vm6, %v25100_v50  ;;  %v25104_v37 = vld [vmem:[#allocation50_spill] sm:$0xff]  ;;  %25108 = vst [vmem:[#allocation39_spill] sm:$0xff] %v22613_v31 }
 0x40a   : > { %15827 = vmatprep.mubr.msk.bf16.mxu1 %vm1244_vm6, %v25101_v60  ;;  %16659 = vmatprep.mubr.msk.bf16.mxu0 %vm1244_vm6, %v25102_v32 }
 0x411   : > { %15828 = vmatmul.mubr.msk.bf16.gmra.mrb[8].mxu1 %vm1244_vm6, %v25103_v56  ;;  %16660 = vmatmul.mubr.msk.bf16.gmra.mrb[24].mxu0 %vm1244_vm6, %v25104_v37  ;;  %v25110_v37 = vld [vmem:[#allocation102_spill] sm:$0xff] }
 0x412   : > { %15831 = vmatprep.mubr.msk.bf16.mxu1 %vm1244_vm6, %v25105_v54  ;;  %16663 = vmatprep.mubr.msk.bf16.mxu0 %vm1244_vm6, %v25106_v23  ;;  %v10497_v23 = vld [vmem:[#allocation14 + $0x4a] sm:$0x3] }
 0x413   : > { %v10505_v47 = vand.u32 %v10497_v23, %v19787_v2  ;;  %v25114_v23 = vld [vmem:[#allocation124_spill] sm:$0xff] }
 0x419   : > { %15832 = vmatmul.mubr.msk.bf16.gmra.mrb[12].mxu1 %vm1244_vm6, %v25109_v34  ;;  %16664 = vmatmul.mubr.msk.bf16.gmra.mrb[28].mxu0 %vm1244_vm6, %v22613_v31  ;;  %v5339_v31 = vld [vmem:[#allocation14 + $0x1a] sm:$0x3] }
 0x41a   : > { %15835 = vmatprep.mubr.msk.bf16.mxu1 %vm1244_vm6, %v25110_v37  ;;  %16669 = vmatprep.mubr.msk.bf16.mxu0 %vm1244_vm6, %v25032_v52 }
 0x421   : > { %15836 = vmatmul.mubr.msk.bf16.gmra.mrb[16].mxu1 %vm1244_vm6, %v25111_v5  ;;  %16670 = vmatmul.mubr.msk.bf16.vlgmr.msra.gmra.mrb[0].mxu0 %vm1244_vm6, %v25035_v33 }
 0x422   : > { %16702 = vmatpush3.bf16.msra.mxu0 %v10293_v51  ;;  %15839 = vmatprep.mubr.msk.bf16.mxu1 %vm1244_vm6, %v25112_v48  ;;  %v25115_v51 = vld [vmem:[#allocation129_spill] sm:$0xff] }
 0x423   : > { %16673 = vmatprep.mubr.msk.bf16.mxu0 %vm1244_vm6, %v25036_v3  ;;  %16735 = vmatprep.subr.bf16.mxu0 %v10505_v47 }
 0x429   : > { %15840 = vmatmul.mubr.msk.bf16.gmra.mrb[20].mxu1 %vm1244_vm6, %v25113_v38  ;;  %16674 = vmatmul.mubr.msk.bf16.gmra.mrb[4].mxu0 %vm1244_vm6, %v25038_v29  ;;  %v25145_v29 = vld [vmem:[#allocation67_spill] sm:$0xff] }
 0x42a   : > { %15843 = vmatprep.mubr.msk.bf16.mxu1 %vm1244_vm6, %v25114_v23  ;;  %16677 = vmatprep.mubr.msk.bf16.mxu0 %vm1244_vm6, %v25039_v43  ;;  %v25119_v43 = vld [vmem:[#allocation141_spill] sm:$0xff] }
 0x431   : > { %15844 = vmatmul.mubr.msk.bf16.gmra.mrb[24].mxu1 %vm1244_vm6, %v25115_v51  ;;  %16678 = vmatmul.mubr.msk.bf16.gmra.mrb[8].mxu0 %vm1244_vm6, %v25041_v63  ;;  %v5347_v63 = vand.u32 %v5339_v31, %v19787_v2  ;;  %v25123_v31 = vld [vmem:[#allocation116_spill] sm:$0xff] }
 0x432   : > { %15847 = vmatprep.mubr.msk.bf16.mxu1 %vm1244_vm6, %v25116_v62  ;;  %16681 = vmatprep.mubr.msk.bf16.mxu0 %vm1244_vm6, %v25043_v42  ;;  %v25120_v42 = vld [vmem:[#allocation107_spill] sm:$0xff] }
 0x439   : > { %15848 = vmatmul.mubr.msk.bf16.gmra.mrb[28].mxu1 %vm1244_vm6, %v25117_v14  ;;  %16682 = vmatmul.mubr.msk.bf16.gmra.mrb[12].mxu0 %vm1244_vm6, %v25045_v17 }
 0x43a   : > { %15853 = vmatprep.mubr.msk.bf16.mxu1 %vm1244_vm6, %v25118_v0  ;;  %16685 = vmatprep.mubr.msk.bf16.mxu0 %vm1244_vm6, %v25047_v58  ;;  %v25121_v0 = vld [vmem:[#allocation108_spill] sm:$0xff]  ;;  %v25122_v58 = vld [vmem:[#allocation142_spill] sm:$0xff] }
 0x441   : > { %15854 = vmatmul.mubr.msk.bf16.vlgmr.msra.gmra.mrb[0].mxu1 %vm1244_vm6, %v25119_v43  ;;  %16686 = vmatmul.mubr.msk.bf16.gmra.mrb[16].mxu0 %vm1244_vm6, %v25049_v26  ;;  %v25124_v43 = vld [vmem:[#allocation144_spill] sm:$0xff] }
 0x442   : > { %15886 = vmatpush3.bf16.msra.mxu1 %v5136_v25  ;;  %15857 = vmatprep.mubr.msk.bf16.mxu1 %vm1244_vm6, %v25120_v42  ;;  %v25125_v25 = vld [vmem:[#allocation122_spill] sm:$0xff]  ;;  %v25126_v42 = vld [vmem:[#allocation143_spill] sm:$0xff]  ;;  %v25128_v26 = vld [vmem:[#allocation140_spill] sm:$0xff] }
 0x443   : > { %16689 = vmatprep.mubr.msk.bf16.mxu0 %vm1244_vm6, %v25051_v41  ;;  %15919 = vmatprep.subr.bf16.mxu1 %v5347_v63  ;;  %v25127_v41 = vld [vmem:[#allocation131_spill] sm:$0xff] }
 0x449   : > { %15858 = vmatmul.mubr.msk.bf16.gmra.mrb[4].mxu1 %vm1244_vm6, %v25121_v0  ;;  %16690 = vmatmul.mubr.msk.bf16.gmra.mrb[20].mxu0 %vm1244_vm6, %v25122_v58  ;;  %v22682_v0 = vld [vmem:[%s19773_s22] sm:$0xf]  ;;  %v22685_v58 = vld [vmem:[%s19773_s22 + $0x4] sm:$0xf] }
 0x44a   : > { %15861 = vmatprep.mubr.msk.bf16.mxu1 %vm1244_vm6, %v25123_v31  ;;  %16693 = vmatprep.mubr.msk.bf16.mxu0 %vm1244_vm6, %v25124_v43  ;;  %v22689_v17 = vcombine.low %v22682_v0, %v22685_v58  ;;  %v25130_v43 = vld [vmem:[#allocation138_spill] sm:$0xff]  ;;  %v25133_v31 = vld [vmem:[#allocation151_spill] sm:$0xff] }
 0x44c   : > { %25129 = vst [vmem:[#allocation91_spill] sm:$0xff] %v22689_v17 }
 0x451   : > { %15862 = vmatmul.mubr.msk.bf16.gmra.mrb[8].mxu1 %vm1244_vm6, %v25125_v25  ;;  %16694 = vmatmul.mubr.msk.bf16.gmra.mrb[24].mxu0 %vm1244_vm6, %v25126_v42  ;;  %v25131_v42 = vld [vmem:[#allocation147_spill] sm:$0xff] }
 0x452   : > { %15865 = vmatprep.mubr.msk.bf16.mxu1 %vm1244_vm6, %v25127_v41  ;;  %16697 = vmatprep.mubr.msk.bf16.mxu0 %vm1244_vm6, %v25128_v26  ;;  %v25132_v41 = vld [vmem:[#allocation90_spill] sm:$0xff]  ;;  %v10716_v26 = vld [vmem:[#allocation14 + $0x4c] sm:$0x3] }
 0x453   : > { %v10724_v25 = vand.u32 %v10716_v26, %v19787_v2  ;;  %v25137_v26 = vld [vmem:[#allocation164_spill] sm:$0xff] }
 0x459   : > { %15866 = vmatmul.mubr.msk.bf16.gmra.mrb[12].mxu1 %vm1244_vm6, %v25130_v43  ;;  %16698 = vmatmul.mubr.msk.bf16.gmra.mrb[28].mxu0 %vm1244_vm6, %v22689_v17  ;;  %v25134_v43 = vld [vmem:[#allocation154_spill] sm:$0xff]  ;;  %v25135_v17 = vld [vmem:[#allocation103_spill] sm:$0xff] }
 0x45a   : > { %15869 = vmatprep.mubr.msk.bf16.mxu1 %vm1244_vm6, %v25131_v42  ;;  %16703 = vmatprep.mubr.msk.bf16.mxu0 %vm1244_vm6, %v25132_v41  ;;  %v25136_v42 = vld [vmem:[#allocation35_spill] sm:$0xff]  ;;  %v25142_v41 = vld [vmem:[#allocation145_spill] sm:$0xff] }
 0x461   : > { %15870 = vmatmul.mubr.msk.bf16.gmra.mrb[16].mxu1 %vm1244_vm6, %v25133_v31  ;;  %16704 = vmatmul.mubr.msk.bf16.vlgmr.msra.gmra.mrb[0].mxu0 %vm1244_vm6, %v25065_v6  ;;  %v25140_v6 = vld [vmem:[#allocation172_spill] sm:$0xff] }
 0x462   : > { %16736 = vmatpush3.bf16.msra.mxu0 %v10505_v47  ;;  %15873 = vmatprep.mubr.msk.bf16.mxu1 %vm1244_vm6, %v25134_v43  ;;  %v25138_v47 = vld [vmem:[#allocation166_spill] sm:$0xff] }
 0x463   : > { %16707 = vmatprep.mubr.msk.bf16.mxu0 %vm1244_vm6, %v25135_v17  ;;  %16769 = vmatprep.subr.bf16.mxu0 %v10724_v25  ;;  %v25139_v17 = vld [vmem:[#allocation171_spill] sm:$0xff] }
 0x469   : > { %15874 = vmatmul.mubr.msk.bf16.gmra.mrb[20].mxu1 %vm1244_vm6, %v25136_v42  ;;  %16708 = vmatmul.mubr.msk.bf16.gmra.mrb[4].mxu0 %vm1244_vm6, %v25071_v13  ;;  %v25141_v13 = vld [vmem:[#allocation135_spill] sm:$0xff] }
 0x46a   : > { %15877 = vmatprep.mubr.msk.bf16.mxu1 %vm1244_vm6, %v25137_v26  ;;  %16711 = vmatprep.mubr.msk.bf16.mxu0 %vm1244_vm6, %v25072_v4  ;;  %v5543_v4 = vld [vmem:[#allocation14 + $0x1c] sm:$0x3] }
 0x471   : > { %15878 = vmatmul.mubr.msk.bf16.gmra.mrb[24].mxu1 %vm1244_vm6, %v25138_v47  ;;  %16712 = vmatmul.mubr.msk.bf16.gmra.mrb[8].mxu0 %vm1244_vm6, %v25074_v8  ;;  %v5553_v8 = vand.u32 %v5543_v4, %v19787_v2  ;;  %v22749_v4 = vshrl.u32 %v22685_v58, 16 }
 0x472   : > { %15881 = vmatprep.mubr.msk.bf16.mxu1 %vm1244_vm6, %v25139_v17  ;;  %16715 = vmatprep.mubr.msk.bf16.mxu0 %vm1244_vm6, %v25075_v44  ;;  %v25143_v44 = vld [vmem:[#allocation54_spill] sm:$0xff] }
 0x479   : > { %15882 = vmatmul.mubr.msk.bf16.gmra.mrb[28].mxu1 %vm1244_vm6, %v25140_v6  ;;  %16716 = vmatmul.mubr.msk.bf16.gmra.mrb[12].mxu0 %vm1244_vm6, %v25076_v28  ;;  %v22740_v28 = vshrl.u32 %v22682_v0, 16  ;;  %v22758_v6 = vld [vmem:[%s19773_s22 + $0x8] sm:$0x7] }
 0x47a   : > { %15887 = vmatprep.mubr.msk.bf16.mxu1 %vm1244_vm6, %v25141_v13  ;;  %16719 = vmatprep.mubr.msk.bf16.mxu0 %vm1244_vm6, %v25077_v40  ;;  %v22743_v13 = vshll.u32 %v22682_v0, 16  ;;  %v22746_v40 = vshll.u32 %v22685_v58, 16  ;;  %v22769_v26 = vshll.u32 %v22758_v6, 16 }
 0x47c   : > { %v10282_v31 = vrot.slane %v22769_v26, 5 }
 0x481   : > { %15888 = vmatmul.mubr.msk.bf16.vlgmr.msra.gmra.mrb[0].mxu1 %vm1244_vm6, %v25142_v41  ;;  %16720 = vmatmul.mubr.msk.bf16.gmra.mrb[16].mxu0 %vm1244_vm6, %v25078_v55  ;;  %v10272_v41 = vrot.slane %v22746_v40, 5  ;;  %v10276_v55 = vrot.slane %v22749_v4, 4 }
 0x482   : > { %15920 = vmatpush3.bf16.msra.mxu1 %v5347_v63  ;;  %15891 = vmatprep.mubr.msk.bf16.mxu1 %vm1244_vm6, %v25143_v44  ;;  %v10263_v63 = vrot.slane %v22740_v28, 4  ;;  %v10266_v44 = vrot.slane %v22743_v13, 5 }
 0x483   : > { %16723 = vmatprep.mubr.msk.bf16.mxu0 %vm1244_vm6, %v25079_v20  ;;  %15953 = vmatprep.subr.bf16.mxu1 %v5553_v8  ;;  %v25144_v20 = vld [vmem:[#allocation64_spill] sm:$0xff]  ;;  %v10277_v47 = vor.u32 %v10276_v55, %v10272_v41 }
 0x484   : > { %v10267_v17 = vor.u32 %v10266_v44, %v10263_v63  ;;  %v25151_v63 = vld [vmem:[#allocation71_spill] sm:$0xff]  ;;  %v25161_v44 = vld [vmem:[#allocation93_spill] sm:$0xff] }
 0x485   : > { %v10278_v43 = vrot.slane %v10277_v47, 4 }
 0x486   : > { %v10268_v42 = vrot.slane %v10267_v17, 4 }
 0x487   : > { %v10283_v17 = vsel %vm19848_vm7, %v10278_v43, %v10282_v31  ;;  %v25155_v43 = vld [vmem:[#allocation77_spill] sm:$0xff] }
 0x488   : > { %v10273_v55 = vsel %vm19848_vm7, %v10268_v42, %v10272_v41  ;;  %v25154_v41 = vld [vmem:[#allocation75_spill] sm:$0xff]  ;;  %v25156_v31 = vld [vmem:[#allocation81_spill] sm:$0xff] }
 0x489   : > { %15892 = vmatmul.mubr.msk.bf16.gmra.mrb[4].mxu1 %vm1244_vm6, %v25073_v45  ;;  %16724 = vmatmul.mubr.msk.bf16.gmra.mrb[20].mxu0 %vm1244_vm6, %v25080_v7  ;;  %v25146_v45 = vld [vmem:[#allocation63_spill] sm:$0xff]  ;;  %v25147_v7 = vld [vmem:[#allocation70_spill] sm:$0xff]  ;;  %v22784_v47 = vcombine.low %v10273_v55, %v10283_v17 }
 0x48a   : > { %15895 = vmatprep.mubr.msk.bf16.mxu1 %vm1244_vm6, %v24961_v59  ;;  %16727 = vmatprep.mubr.msk.bf16.mxu0 %vm1244_vm6, %v25144_v20  ;;  %v25148_v59 = vld [vmem:[#allocation65_spill] sm:$0xff]  ;;  %v25153_v20 = vld [vmem:[#allocation100_spill] sm:$0xff]  ;;  %v25159_v55 = vld [vmem:[#allocation98_spill] sm:$0xff] }
 0x48b   : > { %25150 = vst [vmem:[#allocation150_spill] sm:$0xff] %v22784_v47  ;;  %v25160_v17 = vld [vmem:[#allocation114_spill] sm:$0xff] }
 0x491   : > { %15896 = vmatmul.mubr.msk.bf16.gmra.mrb[8].mxu1 %vm1244_vm6, %v25145_v29  ;;  %16728 = vmatmul.mubr.msk.bf16.gmra.mrb[24].mxu0 %vm1244_vm6, %v25146_v45  ;;  %v25152_v45 = vld [vmem:[#allocation73_spill] sm:$0xff] }
 0x492   : > { %15899 = vmatprep.mubr.msk.bf16.mxu1 %vm1244_vm6, %v25147_v7  ;;  %16731 = vmatprep.mubr.msk.bf16.mxu0 %vm1244_vm6, %v25148_v59  ;;  %v10927_v59 = vld [vmem:[#allocation14 + $0x4e] sm:$0x3] }
 0x493   : > { %v10935_v42 = vand.u32 %v10927_v59, %v19787_v2  ;;  %v25157_v59 = vld [vmem:[#allocation82_spill] sm:$0xff] }
 0x499   : > { %15900 = vmatmul.mubr.msk.bf16.gmra.mrb[12].mxu1 %vm1244_vm6, %v25151_v63  ;;  %16732 = vmatmul.mubr.msk.bf16.gmra.mrb[28].mxu0 %vm1244_vm6, %v22784_v47  ;;  %v5773_v47 = vld [vmem:[#allocation14 + $0x1e] sm:$0x3] }
 0x49a   : > { %15903 = vmatprep.mubr.msk.bf16.mxu1 %vm1244_vm6, %v25152_v45  ;;  %16737 = vmatprep.mubr.msk.bf16.mxu0 %vm1244_vm6, %v25153_v20 }
 0x4a1   : > { %15904 = vmatmul.mubr.msk.bf16.gmra.mrb[16].mxu1 %vm1244_vm6, %v25154_v41  ;;  %16738 = vmatmul.mubr.msk.bf16.vlgmr.msra.gmra.mrb[0].mxu0 %vm1244_vm6, %v25088_v11 }
 0x4a2   : > { %16770 = vmatpush3.bf16.msra.mxu0 %v10724_v25  ;;  %15907 = vmatprep.mubr.msk.bf16.mxu1 %vm1244_vm6, %v25155_v43  ;;  %v25158_v25 = vld [vmem:[#allocation87_spill] sm:$0xff] }
 0x4a3   : > { %16741 = vmatprep.mubr.msk.bf16.mxu0 %vm1244_vm6, %v25090_v22  ;;  %16803 = vmatprep.subr.bf16.mxu0 %v10935_v42 }
 0x4a9   : > { %15908 = vmatmul.mubr.msk.bf16.gmra.mrb[20].mxu1 %vm1244_vm6, %v25156_v31  ;;  %16742 = vmatmul.mubr.msk.bf16.gmra.mrb[4].mxu0 %vm1244_vm6, %v25094_v39 }
 0x4aa   : > { %15911 = vmatprep.mubr.msk.bf16.mxu1 %vm1244_vm6, %v25157_v59  ;;  %16745 = vmatprep.mubr.msk.bf16.mxu0 %vm1244_vm6, %v25095_v57  ;;  %v25162_v57 = vld [vmem:[#allocation92_spill] sm:$0xff] }
 0x4b1   : > { %15912 = vmatmul.mubr.msk.bf16.gmra.mrb[24].mxu1 %vm1244_vm6, %v25158_v25  ;;  %16746 = vmatmul.mubr.msk.bf16.gmra.mrb[8].mxu0 %vm1244_vm6, %v25096_v10  ;;  %v5781_v10 = vand.u32 %v5773_v47, %v19787_v2  ;;  %v14363_v47 = vrot.slane %v22682_v0, 9 }
 0x4b2   : > { %15915 = vmatprep.mubr.msk.bf16.mxu1 %vm1244_vm6, %v25159_v55  ;;  %16749 = vmatprep.mubr.msk.bf16.mxu0 %vm1244_vm6, %v24980_v61  ;;  %v25163_v61 = vld [vmem:[#allocation127_spill] sm:$0xff] }
 0x4b9   : > { %15916 = vmatmul.mubr.msk.bf16.gmra.mrb[28].mxu1 %vm1244_vm6, %v25160_v17  ;;  %16750 = vmatmul.mubr.msk.bf16.gmra.mrb[12].mxu0 %vm1244_vm6, %v24981_v9 }
 0x4ba   : > { %15921 = vmatprep.mubr.msk.bf16.mxu1 %vm1244_vm6, %v25161_v44  ;;  %16753 = vmatprep.mubr.msk.bf16.mxu0 %vm1244_vm6, %v24984_v16  ;;  %v25164_v44 = vld [vmem:[#allocation113_spill] sm:$0xff] }
 0x4c1   : > { %15922 = vmatmul.mubr.msk.bf16.vlgmr.msra.gmra.mrb[0].mxu1 %vm1244_vm6, %v25162_v57  ;;  %16754 = vmatmul.mubr.msk.bf16.gmra.mrb[16].mxu0 %vm1244_vm6, %v24985_v27  ;;  %v10494_v57 = vrot.slane %v22758_v6, 5 }
 0x4c2   : > { %15954 = vmatpush3.bf16.msra.mxu1 %v5553_v8  ;;  %15925 = vmatprep.mubr.msk.bf16.mxu1 %vm1244_vm6, %v25163_v61  ;;  %v10491_v8 = vrot.slane %v22685_v58, 5 }
 0x4c3   : > { %16757 = vmatprep.mubr.msk.bf16.mxu0 %vm1244_vm6, %v24989_v36  ;;  %15987 = vmatprep.subr.bf16.mxu1 %v5781_v10 }
 0x4c4   : > { %v10493_v61 = vrot.slane %v10491_v8, 4  ;;  %v10492_v36 = vsel %vm20954_vm1, %v14363_v47, %v10491_v8  ;;  %v10701_v47 = vrot.slane %v22743_v13, 6 }
 0x4c6   : > { %v10495_v27 = vsel %vm20954_vm1, %v10493_v61, %v10494_v57  ;;  %v25169_v61 = vld [vmem:[#allocation152_spill] sm:$0xff]  ;;  %v25171_v57 = vld [vmem:[#allocation161_spill] sm:$0xff] }
 0x4c7   : > { %v22859_v16 = vcombine.low %v10492_v36, %v10495_v27  ;;  %v5985_v27 = vld [vmem:[#allocation14 + $0x20] sm:$0x3] }
 0x4c8   : > { %v25170_v36 = vld [vmem:[#allocation157_spill] sm:$0xff] }
 0x4c9   : > { %15926 = vmatmul.mubr.msk.bf16.gmra.mrb[4].mxu1 %vm1244_vm6, %v24990_v49  ;;  %16758 = vmatmul.mubr.msk.bf16.gmra.mrb[20].mxu0 %vm1244_vm6, %v22214_v30  ;;  %v25165_v49 = vld [vmem:[#allocation120_spill] sm:$0xff]  ;;  %v25166_v30 = vld [vmem:[#allocation167_spill] sm:$0xff]  ;;  %25168 = vst [vmem:[#allocation162_spill] sm:$0xff] %v22859_v16 }
 0x4ca   : > { %15929 = vmatprep.mubr.msk.bf16.mxu1 %vm1244_vm6, %v24993_v15  ;;  %16761 = vmatprep.mubr.msk.bf16.mxu0 %vm1244_vm6, %v25164_v44 }
 0x4d1   : > { %15930 = vmatmul.mubr.msk.bf16.gmra.mrb[8].mxu1 %vm1244_vm6, %v24994_v21  ;;  %16762 = vmatmul.mubr.msk.bf16.gmra.mrb[24].mxu0 %vm1244_vm6, %v25165_v49  ;;  %v10712_v49 = vrot.slane %v22769_v26, 6 }
 0x4d2   : > { %15933 = vmatprep.mubr.msk.bf16.mxu1 %vm1244_vm6, %v24996_v46  ;;  %16765 = vmatprep.mubr.msk.bf16.mxu0 %vm1244_vm6, %v25166_v30  ;;  %v11144_v30 = vld [vmem:[#allocation14 + $0x50] sm:$0x3] }
 0x4d3   : > { %v11152_v8 = vand.u32 %v11144_v30, %v19787_v2  ;;  %v5993_v30 = vand.u32 %v5985_v27, %v19787_v2  ;;  %v10705_v27 = vrot.slane %v22746_v40, 6 }
 0x4d9   : > { %15934 = vmatmul.mubr.msk.bf16.gmra.mrb[12].mxu1 %vm1244_vm6, %v24997_v18  ;;  %16766 = vmatmul.mubr.msk.bf16.gmra.mrb[28].mxu0 %vm1244_vm6, %v22859_v16 }
 0x4da   : > { %15937 = vmatprep.mubr.msk.bf16.mxu1 %vm1244_vm6, %v24998_v1  ;;  %16771 = vmatprep.mubr.msk.bf16.mxu0 %vm1244_vm6, %v25101_v60 }
 0x4e1   : > { %15938 = vmatmul.mubr.msk.bf16.gmra.mrb[16].mxu1 %vm1244_vm6, %v24999_v35  ;;  %16772 = vmatmul.mubr.msk.bf16.vlgmr.msra.gmra.mrb[0].mxu0 %vm1244_vm6, %v25103_v56 }
 0x4e2   : > { %16804 = vmatpush3.bf16.msra.mxu0 %v10935_v42  ;;  %15941 = vmatprep.mubr.msk.bf16.mxu1 %vm1244_vm6, %v25000_v53  ;;  %v10700_v42 = vrot.slane %v22740_v28, 5 }
 0x4e3   : > { %16775 = vmatprep.mubr.msk.bf16.mxu0 %vm1244_vm6, %v25105_v54  ;;  %16837 = vmatprep.subr.bf16.mxu0 %v11152_v8 }
 0x4e9   : > { %15942 = vmatmul.mubr.msk.bf16.gmra.mrb[20].mxu1 %vm1244_vm6, %v21614_v12  ;;  %16776 = vmatmul.mubr.msk.bf16.gmra.mrb[4].mxu0 %vm1244_vm6, %v25109_v34 }
 0x4ea   : > { %15945 = vmatprep.mubr.msk.bf16.mxu1 %vm1244_vm6, %v21642_v19  ;;  %16779 = vmatprep.mubr.msk.bf16.mxu0 %vm1244_vm6, %v25110_v37 }
 0x4f1   : > { %15946 = vmatmul.mubr.msk.bf16.gmra.mrb[24].mxu1 %vm1244_vm6, %v21665_v24  ;;  %16780 = vmatmul.mubr.msk.bf16.gmra.mrb[8].mxu0 %vm1244_vm6, %v25111_v5 }
 0x4f2   : > { %15949 = vmatprep.mubr.msk.bf16.mxu1 %vm1244_vm6, %v25100_v50  ;;  %16783 = vmatprep.mubr.msk.bf16.mxu0 %vm1244_vm6, %v25112_v48 }
 0x4f9   : > { %15950 = vmatmul.mubr.msk.bf16.gmra.mrb[28].mxu1 %vm1244_vm6, %v25102_v32  ;;  %16784 = vmatmul.mubr.msk.bf16.gmra.mrb[12].mxu0 %vm1244_vm6, %v25113_v38 }
 0x4fa   : > { %15955 = vmatprep.mubr.msk.bf16.mxu1 %vm1244_vm6, %v25169_v61  ;;  %16787 = vmatprep.mubr.msk.bf16.mxu0 %vm1244_vm6, %v25114_v23  ;;  %v10704_v61 = vrot.slane %v22749_v4, 5 }
 0x4fc   : > { %v10706_v44 = vor.u32 %v10705_v27, %v10704_v61  ;;  %v25180_v27 = vld [vmem:[#allocation116_spill] sm:$0xff] }
 0x501   : > { %15956 = vmatmul.mubr.msk.bf16.vlgmr.msra.gmra.mrb[0].mxu1 %vm1244_vm6, %v25170_v36  ;;  %16788 = vmatmul.mubr.msk.bf16.gmra.mrb[16].mxu0 %vm1244_vm6, %v25115_v51  ;;  %v24437_v36 = vshrl.u32 %v22758_v6, 16  ;;  %v10708_v51 = vrot.slane %v10706_v44, 4 }
 0x502   : > { %15988 = vmatpush3.bf16.msra.mxu1 %v5781_v10  ;;  %15959 = vmatprep.mubr.msk.bf16.mxu1 %vm1244_vm6, %v25171_v57  ;;  %v25172_v10 = vld [vmem:[#allocation158_spill] sm:$0xff]  ;;  %v10702_v57 = vor.u32 %v10701_v47, %v10700_v42 }
 0x503   : > { %16791 = vmatprep.mubr.msk.bf16.mxu0 %vm1244_vm6, %v25116_v62  ;;  %16021 = vmatprep.subr.bf16.mxu1 %v5993_v30  ;;  %v10711_v16 = vrot.slane %v24437_v36, 5  ;;  %v11355_v36 = vld [vmem:[#allocation14 + $0x52] sm:$0x3]  ;;  %v25186_v42 = vld [vmem:[#allocation138_spill] sm:$0xff] }
 0x504   : > { %v10703_v62 = vrot.slane %v10702_v57, 4 }
 0x505   : > { %v10713_v23 = vor.u32 %v10712_v49, %v10711_v16  ;;  %v25178_v16 = vld [vmem:[#allocation43_spill] sm:$0xff]  ;;  %v25179_v49 = vld [vmem:[#allocation46_spill] sm:$0xff] }
 0x506   : > { %v10707_v47 = vsel %vm19877_vm8, %v10703_v62, %v10706_v44  ;;  %v11363_v62 = vand.u32 %v11355_v36, %v19787_v2  ;;  %v25181_v44 = vld [vmem:[#allocation55_spill] sm:$0xff]  ;;  %v25187_v36 = vld [vmem:[#allocation61_spill] sm:$0xff] }
 0x507   : > { %v10714_v57 = vsel %vm19877_vm8, %v10708_v51, %v10713_v23  ;;  %v25182_v23 = vld [vmem:[#allocation122_spill] sm:$0xff]  ;;  %v25183_v51 = vld [vmem:[#allocation56_spill] sm:$0xff] }
 0x508   : > { %v22939_v61 = vcombine.low %v10707_v47, %v10714_v57  ;;  %v25184_v47 = vld [vmem:[#allocation131_spill] sm:$0xff]  ;;  %v25185_v57 = vld [vmem:[#allocation66_spill] sm:$0xff] }
 0x509   : > { %15960 = vmatmul.mubr.msk.bf16.gmra.mrb[4].mxu1 %vm1244_vm6, %v25032_v52  ;;  %16792 = vmatmul.mubr.msk.bf16.gmra.mrb[20].mxu0 %vm1244_vm6, %v25117_v14  ;;  %v25173_v52 = vld [vmem:[#allocation174_spill] sm:$0xff]  ;;  %v25174_v14 = vld [vmem:[#allocation173_spill] sm:$0xff] }
 0x50a   : > { %15963 = vmatprep.mubr.msk.bf16.mxu1 %vm1244_vm6, %v25035_v33  ;;  %16795 = vmatprep.mubr.msk.bf16.mxu0 %vm1244_vm6, %v25172_v10  ;;  %v25175_v10 = vld [vmem:[#allocation176_spill] sm:$0xff]  ;;  %25177 = vst [vmem:[#allocation97_spill] sm:$0xff] %v22939_v61 }
 0x511   : > { %15964 = vmatmul.mubr.msk.bf16.gmra.mrb[8].mxu1 %vm1244_vm6, %v25036_v3  ;;  %16796 = vmatmul.mubr.msk.bf16.gmra.mrb[24].mxu0 %vm1244_vm6, %v25173_v52  ;;  %v25191_v52 = vld [vmem:[#allocation142_spill] sm:$0xff] }
 0x512   : > { %15967 = vmatprep.mubr.msk.bf16.mxu1 %vm1244_vm6, %v25174_v14  ;;  %16799 = vmatprep.mubr.msk.bf16.mxu0 %vm1244_vm6, %v25175_v10  ;;  %v25190_v10 = vld [vmem:[#allocation151_spill] sm:$0xff] }
 0x519   : > { %15968 = vmatmul.mubr.msk.bf16.gmra.mrb[12].mxu1 %vm1244_vm6, %v25178_v16  ;;  %16800 = vmatmul.mubr.msk.bf16.gmra.mrb[28].mxu0 %vm1244_vm6, %v22939_v61  ;;  %v25188_v61 = vld [vmem:[#allocation147_spill] sm:$0xff] }
 0x51a   : > { %15971 = vmatprep.mubr.msk.bf16.mxu1 %vm1244_vm6, %v25179_v49  ;;  %16805 = vmatprep.mubr.msk.bf16.mxu0 %vm1244_vm6, %v25180_v27  ;;  %v25195_v27 = vld [vmem:[#allocation72_spill] sm:$0xff]  ;;  %v25211_v49 = vld [vmem:[#allocation109_spill] sm:$0xff] }
 0x521   : > { %15972 = vmatmul.mubr.msk.bf16.gmra.mrb[16].mxu1 %vm1244_vm6, %v25181_v44  ;;  %16806 = vmatmul.mubr.msk.bf16.vlgmr.msra.gmra.mrb[0].mxu0 %vm1244_vm6, %v25182_v23  ;;  %v25193_v23 = vld [vmem:[#allocation144_spill] sm:$0xff] }
 0x522   : > { %16838 = vmatpush3.bf16.msra.mxu0 %v11152_v8  ;;  %15975 = vmatprep.mubr.msk.bf16.mxu1 %vm1244_vm6, %v25183_v51  ;;  %v25189_v8 = vld [vmem:[#allocation68_spill] sm:$0xff] }
 0x523   : > { %16809 = vmatprep.mubr.msk.bf16.mxu0 %vm1244_vm6, %v25184_v47  ;;  %16871 = vmatprep.subr.bf16.mxu0 %v11363_v62  ;;  %v25192_v47 = vld [vmem:[#allocation154_spill] sm:$0xff] }
 0x529   : > { %15976 = vmatmul.mubr.msk.bf16.gmra.mrb[20].mxu1 %vm1244_vm6, %v25185_v57  ;;  %16810 = vmatmul.mubr.msk.bf16.gmra.mrb[4].mxu0 %vm1244_vm6, %v25186_v42  ;;  %v25194_v42 = vld [vmem:[#allocation35_spill] sm:$0xff] }
 0x52a   : > { %15979 = vmatprep.mubr.msk.bf16.mxu1 %vm1244_vm6, %v25187_v36  ;;  %16813 = vmatprep.mubr.msk.bf16.mxu0 %vm1244_vm6, %v25188_v61  ;;  %v25196_v61 = vld [vmem:[#allocation164_spill] sm:$0xff]  ;;  %v25197_v36 = vld [vmem:[#allocation79_spill] sm:$0xff] }
 0x531   : > { %15980 = vmatmul.mubr.msk.bf16.gmra.mrb[24].mxu1 %vm1244_vm6, %v25189_v8  ;;  %16814 = vmatmul.mubr.msk.bf16.gmra.mrb[8].mxu0 %vm1244_vm6, %v25190_v10  ;;  %v6204_v8 = vld [vmem:[#allocation14 + $0x22] sm:$0x3] }
 0x532   : > { %15983 = vmatprep.mubr.msk.bf16.mxu1 %vm1244_vm6, %v25191_v52  ;;  %16817 = vmatprep.mubr.msk.bf16.mxu0 %vm1244_vm6, %v25192_v47  ;;  %v6212_v10 = vand.u32 %v6204_v8, %v19787_v2  ;;  %v25198_v52 = vld [vmem:[#allocation166_spill] sm:$0xff]  ;;  %v25203_v8 = vld [vmem:[#allocation96_spill] sm:$0xff] }
 0x533   : > { %v25199_v47 = vld [vmem:[#allocation86_spill] sm:$0xff] }
 0x539   : > { %15984 = vmatmul.mubr.msk.bf16.gmra.mrb[28].mxu1 %vm1244_vm6, %v25193_v23  ;;  %16818 = vmatmul.mubr.msk.bf16.gmra.mrb[12].mxu0 %vm1244_vm6, %v25194_v42  ;;  %v25200_v42 = vld [vmem:[#allocation171_spill] sm:$0xff] }
 0x53a   : > { %15989 = vmatprep.mubr.msk.bf16.mxu1 %vm1244_vm6, %v25195_v27  ;;  %16821 = vmatprep.mubr.msk.bf16.mxu0 %vm1244_vm6, %v25196_v61  ;;  %v25201_v27 = vld [vmem:[#allocation90_spill] sm:$0xff]  ;;  %v25202_v61 = vld [vmem:[#allocation172_spill] sm:$0xff]  ;;  %v25205_v23 = vld [vmem:[#allocation103_spill] sm:$0xff] }
 0x541   : > { %15990 = vmatmul.mubr.msk.bf16.vlgmr.msra.gmra.mrb[0].mxu1 %vm1244_vm6, %v25197_v36  ;;  %16822 = vmatmul.mubr.msk.bf16.gmra.mrb[16].mxu0 %vm1244_vm6, %v25198_v52  ;;  %v25204_v36 = vld [vmem:[#allocation41_spill] sm:$0xff] }
 0x542   : > { %16022 = vmatpush3.bf16.msra.mxu1 %v5993_v30  ;;  %15993 = vmatprep.mubr.msk.bf16.mxu1 %vm1244_vm6, %v25199_v47  ;;  %v10921_v30 = vrot.slane %v22685_v58, 6  ;;  %v14398_v47 = vrot.slane %v22682_v0, 10 }
 0x543   : > { %16825 = vmatprep.mubr.msk.bf16.mxu0 %vm1244_vm6, %v25200_v42  ;;  %16055 = vmatprep.subr.bf16.mxu1 %v6212_v10  ;;  %v10924_v42 = vrot.slane %v22758_v6, 6 }
 0x544   : > { %v10923_v52 = vrot.slane %v10921_v30, 4  ;;  %v10922_v57 = vsel %vm20299_vm10, %v14398_v47, %v10921_v30  ;;  %v25214_v30 = vld [vmem:[#allocation123_spill] sm:$0xff] }
 0x546   : > { %v10925_v51 = vsel %vm20299_vm10, %v10923_v52, %v10924_v42  ;;  %v25215_v52 = vld [vmem:[#allocation130_spill] sm:$0xff]  ;;  %v25216_v42 = vld [vmem:[#allocation139_spill] sm:$0xff] }
 0x547   : > { %v23014_v44 = vcombine.low %v10922_v57, %v10925_v51  ;;  %v25217_v51 = vld [vmem:[#allocation146_spill] sm:$0xff] }
 0x548   : > { %v25219_v57 = vld [vmem:[#allocation62_spill] sm:$0xff] }
 0x549   : > { %15994 = vmatmul.mubr.msk.bf16.gmra.mrb[4].mxu1 %vm1244_vm6, %v25201_v27  ;;  %16826 = vmatmul.mubr.msk.bf16.gmra.mrb[20].mxu0 %vm1244_vm6, %v25202_v61  ;;  %v25206_v27 = vld [vmem:[#allocation42_spill] sm:$0xff]  ;;  %25210 = vst [vmem:[#allocation99_spill] sm:$0xff] %v23014_v44 }
 0x54a   : > { %15997 = vmatprep.mubr.msk.bf16.mxu1 %vm1244_vm6, %v25203_v8  ;;  %16829 = vmatprep.mubr.msk.bf16.mxu0 %vm1244_vm6, %v25204_v36  ;;  %v25207_v61 = vld [vmem:[#allocation106_spill] sm:$0xff]  ;;  %v25221_v36 = vld [vmem:[#allocation83_spill] sm:$0xff] }
 0x54b   : > { %v25208_v8 = vld [vmem:[#allocation178_spill] sm:$0xff] }
 0x551   : > { %15998 = vmatmul.mubr.msk.bf16.gmra.mrb[8].mxu1 %vm1244_vm6, %v25205_v23  ;;  %16830 = vmatmul.mubr.msk.bf16.gmra.mrb[24].mxu0 %vm1244_vm6, %v25206_v27  ;;  %v25212_v27 = vld [vmem:[#allocation115_spill] sm:$0xff] }
 0x552   : > { %16001 = vmatprep.mubr.msk.bf16.mxu1 %vm1244_vm6, %v25207_v61  ;;  %16833 = vmatprep.mubr.msk.bf16.mxu0 %vm1244_vm6, %v25208_v8  ;;  %v25213_v61 = vld [vmem:[#allocation58_spill] sm:$0xff]  ;;  %v11559_v8 = vld [vmem:[#allocation14 + $0x54] sm:$0x3] }
 0x553   : > { %v11569_v47 = vand.u32 %v11559_v8, %v19787_v2  ;;  %v25220_v8 = vld [vmem:[#allocation64_spill] sm:$0xff] }
 0x559   : > { %16002 = vmatmul.mubr.msk.bf16.gmra.mrb[12].mxu1 %vm1244_vm6, %v25211_v49  ;;  %16834 = vmatmul.mubr.msk.bf16.gmra.mrb[28].mxu0 %vm1244_vm6, %v23014_v44  ;;  %v6415_v44 = vld [vmem:[#allocation14 + $0x24] sm:$0x3] }
 0x55a   : > { %16005 = vmatprep.mubr.msk.bf16.mxu1 %vm1244_vm6, %v25212_v27  ;;  %16839 = vmatprep.mubr.msk.bf16.mxu0 %vm1244_vm6, %v25213_v61 }
 0x561   : > { %16006 = vmatmul.mubr.msk.bf16.gmra.mrb[16].mxu1 %vm1244_vm6, %v25214_v30  ;;  %16840 = vmatmul.mubr.msk.bf16.vlgmr.msra.gmra.mrb[0].mxu0 %vm1244_vm6, %v25145_v29 }
 0x562   : > { %16872 = vmatpush3.bf16.msra.mxu0 %v11363_v62  ;;  %16009 = vmatprep.mubr.msk.bf16.mxu1 %vm1244_vm6, %v25215_v52  ;;  %v25218_v62 = vld [vmem:[#allocation153_spill] sm:$0xff] }
 0x563   : > { %16843 = vmatprep.mubr.msk.bf16.mxu0 %vm1244_vm6, %v25147_v7  ;;  %16905 = vmatprep.subr.bf16.mxu0 %v11569_v47 }
 0x569   : > { %16010 = vmatmul.mubr.msk.bf16.gmra.mrb[20].mxu1 %vm1244_vm6, %v25216_v42  ;;  %16844 = vmatmul.mubr.msk.bf16.gmra.mrb[4].mxu0 %vm1244_vm6, %v25151_v63 }
 0x56a   : > { %16013 = vmatprep.mubr.msk.bf16.mxu1 %vm1244_vm6, %v25217_v51  ;;  %16847 = vmatprep.mubr.msk.bf16.mxu0 %vm1244_vm6, %v25152_v45  ;;  %v25222_v45 = vld [vmem:[#allocation84_spill] sm:$0xff] }
 0x571   : > { %16014 = vmatmul.mubr.msk.bf16.gmra.mrb[24].mxu1 %vm1244_vm6, %v25218_v62  ;;  %16848 = vmatmul.mubr.msk.bf16.gmra.mrb[8].mxu0 %vm1244_vm6, %v25154_v41  ;;  %v6423_v41 = vand.u32 %v6415_v44, %v19787_v2  ;;  %v11134_v44 = vrot.slane %v22749_v4, 6  ;;  %v11140_v4 = vrot.slane %v22769_v26, 7 }
 0x572   : > { %16017 = vmatprep.mubr.msk.bf16.mxu1 %vm1244_vm6, %v25219_v57  ;;  %16851 = vmatprep.mubr.msk.bf16.mxu0 %vm1244_vm6, %v25155_v43  ;;  %v25223_v43 = vld [vmem:[#allocation88_spill] sm:$0xff] }
 0x579   : > { %16018 = vmatmul.mubr.msk.bf16.gmra.mrb[28].mxu1 %vm1244_vm6, %v25220_v8  ;;  %16852 = vmatmul.mubr.msk.bf16.gmra.mrb[12].mxu0 %vm1244_vm6, %v25156_v31  ;;  %v11135_v31 = vrot.slane %v22746_v40, 7 }
 0x57a   : > { %16023 = vmatprep.mubr.msk.bf16.mxu1 %vm1244_vm6, %v25221_v36  ;;  %16855 = vmatprep.mubr.msk.bf16.mxu0 %vm1244_vm6, %v25157_v59  ;;  %v11130_v36 = vrot.slane %v22740_v28, 6  ;;  %v11131_v59 = vrot.slane %v22743_v13, 7  ;;  %v25225_v13 = vshrl.u32 %v22758_v6, 16 }
 0x57b   : > { %v11136_v28 = vor.u32 %v11135_v31, %v11134_v44  ;;  %v11789_v44 = vld [vmem:[#allocation14 + $0x56] sm:$0x3]  ;;  %v25239_v31 = vld [vmem:[#allocation53_spill] sm:$0xff] }
 0x581   : > { %16024 = vmatmul.mubr.msk.bf16.vlgmr.msra.gmra.mrb[0].mxu1 %vm1244_vm6, %v25222_v45  ;;  %16856 = vmatmul.mubr.msk.bf16.gmra.mrb[16].mxu0 %vm1244_vm6, %v25158_v25  ;;  %v11139_v45 = vrot.slane %v25225_v13, 6  ;;  %v25232_v13 = vld [vmem:[#allocation160_spill] sm:$0xff] }
 0x582   : > { %16056 = vmatpush3.bf16.msra.mxu1 %v6212_v10  ;;  %16027 = vmatprep.mubr.msk.bf16.mxu1 %vm1244_vm6, %v25223_v43  ;;  %v25224_v10 = vld [vmem:[#allocation119_spill] sm:$0xff]  ;;  %v11132_v43 = vor.u32 %v11131_v59, %v11130_v36  ;;  %v25231_v36 = vld [vmem:[#allocation133_spill] sm:$0xff] }
 0x583   : > { %16859 = vmatprep.mubr.msk.bf16.mxu0 %vm1244_vm6, %v25159_v55  ;;  %16089 = vmatprep.subr.bf16.mxu1 %v6423_v41  ;;  %v11138_v55 = vrot.slane %v11136_v28, 4  ;;  %v11141_v25 = vor.u32 %v11140_v4, %v11139_v45  ;;  %v25230_v45 = vld [vmem:[#allocation155_spill] sm:$0xff]  ;;  %v25236_v4 = vld [vmem:[#allocation94_spill] sm:$0xff] }
 0x584   : > { %v11133_v40 = vrot.slane %v11132_v43, 4 }
 0x585   : > { %v11142_v26 = vsel %vm20794_vm13, %v11138_v55, %v11141_v25  ;;  %v25233_v25 = vld [vmem:[#allocation175_spill] sm:$0xff]  ;;  %v25234_v55 = vld [vmem:[#allocation177_spill] sm:$0xff] }
 0x586   : > { %v11137_v59 = vsel %vm20794_vm13, %v11133_v40, %v11136_v28  ;;  %v11797_v28 = vand.u32 %v11789_v44, %v19787_v2  ;;  %v25237_v40 = vld [vmem:[#allocation113_spill] sm:$0xff] }
 0x587   : > { %v23093_v43 = vcombine.low %v11137_v59, %v11142_v26  ;;  %v25238_v59 = vld [vmem:[#allocation47_spill] sm:$0xff]  ;;  %v6632_v26 = vld [vmem:[#allocation14 + $0x26] sm:$0x3] }
 0x588   : > { %v6640_v44 = vand.u32 %v6632_v26, %v19787_v2  ;;  %v11352_v26 = vrot.slane %v22758_v6, 7  ;;  %v12001_v6 = vld [vmem:[#allocation14 + $0x58] sm:$0x3] }
 0x589   : > { %16028 = vmatmul.mubr.msk.bf16.gmra.mrb[4].mxu1 %vm1244_vm6, %v25153_v20  ;;  %16860 = vmatmul.mubr.msk.bf16.gmra.mrb[20].mxu0 %vm1244_vm6, %v25160_v17  ;;  %v25226_v20 = vld [vmem:[#allocation126_spill] sm:$0xff]  ;;  %25229 = vst [vmem:[#allocation101_spill] sm:$0xff] %v23093_v43 }
 0x58a   : > { %16031 = vmatprep.mubr.msk.bf16.mxu1 %vm1244_vm6, %v25088_v11  ;;  %16863 = vmatprep.mubr.msk.bf16.mxu0 %vm1244_vm6, %v25224_v10  ;;  %v25227_v10 = vld [vmem:[#allocation37_spill] sm:$0xff] }
 0x591   : > { %16032 = vmatmul.mubr.msk.bf16.gmra.mrb[8].mxu1 %vm1244_vm6, %v25090_v22  ;;  %16864 = vmatmul.mubr.msk.bf16.gmra.mrb[24].mxu0 %vm1244_vm6, %v25226_v20  ;;  %v25253_v20 = vld [vmem:[#allocation158_spill] sm:$0xff] }
 0x592   : > { %16035 = vmatprep.mubr.msk.bf16.mxu1 %vm1244_vm6, %v25094_v39  ;;  %16867 = vmatprep.mubr.msk.bf16.mxu0 %vm1244_vm6, %v25227_v10  ;;  %v25243_v10 = vld [vmem:[#allocation39_spill] sm:$0xff] }
 0x599   : > { %16036 = vmatmul.mubr.msk.bf16.gmra.mrb[12].mxu1 %vm1244_vm6, %v25230_v45  ;;  %16868 = vmatmul.mubr.msk.bf16.gmra.mrb[28].mxu0 %vm1244_vm6, %v23093_v43  ;;  %v25240_v43 = vld [vmem:[#allocation69_spill] sm:$0xff] }
 0x59a   : > { %16039 = vmatprep.mubr.msk.bf16.mxu1 %vm1244_vm6, %v25231_v36  ;;  %16873 = vmatprep.mubr.msk.bf16.mxu0 %vm1244_vm6, %v24993_v15 }
 0x5a1   : > { %16040 = vmatmul.mubr.msk.bf16.gmra.mrb[16].mxu1 %vm1244_vm6, %v25232_v13  ;;  %16874 = vmatmul.mubr.msk.bf16.vlgmr.msra.gmra.mrb[0].mxu0 %vm1244_vm6, %v24994_v21 }
 0x5a2   : > { %16906 = vmatpush3.bf16.msra.mxu0 %v11569_v47  ;;  %16043 = vmatprep.mubr.msk.bf16.mxu1 %vm1244_vm6, %v24981_v9  ;;  %v25235_v47 = vld [vmem:[#allocation36_spill] sm:$0xff] }
 0x5a3   : > { %16877 = vmatprep.mubr.msk.bf16.mxu0 %vm1244_vm6, %v24996_v46  ;;  %16939 = vmatprep.subr.bf16.mxu0 %v11797_v28 }
 0x5a9   : > { %16044 = vmatmul.mubr.msk.bf16.gmra.mrb[20].mxu1 %vm1244_vm6, %v25233_v25  ;;  %16878 = vmatmul.mubr.msk.bf16.gmra.mrb[4].mxu0 %vm1244_vm6, %v24997_v18 }
 0x5aa   : > { %16047 = vmatprep.mubr.msk.bf16.mxu1 %vm1244_vm6, %v25234_v55  ;;  %16881 = vmatprep.mubr.msk.bf16.mxu0 %vm1244_vm6, %v24998_v1 }
 0x5b1   : > { %16048 = vmatmul.mubr.msk.bf16.gmra.mrb[24].mxu1 %vm1244_vm6, %v25235_v47  ;;  %16882 = vmatmul.mubr.msk.bf16.gmra.mrb[8].mxu0 %vm1244_vm6, %v24999_v35 }
 0x5b2   : > { %16051 = vmatprep.mubr.msk.bf16.mxu1 %vm1244_vm6, %v25236_v4  ;;  %16885 = vmatprep.mubr.msk.bf16.mxu0 %vm1244_vm6, %v25000_v53 }
 0x5b9   : > { %16052 = vmatmul.mubr.msk.bf16.gmra.mrb[28].mxu1 %vm1244_vm6, %v25237_v40  ;;  %16886 = vmatmul.mubr.msk.bf16.gmra.mrb[12].mxu0 %vm1244_vm6, %v21614_v12 }
 0x5ba   : > { %16057 = vmatprep.mubr.msk.bf16.mxu1 %vm1244_vm6, %v25238_v59  ;;  %16889 = vmatprep.mubr.msk.bf16.mxu0 %vm1244_vm6, %v21642_v19 }
 0x5c1   : > { %16058 = vmatmul.mubr.msk.bf16.vlgmr.msra.gmra.mrb[0].mxu1 %vm1244_vm6, %v25239_v31  ;;  %16890 = vmatmul.mubr.msk.bf16.gmra.mrb[16].mxu0 %vm1244_vm6, %v21665_v24  ;;  %v25241_v31 = vld [vmem:[#allocation50_spill] sm:$0xff] }
 0x5c2   : > { %16090 = vmatpush3.bf16.msra.mxu1 %v6423_v41  ;;  %16061 = vmatprep.mubr.msk.bf16.mxu1 %vm1244_vm6, %v25240_v43  ;;  %v11349_v41 = vrot.slane %v22685_v58, 7  ;;  %v14433_v43 = vrot.slane %v22682_v0, 11 }
 0x5c3   : > { %16893 = vmatprep.mubr.msk.bf16.mxu0 %vm1244_vm6, %v25100_v50  ;;  %16123 = vmatprep.subr.bf16.mxu1 %v6640_v44 }
 0x5c4   : > { %v11351_v59 = vrot.slane %v11349_v41, 4  ;;  %v11350_v58 = vsel %vm21300_vm3, %v14433_v43, %v11349_v41  ;;  %v12009_v41 = vand.u32 %v12001_v6, %v19787_v2  ;;  %v25246_v43 = vld [vmem:[#allocation124_spill] sm:$0xff] }
 0x5c5   : > { %v25252_v6 = vld [vmem:[#allocation56_spill] sm:$0xff] }
 0x5c6   : > { %v11353_v0 = vsel %vm21300_vm3, %v11351_v59, %v11352_v26  ;;  %v25247_v59 = vld [vmem:[#allocation129_spill] sm:$0xff]  ;;  %v25248_v26 = vld [vmem:[#allocation46_spill] sm:$0xff] }
 0x5c9   : > { %16062 = vmatmul.mubr.msk.bf16.gmra.mrb[4].mxu1 %vm1244_vm6, %v25101_v60  ;;  %16894 = vmatmul.mubr.msk.bf16.gmra.mrb[20].mxu0 %vm1244_vm6, %v25102_v32  ;;  %v25242_v60 = vld [vmem:[#allocation52_spill] sm:$0xff] }
 0x5ca   : > { %16065 = vmatprep.mubr.msk.bf16.mxu1 %vm1244_vm6, %v25103_v56  ;;  %16897 = vmatprep.mubr.msk.bf16.mxu0 %vm1244_vm6, %v25241_v31  ;;  %v23168_v31 = vcombine.low %v11350_v58, %v11353_v0  ;;  %v25250_v58 = vld [vmem:[#allocation55_spill] sm:$0xff] }
 0x5cb   : > { %v25251_v0 = vld [vmem:[#allocation159_spill] sm:$0xff] }
 0x5cc   : > { %25245 = vst [vmem:[#allocation111_spill] sm:$0xff] %v23168_v31 }
 0x5d1   : > { %16066 = vmatmul.mubr.msk.bf16.gmra.mrb[8].mxu1 %vm1244_vm6, %v25105_v54  ;;  %16898 = vmatmul.mubr.msk.bf16.gmra.mrb[24].mxu0 %vm1244_vm6, %v25242_v60  ;;  %v25256_v60 = vld [vmem:[#allocation61_spill] sm:$0xff] }
 0x5d2   : > { %16069 = vmatprep.mubr.msk.bf16.mxu1 %vm1244_vm6, %v25109_v34  ;;  %16901 = vmatprep.mubr.msk.bf16.mxu0 %vm1244_vm6, %v25243_v10  ;;  %v25255_v10 = vld [vmem:[#allocation141_spill] sm:$0xff] }
 0x5d9   : > { %16070 = vmatmul.mubr.msk.bf16.gmra.mrb[12].mxu1 %vm1244_vm6, %v25110_v37  ;;  %16902 = vmatmul.mubr.msk.bf16.gmra.mrb[28].mxu0 %vm1244_vm6, %v23168_v31  ;;  %v25254_v31 = vld [vmem:[#allocation66_spill] sm:$0xff] }
 0x5da   : > { %16073 = vmatprep.mubr.msk.bf16.mxu1 %vm1244_vm6, %v25111_v5  ;;  %16907 = vmatprep.mubr.msk.bf16.mxu0 %vm1244_vm6, %v25035_v33 }
 0x5e1   : > { %16074 = vmatmul.mubr.msk.bf16.gmra.mrb[16].mxu1 %vm1244_vm6, %v25112_v48  ;;  %16908 = vmatmul.mubr.msk.bf16.vlgmr.msra.gmra.mrb[0].mxu0 %vm1244_vm6, %v25036_v3  ;;  %v25272_v3 = vld [vmem:[#allocation154_spill] sm:$0xff] }
 0x5e2   : > { %16940 = vmatpush3.bf16.msra.mxu0 %v11797_v28  ;;  %16077 = vmatprep.mubr.msk.bf16.mxu1 %vm1244_vm6, %v25113_v38  ;;  %v25249_v28 = vld [vmem:[#allocation132_spill] sm:$0xff] }
 0x5e3   : > { %16911 = vmatprep.mubr.msk.bf16.mxu0 %vm1244_vm6, %v25174_v14  ;;  %16973 = vmatprep.subr.bf16.mxu0 %v12009_v41  ;;  %v25259_v14 = vld [vmem:[#allocation108_spill] sm:$0xff] }
 0x5e9   : > { %16078 = vmatmul.mubr.msk.bf16.gmra.mrb[20].mxu1 %vm1244_vm6, %v25246_v43  ;;  %16912 = vmatmul.mubr.msk.bf16.gmra.mrb[4].mxu0 %vm1244_vm6, %v25178_v16  ;;  %v25257_v16 = vld [vmem:[#allocation107_spill] sm:$0xff] }
 0x5ea   : > { %16081 = vmatprep.mubr.msk.bf16.mxu1 %vm1244_vm6, %v25247_v59  ;;  %16915 = vmatprep.mubr.msk.bf16.mxu0 %vm1244_vm6, %v25248_v26  ;;  %v6843_v26 = vld [vmem:[#allocation14 + $0x28] sm:$0x3] }
 0x5f1   : > { %16082 = vmatmul.mubr.msk.bf16.gmra.mrb[24].mxu1 %vm1244_vm6, %v25249_v28  ;;  %16916 = vmatmul.mubr.msk.bf16.gmra.mrb[8].mxu0 %vm1244_vm6, %v25250_v58  ;;  %v6851_v58 = vand.u32 %v6843_v26, %v19787_v2  ;;  %v25263_v26 = vld [vmem:[#allocation122_spill] sm:$0xff] }
 0x5f2   : > { %16085 = vmatprep.mubr.msk.bf16.mxu1 %vm1244_vm6, %v25251_v0  ;;  %16919 = vmatprep.mubr.msk.bf16.mxu0 %vm1244_vm6, %v25252_v6  ;;  %v25258_v6 = vld [vmem:[#allocation68_spill] sm:$0xff] }
 0x5f9   : > { %16086 = vmatmul.mubr.msk.bf16.gmra.mrb[28].mxu1 %vm1244_vm6, %v25253_v20  ;;  %16920 = vmatmul.mubr.msk.bf16.gmra.mrb[12].mxu0 %vm1244_vm6, %v25254_v31  ;;  %v25260_v31 = vld [vmem:[#allocation142_spill] sm:$0xff]  ;;  %v25273_v20 = vld [vmem:[#allocation35_spill] sm:$0xff] }
 0x5fa   : > { %16091 = vmatprep.mubr.msk.bf16.mxu1 %vm1244_vm6, %v25255_v10  ;;  %16923 = vmatprep.mubr.msk.bf16.mxu0 %vm1244_vm6, %v25256_v60  ;;  %v25261_v10 = vld [vmem:[#allocation116_spill] sm:$0xff] }
 0x5fb   : > { %v25262_v60 = vld [vmem:[#allocation144_spill] sm:$0xff] }
 0x601   : > { %16092 = vmatmul.mubr.msk.bf16.vlgmr.msra.gmra.mrb[0].mxu1 %vm1244_vm6, %v25257_v16  ;;  %16924 = vmatmul.mubr.msk.bf16.gmra.mrb[16].mxu0 %vm1244_vm6, %v25258_v6  ;;  %v25264_v16 = vld [vmem:[#allocation143_spill] sm:$0xff] }
 0x602   : > { %16124 = vmatpush3.bf16.msra.mxu1 %v6640_v44  ;;  %16095 = vmatprep.mubr.msk.bf16.mxu1 %vm1244_vm6, %v25259_v14  ;;  %v25265_v44 = vld [vmem:[#allocation131_spill] sm:$0xff]  ;;  %v25266_v14 = vld [vmem:[#allocation140_spill] sm:$0xff] }
 0x603   : > { %16927 = vmatprep.mubr.msk.bf16.mxu0 %vm1244_vm6, %v25260_v31  ;;  %16157 = vmatprep.subr.bf16.mxu1 %v6851_v58  ;;  %v25267_v31 = vld [vmem:[#allocation138_spill] sm:$0xff]  ;;  %v25268_v6 = vld [vmem:[#allocation91_spill] sm:$0xff] }
 0x609   : > { %16096 = vmatmul.mubr.msk.bf16.gmra.mrb[4].mxu1 %vm1244_vm6, %v25261_v10  ;;  %16928 = vmatmul.mubr.msk.bf16.gmra.mrb[20].mxu0 %vm1244_vm6, %v25262_v60  ;;  %v23237_v10 = vld [vmem:[%s19779_s29] sm:$0xf]  ;;  %v23240_v60 = vld [vmem:[%s19779_s29 + $0x4] sm:$0xf] }
 0x60a   : > { %16099 = vmatprep.mubr.msk.bf16.mxu1 %vm1244_vm6, %v25263_v26  ;;  %16931 = vmatprep.mubr.msk.bf16.mxu0 %vm1244_vm6, %v25264_v16  ;;  %v14451_v26 = vcombine.low %v23237_v10, %v23240_v60  ;;  %v25269_v16 = vld [vmem:[#allocation147_spill] sm:$0xff] }
 0x611   : > { %16100 = vmatmul.mubr.msk.bf16.gmra.mrb[8].mxu1 %vm1244_vm6, %v25265_v44  ;;  %16932 = vmatmul.mubr.msk.bf16.gmra.mrb[24].mxu0 %vm1244_vm6, %v25266_v14  ;;  %v25270_v44 = vld [vmem:[#allocation151_spill] sm:$0xff]  ;;  %v25271_v14 = vld [vmem:[#allocation96_spill] sm:$0xff] }
 0x612   : > { %16103 = vmatprep.mubr.msk.bf16.mxu1 %vm1244_vm6, %v25267_v31  ;;  %16935 = vmatprep.mubr.msk.bf16.mxu0 %vm1244_vm6, %v25268_v6  ;;  %v12220_v31 = vld [vmem:[#allocation14 + $0x5a] sm:$0x3] }
 0x613   : > { %v12228_v6 = vand.u32 %v12220_v31, %v19787_v2  ;;  %v25276_v31 = vld [vmem:[#allocation166_spill] sm:$0xff] }
 0x619   : > { %16104 = vmatmul.mubr.msk.bf16.gmra.mrb[12].mxu1 %vm1244_vm6, %v25269_v16  ;;  %16936 = vmatmul.mubr.msk.bf16.gmra.mrb[28].mxu0 %vm1244_vm6, %v14451_v26  ;;  %v25274_v26 = vld [vmem:[#allocation106_spill] sm:$0xff] }
 0x61a   : > { %16107 = vmatprep.mubr.msk.bf16.mxu1 %vm1244_vm6, %v25270_v44  ;;  %16941 = vmatprep.mubr.msk.bf16.mxu0 %vm1244_vm6, %v25271_v14  ;;  %v25275_v44 = vld [vmem:[#allocation164_spill] sm:$0xff]  ;;  %v25281_v14 = vld [vmem:[#allocation54_spill] sm:$0xff] }
 0x621   : > { %16108 = vmatmul.mubr.msk.bf16.gmra.mrb[16].mxu1 %vm1244_vm6, %v25272_v3  ;;  %16942 = vmatmul.mubr.msk.bf16.vlgmr.msra.gmra.mrb[0].mxu0 %vm1244_vm6, %v25205_v23  ;;  %v25279_v23 = vld [vmem:[#allocation41_spill] sm:$0xff] }
 0x622   : > { %16974 = vmatpush3.bf16.msra.mxu0 %v12009_v41  ;;  %16111 = vmatprep.mubr.msk.bf16.mxu1 %vm1244_vm6, %v25273_v20  ;;  %v25277_v41 = vld [vmem:[#allocation171_spill] sm:$0xff] }
 0x623   : > { %16945 = vmatprep.mubr.msk.bf16.mxu0 %vm1244_vm6, %v25274_v26  ;;  %17007 = vmatprep.subr.bf16.mxu0 %v12228_v6  ;;  %v25278_v26 = vld [vmem:[#allocation172_spill] sm:$0xff] }
 0x629   : > { %16112 = vmatmul.mubr.msk.bf16.gmra.mrb[20].mxu1 %vm1244_vm6, %v25275_v44  ;;  %16946 = vmatmul.mubr.msk.bf16.gmra.mrb[4].mxu0 %vm1244_vm6, %v25211_v49  ;;  %v25280_v49 = vld [vmem:[#allocation145_spill] sm:$0xff] }
 0x62a   : > { %16115 = vmatprep.mubr.msk.bf16.mxu1 %vm1244_vm6, %v25276_v31  ;;  %16949 = vmatprep.mubr.msk.bf16.mxu0 %vm1244_vm6, %v25212_v27  ;;  %v7047_v27 = vld [vmem:[#allocation14 + $0x2a] sm:$0x3] }
 0x631   : > { %16116 = vmatmul.mubr.msk.bf16.gmra.mrb[24].mxu1 %vm1244_vm6, %v25277_v41  ;;  %16950 = vmatmul.mubr.msk.bf16.gmra.mrb[8].mxu0 %vm1244_vm6, %v25214_v30  ;;  %v7057_v30 = vand.u32 %v7047_v27, %v19787_v2  ;;  %v23301_v27 = vshrl.u32 %v23240_v60, 16 }
 0x632   : > { %16119 = vmatprep.mubr.msk.bf16.mxu1 %vm1244_vm6, %v25278_v26  ;;  %16953 = vmatprep.mubr.msk.bf16.mxu0 %vm1244_vm6, %v25215_v52  ;;  %v25282_v52 = vld [vmem:[#allocation57_spill] sm:$0xff] }
 0x639   : > { %16120 = vmatmul.mubr.msk.bf16.gmra.mrb[28].mxu1 %vm1244_vm6, %v25279_v23  ;;  %16954 = vmatmul.mubr.msk.bf16.gmra.mrb[12].mxu0 %vm1244_vm6, %v25216_v42  ;;  %v23292_v42 = vshrl.u32 %v23237_v10, 16  ;;  %v23310_v23 = vld [vmem:[%s19779_s29 + $0x8] sm:$0x7] }
 0x63a   : > { %16125 = vmatprep.mubr.msk.bf16.mxu1 %vm1244_vm6, %v25280_v49  ;;  %16957 = vmatprep.mubr.msk.bf16.mxu0 %vm1244_vm6, %v25217_v51  ;;  %v23295_v49 = vshll.u32 %v23237_v10, 16  ;;  %v23298_v51 = vshll.u32 %v23240_v60, 16  ;;  %v23321_v31 = vshll.u32 %v23310_v23, 16 }
 0x63c   : > { %v11786_v3 = vrot.slane %v23321_v31, 5 }
 0x641   : > { %16126 = vmatmul.mubr.msk.bf16.vlgmr.msra.gmra.mrb[0].mxu1 %vm1244_vm6, %v25281_v14  ;;  %16958 = vmatmul.mubr.msk.bf16.gmra.mrb[16].mxu0 %vm1244_vm6, %v25218_v62  ;;  %v11776_v14 = vrot.slane %v23298_v51, 5  ;;  %v11780_v62 = vrot.slane %v23301_v27, 4 }
 0x642   : > { %16158 = vmatpush3.bf16.msra.mxu1 %v6851_v58  ;;  %16129 = vmatprep.mubr.msk.bf16.mxu1 %vm1244_vm6, %v25282_v52  ;;  %v11767_v58 = vrot.slane %v23292_v42, 4  ;;  %v11770_v52 = vrot.slane %v23295_v49, 5 }
 0x643   : > { %16961 = vmatprep.mubr.msk.bf16.mxu0 %vm1244_vm6, %v25219_v57  ;;  %16191 = vmatprep.subr.bf16.mxu1 %v7057_v30  ;;  %v25283_v57 = vld [vmem:[#allocation63_spill] sm:$0xff]  ;;  %v11781_v41 = vor.u32 %v11780_v62, %v11776_v14  ;;  %v25295_v62 = vld [vmem:[#allocation92_spill] sm:$0xff] }
 0x644   : > { %v11771_v26 = vor.u32 %v11770_v52, %v11767_v58  ;;  %v25287_v52 = vld [vmem:[#allocation73_spill] sm:$0xff] }
 0x645   : > { %v11782_v20 = vrot.slane %v11781_v41, 4 }
 0x646   : > { %v11772_v44 = vrot.slane %v11771_v26, 4 }
 0x647   : > { %v11787_v26 = vsel %vm19848_vm7, %v11782_v20, %v11786_v3  ;;  %v25290_v3 = vld [vmem:[#allocation81_spill] sm:$0xff]  ;;  %v25291_v20 = vld [vmem:[#allocation82_spill] sm:$0xff] }
 0x648   : > { %v11777_v58 = vsel %vm19848_vm7, %v11772_v44, %v11776_v14  ;;  %v25292_v44 = vld [vmem:[#allocation87_spill] sm:$0xff] }
 0x649   : > { %16130 = vmatmul.mubr.msk.bf16.gmra.mrb[4].mxu1 %vm1244_vm6, %v25213_v61  ;;  %16962 = vmatmul.mubr.msk.bf16.gmra.mrb[20].mxu0 %vm1244_vm6, %v25220_v8  ;;  %v25284_v61 = vld [vmem:[#allocation65_spill] sm:$0xff]  ;;  %v25285_v8 = vld [vmem:[#allocation150_spill] sm:$0xff]  ;;  %v14468_v41 = vcombine.low %v11777_v58, %v11787_v26  ;;  %v25294_v14 = vld [vmem:[#allocation119_spill] sm:$0xff] }
 0x64a   : > { %16133 = vmatprep.mubr.msk.bf16.mxu1 %vm1244_vm6, %v25145_v29  ;;  %16965 = vmatprep.mubr.msk.bf16.mxu0 %vm1244_vm6, %v25283_v57  ;;  %v25288_v57 = vld [vmem:[#allocation75_spill] sm:$0xff] }
 0x64b   : > { %v7277_v58 = vld [vmem:[#allocation14 + $0x2c] sm:$0x3] }
 0x64c   : > { %v7285_v26 = vand.u32 %v7277_v58, %v19787_v2  ;;  %v14485_v58 = vrot.slane %v23237_v10, 9 }
 0x651   : > { %16134 = vmatmul.mubr.msk.bf16.gmra.mrb[8].mxu1 %vm1244_vm6, %v25147_v7  ;;  %16966 = vmatmul.mubr.msk.bf16.gmra.mrb[24].mxu0 %vm1244_vm6, %v25284_v61  ;;  %v12431_v61 = vld [vmem:[#allocation14 + $0x5c] sm:$0x3] }
 0x652   : > { %16137 = vmatprep.mubr.msk.bf16.mxu1 %vm1244_vm6, %v25151_v63  ;;  %16969 = vmatprep.mubr.msk.bf16.mxu0 %vm1244_vm6, %v25285_v8  ;;  %v12439_v8 = vand.u32 %v12431_v61, %v19787_v2  ;;  %v25289_v63 = vld [vmem:[#allocation77_spill] sm:$0xff]  ;;  %v25297_v61 = vld [vmem:[#allocation156_spill] sm:$0xff] }
 0x659   : > { %16138 = vmatmul.mubr.msk.bf16.gmra.mrb[12].mxu1 %vm1244_vm6, %v25287_v52  ;;  %16970 = vmatmul.mubr.msk.bf16.gmra.mrb[28].mxu0 %vm1244_vm6, %v14468_v41  ;;  %v25296_v41 = vld [vmem:[#allocation127_spill] sm:$0xff] }
 0x65a   : > { %16141 = vmatprep.mubr.msk.bf16.mxu1 %vm1244_vm6, %v25288_v57  ;;  %16975 = vmatprep.mubr.msk.bf16.mxu0 %vm1244_vm6, %v25088_v11 }
 0x661   : > { %16142 = vmatmul.mubr.msk.bf16.gmra.mrb[16].mxu1 %vm1244_vm6, %v25289_v63  ;;  %16976 = vmatmul.mubr.msk.bf16.vlgmr.msra.gmra.mrb[0].mxu0 %vm1244_vm6, %v25090_v22 }
 0x662   : > { %17008 = vmatpush3.bf16.msra.mxu0 %v12228_v6  ;;  %16145 = vmatprep.mubr.msk.bf16.mxu1 %vm1244_vm6, %v25290_v3  ;;  %v25293_v6 = vld [vmem:[#allocation98_spill] sm:$0xff] }
 0x663   : > { %16979 = vmatprep.mubr.msk.bf16.mxu0 %vm1244_vm6, %v25094_v39  ;;  %17041 = vmatprep.subr.bf16.mxu0 %v12439_v8 }
 0x669   : > { %16146 = vmatmul.mubr.msk.bf16.gmra.mrb[20].mxu1 %vm1244_vm6, %v25291_v20  ;;  %16980 = vmatmul.mubr.msk.bf16.gmra.mrb[4].mxu0 %vm1244_vm6, %v25230_v45 }
 0x66a   : > { %16149 = vmatprep.mubr.msk.bf16.mxu1 %vm1244_vm6, %v25292_v44  ;;  %16983 = vmatprep.mubr.msk.bf16.mxu0 %vm1244_vm6, %v25231_v36 }
 0x671   : > { %16150 = vmatmul.mubr.msk.bf16.gmra.mrb[24].mxu1 %vm1244_vm6, %v25293_v6  ;;  %16984 = vmatmul.mubr.msk.bf16.gmra.mrb[8].mxu0 %vm1244_vm6, %v25232_v13 }
 0x672   : > { %16153 = vmatprep.mubr.msk.bf16.mxu1 %vm1244_vm6, %v25160_v17  ;;  %16987 = vmatprep.mubr.msk.bf16.mxu0 %vm1244_vm6, %v24981_v9 }
 0x679   : > { %16154 = vmatmul.mubr.msk.bf16.gmra.mrb[28].mxu1 %vm1244_vm6, %v25294_v14  ;;  %16988 = vmatmul.mubr.msk.bf16.gmra.mrb[12].mxu0 %vm1244_vm6, %v25233_v25 }
 0x67a   : > { %16159 = vmatprep.mubr.msk.bf16.mxu1 %vm1244_vm6, %v25295_v62  ;;  %16991 = vmatprep.mubr.msk.bf16.mxu0 %vm1244_vm6, %v25234_v55  ;;  %v25298_v62 = vld [vmem:[#allocation120_spill] sm:$0xff] }
 0x681   : > { %16160 = vmatmul.mubr.msk.bf16.vlgmr.msra.gmra.mrb[0].mxu1 %vm1244_vm6, %v25296_v41  ;;  %16992 = vmatmul.mubr.msk.bf16.gmra.mrb[16].mxu0 %vm1244_vm6, %v25235_v47 }
 0x682   : > { %16192 = vmatpush3.bf16.msra.mxu1 %v7057_v30  ;;  %16163 = vmatprep.mubr.msk.bf16.mxu1 %vm1244_vm6, %v25297_v61  ;;  %v11995_v30 = vrot.slane %v23240_v60, 5  ;;  %v11998_v61 = vrot.slane %v23310_v23, 5 }
 0x683   : > { %16995 = vmatprep.mubr.msk.bf16.mxu0 %vm1244_vm6, %v25236_v4  ;;  %16225 = vmatprep.subr.bf16.mxu1 %v7285_v26 }
 0x684   : > { %v11997_v41 = vrot.slane %v11995_v30, 4  ;;  %v11996_v4 = vsel %vm20954_vm1, %v14485_v58, %v11995_v30  ;;  %v12213_v30 = vshrl.u32 %v23310_v23, 16  ;;  %v25307_v58 = vld [vmem:[#allocation170_spill] sm:$0xff] }
 0x686   : > { %v11999_v47 = vsel %vm20954_vm1, %v11997_v41, %v11998_v61  ;;  %v25308_v41 = vld [vmem:[#allocation174_spill] sm:$0xff] }
 0x687   : > { %v14486_v55 = vcombine.low %v11996_v4, %v11999_v47  ;;  %v12204_v47 = vrot.slane %v23292_v42, 5  ;;  %v12205_v4 = vrot.slane %v23295_v49, 6 }
 0x689   : > { %16164 = vmatmul.mubr.msk.bf16.gmra.mrb[4].mxu1 %vm1244_vm6, %v24993_v15  ;;  %16996 = vmatmul.mubr.msk.bf16.gmra.mrb[20].mxu0 %vm1244_vm6, %v25237_v40  ;;  %v25299_v15 = vld [vmem:[#allocation167_spill] sm:$0xff]  ;;  %v25300_v40 = vld [vmem:[#allocation162_spill] sm:$0xff]  ;;  %v12206_v61 = vor.u32 %v12205_v4, %v12204_v47 }
 0x68a   : > { %16167 = vmatprep.mubr.msk.bf16.mxu1 %vm1244_vm6, %v24994_v21  ;;  %16999 = vmatprep.mubr.msk.bf16.mxu0 %vm1244_vm6, %v25298_v62  ;;  %v12209_v62 = vrot.slane %v23298_v51, 6  ;;  %v25325_v47 = vld [vmem:[#allocation154_spill] sm:$0xff] }
 0x691   : > { %16168 = vmatmul.mubr.msk.bf16.gmra.mrb[8].mxu1 %vm1244_vm6, %v24996_v46  ;;  %17000 = vmatmul.mubr.msk.bf16.gmra.mrb[24].mxu0 %vm1244_vm6, %v25299_v15  ;;  %v12648_v15 = vld [vmem:[#allocation14 + $0x5e] sm:$0x3] }
 0x692   : > { %16171 = vmatprep.mubr.msk.bf16.mxu1 %vm1244_vm6, %v24997_v18  ;;  %17003 = vmatprep.mubr.msk.bf16.mxu0 %vm1244_vm6, %v25300_v40  ;;  %v12656_v40 = vand.u32 %v12648_v15, %v19787_v2 }
 0x699   : > { %16172 = vmatmul.mubr.msk.bf16.gmra.mrb[12].mxu1 %vm1244_vm6, %v24998_v1  ;;  %17004 = vmatmul.mubr.msk.bf16.gmra.mrb[28].mxu0 %vm1244_vm6, %v14486_v55  ;;  %v25305_v55 = vld [vmem:[#allocation163_spill] sm:$0xff] }
 0x69a   : > { %16175 = vmatprep.mubr.msk.bf16.mxu1 %vm1244_vm6, %v24999_v35  ;;  %17009 = vmatprep.mubr.msk.bf16.mxu0 %vm1244_vm6, %v25103_v56  ;;  %v7489_v56 = vld [vmem:[#allocation14 + $0x2e] sm:$0x3] }
 0x6a1   : > { %16176 = vmatmul.mubr.msk.bf16.gmra.mrb[16].mxu1 %vm1244_vm6, %v25000_v53  ;;  %17010 = vmatmul.mubr.msk.bf16.vlgmr.msra.gmra.mrb[0].mxu0 %vm1244_vm6, %v25105_v54  ;;  %v25302_v54 = vld [vmem:[#allocation50_spill] sm:$0xff] }
 0x6a2   : > { %17042 = vmatpush3.bf16.msra.mxu0 %v12439_v8  ;;  %16179 = vmatprep.mubr.msk.bf16.mxu1 %vm1244_vm6, %v21614_v12  ;;  %v12208_v8 = vrot.slane %v23301_v27, 5 }
 0x6a3   : > { %17013 = vmatprep.mubr.msk.bf16.mxu0 %vm1244_vm6, %v25109_v34  ;;  %17075 = vmatprep.subr.bf16.mxu0 %v12656_v40  ;;  %v7497_v34 = vand.u32 %v7489_v56, %v19787_v2  ;;  %v12216_v56 = vrot.slane %v23321_v31, 6 }
 0x6a4   : > { %v12210_v15 = vor.u32 %v12209_v62, %v12208_v8 }
 0x6a9   : > { %16180 = vmatmul.mubr.msk.bf16.gmra.mrb[20].mxu1 %vm1244_vm6, %v21642_v19  ;;  %17014 = vmatmul.mubr.msk.bf16.gmra.mrb[4].mxu0 %vm1244_vm6, %v25110_v37  ;;  %v25303_v37 = vld [vmem:[#allocation157_spill] sm:$0xff] }
 0x6aa   : > { %16183 = vmatprep.mubr.msk.bf16.mxu1 %vm1244_vm6, %v21665_v24  ;;  %17017 = vmatprep.mubr.msk.bf16.mxu0 %vm1244_vm6, %v25111_v5  ;;  %v25304_v5 = vld [vmem:[#allocation161_spill] sm:$0xff] }
 0x6b1   : > { %16184 = vmatmul.mubr.msk.bf16.gmra.mrb[24].mxu1 %vm1244_vm6, %v25100_v50  ;;  %17018 = vmatmul.mubr.msk.bf16.gmra.mrb[8].mxu0 %vm1244_vm6, %v25112_v48 }
 0x6b2   : > { %16187 = vmatprep.mubr.msk.bf16.mxu1 %vm1244_vm6, %v25102_v32  ;;  %17021 = vmatprep.mubr.msk.bf16.mxu0 %vm1244_vm6, %v25113_v38 }
 0x6b9   : > { %16188 = vmatmul.mubr.msk.bf16.gmra.mrb[28].mxu1 %vm1244_vm6, %v25302_v54  ;;  %17022 = vmatmul.mubr.msk.bf16.gmra.mrb[12].mxu0 %vm1244_vm6, %v25246_v43 }
 0x6ba   : > { %16193 = vmatprep.mubr.msk.bf16.mxu1 %vm1244_vm6, %v25303_v37  ;;  %17025 = vmatprep.mubr.msk.bf16.mxu0 %vm1244_vm6, %v25247_v59  ;;  %v12215_v37 = vrot.slane %v12213_v30, 5 }
 0x6c1   : > { %16194 = vmatmul.mubr.msk.bf16.vlgmr.msra.gmra.mrb[0].mxu1 %vm1244_vm6, %v25304_v5  ;;  %17026 = vmatmul.mubr.msk.bf16.gmra.mrb[16].mxu0 %vm1244_vm6, %v25249_v28  ;;  %v12207_v5 = vrot.slane %v12206_v61, 4  ;;  %v25314_v61 = vld [vmem:[#allocation46_spill] sm:$0xff] }
 0x6c2   : > { %16226 = vmatpush3.bf16.msra.mxu1 %v7285_v26  ;;  %16197 = vmatprep.mubr.msk.bf16.mxu1 %vm1244_vm6, %v25305_v55  ;;  %v25306_v26 = vld [vmem:[#allocation158_spill] sm:$0xff]  ;;  %v12212_v55 = vrot.slane %v12210_v15, 4 }
 0x6c3   : > { %17029 = vmatprep.mubr.msk.bf16.mxu0 %vm1244_vm6, %v25251_v0  ;;  %16259 = vmatprep.subr.bf16.mxu1 %v7497_v34  ;;  %v12217_v0 = vor.u32 %v12216_v56, %v12215_v37  ;;  %v12211_v4 = vsel %vm19877_vm8, %v12207_v5, %v12210_v15  ;;  %v25315_v37 = vld [vmem:[#allocation55_spill] sm:$0xff]  ;;  %v12859_v56 = vld [vmem:[#allocation14 + $0x60] sm:$0x3]  ;;  %v25320_v5 = vld [vmem:[#allocation138_spill] sm:$0xff] }
 0x6c4   : > { %v25318_v15 = vld [vmem:[#allocation131_spill] sm:$0xff] }
 0x6c5   : > { %v12218_v8 = vsel %vm19877_vm8, %v12212_v55, %v12217_v0  ;;  %v25319_v0 = vld [vmem:[#allocation66_spill] sm:$0xff]  ;;  %v25321_v55 = vld [vmem:[#allocation61_spill] sm:$0xff] }
 0x6c6   : > { %v14503_v62 = vcombine.low %v12211_v4, %v12218_v8  ;;  %v25326_v4 = vld [vmem:[#allocation144_spill] sm:$0xff]  ;;  %v25327_v8 = vld [vmem:[#allocation35_spill] sm:$0xff] }
 0x6c9   : > { %16198 = vmatmul.mubr.msk.bf16.gmra.mrb[4].mxu1 %vm1244_vm6, %v25035_v33  ;;  %17030 = vmatmul.mubr.msk.bf16.gmra.mrb[20].mxu0 %vm1244_vm6, %v25306_v26  ;;  %v25309_v33 = vld [vmem:[#allocation173_spill] sm:$0xff]  ;;  %v25310_v26 = vld [vmem:[#allocation176_spill] sm:$0xff] }
 0x6ca   : > { %16201 = vmatprep.mubr.msk.bf16.mxu1 %vm1244_vm6, %v25307_v58  ;;  %17033 = vmatprep.mubr.msk.bf16.mxu0 %vm1244_vm6, %v25308_v41  ;;  %v25311_v58 = vld [vmem:[#allocation43_spill] sm:$0xff]  ;;  %v25312_v41 = vld [vmem:[#allocation97_spill] sm:$0xff] }
 0x6d1   : > { %16202 = vmatmul.mubr.msk.bf16.gmra.mrb[8].mxu1 %vm1244_vm6, %v25309_v33  ;;  %17034 = vmatmul.mubr.msk.bf16.gmra.mrb[24].mxu0 %vm1244_vm6, %v25310_v26  ;;  %v25316_v26 = vld [vmem:[#allocation122_spill] sm:$0xff]  ;;  %v25317_v33 = vld [vmem:[#allocation56_spill] sm:$0xff] }
 0x6d2   : > { %16205 = vmatprep.mubr.msk.bf16.mxu1 %vm1244_vm6, %v25311_v58  ;;  %17037 = vmatprep.mubr.msk.bf16.mxu0 %vm1244_vm6, %v25312_v41  ;;  %v12867_v41 = vand.u32 %v12859_v56, %v19787_v2  ;;  %v25322_v2 = vld [vmem:[#allocation68_spill] sm:$0xff]  ;;  %v25323_v58 = vld [vmem:[#allocation151_spill] sm:$0xff] }
 0x6d3   : > { %v25333_v56 = vld [vmem:[#allocation171_spill] sm:$0xff] }
 0x6d9   : > { %16206 = vmatmul.mubr.msk.bf16.gmra.mrb[12].mxu1 %vm1244_vm6, %v25314_v61  ;;  %17038 = vmatmul.mubr.msk.bf16.gmra.mrb[28].mxu0 %vm1244_vm6, %v14503_v62  ;;  %v25328_v62 = vld [vmem:[#allocation143_spill] sm:$0xff] }
 0x6da   : > { %16209 = vmatprep.mubr.msk.bf16.mxu1 %vm1244_vm6, %v25315_v37  ;;  %17043 = vmatprep.mubr.msk.bf16.mxu0 %vm1244_vm6, %v25316_v26  ;;  %v25330_v61 = vld [vmem:[#allocation79_spill] sm:$0xff]  ;;  %v25331_v37 = vld [vmem:[#allocation166_spill] sm:$0xff] }
 0x6db   : > { %v25332_v26 = vld [vmem:[#allocation86_spill] sm:$0xff] }
 0x6e1   : > { %16210 = vmatmul.mubr.msk.bf16.gmra.mrb[16].mxu1 %vm1244_vm6, %v25317_v33  ;;  %17044 = vmatmul.mubr.msk.bf16.vlgmr.msra.gmra.mrb[0].mxu0 %vm1244_vm6, %v25318_v15  ;;  %v25334_v33 = vld [vmem:[#allocation90_spill] sm:$0xff]  ;;  %v25335_v15 = vld [vmem:[#allocation172_spill] sm:$0xff] }
 0x6e2   : > { %17076 = vmatpush3.bf16.msra.mxu0 %v12656_v40  ;;  %16213 = vmatprep.mubr.msk.bf16.mxu1 %vm1244_vm6, %v25319_v0  ;;  %v25324_v40 = vld [vmem:[#allocation142_spill] sm:$0xff] }
 0x6e3   : > { %17047 = vmatprep.mubr.msk.bf16.mxu0 %vm1244_vm6, %v25320_v5  ;;  %17109 = vmatprep.subr.bf16.mxu0 %v12867_v41  ;;  %v25336_v0 = vld [vmem:[#allocation34_spill] sm:$0xff]  ;;  %v25337_v5 = vld [vmem:[#allocation96_spill] sm:$0xff] }
 0x6e9   : > { %16214 = vmatmul.mubr.msk.bf16.gmra.mrb[20].mxu1 %vm1244_vm6, %v25321_v55  ;;  %17048 = vmatmul.mubr.msk.bf16.gmra.mrb[4].mxu0 %vm1244_vm6, %v25269_v16  ;;  %v25329_v16 = vld [vmem:[#allocation164_spill] sm:$0xff]  ;;  %v25338_v55 = vld [vmem:[#allocation41_spill] sm:$0xff] }
 0x6ea   : > { %16217 = vmatprep.mubr.msk.bf16.mxu1 %vm1244_vm6, %v25322_v2  ;;  %17051 = vmatprep.mubr.msk.bf16.mxu0 %vm1244_vm6, %v25323_v58  ;;  %v25339_v2 = vld [vmem:[#allocation103_spill] sm:$0xff]  ;;  %v25340_v58 = vld [vmem:[#allocation42_spill] sm:$0xff] }
 0x6f1   : > { %16218 = vmatmul.mubr.msk.bf16.gmra.mrb[24].mxu1 %vm1244_vm6, %v25324_v40  ;;  %17052 = vmatmul.mubr.msk.bf16.gmra.mrb[8].mxu0 %vm1244_vm6, %v25325_v47  ;;  %v14520_v40 = vrot.slane %v23237_v10, 10 }
 0x6f2   : > { %16221 = vmatprep.mubr.msk.bf16.mxu1 %vm1244_vm6, %v25326_v4  ;;  %17055 = vmatprep.mubr.msk.bf16.mxu0 %vm1244_vm6, %v25327_v8  ;;  %v12428_v4 = vrot.slane %v23310_v23, 6  ;;  %v25341_v8 = vld [vmem:[#allocation106_spill] sm:$0xff] }
 0x6f9   : > { %16222 = vmatmul.mubr.msk.bf16.gmra.mrb[28].mxu1 %vm1244_vm6, %v25328_v62  ;;  %17056 = vmatmul.mubr.msk.bf16.gmra.mrb[12].mxu0 %vm1244_vm6, %v25329_v16  ;;  %v25342_v62 = vld [vmem:[#allocation178_spill] sm:$0xff]  ;;  %v25343_v16 = vld [vmem:[#allocation109_spill] sm:$0xff] }
 0x6fa   : > { %16227 = vmatprep.mubr.msk.bf16.mxu1 %vm1244_vm6, %v25330_v61  ;;  %17059 = vmatprep.mubr.msk.bf16.mxu0 %vm1244_vm6, %v25331_v37  ;;  %v25344_v61 = vld [vmem:[#allocation99_spill] sm:$0xff] }
 0x701   : > { %16228 = vmatmul.mubr.msk.bf16.vlgmr.msra.gmra.mrb[0].mxu1 %vm1244_vm6, %v25332_v26  ;;  %17060 = vmatmul.mubr.msk.bf16.gmra.mrb[16].mxu0 %vm1244_vm6, %v25333_v56 }
 0x702   : > { %16260 = vmatpush3.bf16.msra.mxu1 %v7497_v34  ;;  %16231 = vmatprep.mubr.msk.bf16.mxu1 %vm1244_vm6, %v25334_v33  ;;  %v12425_v34 = vrot.slane %v23240_v60, 6 }
 0x703   : > { %17063 = vmatprep.mubr.msk.bf16.mxu0 %vm1244_vm6, %v25335_v15  ;;  %17143 = vmatprep.subr.bf16.mxu1 %v25336_v0  ;;  %v25346_v15 = vld [vmem:[#allocation115_spill] sm:$0xff] }
 0x704   : > { %v12427_v47 = vrot.slane %v12425_v34, 4  ;;  %v12426_v26 = vsel %vm20299_vm10, %v14520_v40, %v12425_v34  ;;  %v25351_v34 = vld [vmem:[#allocation146_spill] sm:$0xff]  ;;  %v25355_v40 = vld [vmem:[#allocation63_spill] sm:$0xff] }
 0x706   : > { %v12429_v56 = vsel %vm20299_vm10, %v12427_v47, %v12428_v4  ;;  %v12639_v47 = vrot.slane %v23298_v51, 7 }
 0x707   : > { %v14521_v33 = vcombine.low %v12426_v26, %v12429_v56 }
 0x709   : > { %16232 = vmatmul.mubr.msk.bf16.gmra.mrb[4].mxu1 %vm1244_vm6, %v25337_v5  ;;  %17064 = vmatmul.mubr.msk.bf16.gmra.mrb[20].mxu0 %vm1244_vm6, %v25338_v55  ;;  %v25347_v5 = vld [vmem:[#allocation123_spill] sm:$0xff]  ;;  %v25348_v55 = vld [vmem:[#allocation130_spill] sm:$0xff] }
 0x70a   : > { %16235 = vmatprep.mubr.msk.bf16.mxu1 %vm1244_vm6, %v25339_v2  ;;  %17067 = vmatprep.mubr.msk.bf16.mxu0 %vm1244_vm6, %v25340_v58  ;;  %v25349_v2 = vld [vmem:[#allocation139_spill] sm:$0xff] }
 0x70b   : > { %v25350_v58 = vld [vmem:[#allocation71_spill] sm:$0xff] }
 0x711   : > { %16236 = vmatmul.mubr.msk.bf16.gmra.mrb[8].mxu1 %vm1244_vm6, %v25341_v8  ;;  %17068 = vmatmul.mubr.msk.bf16.gmra.mrb[24].mxu0 %vm1244_vm6, %v25342_v62 }
 0x712   : > { %16239 = vmatprep.mubr.msk.bf16.mxu1 %vm1244_vm6, %v25343_v16  ;;  %17071 = vmatprep.mubr.msk.bf16.mxu0 %vm1244_vm6, %v25344_v61 }
 0x719   : > { %16240 = vmatmul.mubr.msk.bf16.gmra.mrb[12].mxu1 %vm1244_vm6, %v25346_v15  ;;  %17072 = vmatmul.mubr.msk.bf16.gmra.mrb[28].mxu0 %vm1244_vm6, %v14521_v33 }
 0x71a   : > { %16243 = vmatprep.mubr.msk.bf16.mxu1 %vm1244_vm6, %v25347_v5  ;;  %17077 = vmatprep.mubr.msk.bf16.mxu0 %vm1244_vm6, %v25145_v29  ;;  %v25352_v29 = vld [vmem:[#allocation153_spill] sm:$0xff] }
 0x721   : > { %16244 = vmatmul.mubr.msk.bf16.gmra.mrb[16].mxu1 %vm1244_vm6, %v25348_v55  ;;  %17078 = vmatmul.mubr.msk.bf16.vlgmr.msra.gmra.mrb[0].mxu0 %vm1244_vm6, %v25147_v7  ;;  %v25353_v7 = vld [vmem:[#allocation62_spill] sm:$0xff]  ;;  %v23713_v55 = vld [vmem:[#allocation16] ss:$0 sm:$0xff] }
 0x722   : > { %17110 = vmatpush3.bf16.msra.mxu0 %v12867_v41  ;;  %16247 = vmatprep.mubr.msk.bf16.mxu1 %vm1244_vm6, %v25349_v2  ;;  %v25354_v41 = vld [vmem:[#allocation64_spill] sm:$0xff] }
 0x723   : > { %17081 = vmatprep.mubr.msk.bf16.mxu0 %vm1244_vm6, %v25350_v58 }
 0x729   : > { %16248 = vmatmul.mubr.msk.bf16.gmra.mrb[20].mxu1 %vm1244_vm6, %v25351_v34  ;;  %17082 = vmatmul.mubr.msk.bf16.gmra.mrb[4].mxu0 %vm1244_vm6, %v25287_v52  ;;  %v25356_v52 = vld [vmem:[#allocation84_spill] sm:$0xff] }
 0x72a   : > { %16251 = vmatprep.mubr.msk.bf16.mxu1 %vm1244_vm6, %v25352_v29  ;;  %17085 = vmatprep.mubr.msk.bf16.mxu0 %vm1244_vm6, %v25288_v57  ;;  %v25357_v57 = vld [vmem:[#allocation88_spill] sm:$0xff] }
 0x731   : > { %16252 = vmatmul.mubr.msk.bf16.gmra.mrb[24].mxu1 %vm1244_vm6, %v25353_v7  ;;  %17086 = vmatmul.mubr.msk.bf16.gmra.mrb[8].mxu0 %vm1244_vm6, %v25289_v63  ;;  %v25358_v63 = vld [vmem:[#allocation100_spill] sm:$0xff] }
 0x732   : > { %16255 = vmatprep.mubr.msk.bf16.mxu1 %vm1244_vm6, %v25354_v41  ;;  %17089 = vmatprep.mubr.msk.bf16.mxu0 %vm1244_vm6, %v25290_v3  ;;  %v12634_v3 = vrot.slane %v23292_v42, 6 }
 0x739   : > { %16256 = vmatmul.mubr.msk.bf16.gmra.mrb[28].mxu1 %vm1244_vm6, %v25355_v40  ;;  %17090 = vmatmul.mubr.msk.bf16.gmra.mrb[12].mxu0 %vm1244_vm6, %v25291_v20  ;;  %v12635_v20 = vrot.slane %v23295_v49, 7  ;;  %v12643_v49 = vrot.slane %v12213_v30, 6 }
 0x73a   : > { %16261 = vmatprep.mubr.msk.bf16.mxu1 %vm1244_vm6, %v25356_v52  ;;  %17093 = vmatprep.mubr.msk.bf16.mxu0 %vm1244_vm6, %v25292_v44  ;;  %v12638_v44 = vrot.slane %v23301_v27, 6  ;;  %v12644_v27 = vrot.slane %v23321_v31, 7 }
 0x73c   : > { %v12640_v42 = vor.u32 %v12639_v47, %v12638_v44  ;;  %v12645_v4 = vor.u32 %v12644_v27, %v12643_v49 }
 0x741   : > { %16262 = vmatmul.mubr.msk.bf16.vlgmr.msra.gmra.mrb[0].mxu1 %vm1244_vm6, %v25357_v57  ;;  %17094 = vmatmul.mubr.msk.bf16.gmra.mrb[16].mxu0 %vm1244_vm6, %v25293_v6  ;;  %v25359_v6 = vld [vmem:[#allocation126_spill] sm:$0xff] }
 0x742   : > { %17144 = vmatpush3.bf16.msra.mxu1 %v25336_v0  ;;  %16265 = vmatprep.mubr.msk.bf16.mxu1 %vm1244_vm6, %v25358_v63  ;;  %v12642_v0 = vrot.slane %v12640_v42, 4 }
 0x743   : > { %17097 = vmatprep.mubr.msk.bf16.mxu0 %vm1244_vm6, %v25160_v17  ;;  %v12636_v17 = vor.u32 %v12635_v20, %v12634_v3 }
 0x744   : > { %v12646_v31 = vsel %vm20794_vm13, %v12642_v0, %v12645_v4 }
 0x745   : > { %v12637_v51 = vrot.slane %v12636_v17, 4 }
 0x747   : > { %v12641_v30 = vsel %vm20794_vm13, %v12637_v51, %v12640_v42 }
 0x748   : > { %v14538_v8 = vcombine.low %v12641_v30, %v12646_v31 }
 0x749   : > { %16266 = vmatmul.mubr.msk.bf16.gmra.mrb[4].mxu1 %vm1244_vm6, %v25088_v11  ;;  %17098 = vmatmul.mubr.msk.bf16.gmra.mrb[20].mxu0 %vm1244_vm6, %v25294_v14  ;;  %v25360_v11 = vld [vmem:[#allocation37_spill] sm:$0xff] }
 0x74a   : > { %16269 = vmatprep.mubr.msk.bf16.mxu1 %vm1244_vm6, %v25090_v22  ;;  %17101 = vmatprep.mubr.msk.bf16.mxu0 %vm1244_vm6, %v25359_v6  ;;  %v25361_v22 = vld [vmem:[#allocation101_spill] sm:$0xff] }
 0x751   : > { %16270 = vmatmul.mubr.msk.bf16.gmra.mrb[8].mxu1 %vm1244_vm6, %v25094_v39  ;;  %17102 = vmatmul.mubr.msk.bf16.gmra.mrb[24].mxu0 %vm1244_vm6, %v25360_v11  ;;  %v25363_v39 = vld [vmem:[#allocation177_spill] sm:$0xff] }
 0x752   : > { %16273 = vmatprep.mubr.msk.bf16.mxu1 %vm1244_vm6, %v25230_v45  ;;  %17105 = vmatprep.mubr.msk.bf16.mxu0 %vm1244_vm6, %v25361_v22  ;;  %v25364_v45 = vld [vmem:[#allocation36_spill] sm:$0xff] }
 0x759   : > { %16274 = vmatmul.mubr.msk.bf16.gmra.mrb[12].mxu1 %vm1244_vm6, %v25231_v36  ;;  %17106 = vmatmul.mubr.msk.bf16.gmra.mrb[28].mxu0 %vm1244_vm6, %v14538_v8 }
 0x75a   : > { %16277 = vmatprep.mubr.msk.bf16.mxu1 %vm1244_vm6, %v25232_v13  ;;  %17111 = vmatprep.mubr.msk.bf16.mxu0 %vm1244_vm6, %v24994_v21  ;;  %v25366_v21 = vld [vmem:[#allocation113_spill] sm:$0xff] }
 0x761   : > { %16278 = vmatmul.mubr.msk.bf16.gmra.mrb[16].mxu1 %vm1244_vm6, %v24981_v9  ;;  %17112 = vmatmul.mubr.msk.bf16.vlgmr.msra.gmra.mrb[0].mxu0 %vm1244_vm6, %v24996_v46  ;;  %v25365_v9 = vld [vmem:[#allocation94_spill] sm:$0xff]  ;;  %v25367_v46 = vld [vmem:[#allocation120_spill] sm:$0xff] }
 0x762   : > { %16281 = vmatprep.mubr.msk.bf16.mxu1 %vm1244_vm6, %v25233_v25  ;;  %17115 = vmatprep.mubr.msk.bf16.mxu0 %vm1244_vm6, %v24997_v18 }
 0x769   : > { %16282 = vmatmul.mubr.msk.bf16.gmra.mrb[20].mxu1 %vm1244_vm6, %v25363_v39  ;;  %17116 = vmatmul.mubr.msk.bf16.gmra.mrb[4].mxu0 %vm1244_vm6, %v24998_v1  ;;  %v12856_v1 = vrot.slane %v23310_v23, 7  ;;  %v25374_v23 = vld [vmem:[#allocation174_spill] sm:$0xff] }
 0x76a   : > { %16285 = vmatprep.mubr.msk.bf16.mxu1 %vm1244_vm6, %v25364_v45  ;;  %17119 = vmatprep.mubr.msk.bf16.mxu0 %vm1244_vm6, %v24999_v35  ;;  %v25369_v35 = vld [vmem:[#allocation159_spill] sm:$0xff] }
 0x771   : > { %16286 = vmatmul.mubr.msk.bf16.gmra.mrb[24].mxu1 %vm1244_vm6, %v25365_v9  ;;  %17120 = vmatmul.mubr.msk.bf16.gmra.mrb[8].mxu0 %vm1244_vm6, %v25000_v53  ;;  %v25370_v53 = vld [vmem:[#allocation39_spill] sm:$0xff] }
 0x772   : > { %16289 = vmatprep.mubr.msk.bf16.mxu1 %vm1244_vm6, %v25366_v21  ;;  %17123 = vmatprep.mubr.msk.bf16.mxu0 %vm1244_vm6, %v21614_v12  ;;  %v25368_v12 = vld [vmem:[#allocation52_spill] sm:$0xff] }
 0x779   : > { %16290 = vmatmul.mubr.msk.bf16.gmra.mrb[28].mxu1 %vm1244_vm6, %v25367_v46  ;;  %17124 = vmatmul.mubr.msk.bf16.gmra.mrb[12].mxu0 %vm1244_vm6, %v21642_v19  ;;  %v12853_v19 = vrot.slane %v23240_v60, 7 }
 0x77a   : > { %16311 = vmatprep.mubr.msk.bf16.mxu1 %vm1244_vm6, %v25112_v48  ;;  %17127 = vmatprep.mubr.msk.bf16.mxu0 %vm1244_vm6, %v21665_v24  ;;  %v14555_v24 = vrot.slane %v23237_v10, 11 }
 0x77b   : > { %v12855_v18 = vrot.slane %v12853_v19, 4 }
 0x77d   : > { %v12857_v36 = vsel %vm21300_vm3, %v12855_v18, %v12856_v1 }
 0x781   : > { %16312 = vmatmul.mubr.msk.bf16.vlgmr.msra.gmra.mrb[16].mxu1 %vm1244_vm6, %v25113_v38  ;;  %17128 = vmatmul.mubr.msk.bf16.gmra.mrb[16].mxu0 %vm1244_vm6, %v25100_v50  ;;  %v25371_v50 = vld [vmem:[#allocation158_spill] sm:$0xff]  ;;  %v12854_v38 = vsel %vm21300_vm3, %v14555_v24, %v12853_v19 }
 0x782   : > { %16315 = vmatprep.mubr.msk.bf16.mxu1 %vm1244_vm6, %v25246_v43  ;;  %17131 = vmatprep.mubr.msk.bf16.mxu0 %vm1244_vm6, %v25102_v32  ;;  %v25372_v32 = vld [vmem:[#allocation111_spill] sm:$0xff]  ;;  %v14556_v13 = vcombine.low %v12854_v38, %v12857_v36 }
 0x789   : > { %16316 = vmatmul.mubr.msk.bf16.gmra.mrb[20].mxu1 %vm1244_vm6, %v25247_v59  ;;  %17132 = vmatmul.mubr.msk.bf16.gmra.mrb[20].mxu0 %vm1244_vm6, %v25302_v54 }
 0x78a   : > { %16319 = vmatprep.mubr.msk.bf16.mxu1 %vm1244_vm6, %v25249_v28  ;;  %17135 = vmatprep.mubr.msk.bf16.mxu0 %vm1244_vm6, %v25368_v12 }
 0x791   : > { %16320 = vmatmul.mubr.msk.bf16.gmra.mrb[24].mxu1 %vm1244_vm6, %v25369_v35  ;;  %17136 = vmatmul.mubr.msk.bf16.gmra.mrb[24].mxu0 %vm1244_vm6, %v25370_v53 }
 0x792   : > { %16323 = vmatprep.mubr.msk.bf16.mxu1 %vm1244_vm6, %v25371_v50  ;;  %17139 = vmatprep.mubr.msk.bf16.mxu0 %vm1244_vm6, %v25372_v32 }
 0x799   : > { %16324 = vmatmul.mubr.msk.bf16.gmra.mrb[28].mxu1 %vm1244_vm6, %v25374_v23  ;;  %17140 = vmatmul.mubr.msk.bf16.gmra.mrb[28].mxu0 %vm1244_vm6, %v14556_v13 }
 0x814   : > { %v16263_v25 = vpop.f32.mrb[0].mxu1 }
 0x815   : > { %v7533_v60 = vpop.f32.mrb[1].mxu1 }
 0x816   : > { %v16264_v43 = vpop.f32.mrb[2].mxu1 }
 0x817   : > { %v7536_v59 = vpop.f32.mrb[3].mxu1 }
 0x81c   : > { %v16267_v28 = vpop.f32.mrb[4].mxu1 }
 0x81d   : > { %v7549_v10 = vpop.f32.mrb[5].mxu1 }
 0x81e   : > { %v16268_v54 = vpop.f32.mrb[6].mxu1 }
 0x81f   : > { %v7552_v62 = vpop.f32.mrb[7].mxu1 }
 0x824   : > { %v16271_v16 = vpop.f32.mrb[8].mxu1 }
 0x825   : > { %v7565_v61 = vpop.f32.mrb[9].mxu1 }
 0x826   : > { %v16272_v37 = vpop.f32.mrb[10].mxu1 }
 0x827   : > { %v7568_v26 = vpop.f32.mrb[11].mxu1 }
 0x82c   : > { %v23705_v56 = vpop.f32.mrb[12].mxu1 }
 0x82d   : > { %v23707_v33 = vpop.f32.mrb[13].mxu1 }
 0x82e   : > { %v23709_v15 = vpop.f32.mrb[14].mxu1 }
 0x82f   : > { %v23711_v5 = vpop.f32.mrb[15].mxu1 }
 0x834   : > { %v17113_v2 = vpop.f32.mrb[0].mxu0 }
 0x835   : > { %v17145_v58 = vadd.f32 %v17113_v2, %v16263_v25  ;;  %v12903_v34 = vpop.f32.mrb[1].mxu0 }
 0x836   : > { %v17146_v29 = vadd.f32 %v12903_v34, %v7533_v60  ;;  %v17114_v7 = vpop.f32.mrb[2].mxu0 }
 0x837   : > { %v13070_v41 = vadd.f32 %v17145_v58, %v23713_v55  ;;  %v17147_v40 = vadd.f32 %v17114_v7, %v16264_v43  ;;  %v12906_v52 = vpop.f32.mrb[3].mxu0 }
 0x838   : > { %v13068_v57 = vadd.f32 %v17146_v29, %v23713_v55  ;;  %v17148_v63 = vadd.f32 %v12906_v52, %v7536_v59 }
 0x839   : > { %v14613_v3 = vpack.c.bf16 %v13070_v41, %v13070_v41  ;;  %v13071_v20 = vadd.f32 %v17147_v40, %v23713_v55 }
 0x83a   : > { %v14611_v44 = vpack.c.bf16 %v13068_v57, %v13068_v57  ;;  %v13069_v47 = vadd.f32 %v17148_v63, %v23713_v55 }
 0x83b   : > { %13231 = vst.msk [vmem:[%s23720_s16 + $0x8] sm:$0xf] %vm13228_vm0, %v14613_v3  ;;  %v14614_v6 = vpack.c.bf16 %v13071_v20, %v13071_v20 }
 0x83c   : > { %13229 = vst.msk [vmem:[%s23720_s16] sm:$0xf] %vm13228_vm0, %v14611_v44  ;;  %v14612_v17 = vpack.c.bf16 %v13069_v47, %v13069_v47  ;;  %v17117_v42 = vpop.f32.mrb[4].mxu0 }
 0x83d   : > { %13232 = vst.msk [vmem:[%s23720_s16 + $0xc] sm:$0xf] %vm13228_vm0, %v14614_v6  ;;  %v17149_v49 = vadd.f32 %v17117_v42, %v16267_v28  ;;  %v12919_v27 = vpop.f32.mrb[5].mxu0 }
 0x83e   : > { %13230 = vst.msk [vmem:[%s23720_s16 + $0x4] sm:$0xf] %vm13228_vm0, %v14612_v17  ;;  %v17150_v51 = vadd.f32 %v12919_v27, %v7549_v10  ;;  %v17118_v0 = vpop.f32.mrb[6].mxu0 }
 0x83f   : > { %v13074_v4 = vadd.f32 %v17149_v49, %v23713_v55  ;;  %v17151_v11 = vadd.f32 %v17118_v0, %v16268_v54  ;;  %v12922_v22 = vpop.f32.mrb[7].mxu0 }
 0x840   : > { %v13072_v14 = vadd.f32 %v17150_v51, %v23713_v55  ;;  %v17152_v30 = vadd.f32 %v12922_v22, %v7552_v62 }
 0x841   : > { %v14617_v31 = vpack.c.bf16 %v13074_v4, %v13074_v4  ;;  %v13075_v8 = vadd.f32 %v17151_v11, %v23713_v55 }
 0x842   : > { %v14615_v39 = vpack.c.bf16 %v13072_v14, %v13072_v14  ;;  %v13073_v45 = vadd.f32 %v17152_v30, %v23713_v55 }
 0x843   : > { %13235 = vst.msk [vmem:[%s23720_s16 + $0x18] sm:$0xf] %vm13228_vm0, %v14617_v31  ;;  %v14618_v9 = vpack.c.bf16 %v13075_v8, %v13075_v8 }
 0x844   : > { %13233 = vst.msk [vmem:[%s23720_s16 + $0x10] sm:$0xf] %vm13228_vm0, %v14615_v39  ;;  %v14616_v21 = vpack.c.bf16 %v13073_v45, %v13073_v45  ;;  %v17121_v46 = vpop.f32.mrb[8].mxu0 }
 0x845   : > { %13236 = vst.msk [vmem:[%s23720_s16 + $0x1c] sm:$0xf] %vm13228_vm0, %v14618_v9  ;;  %v17153_v12 = vadd.f32 %v17121_v46, %v16271_v16  ;;  %v12935_v19 = vpop.f32.mrb[9].mxu0 }
 0x846   : > { %13234 = vst.msk [vmem:[%s23720_s16 + $0x14] sm:$0xf] %vm13228_vm0, %v14616_v21  ;;  %v17154_v24 = vadd.f32 %v12935_v19, %v7565_v61  ;;  %v17122_v18 = vpop.f32.mrb[10].mxu0 }
 0x847   : > { %v13078_v1 = vadd.f32 %v17153_v12, %v23713_v55  ;;  %v17155_v35 = vadd.f32 %v17122_v18, %v16272_v37  ;;  %v12938_v53 = vpop.f32.mrb[11].mxu0 }
 0x848   : > { %v13076_v50 = vadd.f32 %v17154_v24, %v23713_v55  ;;  %v17156_v32 = vadd.f32 %v12938_v53, %v7568_v26 }
 0x849   : > { %v14621_v48 = vpack.c.bf16 %v13078_v1, %v13078_v1  ;;  %v13079_v38 = vadd.f32 %v17155_v35, %v23713_v55 }
 0x84a   : > { %v14619_v36 = vpack.c.bf16 %v13076_v50, %v13076_v50  ;;  %v13077_v13 = vadd.f32 %v17156_v32, %v23713_v55 }
 0x84b   : > { %13239 = vst.msk [vmem:[%s23720_s16 + $0x28] sm:$0xf] %vm13228_vm0, %v14621_v48  ;;  %v14622_v23 = vpack.c.bf16 %v13079_v38, %v13079_v38 }
 0x84c   : > { %13237 = vst.msk [vmem:[%s23720_s16 + $0x20] sm:$0xf] %vm13228_vm0, %v14619_v36  ;;  %v14620_v25 = vpack.c.bf16 %v13077_v13, %v13077_v13  ;;  %v17125_v60 = vpop.f32.mrb[12].mxu0 }
 0x84d   : > { %13240 = vst.msk [vmem:[%s23720_s16 + $0x2c] sm:$0xf] %vm13228_vm0, %v14622_v23  ;;  %v17157_v43 = vadd.f32 %v17125_v60, %v23705_v56  ;;  %v12951_v59 = vpop.f32.mrb[13].mxu0 }
 0x84e   : > { %13238 = vst.msk [vmem:[%s23720_s16 + $0x24] sm:$0xf] %vm13228_vm0, %v14620_v25  ;;  %v17158_v28 = vadd.f32 %v12951_v59, %v23707_v33  ;;  %v17126_v10 = vpop.f32.mrb[14].mxu0 }
 0x84f   : > { %v13082_v54 = vadd.f32 %v17157_v43, %v23713_v55  ;;  %v17159_v62 = vadd.f32 %v17126_v10, %v23709_v15  ;;  %v12954_v16 = vpop.f32.mrb[15].mxu0 }
 0x850   : > { %v13080_v61 = vadd.f32 %v17158_v28, %v23713_v55  ;;  %v17160_v37 = vadd.f32 %v12954_v16, %v23711_v5 }
 0x851   : > { %v14625_v26 = vpack.c.bf16 %v13082_v54, %v13082_v54  ;;  %v13083_v56 = vadd.f32 %v17159_v62, %v23713_v55 }
 0x852   : > { %v14623_v2 = vpack.c.bf16 %v13080_v61, %v13080_v61  ;;  %v13081_v58 = vadd.f32 %v17160_v37, %v23713_v55 }
 0x853   : > { %13243 = vst.msk [vmem:[%s23720_s16 + $0x38] sm:$0xf] %vm13228_vm0, %v14625_v26  ;;  %v14626_v33 = vpack.c.bf16 %v13083_v56, %v13083_v56 }
 0x854   : > { %13241 = vst.msk [vmem:[%s23720_s16 + $0x30] sm:$0xf] %vm13228_vm0, %v14623_v2  ;;  %v14624_v34 = vpack.c.bf16 %v13081_v58, %v13081_v58  ;;  %v16313_v29 = vpop.f32.mrb[16].mxu1  ;;  %v17129_v15 = vpop.f32.mrb[16].mxu0 }
 0x855   : > { %13244 = vst.msk [vmem:[%s23720_s16 + $0x3c] sm:$0xf] %vm13228_vm0, %v14626_v33  ;;  %v17161_v7 = vadd.f32 %v17129_v15, %v16313_v29  ;;  %v7816_v41 = vpop.f32.mrb[17].mxu1  ;;  %v12967_v5 = vpop.f32.mrb[17].mxu0 }
 0x856   : > { %13242 = vst.msk [vmem:[%s23720_s16 + $0x34] sm:$0xf] %vm13228_vm0, %v14624_v34  ;;  %v17162_v40 = vadd.f32 %v12967_v5, %v7816_v41  ;;  %v16314_v52 = vpop.f32.mrb[18].mxu1  ;;  %v17130_v57 = vpop.f32.mrb[18].mxu0 }
 0x857   : > { %v13086_v63 = vadd.f32 %v17161_v7, %v23713_v55  ;;  %v17163_v3 = vadd.f32 %v17130_v57, %v16314_v52  ;;  %v7819_v20 = vpop.f32.mrb[19].mxu1  ;;  %v12970_v44 = vpop.f32.mrb[19].mxu0 }
 0x858   : > { %v13084_v47 = vadd.f32 %v17162_v40, %v23713_v55  ;;  %v17164_v6 = vadd.f32 %v12970_v44, %v7819_v20 }
 0x859   : > { %v14629_v17 = vpack.c.bf16 %v13086_v63, %v13086_v63  ;;  %v13087_v42 = vadd.f32 %v17163_v3, %v23713_v55 }
 0x85a   : > { %v14627_v49 = vpack.c.bf16 %v13084_v47, %v13084_v47  ;;  %v13085_v27 = vadd.f32 %v17164_v6, %v23713_v55 }
 0x85b   : > { %13247 = vst.msk [vmem:[%s23720_s16 + $0x48] sm:$0xf] %vm13228_vm0, %v14629_v17  ;;  %v14630_v51 = vpack.c.bf16 %v13087_v42, %v13087_v42 }
 0x85c   : > { %13245 = vst.msk [vmem:[%s23720_s16 + $0x40] sm:$0xf] %vm13228_vm0, %v14627_v49  ;;  %v14628_v0 = vpack.c.bf16 %v13085_v27, %v13085_v27  ;;  %v16317_v4 = vpop.f32.mrb[20].mxu1  ;;  %v17133_v11 = vpop.f32.mrb[20].mxu0 }
 0x85d   : > { %13248 = vst.msk [vmem:[%s23720_s16 + $0x4c] sm:$0xf] %vm13228_vm0, %v14630_v51  ;;  %v17165_v22 = vadd.f32 %v17133_v11, %v16317_v4  ;;  %v7832_v14 = vpop.f32.mrb[21].mxu1  ;;  %v12983_v30 = vpop.f32.mrb[21].mxu0 }
 0x85e   : > { %13246 = vst.msk [vmem:[%s23720_s16 + $0x44] sm:$0xf] %vm13228_vm0, %v14628_v0  ;;  %v17166_v31 = vadd.f32 %v12983_v30, %v7832_v14  ;;  %v16318_v8 = vpop.f32.mrb[22].mxu1  ;;  %v17134_v39 = vpop.f32.mrb[22].mxu0 }
 0x85f   : > { %v13090_v45 = vadd.f32 %v17165_v22, %v23713_v55  ;;  %v17167_v9 = vadd.f32 %v17134_v39, %v16318_v8  ;;  %v7835_v21 = vpop.f32.mrb[23].mxu1  ;;  %v12986_v46 = vpop.f32.mrb[23].mxu0 }
 0x860   : > { %v13088_v12 = vadd.f32 %v17166_v31, %v23713_v55  ;;  %v17168_v19 = vadd.f32 %v12986_v46, %v7835_v21 }
 0x861   : > { %v14633_v24 = vpack.c.bf16 %v13090_v45, %v13090_v45  ;;  %v13091_v18 = vadd.f32 %v17167_v9, %v23713_v55 }
 0x862   : > { %v14631_v1 = vpack.c.bf16 %v13088_v12, %v13088_v12  ;;  %v13089_v35 = vadd.f32 %v17168_v19, %v23713_v55 }
 0x863   : > { %13251 = vst.msk [vmem:[%s23720_s16 + $0x58] sm:$0xf] %vm13228_vm0, %v14633_v24  ;;  %v14634_v53 = vpack.c.bf16 %v13091_v18, %v13091_v18 }
 0x864   : > { %13249 = vst.msk [vmem:[%s23720_s16 + $0x50] sm:$0xf] %vm13228_vm0, %v14631_v1  ;;  %v14632_v50 = vpack.c.bf16 %v13089_v35, %v13089_v35  ;;  %v16321_v32 = vpop.f32.mrb[24].mxu1  ;;  %v17137_v48 = vpop.f32.mrb[24].mxu0 }
 0x865   : > { %13252 = vst.msk [vmem:[%s23720_s16 + $0x5c] sm:$0xf] %vm13228_vm0, %v14634_v53  ;;  %v17169_v38 = vadd.f32 %v17137_v48, %v16321_v32  ;;  %v7848_v36 = vpop.f32.mrb[25].mxu1  ;;  %v12999_v13 = vpop.f32.mrb[25].mxu0 }
 0x866   : > { %13250 = vst.msk [vmem:[%s23720_s16 + $0x54] sm:$0xf] %vm13228_vm0, %v14632_v50  ;;  %v17170_v23 = vadd.f32 %v12999_v13, %v7848_v36  ;;  %v16322_v25 = vpop.f32.mrb[26].mxu1  ;;  %v17138_v60 = vpop.f32.mrb[26].mxu0 }
 0x867   : > { %v13094_v43 = vadd.f32 %v17169_v38, %v23713_v55  ;;  %v17171_v59 = vadd.f32 %v17138_v60, %v16322_v25  ;;  %v7851_v28 = vpop.f32.mrb[27].mxu1  ;;  %v13002_v10 = vpop.f32.mrb[27].mxu0 }
 0x868   : > { %v13092_v54 = vadd.f32 %v17170_v23, %v23713_v55  ;;  %v17172_v62 = vadd.f32 %v13002_v10, %v7851_v28 }
 0x869   : > { %v14637_v16 = vpack.c.bf16 %v13094_v43, %v13094_v43  ;;  %v13095_v61 = vadd.f32 %v17171_v59, %v23713_v55 }
 0x86a   : > { %v14635_v37 = vpack.c.bf16 %v13092_v54, %v13092_v54  ;;  %v13093_v26 = vadd.f32 %v17172_v62, %v23713_v55 }
 0x86b   : > { %13255 = vst.msk [vmem:[%s23720_s16 + $0x68] sm:$0xf] %vm13228_vm0, %v14637_v16  ;;  %v14638_v56 = vpack.c.bf16 %v13095_v61, %v13095_v61 }
 0x86c   : > { %13253 = vst.msk [vmem:[%s23720_s16 + $0x60] sm:$0xf] %vm13228_vm0, %v14635_v37  ;;  %v14636_v2 = vpack.c.bf16 %v13093_v26, %v13093_v26  ;;  %v16325_v58 = vpop.f32.mrb[28].mxu1  ;;  %v17141_v33 = vpop.f32.mrb[28].mxu0 }
 0x86d   : > { %13256 = vst.msk [vmem:[%s23720_s16 + $0x6c] sm:$0xf] %vm13228_vm0, %v14638_v56  ;;  %v17173_v34 = vadd.f32 %v17141_v33, %v16325_v58  ;;  %v7864_v29 = vpop.f32.mrb[29].mxu1  ;;  %v13015_v15 = vpop.f32.mrb[29].mxu0 }
 0x86e   : > { %13254 = vst.msk [vmem:[%s23720_s16 + $0x64] sm:$0xf] %vm13228_vm0, %v14636_v2  ;;  %v17174_v7 = vadd.f32 %v13015_v15, %v7864_v29  ;;  %v16326_v41 = vpop.f32.mrb[30].mxu1  ;;  %v17142_v5 = vpop.f32.mrb[30].mxu0 }
 0x86f   : > { %v13098_v40 = vadd.f32 %v17173_v34, %v23713_v55  ;;  %v17175_v52 = vadd.f32 %v17142_v5, %v16326_v41  ;;  %v7867_v57 = vpop.f32.mrb[31].mxu1  ;;  %v13018_v63 = vpop.f32.mrb[31].mxu0 }
 0x870   : > { %v13096_v3 = vadd.f32 %v17174_v7, %v23713_v55  ;;  %v17176_v20 = vadd.f32 %v13018_v63, %v7867_v57 }
 0x871   : > { %v14641_v44 = vpack.c.bf16 %v13098_v40, %v13098_v40  ;;  %v13099_v47 = vadd.f32 %v17175_v52, %v23713_v55 }
 0x872   : > { %v14639_v6 = vpack.c.bf16 %v13096_v3, %v13096_v3  ;;  %v13097_v17 = vadd.f32 %v17176_v20, %v23713_v55 }
 0x873   : > { %13259 = vst.msk [vmem:[%s23720_s16 + $0x78] sm:$0xf] %vm13228_vm0, %v14641_v44  ;;  %v14642_v42 = vpack.c.bf16 %v13099_v47, %v13099_v47 }
 0x874   : > { %13257 = vst.msk [vmem:[%s23720_s16 + $0x70] sm:$0xf] %vm13228_vm0, %v14639_v6  ;;  %v14640_v49 = vpack.c.bf16 %v13097_v17, %v13097_v17 }
 0x875   : > { %13260 = vst.msk [vmem:[%s23720_s16 + $0x7c] sm:$0xf] %vm13228_vm0, %v14642_v42 }
 0x876   : > { %13258 = vst.msk [vmem:[%s23720_s16 + $0x74] sm:$0xf] %vm13228_vm0, %v14640_v49 }
 0x877   : > { %19184 = shalt.err (!%p19181_p7)
}
 0x878   : > { %s19185_s5 = scalar_lea.hbm %s23817_s26, 2048  ;;  %s19189_s11 = scalar_lea.hbm %s25378_s18, 4096 }
 0x879   : > { %p19186_p1 = scmp.ne.s32.totalorder %s23817_s26, %s19185_s5  ;;  %p19190_p10 = scmp.lt.u32.totalorder %s23817_s26, %s25378_s18 }
 0x87a   : > { %p19191_p9 = scmp.lt.u32.totalorder %s19189_s11, %s19185_s5  ;;  %p19193_p4 = scmp.lt.u32.totalorder %s19185_s5, %s23817_s26 }
 0x87b   : > { %p19187_p0 = pnand %p19186_p1, %p25379_p12 }
 0x87c   : > { %p19192_p3 = por %p19191_p9, %p19190_p10 }
 0x87d   : > { %p19188_p8 = pneg %p19187_p0 }
 0x87e   : > { %p19194_p11 = por %p19193_p4, %p19192_p3 }
 0x880   : > { %p19195_p6 = pnand %p19194_p11, %p19188_p8 }
 0x882   : > { %19198 = shalt.err (!%p19195_p6)
}
 0x883   : > { %s19286_s15 = smov 64   ;;  %s19287_s16 = smov 4  }
 0x884   : > { %18713 = dma.vmem_to_hbm [thread:$0]  (%p25379_p12), %s23819_s12, 2048, %s23817_s26, %s13262_s25, %s19286_s15, %s19286_s15, %s19287_s16  }
 0x885 PF: > { %s25380_s20 = sld [smem:[#allocation24_spill]]  ;;  %s25381_s3 = sld [smem:[#allocation33_spill]] }
 0x886   : > { %p25383_p2 = scmp.ge.s32.totalorder %s19269_s14, 2 }
 0x88b   : > { %s13294_s27 = sand.u32 1, %s25380_s20   ;;  %p25382_p5 = scmp.ne.s32.totalorder %s25381_s3, 0 }
 0x88c   : > { %s13295_s23 = scalar_lea.sflag [#allocation4], %s13294_s27 }
 0x88d   : > { %p18745_p13 = pnand %p25383_p2, %p25382_p5 }
 0x88f   : > { %19244 = dma.done.wait (!%p18745_p13), %s13295_s23, 2048  }
 0x890   : > { %19246 = vsyncadd (!%p18745_p13), %s13295_s23, 4294965248  ;;  %s35_s14 = sadd.s32 1, %s19269_s14   ;;  %s25384_s21 = sld [smem:[#allocation25_spill]] }
 0x891   : > { %p32_p7 = scmp.ge.s32.totalorder %s35_s14, 4   ;;  %s25385_s11 = sld [smem:[#allocation32_spill]] }
 0x892   : > { %s25386_s12 = sld [smem:[#allocation27_spill]]  ;;  %s25387_s13 = sld [smem:[#allocation29_spill]] }
 0x893   : > { %s25388_s30 = smov %s19253_s10  ;;  %34 = sbr.rel (!%p32_p7) target bundleno = 18 (0x12), region = 231 }
 0x896   : > { %s25389_s10 = smov %s25384_s21 }
 0x89a   :  { %13300 = vsyncpa [#allocation3], 1 }
 0x89b   :  { %13302 = vsyncpa [#allocation3 + $0x1], 1 }
 0x89c   :  { %13303 = vsyncpa [#allocation6], 1 }
 0x89d   :  { %13305 = vsyncpa [#allocation6 + $0x1], 1 }
 0x89e   :  { %13306 = vsyncpa [#allocation9], 1 }
 0x89f   :  { %13308 = vsyncpa [#allocation9 + $0x1], 1 }
 0x8a0   :  { %13309 = vsyncpa [#allocation12], 1 }
 0x8a1   :  { %13311 = vsyncpa [#allocation12 + $0x1], 1 }
 0x8a2   :  { %13312 = vsyncpa [#allocation15], 1 }
 0x8a3   :  { %13313 = vsyncpa [#allocation4], 1 }
 0x8a4   :  { %13315 = vsyncpa [#allocation4 + $0x1], 1 }

</bundles_post_ra>
